<compile_context>
chip_gen: v7x
topology: tpu7x:2x2x1
jax: 0.10.0
libtpu: 0.0.40
codegen_flags: <defaults>
</compile_context>

<pallas_src>
import functools

import jax
import jax.numpy as jnp
from jax.experimental import pallas as pl
from jax.experimental.pallas import tpu as pltpu


def _parallel_slices_kernel(idx_ref, x_ref, sf_ref, sc_ref, o_ref, *, n, width):
    """One grid step: TB batch rows (on sublanes) -> one (TB, n*W) output tile.

    idx_ref : SMEM int32 (2, n)  [floor-channel, ceil-channel] per branch
    x_ref   : VMEM (C, TB, Lp)   batch on sublanes, time on lanes
    sf_ref  : VMEM (n, Lp, W)    (1 - wc_i) * two-hot time gather/lerp matrix
    sc_ref  : VMEM (n, Lp, W)    wc_i       * two-hot time gather/lerp matrix
    o_ref   : VMEM (TB, n*W)     lane-dense concat of the n branch outputs
    """
    outs = []
    for i in range(n):                      # static unroll; n is small
        fc = idx_ref[0, i]                  # floor channel index (dynamic scalar)
        cc = idx_ref[1, i]                  # ceil  channel index (already clamped)

        # Two dynamic channel rows, full (TB, Lp) vreg tiles.
        vf = x_ref[pl.ds(fc, 1), :, :][0]   # (TB, Lp)
        vc = x_ref[pl.ds(cc, 1), :, :][0]   # (TB, Lp)

        # Channel lerp + time lerp + window gather, all as MXU matmuls against
        # the precomputed weighted two-hot matrices (MXU is otherwise idle).
        w = jnp.dot(vf, sf_ref[i], preferred_element_type=jnp.float32,
                    precision=jax.lax.Precision.HIGHEST)
        w = w + jnp.dot(vc, sc_ref[i], preferred_element_type=jnp.float32,
                        precision=jax.lax.Precision.HIGHEST)   # (TB, W)
        outs.append(w)

    # Parallel's torch.cat(dim=-1): one unmasked, lane-dense store per step.
    o_ref[...] = jnp.concatenate(outs, axis=-1).astype(o_ref.dtype)


@functools.partial(jax.jit, static_argnames=("width",))
def parallel_extract_learnable_slices(x, channel_params, offset_params, *, width):
    """Parallel(n learnable-slice extractors)(x): (B, C, L) -> (B, n*width)."""
    B, C, L = x.shape
    n = channel_params.shape[0]
    W = int(width)

    # ------------- parameter-only math, hoisted out of the kernel -------------
    # Channel interpolation: dynamic channel indices + lerp weight per branch.
    dc = jax.nn.sigmoid(channel_params.astype(jnp.float32)) * (C - 1)     # (n,)
    fc = jnp.floor(dc)
    cc = jnp.minimum(fc + 1.0, float(C - 1))
    wc = dc - fc                                                          # (n,)
    idx = jnp.stack([fc, cc]).astype(jnp.int32)                           # (2, n)

    # Time interpolation + window gather as a two-hot selection matrix per
    # branch, built to mirror the reference exactly (per-column floor/frac and
    # pc clamped to L-1, so there is no wrap into padding).
    t0 = jax.nn.sigmoid(offset_params.astype(jnp.float32)) * (L - W)      # (n,)
    pos = t0[:, None] + jnp.arange(W, dtype=jnp.float32)[None, :]         # (n, W)
    pf = jnp.floor(pos).astype(jnp.int32)
    wt = pos - pf.astype(jnp.float32)
    pc = jnp.minimum(pf + 1, L - 1)

    Lp = max(((L + 127) // 128) * 128, 128)          # lane-pad contraction dim
    lane = jnp.arange(Lp, dtype=jnp.int32)
    oh_f = (lane[None, :, None] == pf[:, None, :]).astype(jnp.float32)    # (n, Lp, W)
    oh_c = (lane[None, :, None] == pc[:, None, :]).astype(jnp.float32)
    s_two_hot = oh_f * (1.0 - wt)[:, None, :] + oh_c * wt[:, None, :]     # (n, Lp, W)
    # Fold the channel lerp weight in by linearity (removes f32 scalars and
    # per-branch VALU lerp from the kernel).
    s_f = (1.0 - wc)[:, None, None] * s_two_hot
    s_c = wc[:, None, None] * s_two_hot

    # ------------------- layout: batch on vreg sublanes -----------------------
    TB = 8                                            # f32 sublane count
    B_pad = ((B + TB - 1) // TB) * TB
    while TB * 2 <= min(B_pad, 64) and B_pad % (TB * 2) == 0:
        TB *= 2                                       # amortize ~0.35us/step overhead
    x_t = jnp.transpose(x, (1, 0, 2))                 # (C, B, L)
    if B_pad != B or Lp != L:
        x_t = jnp.pad(x_t, ((0, 0), (0, B_pad - B), (0, Lp - L)))
    grid = (B_pad // TB,)

    # VMEM budget derived from the actual (double-buffered) block bytes; stays
    # below v5e's 16 MiB default and far below v7x's 64 MiB physical VMEM.
    itemsize = 4
    block_bytes = (C * TB * Lp + TB * n * W + 2 * n * Lp * W) * itemsize
    vmem_limit = int(max(4 * block_bytes, 4 * 1024 * 1024))

    kernel = functools.partial(_parallel_slices_kernel, n=n, width=W)

    out = pl.pallas_call(
        kernel,
        out_shape=jax.ShapeDtypeStruct((B_pad, n * W), x.dtype),
        grid_spec=pltpu.PrefetchScalarGridSpec(
            num_scalar_prefetch=1,                    # idx -> SMEM
            grid=grid,
            in_specs=[
                # one sublane-packed batch tile of x per grid step
                pl.BlockSpec((C, TB, Lp), lambda g, idx_r: (0, g, 0)),
                # weighted two-hot matrices: same block every step -> resident
                pl.BlockSpec((n, Lp, W), lambda g, idx_r: (0, 0, 0)),
                pl.BlockSpec((n, Lp, W), lambda g, idx_r: (0, 0, 0)),
            ],
            # lane-dense (TB, n*W) output block: one unmasked store per step
            out_specs=pl.BlockSpec((TB, n * W), lambda g, idx_r: (g, 0)),
        ),
        compiler_params=pltpu.CompilerParams(
            dimension_semantics=("parallel",),        # megacore / v7x 2-TC sharding
            vmem_limit_bytes=vmem_limit,
        ),
    )(idx, x_t, s_f, s_c)

    return out[:B]                                    # (B, n*width)


def reference(x, channel_params, offset_params, width):
    """Pure-JAX transcription of the PyTorch forward (for verification)."""
    B, C, L = x.shape
    n = channel_params.shape[0]
    dc = jax.nn.sigmoid(channel_params) * (C - 1)
    fc = jnp.floor(dc).astype(jnp.int32)
    cc = jnp.minimum(fc + 1, C - 1)
    wc = (dc - fc.astype(jnp.float32))[None, :, None]
    x_f = x[:, fc, :]
    x_c = x[:, cc, :]
    x_ch = x_f + wc * (x_c - x_f)                     # torch.lerp along C
    t0 = jax.nn.sigmoid(offset_params) * (L - width)
    j = jnp.arange(width, dtype=x.dtype)
    pos = t0[:, None] + j[None, :]
    pf = jnp.floor(pos).astype(jnp.int32)
    wt = (pos - pf.astype(jnp.float32))[None]
    pc = jnp.minimum(pf + 1, L - 1)
    pf_e = jnp.broadcast_to(pf[None], (B, n, width))
    pc_e = jnp.broadcast_to(pc[None], (B, n, width))
    x_ft = jnp.take_along_axis(x_ch, pf_e, axis=2)
    x_ct = jnp.take_along_axis(x_ch, pc_e, axis=2)
    out = x_ft + wt * (x_ct - x_ft)                   # torch.lerp along L
    # Parallel: concat the n branch outputs along the last dim.
    return out.reshape(B, n * width)


if __name__ == "__main__":
    # Small shapes consistent with the module: x (B, C, L), per-branch params (n,)
    B, C, L = 4, 4, 128
    n, width = 8, 64

    key = jax.random.PRNGKey(0)
    kx, kc, ko = jax.random.split(key, 3)
    x = jax.random.normal(kx, (B, C, L), dtype=jnp.float32)
    channel_params = jax.random.uniform(kc, (n,), dtype=jnp.float32)   # torch.rand
    offset_params = jax.random.uniform(ko, (n,), dtype=jnp.float32)    # torch.rand

    out = parallel_extract_learnable_slices(x, channel_params, offset_params, width=width)
    out = jax.block_until_ready(out)

    ref = jax.block_until_ready(reference(x, channel_params, offset_params, width))
    assert out.shape == (B, n * width), out.shape
    # Tolerance leaves headroom for MXU f32 pass reassociation vs the pure-JAX
    # gather reference; with Precision.HIGHEST errors are ~1e-6 in practice.
    assert jnp.allclose(out, ref, atol=1e-3, rtol=1e-3), float(jnp.max(jnp.abs(out - ref)))
    print("KERNEL_OK")
</pallas_src>

<mosaic_0001>
module attributes {stable_mosaic.version = 11 : i64} {
  func.func @_parallel_slices_kernel(%arg0: i32, %arg1: memref<2x8xi32, #tpu.memory_space<smem>>, %arg2: memref<4x8x128xf32, #tpu.memory_space<vmem>>, %arg3: memref<8x128x64xf32, #tpu.memory_space<vmem>>, %arg4: memref<8x128x64xf32, #tpu.memory_space<vmem>>, %arg5: memref<8x512xf32, #tpu.memory_space<vmem>>) attributes {dimension_semantics = [#tpu.dimension_semantics<parallel>], iteration_bounds = array<i64: 1>, scalar_prefetch = 1 : i64, scratch_operands = 0 : i64, tpu.core_type = #tpu.core_type<tc>, window_params = [{transform_indices = @transform_0, window_bounds = array<i64: 4, 8, 128>}, {pipeline_mode = #tpu.pipeline_mode<synchronous>, transform_indices = @transform_1, window_bounds = array<i64: 8, 128, 64>}, {pipeline_mode = #tpu.pipeline_mode<synchronous>, transform_indices = @transform_2, window_bounds = array<i64: 8, 128, 64>}, {transform_indices = @transform_3, window_bounds = array<i64: 8, 512>}]} {
    %c0 = arith.constant 0 : index
    %c0_0 = arith.constant 0 : index
    %0 = memref.load %arg1[%c0, %c0_0] : memref<2x8xi32, #tpu.memory_space<smem>>
    %c1 = arith.constant 1 : index
    %c0_1 = arith.constant 0 : index
    %1 = memref.load %arg1[%c1, %c0_1] : memref<2x8xi32, #tpu.memory_space<smem>>
    %2 = arith.index_cast %0 : i32 to index
    %c0_2 = arith.constant 0 : index
    %c0_3 = arith.constant 0 : index
    %3 = vector.load %arg2[%2, %c0_2, %c0_3] : memref<4x8x128xf32, #tpu.memory_space<vmem>>, vector<1x8x128xf32>
    %4 = vector.shape_cast %3 : vector<1x8x128xf32> to vector<8x128xf32>
    %5 = arith.index_cast %1 : i32 to index
    %c0_4 = arith.constant 0 : index
    %c0_5 = arith.constant 0 : index
    %6 = vector.load %arg2[%5, %c0_4, %c0_5] : memref<4x8x128xf32, #tpu.memory_space<vmem>>, vector<1x8x128xf32>
    %7 = vector.shape_cast %6 : vector<1x8x128xf32> to vector<8x128xf32>
    %c0_6 = arith.constant 0 : index
    %c0_7 = arith.constant 0 : index
    %c0_8 = arith.constant 0 : index
    %8 = vector.load %arg3[%c0_6, %c0_7, %c0_8] : memref<8x128x64xf32, #tpu.memory_space<vmem>>, vector<1x128x64xf32>
    %9 = vector.shape_cast %8 : vector<1x128x64xf32> to vector<128x64xf32>
    %cst = arith.constant dense<0.000000e+00> : vector<8x64xf32>
    %10 = tpu.matmul %4, %9, %cst {dimension_numbers = #tpu.dot_dimension_numbers<[1], [0], [0], [1], [0, 0, 1, 1], [], []>, precision = #tpu.contract_precision<fp32>} : vector<8x128xf32>, vector<128x64xf32>, vector<8x64xf32> -> vector<8x64xf32>
    %c0_9 = arith.constant 0 : index
    %c0_10 = arith.constant 0 : index
    %c0_11 = arith.constant 0 : index
    %11 = vector.load %arg4[%c0_9, %c0_10, %c0_11] : memref<8x128x64xf32, #tpu.memory_space<vmem>>, vector<1x128x64xf32>
    %12 = vector.shape_cast %11 : vector<1x128x64xf32> to vector<128x64xf32>
    %cst_12 = arith.constant dense<0.000000e+00> : vector<8x64xf32>
    %13 = tpu.matmul %7, %12, %cst_12 {dimension_numbers = #tpu.dot_dimension_numbers<[1], [0], [0], [1], [0, 0, 1, 1], [], []>, precision = #tpu.contract_precision<fp32>} : vector<8x128xf32>, vector<128x64xf32>, vector<8x64xf32> -> vector<8x64xf32>
    %14 = arith.addf %10, %13 : vector<8x64xf32>
    %c0_13 = arith.constant 0 : index
    %c1_14 = arith.constant 1 : index
    %15 = memref.load %arg1[%c0_13, %c1_14] : memref<2x8xi32, #tpu.memory_space<smem>>
    %c1_15 = arith.constant 1 : index
    %c1_16 = arith.constant 1 : index
    %16 = memref.load %arg1[%c1_15, %c1_16] : memref<2x8xi32, #tpu.memory_space<smem>>
    %17 = arith.index_cast %15 : i32 to index
    %c0_17 = arith.constant 0 : index
    %c0_18 = arith.constant 0 : index
    %18 = vector.load %arg2[%17, %c0_17, %c0_18] : memref<4x8x128xf32, #tpu.memory_space<vmem>>, vector<1x8x128xf32>
    %19 = vector.shape_cast %18 : vector<1x8x128xf32> to vector<8x128xf32>
    %20 = arith.index_cast %16 : i32 to index
    %c0_19 = arith.constant 0 : index
    %c0_20 = arith.constant 0 : index
    %21 = vector.load %arg2[%20, %c0_19, %c0_20] : memref<4x8x128xf32, #tpu.memory_space<vmem>>, vector<1x8x128xf32>
    %22 = vector.shape_cast %21 : vector<1x8x128xf32> to vector<8x128xf32>
    %c1_21 = arith.constant 1 : index
    %c0_22 = arith.constant 0 : index
    %c0_23 = arith.constant 0 : index
    %23 = vector.load %arg3[%c1_21, %c0_22, %c0_23] : memref<8x128x64xf32, #tpu.memory_space<vmem>>, vector<1x128x64xf32>
    %24 = vector.shape_cast %23 : vector<1x128x64xf32> to vector<128x64xf32>
    %cst_24 = arith.constant dense<0.000000e+00> : vector<8x64xf32>
    %25 = tpu.matmul %19, %24, %cst_24 {dimension_numbers = #tpu.dot_dimension_numbers<[1], [0], [0], [1], [0, 0, 1, 1], [], []>, precision = #tpu.contract_precision<fp32>} : vector<8x128xf32>, vector<128x64xf32>, vector<8x64xf32> -> vector<8x64xf32>
    %c1_25 = arith.constant 1 : index
    %c0_26 = arith.constant 0 : index
    %c0_27 = arith.constant 0 : index
    %26 = vector.load %arg4[%c1_25, %c0_26, %c0_27] : memref<8x128x64xf32, #tpu.memory_space<vmem>>, vector<1x128x64xf32>
    %27 = vector.shape_cast %26 : vector<1x128x64xf32> to vector<128x64xf32>
    %cst_28 = arith.constant dense<0.000000e+00> : vector<8x64xf32>
    %28 = tpu.matmul %22, %27, %cst_28 {dimension_numbers = #tpu.dot_dimension_numbers<[1], [0], [0], [1], [0, 0, 1, 1], [], []>, precision = #tpu.contract_precision<fp32>} : vector<8x128xf32>, vector<128x64xf32>, vector<8x64xf32> -> vector<8x64xf32>
    %29 = arith.addf %25, %28 : vector<8x64xf32>
    %c0_29 = arith.constant 0 : index
    %c2 = arith.constant 2 : index
    %30 = memref.load %arg1[%c0_29, %c2] : memref<2x8xi32, #tpu.memory_space<smem>>
    %c1_30 = arith.constant 1 : index
    %c2_31 = arith.constant 2 : index
    %31 = memref.load %arg1[%c1_30, %c2_31] : memref<2x8xi32, #tpu.memory_space<smem>>
    %32 = arith.index_cast %30 : i32 to index
    %c0_32 = arith.constant 0 : index
    %c0_33 = arith.constant 0 : index
    %33 = vector.load %arg2[%32, %c0_32, %c0_33] : memref<4x8x128xf32, #tpu.memory_space<vmem>>, vector<1x8x128xf32>
    %34 = vector.shape_cast %33 : vector<1x8x128xf32> to vector<8x128xf32>
    %35 = arith.index_cast %31 : i32 to index
    %c0_34 = arith.constant 0 : index
    %c0_35 = arith.constant 0 : index
    %36 = vector.load %arg2[%35, %c0_34, %c0_35] : memref<4x8x128xf32, #tpu.memory_space<vmem>>, vector<1x8x128xf32>
    %37 = vector.shape_cast %36 : vector<1x8x128xf32> to vector<8x128xf32>
    %c2_36 = arith.constant 2 : index
    %c0_37 = arith.constant 0 : index
    %c0_38 = arith.constant 0 : index
    %38 = vector.load %arg3[%c2_36, %c0_37, %c0_38] : memref<8x128x64xf32, #tpu.memory_space<vmem>>, vector<1x128x64xf32>
    %39 = vector.shape_cast %38 : vector<1x128x64xf32> to vector<128x64xf32>
    %cst_39 = arith.constant dense<0.000000e+00> : vector<8x64xf32>
    %40 = tpu.matmul %34, %39, %cst_39 {dimension_numbers = #tpu.dot_dimension_numbers<[1], [0], [0], [1], [0, 0, 1, 1], [], []>, precision = #tpu.contract_precision<fp32>} : vector<8x128xf32>, vector<128x64xf32>, vector<8x64xf32> -> vector<8x64xf32>
    %c2_40 = arith.constant 2 : index
    %c0_41 = arith.constant 0 : index
    %c0_42 = arith.constant 0 : index
    %41 = vector.load %arg4[%c2_40, %c0_41, %c0_42] : memref<8x128x64xf32, #tpu.memory_space<vmem>>, vector<1x128x64xf32>
    %42 = vector.shape_cast %41 : vector<1x128x64xf32> to vector<128x64xf32>
    %cst_43 = arith.constant dense<0.000000e+00> : vector<8x64xf32>
    %43 = tpu.matmul %37, %42, %cst_43 {dimension_numbers = #tpu.dot_dimension_numbers<[1], [0], [0], [1], [0, 0, 1, 1], [], []>, precision = #tpu.contract_precision<fp32>} : vector<8x128xf32>, vector<128x64xf32>, vector<8x64xf32> -> vector<8x64xf32>
    %44 = arith.addf %40, %43 : vector<8x64xf32>
    %c0_44 = arith.constant 0 : index
    %c3 = arith.constant 3 : index
    %45 = memref.load %arg1[%c0_44, %c3] : memref<2x8xi32, #tpu.memory_space<smem>>
    %c1_45 = arith.constant 1 : index
    %c3_46 = arith.constant 3 : index
    %46 = memref.load %arg1[%c1_45, %c3_46] : memref<2x8xi32, #tpu.memory_space<smem>>
    %47 = arith.index_cast %45 : i32 to index
    %c0_47 = arith.constant 0 : index
    %c0_48 = arith.constant 0 : index
    %48 = vector.load %arg2[%47, %c0_47, %c0_48] : memref<4x8x128xf32, #tpu.memory_space<vmem>>, vector<1x8x128xf32>
    %49 = vector.shape_cast %48 : vector<1x8x128xf32> to vector<8x128xf32>
    %50 = arith.index_cast %46 : i32 to index
    %c0_49 = arith.constant 0 : index
    %c0_50 = arith.constant 0 : index
    %51 = vector.load %arg2[%50, %c0_49, %c0_50] : memref<4x8x128xf32, #tpu.memory_space<vmem>>, vector<1x8x128xf32>
    %52 = vector.shape_cast %51 : vector<1x8x128xf32> to vector<8x128xf32>
    %c3_51 = arith.constant 3 : index
    %c0_52 = arith.constant 0 : index
    %c0_53 = arith.constant 0 : index
    %53 = vector.load %arg3[%c3_51, %c0_52, %c0_53] : memref<8x128x64xf32, #tpu.memory_space<vmem>>, vector<1x128x64xf32>
    %54 = vector.shape_cast %53 : vector<1x128x64xf32> to vector<128x64xf32>
    %cst_54 = arith.constant dense<0.000000e+00> : vector<8x64xf32>
    %55 = tpu.matmul %49, %54, %cst_54 {dimension_numbers = #tpu.dot_dimension_numbers<[1], [0], [0], [1], [0, 0, 1, 1], [], []>, precision = #tpu.contract_precision<fp32>} : vector<8x128xf32>, vector<128x64xf32>, vector<8x64xf32> -> vector<8x64xf32>
    %c3_55 = arith.constant 3 : index
    %c0_56 = arith.constant 0 : index
    %c0_57 = arith.constant 0 : index
    %56 = vector.load %arg4[%c3_55, %c0_56, %c0_57] : memref<8x128x64xf32, #tpu.memory_space<vmem>>, vector<1x128x64xf32>
    %57 = vector.shape_cast %56 : vector<1x128x64xf32> to vector<128x64xf32>
    %cst_58 = arith.constant dense<0.000000e+00> : vector<8x64xf32>
    %58 = tpu.matmul %52, %57, %cst_58 {dimension_numbers = #tpu.dot_dimension_numbers<[1], [0], [0], [1], [0, 0, 1, 1], [], []>, precision = #tpu.contract_precision<fp32>} : vector<8x128xf32>, vector<128x64xf32>, vector<8x64xf32> -> vector<8x64xf32>
    %59 = arith.addf %55, %58 : vector<8x64xf32>
    %c0_59 = arith.constant 0 : index
    %c4 = arith.constant 4 : index
    %60 = memref.load %arg1[%c0_59, %c4] : memref<2x8xi32, #tpu.memory_space<smem>>
    %c1_60 = arith.constant 1 : index
    %c4_61 = arith.constant 4 : index
    %61 = memref.load %arg1[%c1_60, %c4_61] : memref<2x8xi32, #tpu.memory_space<smem>>
    %62 = arith.index_cast %60 : i32 to index
    %c0_62 = arith.constant 0 : index
    %c0_63 = arith.constant 0 : index
    %63 = vector.load %arg2[%62, %c0_62, %c0_63] : memref<4x8x128xf32, #tpu.memory_space<vmem>>, vector<1x8x128xf32>
    %64 = vector.shape_cast %63 : vector<1x8x128xf32> to vector<8x128xf32>
    %65 = arith.index_cast %61 : i32 to index
    %c0_64 = arith.constant 0 : index
    %c0_65 = arith.constant 0 : index
    %66 = vector.load %arg2[%65, %c0_64, %c0_65] : memref<4x8x128xf32, #tpu.memory_space<vmem>>, vector<1x8x128xf32>
    %67 = vector.shape_cast %66 : vector<1x8x128xf32> to vector<8x128xf32>
    %c4_66 = arith.constant 4 : index
    %c0_67 = arith.constant 0 : index
    %c0_68 = arith.constant 0 : index
    %68 = vector.load %arg3[%c4_66, %c0_67, %c0_68] : memref<8x128x64xf32, #tpu.memory_space<vmem>>, vector<1x128x64xf32>
    %69 = vector.shape_cast %68 : vector<1x128x64xf32> to vector<128x64xf32>
    %cst_69 = arith.constant dense<0.000000e+00> : vector<8x64xf32>
    %70 = tpu.matmul %64, %69, %cst_69 {dimension_numbers = #tpu.dot_dimension_numbers<[1], [0], [0], [1], [0, 0, 1, 1], [], []>, precision = #tpu.contract_precision<fp32>} : vector<8x128xf32>, vector<128x64xf32>, vector<8x64xf32> -> vector<8x64xf32>
    %c4_70 = arith.constant 4 : index
    %c0_71 = arith.constant 0 : index
    %c0_72 = arith.constant 0 : index
    %71 = vector.load %arg4[%c4_70, %c0_71, %c0_72] : memref<8x128x64xf32, #tpu.memory_space<vmem>>, vector<1x128x64xf32>
    %72 = vector.shape_cast %71 : vector<1x128x64xf32> to vector<128x64xf32>
    %cst_73 = arith.constant dense<0.000000e+00> : vector<8x64xf32>
    %73 = tpu.matmul %67, %72, %cst_73 {dimension_numbers = #tpu.dot_dimension_numbers<[1], [0], [0], [1], [0, 0, 1, 1], [], []>, precision = #tpu.contract_precision<fp32>} : vector<8x128xf32>, vector<128x64xf32>, vector<8x64xf32> -> vector<8x64xf32>
    %74 = arith.addf %70, %73 : vector<8x64xf32>
    %c0_74 = arith.constant 0 : index
    %c5 = arith.constant 5 : index
    %75 = memref.load %arg1[%c0_74, %c5] : memref<2x8xi32, #tpu.memory_space<smem>>
    %c1_75 = arith.constant 1 : index
    %c5_76 = arith.constant 5 : index
    %76 = memref.load %arg1[%c1_75, %c5_76] : memref<2x8xi32, #tpu.memory_space<smem>>
    %77 = arith.index_cast %75 : i32 to index
    %c0_77 = arith.constant 0 : index
    %c0_78 = arith.constant 0 : index
    %78 = vector.load %arg2[%77, %c0_77, %c0_78] : memref<4x8x128xf32, #tpu.memory_space<vmem>>, vector<1x8x128xf32>
    %79 = vector.shape_cast %78 : vector<1x8x128xf32> to vector<8x128xf32>
    %80 = arith.index_cast %76 : i32 to index
    %c0_79 = arith.constant 0 : index
    %c0_80 = arith.constant 0 : index
    %81 = vector.load %arg2[%80, %c0_79, %c0_80] : memref<4x8x128xf32, #tpu.memory_space<vmem>>, vector<1x8x128xf32>
    %82 = vector.shape_cast %81 : vector<1x8x128xf32> to vector<8x128xf32>
    %c5_81 = arith.constant 5 : index
    %c0_82 = arith.constant 0 : index
    %c0_83 = arith.constant 0 : index
    %83 = vector.load %arg3[%c5_81, %c0_82, %c0_83] : memref<8x128x64xf32, #tpu.memory_space<vmem>>, vector<1x128x64xf32>
    %84 = vector.shape_cast %83 : vector<1x128x64xf32> to vector<128x64xf32>
    %cst_84 = arith.constant dense<0.000000e+00> : vector<8x64xf32>
    %85 = tpu.matmul %79, %84, %cst_84 {dimension_numbers = #tpu.dot_dimension_numbers<[1], [0], [0], [1], [0, 0, 1, 1], [], []>, precision = #tpu.contract_precision<fp32>} : vector<8x128xf32>, vector<128x64xf32>, vector<8x64xf32> -> vector<8x64xf32>
    %c5_85 = arith.constant 5 : index
    %c0_86 = arith.constant 0 : index
    %c0_87 = arith.constant 0 : index
    %86 = vector.load %arg4[%c5_85, %c0_86, %c0_87] : memref<8x128x64xf32, #tpu.memory_space<vmem>>, vector<1x128x64xf32>
    %87 = vector.shape_cast %86 : vector<1x128x64xf32> to vector<128x64xf32>
    %cst_88 = arith.constant dense<0.000000e+00> : vector<8x64xf32>
    %88 = tpu.matmul %82, %87, %cst_88 {dimension_numbers = #tpu.dot_dimension_numbers<[1], [0], [0], [1], [0, 0, 1, 1], [], []>, precision = #tpu.contract_precision<fp32>} : vector<8x128xf32>, vector<128x64xf32>, vector<8x64xf32> -> vector<8x64xf32>
    %89 = arith.addf %85, %88 : vector<8x64xf32>
    %c0_89 = arith.constant 0 : index
    %c6 = arith.constant 6 : index
    %90 = memref.load %arg1[%c0_89, %c6] : memref<2x8xi32, #tpu.memory_space<smem>>
    %c1_90 = arith.constant 1 : index
    %c6_91 = arith.constant 6 : index
    %91 = memref.load %arg1[%c1_90, %c6_91] : memref<2x8xi32, #tpu.memory_space<smem>>
    %92 = arith.index_cast %90 : i32 to index
    %c0_92 = arith.constant 0 : index
    %c0_93 = arith.constant 0 : index
    %93 = vector.load %arg2[%92, %c0_92, %c0_93] : memref<4x8x128xf32, #tpu.memory_space<vmem>>, vector<1x8x128xf32>
    %94 = vector.shape_cast %93 : vector<1x8x128xf32> to vector<8x128xf32>
    %95 = arith.index_cast %91 : i32 to index
    %c0_94 = arith.constant 0 : index
    %c0_95 = arith.constant 0 : index
    %96 = vector.load %arg2[%95, %c0_94, %c0_95] : memref<4x8x128xf32, #tpu.memory_space<vmem>>, vector<1x8x128xf32>
    %97 = vector.shape_cast %96 : vector<1x8x128xf32> to vector<8x128xf32>
    %c6_96 = arith.constant 6 : index
    %c0_97 = arith.constant 0 : index
    %c0_98 = arith.constant 0 : index
    %98 = vector.load %arg3[%c6_96, %c0_97, %c0_98] : memref<8x128x64xf32, #tpu.memory_space<vmem>>, vector<1x128x64xf32>
    %99 = vector.shape_cast %98 : vector<1x128x64xf32> to vector<128x64xf32>
    %cst_99 = arith.constant dense<0.000000e+00> : vector<8x64xf32>
    %100 = tpu.matmul %94, %99, %cst_99 {dimension_numbers = #tpu.dot_dimension_numbers<[1], [0], [0], [1], [0, 0, 1, 1], [], []>, precision = #tpu.contract_precision<fp32>} : vector<8x128xf32>, vector<128x64xf32>, vector<8x64xf32> -> vector<8x64xf32>
    %c6_100 = arith.constant 6 : index
    %c0_101 = arith.constant 0 : index
    %c0_102 = arith.constant 0 : index
    %101 = vector.load %arg4[%c6_100, %c0_101, %c0_102] : memref<8x128x64xf32, #tpu.memory_space<vmem>>, vector<1x128x64xf32>
    %102 = vector.shape_cast %101 : vector<1x128x64xf32> to vector<128x64xf32>
    %cst_103 = arith.constant dense<0.000000e+00> : vector<8x64xf32>
    %103 = tpu.matmul %97, %102, %cst_103 {dimension_numbers = #tpu.dot_dimension_numbers<[1], [0], [0], [1], [0, 0, 1, 1], [], []>, precision = #tpu.contract_precision<fp32>} : vector<8x128xf32>, vector<128x64xf32>, vector<8x64xf32> -> vector<8x64xf32>
    %104 = arith.addf %100, %103 : vector<8x64xf32>
    %c0_104 = arith.constant 0 : index
    %c7 = arith.constant 7 : index
    %105 = memref.load %arg1[%c0_104, %c7] : memref<2x8xi32, #tpu.memory_space<smem>>
    %c1_105 = arith.constant 1 : index
    %c7_106 = arith.constant 7 : index
    %106 = memref.load %arg1[%c1_105, %c7_106] : memref<2x8xi32, #tpu.memory_space<smem>>
    %107 = arith.index_cast %105 : i32 to index
    %c0_107 = arith.constant 0 : index
    %c0_108 = arith.constant 0 : index
    %108 = vector.load %arg2[%107, %c0_107, %c0_108] : memref<4x8x128xf32, #tpu.memory_space<vmem>>, vector<1x8x128xf32>
    %109 = vector.shape_cast %108 : vector<1x8x128xf32> to vector<8x128xf32>
    %110 = arith.index_cast %106 : i32 to index
    %c0_109 = arith.constant 0 : index
    %c0_110 = arith.constant 0 : index
    %111 = vector.load %arg2[%110, %c0_109, %c0_110] : memref<4x8x128xf32, #tpu.memory_space<vmem>>, vector<1x8x128xf32>
    %112 = vector.shape_cast %111 : vector<1x8x128xf32> to vector<8x128xf32>
    %c7_111 = arith.constant 7 : index
    %c0_112 = arith.constant 0 : index
    %c0_113 = arith.constant 0 : index
    %113 = vector.load %arg3[%c7_111, %c0_112, %c0_113] : memref<8x128x64xf32, #tpu.memory_space<vmem>>, vector<1x128x64xf32>
    %114 = vector.shape_cast %113 : vector<1x128x64xf32> to vector<128x64xf32>
    %cst_114 = arith.constant dense<0.000000e+00> : vector<8x64xf32>
    %115 = tpu.matmul %109, %114, %cst_114 {dimension_numbers = #tpu.dot_dimension_numbers<[1], [0], [0], [1], [0, 0, 1, 1], [], []>, precision = #tpu.contract_precision<fp32>} : vector<8x128xf32>, vector<128x64xf32>, vector<8x64xf32> -> vector<8x64xf32>
    %c7_115 = arith.constant 7 : index
    %c0_116 = arith.constant 0 : index
    %c0_117 = arith.constant 0 : index
    %116 = vector.load %arg4[%c7_115, %c0_116, %c0_117] : memref<8x128x64xf32, #tpu.memory_space<vmem>>, vector<1x128x64xf32>
    %117 = vector.shape_cast %116 : vector<1x128x64xf32> to vector<128x64xf32>
    %cst_118 = arith.constant dense<0.000000e+00> : vector<8x64xf32>
    %118 = tpu.matmul %112, %117, %cst_118 {dimension_numbers = #tpu.dot_dimension_numbers<[1], [0], [0], [1], [0, 0, 1, 1], [], []>, precision = #tpu.contract_precision<fp32>} : vector<8x128xf32>, vector<128x64xf32>, vector<8x64xf32> -> vector<8x64xf32>
    %119 = arith.addf %115, %118 : vector<8x64xf32>
    %120 = tpu.concatenate %14, %29, %44, %59, %74, %89, %104, %119 in 1 : vector<8x64xf32>, vector<8x64xf32>, vector<8x64xf32>, vector<8x64xf32>, vector<8x64xf32>, vector<8x64xf32>, vector<8x64xf32>, vector<8x64xf32> -> vector<8x512xf32>
    %c0_119 = arith.constant 0 : index
    %c0_120 = arith.constant 0 : index
    %121 = vector.load %arg5[%c0_119, %c0_120] : memref<8x512xf32, #tpu.memory_space<vmem>>, vector<8x512xf32>
    tpu.vector_store %arg5[%c0_119, %c0_120], %120 {strides = array<i32>} : memref<8x512xf32, #tpu.memory_space<vmem>>, vector<8x512xf32>,
    return
  }
  func.func @transform_0(%arg0: i32, %arg1: memref<2x8xi32, #tpu.memory_space<smem>>) -> (i32, i32, i32) {
    %c0_i32 = arith.constant 0 : i32
    %c0_i32_0 = arith.constant 0 : i32
    %c0_i32_1 = arith.constant 0 : i32
    return %c0_i32, %arg0, %c0_i32_0 : i32, i32, i32
  }
  func.func @transform_1(%arg0: i32, %arg1: memref<2x8xi32, #tpu.memory_space<smem>>) -> (i32, i32, i32) {
    %c0_i32 = arith.constant 0 : i32
    %c0_i32_0 = arith.constant 0 : i32
    %c0_i32_1 = arith.constant 0 : i32
    %c0_i32_2 = arith.constant 0 : i32
    return %c0_i32, %c0_i32_0, %c0_i32_1 : i32, i32, i32
  }
  func.func @transform_2(%arg0: i32, %arg1: memref<2x8xi32, #tpu.memory_space<smem>>) -> (i32, i32, i32) {
    %c0_i32 = arith.constant 0 : i32
    %c0_i32_0 = arith.constant 0 : i32
    %c0_i32_1 = arith.constant 0 : i32
    %c0_i32_2 = arith.constant 0 : i32
    return %c0_i32, %c0_i32_0, %c0_i32_1 : i32, i32, i32
  }
  func.func @transform_3(%arg0: i32, %arg1: memref<2x8xi32, #tpu.memory_space<smem>>) -> (i32, i32) {
    %c0_i32 = arith.constant 0 : i32
    %c0_i32_0 = arith.constant 0 : i32
    return %arg0, %c0_i32 : i32, i32
  }
}

</mosaic_0001>

<bundles_post_ra>
// kernel: parallel_extract_learnable_slices.1
= control target key start
LH: loop header
LB: loop body
LE: loop exit
PB: predicated region body
PF: predicated region fallthrough
CT: control target
= control target key end

     0   :  { %s23948_s0 = inlined_call_operand.vmem [shape: s32[2,8], index: 0, kind: input, shape index: {}]   ;;  %s23949_s1 = inlined_call_operand.vmem [shape: f32[4,8,128], index: 1, kind: input, shape index: {}]   ;;  %s23950_s2 = inlined_call_operand.vmem [shape: f32[8,128,64], index: 2, kind: input, shape index: {}]   ;;  %s23951_s3 = inlined_call_operand.vmem [shape: f32[8,128,64], index: 3, kind: input, shape index: {}]   ;;  %s23952_s4 = inlined_call_operand.vmem [shape: f32[8,512], index: 4, kind: output, shape index: {}]  }
   0x1   :  { %s9_s17 = sshll.u32 %s23948_s0, 4  ;;  %s10_s17 = int_to_ptr.vmem [resolvable:$true] %s9_s17 }
   0x2   :  { %s18404_s18 = scalar_lea.vmem %s10_s17, 32  ;;  %p18409_p1 = scmp.lt.s32.totalorder %s10_s17, %s10_s17 }
   0x3   :  { %p18405_p0 = scmp.ne.s32.totalorder %s10_s17, %s18404_s18  ;;  %p18410_p2 = scmp.lt.s32.totalorder %s18404_s18, %s18404_s18 }
   0x5   :  { %p18411_p3 = por %p18410_p2, %p18409_p1 }
   0x7   :  { %p18412_p4 = pnand %p18411_p3, %p18405_p0 }
   0x9   :  { %18415 = shalt.err (!%p18412_p4)  }
   0xa   :  { %s18418_s19 = smov [#allocation3]  }
   0xb   :  { %12 = dma.vmem_to_smem %s10_s17, 32, %s18418_s19, [#allocation2] }
   0xc   :  { %18416 = dma.done.wait [#allocation2], 32 }
   0xd   :  { %18417 = vsyncadd [#allocation2], 4294967264 }
   0xe   :  { %14 = sfence }
   0xf   :  { %v45_v0 = vld [vmem:[%s23951_s3] sm:$0xff]  ;;  %v46_v1 = vld [vmem:[%s23951_s3 + $0x8] sm:$0xff]  ;;  %v23957_v3 = vmov 0.0|0.0   ;;  %v47_v8 = vld [vmem:[%s23951_s3 + $0x10] sm:$0xff]  ;;  %vm18420_vm0 = vmmov 0   ;;  %v23953_v16 = vmov 0.0  }
  0x10   :  { %v10695_v2 = vld [vmem:[%s23951_s3 + $0x80] sm:$0xff]  ;;  %15919 = vmatprep.subr.bf16.mxu0 %v23957_v3  ;;  %16207 = vmatprep.subr.bf16.mxu1 %v23957_v3  ;;  %v62_v4 = vand.u32 4294901760, %v45_v0  ;;  %v65_v5 = vand.u32 4294901760, %v46_v1  ;;  %v10696_v6 = vld [vmem:[%s23951_s3 + $0x88] sm:$0xff]  ;;  %v48_v9 = vld [vmem:[%s23951_s3 + $0x18] sm:$0xff]  ;;  %v68_v11 = vand.u32 4294901760, %v47_v8 }
  0x11   :  { %v1386_v7 = vand.u32 4294901760, %v10695_v2  ;;  %v1389_v10 = vand.u32 4294901760, %v10696_v6  ;;  %v71_v12 = vand.u32 4294901760, %v48_v9  ;;  %v10697_v13 = vld [vmem:[%s23951_s3 + $0x90] sm:$0xff]  ;;  %v10698_v14 = vld [vmem:[%s23951_s3 + $0x98] sm:$0xff]  ;;  %v49_v15 = vld [vmem:[%s23951_s3 + $0x20] sm:$0xff]  ;;  %12591 = vmatprep.mubr.msk.f32.mxu0 %vm18420_vm0, %v23953_v16  ;;  %13011 = vmatprep.mubr.msk.f32.mxu1 %vm18420_vm0, %v23953_v16 }
  0x12   :  { %v18484_v17 = vpack.c.bf16 %v65_v5, %v62_v4  ;;  %v50_v18 = vld [vmem:[%s23951_s3 + $0x28] sm:$0xff]  ;;  %v10699_v19 = vld [vmem:[%s23951_s3 + $0xa0] sm:$0xff]  ;;  %s18495_s17 = sld [smem:[#allocation3 + $0x80]]  ;;  %v1392_v23 = vand.u32 4294901760, %v10697_v13  ;;  %v1395_v24 = vand.u32 4294901760, %v10698_v14  ;;  %v74_v25 = vand.u32 4294901760, %v49_v15 }
  0x13   :  { %v10700_v20 = vld [vmem:[%s23951_s3 + $0xa8] sm:$0xff]  ;;  %v18497_v21 = vpack.c.bf16 %v1389_v10, %v1386_v7  ;;  %v18500_v22 = vpack.c.bf16 %v71_v12, %v68_v11  ;;  %v51_v26 = vld [vmem:[%s23951_s3 + $0x30] sm:$0xff]  ;;  %s18505_s20 = sld [smem:[#allocation3 + $0x81]]  ;;  %v77_v27 = vand.u32 4294901760, %v50_v18  ;;  %v1398_v28 = vand.u32 4294901760, %v10699_v19  ;;  %v52_v30 = vld [vmem:[%s23951_s3 + $0x38] sm:$0xff] }
  0x14   :  { %24291 = vst [vmem:[#allocation5_spill] sm:$0xff] %v18484_v17  ;;  %15921 = vmatpush3.bf16.msra.mxu0 %v18484_v17  ;;  %v1401_v29 = vand.u32 4294901760, %v10700_v20  ;;  %v10701_v31 = vld [vmem:[%s23951_s3 + $0xb0] sm:$0xff]  ;;  %v18515_v32 = vsub.f32 %v45_v0, %v62_v4  ;;  %v18517_v33 = vsub.f32 %v46_v1, %v65_v5  ;;  %v18519_v34 = vsub.f32 %v10695_v2, %v1386_v7  ;;  %v10702_v36 = vld [vmem:[%s23951_s3 + $0xb8] sm:$0xff]  ;;  %v53_v41 = vld [vmem:[%s23951_s3 + $0x40] sm:$0xff]  ;;  %s19160_s26 = sld [smem:[#allocation3 + $0x1]] }
  0x15   :  { %24292 = vst [vmem:[#allocation6_spill] sm:$0xff] %v18497_v21  ;;  %24293 = vst [vmem:[#allocation7_spill] sm:$0xff] %v18500_v22  ;;  %16209 = vmatpush3.bf16.msra.mxu1 %v18497_v21  ;;  %15922 = vmatprep.subr.bf16.mxu0 %v23957_v3  ;;  %v18522_v35 = vpack.c.bf16 %v1395_v24, %v1392_v23  ;;  %v18527_v37 = vsub.f32 %v10696_v6, %v1389_v10  ;;  %v80_v40 = vand.u32 4294901760, %v51_v26  ;;  %v54_v42 = vld [vmem:[%s23951_s3 + $0x48] sm:$0xff]  ;;  %v10703_v47 = vld [vmem:[%s23951_s3 + $0xc0] sm:$0xff]  ;;  %s19832_s14 = sld [smem:[#allocation3 + $0x82]] }
  0x16   :  { %16210 = vmatprep.subr.bf16.mxu1 %v23957_v3  ;;  %v18529_v38 = vsub.f32 %v47_v8, %v68_v11  ;;  %v18531_v39 = vsub.f32 %v48_v9, %v71_v12  ;;  %v18540_v43 = vsub.f32 %v10697_v13, %v1392_v23  ;;  %v18542_v44 = vpack.c.bf16 %v77_v27, %v74_v25  ;;  %v10704_v48 = vld [vmem:[%s23951_s3 + $0xc8] sm:$0xff]  ;;  %v55_v53 = vld [vmem:[%s23951_s3 + $0x50] sm:$0xff]  ;;  %v56_v58 = vld [vmem:[%s23951_s3 + $0x58] sm:$0xff]  ;;  %s19842_s21 = sld [smem:[#allocation3 + $0x83]]  ;;  %s20514_s7 = sld [smem:[#allocation3 + $0x2]] }
  0x17   :  { %24294 = vst [vmem:[#allocation8_spill] sm:$0xff] %v18522_v35  ;;  %v83_v45 = vand.u32 4294901760, %v52_v30  ;;  %v1404_v46 = vand.u32 4294901760, %v10701_v31  ;;  %v18551_v49 = vsub.f32 %v10698_v14, %v1395_v24  ;;  %v18554_v50 = vsub.f32 %v49_v15, %v74_v25  ;;  %v10705_v59 = vld [vmem:[%s23951_s3 + $0xd0] sm:$0xff]  ;;  %v10706_v60 = vld [vmem:[%s23951_s3 + $0xd8] sm:$0xff]  ;;  %v57_v1 = vld [vmem:[%s23951_s3 + $0x60] sm:$0xff] }
  0x18   :  { %15924 = vmatpush3.bf16.msra.mxu0 %v18500_v22  ;;  %24295 = vst [vmem:[#allocation9_spill] sm:$0xff] %v18542_v44  ;;  %v18556_v51 = vpack.c.bf16 %v1401_v29, %v1398_v28  ;;  %v1407_v52 = vand.u32 4294901760, %v10702_v36  ;;  %v18562_v54 = vsub.f32 %v50_v18, %v77_v27  ;;  %v18564_v55 = vsub.f32 %v10699_v19, %v1398_v28  ;;  %s10674_s16 = sshll.u32 %s18495_s17, 3  ;;  %v58_v2 = vld [vmem:[%s23951_s3 + $0x68] sm:$0xff]  ;;  %v18601_v12 = vld [vmem:[%s23951_s3 + $0xe0] sm:$0xff]  ;;  %s21214_s8 = sld [smem:[#allocation3 + $0x85]] }
  0x19   :  { %16212 = vmatpush3.bf16.msra.mxu1 %v18522_v35  ;;  %15925 = vmatprep.subr.bf16.mxu0 %v23957_v3  ;;  %v86_v56 = vand.u32 4294901760, %v53_v41  ;;  %v89_v57 = vand.u32 4294901760, %v54_v42  ;;  %v18576_v61 = vsub.f32 %v10700_v20, %v1401_v29  ;;  %v18578_v62 = vsub.f32 %v51_v26, %v80_v40  ;;  %s10678_s17 = sshll.u32 %s18505_s20, 3  ;;  %v18606_v13 = vld [vmem:[%s23951_s3 + $0xe8] sm:$0xff]  ;;  %s27_s27 = scalar_lea.vmem %s23949_s1, %s10674_s16 }
  0x1a   :  { %24296 = vst [vmem:[#allocation10_spill] sm:$0xff] %v18556_v51  ;;  %16213 = vmatprep.subr.bf16.mxu1 %v23957_v3  ;;  %v1410_v63 = vand.u32 4294901760, %v10703_v47  ;;  %v1413_v0 = vand.u32 4294901760, %v10704_v48  ;;  %v18587_v4 = vpack.c.bf16 %v83_v45, %v80_v40  ;;  %v18589_v5 = vsub.f32 %v52_v30, %v83_v45  ;;  %s1349_s30 = scalar_lea.vmem %s23949_s1, %s10678_s17  ;;  %v28_v30 = vld [vmem:[%s27_s27] sm:$0xff]  ;;  %v18655_v45 = vld [vmem:[%s23951_s3 + $0xf0] sm:$0xff]  ;;  %s19150_s17 = sld [smem:[#allocation3]] }
  0x1b   :  { %v18591_v6 = vpack.c.bf16 %v1407_v52, %v1404_v46  ;;  %v18593_v7 = vsub.f32 %v10701_v31, %v1404_v46  ;;  %v92_v8 = vand.u32 4294901760, %v55_v53  ;;  %v95_v9 = vand.u32 4294901760, %v56_v58  ;;  %s10677_s18 = sshll.u32 %s19160_s26, 3  ;;  %s10714_s5 = sshll.u32 %s19832_s14, 3 }
  0x1c   :  { %15927 = vmatpush3.bf16.msra.mxu0 %v18542_v44  ;;  %24297 = vst [vmem:[#allocation11_spill] sm:$0xff] %v18587_v4  ;;  %v1416_v10 = vand.u32 4294901760, %v10705_v59  ;;  %v1419_v11 = vand.u32 4294901760, %v10706_v60  ;;  %v18612_v14 = vsub.f32 %v10702_v36, %v1407_v52  ;;  %v18614_v15 = vpack.c.bf16 %v89_v57, %v86_v56  ;;  %s10750_s10 = sshll.u32 %s19842_s21, 3  ;;  %s10713_s25 = sshll.u32 %s20514_s7, 3 }
  0x1d   :  { %24298 = vst [vmem:[#allocation12_spill] sm:$0xff] %v18591_v6  ;;  %16215 = vmatpush3.bf16.msra.mxu1 %v18556_v51  ;;  %15928 = vmatprep.subr.bf16.mxu0 %v23957_v3  ;;  %v98_v18 = vand.u32 4294901760, %v57_v1  ;;  %v101_v19 = vand.u32 4294901760, %v58_v2  ;;  %v18616_v20 = vsub.f32 %v53_v41, %v86_v56  ;;  %v18618_v23 = vsub.f32 %v54_v42, %v89_v57  ;;  %v18645_v41 = vld [vmem:[%s23951_s3 + $0x70] sm:$0xff]  ;;  %v18650_v42 = vld [vmem:[%s23951_s3 + $0x78] sm:$0xff]  ;;  %v1350_v56 = vld [vmem:[%s1349_s30] sm:$0xff]  ;;  %s1346_s30 = scalar_lea.vmem %s23949_s1, %s10677_s18  ;;  %s2673_s18 = scalar_lea.vmem %s23949_s1, %s10714_s5 }
  0x1e   :  { %16216 = vmatprep.subr.bf16.mxu1 %v23957_v3  ;;  %24299 = vst [vmem:[#allocation13_spill] sm:$0xff] %v18614_v15  ;;  %v18620_v24 = vpack.c.bf16 %v1413_v0, %v1410_v63  ;;  %v18622_v25 = vsub.f32 %v10703_v47, %v1410_v63  ;;  %v18628_v26 = vsub.f32 %v10704_v48, %v1413_v0  ;;  %v1422_v28 = vand.u32 4294901760, %v18601_v12  ;;  %s18422_s21 = smov 64   ;;  %s10822_s20 = sshll.u32 %s21214_s8, 3 }
  0x1f   :  { %v18630_v27 = vpack.c.bf16 %v95_v9, %v92_v8  ;;  %v1425_v29 = vand.u32 4294901760, %v18606_v13  ;;  %v18636_v31 = vsub.f32 %v55_v53, %v92_v8  ;;  %v18638_v36 = vsub.f32 %v56_v58, %v95_v9  ;;  %v18669_v53 = vld [vmem:[%s23951_s3 + $0xf8] sm:$0xff]  ;;  %s6645_s14 = scalar_lea.vmem %s23949_s1, %s10822_s20  ;;  %s21886_s26 = sld [smem:[#allocation3 + $0x4]] }
  0x20   :  { %24300 = vst [vmem:[#allocation14_spill] sm:$0xff] %v18620_v24  ;;  %15930 = vmatpush3.bf16.msra.mxu0 %v18587_v4  ;;  %v18640_v40 = vpack.c.bf16 %v1419_v11, %v1416_v10  ;;  %v18658_v46 = vsub.f32 %v10705_v59, %v1416_v10  ;;  %v18660_v47 = vsub.f32 %v10706_v60, %v1419_v11  ;;  %v18673_v58 = vand.u32 4294901760, %v28_v30  ;;  %s10673_s12 = sshll.u32 %s19150_s17, 3  ;;  %s22586_s28 = sld [smem:[#allocation3 + $0x87]] }
  0x21   :  { %24301 = vst [vmem:[#allocation15_spill] sm:$0xff] %v18630_v27  ;;  %16218 = vmatpush3.bf16.msra.mxu1 %v18591_v6  ;;  %15931 = vmatprep.subr.bf16.mxu0 %v23957_v3  ;;  %v18662_v48 = vpack.c.bf16 %v101_v19, %v98_v18  ;;  %v18664_v52 = vsub.f32 %v57_v1, %v98_v18  ;;  %v23955_v63 = vand.u32 4294901760, %v18515_v32  ;;  %v23956_v59 = vand.u32 4294901760, %v18517_v33  ;;  %s24_s24 = scalar_lea.vmem %s23949_s1, %s10673_s12  ;;  %s20524_s12 = sld [smem:[#allocation3 + $0x3]] }
  0x22   :  { %24302 = vst [vmem:[#allocation16_spill] sm:$0xff] %v18640_v40  ;;  %16219 = vmatprep.subr.bf16.mxu1 %v23957_v3  ;;  %v18671_v57 = vsub.f32 %v58_v2, %v101_v19  ;;  %v18678_v60 = vpack.c.bf16 %v1425_v29, %v1422_v28  ;;  %v18687_v9 = vsub.f32 %v28_v30, %v18673_v58  ;;  %v18692_v11 = vand.u32 4294901760, %v1350_v56  ;;  %s23258_s19 = sld [smem:[#allocation3 + $0x6]] }
  0x23   :  { %24303 = vst [vmem:[#allocation17_spill] sm:$0xff] %v18662_v48  ;;  %v156_v10 = vsub.f32 %v18515_v32, %v23955_v63  ;;  %v163_v18 = vsub.f32 %v18517_v33, %v23956_v59  ;;  %v23959_v19 = vand.u32 4294901760, %v18519_v34  ;;  %v23962_v16 = vand.u32 4294901760, %v18527_v37 }
  0x24   :  { %15933 = vmatpush3.bf16.msra.mxu0 %v18614_v15  ;;  %24304 = vst [vmem:[#allocation18_spill] sm:$0xff] %v18678_v60  ;;  %24305 = vst [vmem:[#allocation19_spill] sm:$0xff] %v18687_v9  ;;  %v23963_v2 = vand.u32 4294901760, %v18529_v38  ;;  %v23968_v30 = vand.u32 4294901760, %v18687_v9  ;;  %v18703_v1 = vsub.f32 %v1350_v56, %v18692_v11  ;;  %v24307_v56 = vmov 0.0|0.0  }
  0x25   :  { %16221 = vmatpush3.bf16.msra.mxu1 %v18620_v24  ;;  %15934 = vmatprep.subr.bf16.mxu0 %v23957_v3  ;;  %v157_v8 = vand.u32 4294901760, %v156_v10  ;;  %v164_v0 = vand.u32 4294901760, %v163_v18  ;;  %v1480_v59 = vsub.f32 %v18519_v34, %v23959_v19  ;;  %v24308_v19 = vand.u32 4294901760, %v18531_v39 }
  0x26   :  { %16222 = vmatprep.subr.bf16.mxu1 %v23957_v3  ;;  %24306 = vst [vmem:[#allocation20_spill] sm:$0xff] %v18703_v1  ;;  %v1487_v3 = vsub.f32 %v18527_v37, %v23962_v16  ;;  %v170_v10 = vsub.f32 %v18529_v38, %v23963_v2  ;;  %v145_v18 = vsub.f32 %v18687_v9, %v23968_v30  ;;  %v24310_v24 = vand.u32 4294901760, %v18645_v41  ;;  %s10894_s17 = sshll.u32 %s22586_s28, 3 }
  0x27   :  { %v18728_v2 = vsub.f32 %v18601_v12, %v1422_v28  ;;  %v24311_v30 = vand.u32 4294901760, %v18650_v42  ;;  %v24313_v63 = vand.u32 4294901760, %v18655_v45  ;;  %v15944_v16 = vpack.c.bf16 %v164_v0, %v157_v8  ;;  %s10749_s29 = sshll.u32 %s20524_s12, 3  ;;  %s9293_s8 = scalar_lea.vmem %s23949_s1, %s10894_s17 }
  0x28   :  { %15936 = vmatpush3.bf16.msra.mxu0 %v18630_v27  ;;  %v177_v27 = vsub.f32 %v18531_v39, %v24308_v19  ;;  %v24314_v19 = vand.u32 4294901760, %v18669_v53  ;;  %v24316_v4 = vand.u32 4294901760, %v18703_v1  ;;  %v1481_v28 = vand.u32 4294901760, %v1480_v59 }
  0x29   :  { %16224 = vmatpush3.bf16.msra.mxu1 %v18640_v40  ;;  %15937 = vmatprep.subr.bf16.mxu0 %v24307_v56  ;;  %v18731_v40 = vsub.f32 %v18606_v13, %v1425_v29  ;;  %v18737_v15 = vpack.c.bf16 %v24311_v30, %v24310_v24  ;;  %v1488_v13 = vand.u32 4294901760, %v1487_v3  ;;  %v24317_v29 = vand.u32 4294901760, %v18540_v43 }
  0x2a   :  { %16225 = vmatprep.subr.bf16.mxu1 %v24307_v56  ;;  %v18743_v6 = vpack.c.bf16 %v24314_v19, %v24313_v63  ;;  %v1469_v12 = vsub.f32 %v18703_v1, %v24316_v4  ;;  %v23979_v30 = vand.u32 4294901760, %v18551_v49  ;;  %v23982_v51 = vand.u32 4294901760, %v18554_v50 }
  0x2b   :  { %24309 = vst [vmem:[#allocation21_spill] sm:$0xff] %v18731_v40  ;;  %24312 = vst [vmem:[#allocation22_spill] sm:$0xff] %v18737_v15  ;;  %v1494_v24 = vsub.f32 %v18540_v43, %v24317_v29  ;;  %v23988_v63 = vand.u32 4294901760, %v18562_v54  ;;  %v146_v0 = vand.u32 4294901760, %v145_v18  ;;  %v171_v4 = vand.u32 4294901760, %v170_v10 }
  0x2c   :  { %24315 = vst [vmem:[#allocation23_spill] sm:$0xff] %v18743_v6  ;;  %15939 = vmatpush3.bf16.msra.mxu0 %v18662_v48  ;;  %v178_v59 = vand.u32 4294901760, %v177_v27  ;;  %v23987_v3 = vand.u32 4294901760, %v18564_v55  ;;  %v1501_v8 = vsub.f32 %v18551_v49, %v23979_v30  ;;  %v184_v19 = vsub.f32 %v18554_v50, %v23982_v51 }
  0x2d   :  { %16227 = vmatpush3.bf16.msra.mxu1 %v18678_v60  ;;  %15940 = vmatprep.subr.bf16.mxu0 %v24307_v56  ;;  %v191_v29 = vsub.f32 %v18562_v54, %v23988_v63  ;;  %v23989_v18 = vand.u32 4294901760, %v18576_v61  ;;  %v23992_v10 = vand.u32 4294901760, %v18578_v62  ;;  %v23995_v60 = vand.u32 4294901760, %v18589_v5 }
  0x2e   :  { %16228 = vmatprep.subr.bf16.mxu1 %v24307_v56  ;;  %v1508_v27 = vsub.f32 %v18564_v55, %v23987_v3  ;;  %v1470_v48 = vand.u32 4294901760, %v1469_v12  ;;  %v16232_v51 = vpack.c.bf16 %v1488_v13, %v1481_v28  ;;  %v1495_v44 = vand.u32 4294901760, %v1494_v24 }
  0x2f   :  { %v1502_v35 = vand.u32 4294901760, %v1501_v8  ;;  %v1515_v3 = vsub.f32 %v18576_v61, %v23989_v18  ;;  %v198_v63 = vsub.f32 %v18578_v62, %v23992_v10  ;;  %v205_v30 = vsub.f32 %v18589_v5, %v23995_v60 }
  0x30   :  { %15942 = vmatpush3.bf16.msra.mxu0 %v18737_v15  ;;  %v24318_v12 = vand.u32 4294901760, %v18645_v41  ;;  %v15947_v13 = vpack.c.bf16 %v178_v59, %v171_v4  ;;  %v185_v24 = vand.u32 4294901760, %v184_v19  ;;  %v24002_v8 = vand.u32 4294901760, %v18612_v14 }
  0x31   :  { %16230 = vmatpush3.bf16.msra.mxu1 %v18743_v6  ;;  %15943 = vmatprep.subr.bf16.mxu0 %v24307_v56  ;;  %v192_v18 = vand.u32 4294901760, %v191_v29  ;;  %v1509_v6 = vand.u32 4294901760, %v1508_v27  ;;  %v24319_v10 = vand.u32 4294901760, %v18593_v7  ;;  %v24000_v60 = vand.u32 4294901760, %v18616_v20 }
  0x32   :  { %v18790_v28 = vsub.f32 %v18645_v41, %v24318_v12  ;;  %16231 = vmatprep.subr.bf16.mxu1 %v24307_v56  ;;  %v16235_v22 = vpack.c.bf16 %v1502_v35, %v1495_v44  ;;  %v1529_v41 = vsub.f32 %v18612_v14, %v24002_v8  ;;  %v23998_v4 = vand.u32 4294901760, %v18618_v23 }
  0x33   :  { %12592 = vmatmul.mubr.f32.vlgmr.msra.gmra.mrb[0].mxu0 %v146_v0  ;;  %v1522_v15 = vsub.f32 %v18593_v7, %v24319_v10  ;;  %v23999_v59 = vand.u32 4294901760, %v18622_v25  ;;  %v1516_v0 = vand.u32 4294901760, %v1515_v3  ;;  %v199_v19 = vand.u32 4294901760, %v198_v63 }
  0x34   :  { %15945 = vmatpush3.bf16.msra.mxu0 %v15944_v16  ;;  %13012 = vmatmul.mubr.f32.vlgmr.msra.gmra.mrb[0].mxu1 %v1470_v48  ;;  %v206_v29 = vand.u32 4294901760, %v205_v30  ;;  %v24001_v27 = vand.u32 4294901760, %v18628_v26  ;;  %v24320_v16 = vand.u32 4294901760, %v18650_v42  ;;  %v24321_v44 = vand.u32 4294901760, %v18655_v45 }
  0x35   :  { %16233 = vmatpush3.bf16.msra.mxu1 %v16232_v51  ;;  %15946 = vmatprep.subr.bf16.mxu0 %v24307_v56  ;;  %v212_v51 = vsub.f32 %v18616_v20, %v24000_v60  ;;  %v24006_v30 = vand.u32 4294901760, %v18636_v31  ;;  %v24322_v63 = vmov 0.0   ;;  %v1523_v3 = vand.u32 4294901760, %v1522_v15 }
  0x36   :  { %v18808_v35 = vsub.f32 %v18650_v42, %v24320_v16  ;;  %v18813_v48 = vsub.f32 %v18655_v45, %v24321_v44  ;;  %16234 = vmatprep.subr.bf16.mxu1 %v24307_v56  ;;  %12626 = vmatprep.mubr.msk.f32.mxu0 %vm18420_vm0, %v24322_v63  ;;  %v1530_v10 = vand.u32 4294901760, %v1529_v41  ;;  %v219_v42 = vsub.f32 %v18618_v23, %v23998_v4 }
  0x37   :  { %v1536_v45 = vsub.f32 %v18622_v25, %v23999_v59  ;;  %13046 = vmatprep.mubr.msk.f32.mxu1 %vm18420_vm0, %v24322_v63  ;;  %v15950_v12 = vpack.c.bf16 %v192_v18, %v185_v24  ;;  %v1543_v16 = vsub.f32 %v18628_v26, %v24001_v27  ;;  %v24005_v15 = vand.u32 4294901760, %v18638_v36 }
  0x38   :  { %15948 = vmatpush3.bf16.msra.mxu0 %v15947_v13  ;;  %v24323_v44 = vand.u32 4294901760, %v18669_v53  ;;  %v16238_v59 = vpack.c.bf16 %v1516_v0, %v1509_v6  ;;  %v15953_v60 = vpack.c.bf16 %v206_v29, %v199_v19  ;;  %v24003_v18 = vand.u32 4294901760, %v18660_v47 }
  0x39   :  { %16236 = vmatpush3.bf16.msra.mxu1 %v16235_v22  ;;  %15949 = vmatprep.subr.bf16.mxu0 %v24307_v56  ;;  %v213_v13 = vand.u32 4294901760, %v212_v51  ;;  %v226_v24 = vsub.f32 %v18636_v31, %v24006_v30  ;;  %v24004_v27 = vand.u32 4294901760, %v18664_v52  ;;  %v24007_v8 = vand.u32 4294901760, %v18671_v57 }
  0x3a   :  { %v18838_v4 = vsub.f32 %v18669_v53, %v24323_v44  ;;  %16237 = vmatprep.subr.bf16.mxu1 %v24307_v56  ;;  %v16241_v53 = vpack.c.bf16 %v1530_v10, %v1523_v3  ;;  %v220_v44 = vand.u32 4294901760, %v219_v42  ;;  %v1537_v22 = vand.u32 4294901760, %v1536_v45 }
  0x3b   :  { %v24012_v41 = vand.u32 4294901760, %v18728_v2  ;;  %v1544_v6 = vand.u32 4294901760, %v1543_v16  ;;  %v233_v0 = vsub.f32 %v18638_v36, %v24005_v15  ;;  %v24324_v19 = vand.u32 4294901760, %v18658_v46 }
  0x3c   :  { %15951 = vmatpush3.bf16.msra.mxu0 %v15950_v12  ;;  %v1570_v51 = vand.u32 4294901760, %v18731_v40  ;;  %v1557_v3 = vsub.f32 %v18660_v47, %v24003_v18  ;;  %v240_v10 = vsub.f32 %v18664_v52, %v24004_v27  ;;  %v247_v42 = vsub.f32 %v18671_v57, %v24007_v8 }
  0x3d   :  { %v1550_v29 = vsub.f32 %v18658_v46, %v24324_v19  ;;  %16239 = vmatpush3.bf16.msra.mxu1 %v16238_v59  ;;  %15952 = vmatprep.subr.bf16.mxu0 %v24307_v56  ;;  %v1564_v59 = vsub.f32 %v18728_v2, %v24012_v41  ;;  %v253_v12 = vand.u32 4294901760, %v18790_v28  ;;  %v260_v16 = vand.u32 4294901760, %v18808_v35 }
  0x3e   :  { %16240 = vmatprep.subr.bf16.mxu1 %v24307_v56  ;;  %v1571_v45 = vsub.f32 %v18731_v40, %v1570_v51  ;;  %v227_v19 = vand.u32 4294901760, %v226_v24  ;;  %v1577_v18 = vand.u32 4294901760, %v18813_v48  ;;  %v15956_v27 = vpack.c.bf16 %v220_v44, %v213_v13 }
  0x3f   :  { %v16244_v15 = vpack.c.bf16 %v1544_v6, %v1537_v22  ;;  %v234_v30 = vand.u32 4294901760, %v233_v0  ;;  %v1551_v8 = vand.u32 4294901760, %v1550_v29  ;;  %v1558_v21 = vand.u32 4294901760, %v1557_v3 }
  0x40   :  { %15954 = vmatpush3.bf16.msra.mxu0 %v15953_v60  ;;  %v241_v1 = vand.u32 4294901760, %v240_v10  ;;  %v248_v41 = vand.u32 4294901760, %v247_v42  ;;  %v1584_v17 = vand.u32 4294901760, %v18838_v4  ;;  %v1565_v9 = vand.u32 4294901760, %v1564_v59 }
  0x41   :  { %16242 = vmatpush3.bf16.msra.mxu1 %v16241_v53  ;;  %15955 = vmatprep.subr.bf16.mxu0 %v24307_v56  ;;  %v1572_v40 = vand.u32 4294901760, %v1571_v45  ;;  %v254_v24 = vsub.f32 %v18790_v28, %v253_v12  ;;  %v261_v60 = vsub.f32 %v18808_v35, %v260_v16  ;;  %v1578_v13 = vsub.f32 %v18813_v48, %v1577_v18 }
  0x42   :  { %16243 = vmatprep.subr.bf16.mxu1 %v24307_v56  ;;  %v15959_v44 = vpack.c.bf16 %v234_v30, %v227_v19  ;;  %v16247_v53 = vpack.c.bf16 %v1558_v21, %v1551_v8  ;;  %v1585_v22 = vsub.f32 %v18838_v4, %v1584_v17  ;;  %v15962_v6 = vpack.c.bf16 %v248_v41, %v241_v1 }
  0x43   :  { %v16250_v0 = vpack.c.bf16 %v1572_v40, %v1565_v9  ;;  %v255_v29 = vand.u32 4294901760, %v254_v24  ;;  %v262_v3 = vand.u32 4294901760, %v261_v60  ;;  %v1579_v10 = vand.u32 4294901760, %v1578_v13 }
  0x44   :  { %15957 = vmatpush3.bf16.msra.mxu0 %v15956_v27  ;;  %v24325_v42 = vand.u32 4294901760, %v18515_v32  ;;  %v24326_v59 = vand.u32 4294901760, %v18517_v33  ;;  %v24327_v27 = vand.u32 4294901760, %v18519_v34  ;;  %v24328_v30 = vand.u32 4294901760, %v18527_v37 }
  0x45   :  { %16245 = vmatpush3.bf16.msra.mxu1 %v16244_v15  ;;  %15958 = vmatprep.subr.bf16.mxu0 %v24307_v56  ;;  %v24329_v8 = vand.u32 4294901760, %v18529_v38  ;;  %v24330_v1 = vand.u32 4294901760, %v18531_v39  ;;  %v24331_v9 = vand.u32 4294901760, %v18540_v43  ;;  %v24332_v15 = vand.u32 4294901760, %v18551_v49 }
  0x46   :  { %16246 = vmatprep.subr.bf16.mxu1 %v24307_v56  ;;  %v18887_v45 = vpack.c.bf16 %v24326_v59, %v24325_v42  ;;  %v18893_v21 = vpack.c.bf16 %v24328_v30, %v24327_v27  ;;  %v24333_v19 = vand.u32 4294901760, %v18554_v50  ;;  %v24334_v24 = vand.u32 4294901760, %v18562_v54 }
  0x47   :  { %v18899_v40 = vpack.c.bf16 %v24330_v1, %v24329_v8  ;;  %v18905_v41 = vpack.c.bf16 %v24332_v15, %v24331_v9  ;;  %v24335_v13 = vand.u32 4294901760, %v18564_v55  ;;  %v24336_v42 = vand.u32 4294901760, %v18576_v61 }
  0x48   :  { %15960 = vmatpush3.bf16.msra.mxu0 %v15959_v44  ;;  %v18911_v60 = vpack.c.bf16 %v24334_v24, %v24333_v19  ;;  %v24337_v44 = vand.u32 4294901760, %v18578_v62  ;;  %v24338_v27 = vand.u32 4294901760, %v18589_v5  ;;  %v1586_v8 = vand.u32 4294901760, %v1585_v22 }
  0x49   :  { %v18917_v59 = vpack.c.bf16 %v24336_v42, %v24335_v13  ;;  %16248 = vmatpush3.bf16.msra.mxu1 %v16247_v53  ;;  %15961 = vmatprep.subr.bf16.mxu0 %v24307_v56  ;;  %v24340_v1 = vand.u32 4294901760, %v18593_v7  ;;  %v24341_v9 = vand.u32 4294901760, %v18612_v14  ;;  %v24343_v19 = vand.u32 4294901760, %v18616_v20 }
  0x4a   :  { %v18923_v30 = vpack.c.bf16 %v24338_v27, %v24337_v44  ;;  %v24344_v24 = vand.u32 4294901760, %v18618_v23  ;;  %v24346_v42 = vand.u32 4294901760, %v18622_v25  ;;  %v24347_v44 = vand.u32 4294901760, %v18628_v26  ;;  %16249 = vmatprep.subr.bf16.mxu1 %v24307_v56 }
  0x4b   :  { %v18930_v15 = vpack.c.bf16 %v24341_v9, %v24340_v1  ;;  %v24349_v22 = vand.u32 4294901760, %v18636_v31  ;;  %v24350_v27 = vand.u32 4294901760, %v18638_v36  ;;  %v24351_v9 = vand.u32 4294901760, %v18658_v46 }
  0x4c   :  { %24339 = vst [vmem:[#allocation24_spill] sm:$0xff] %v18923_v30  ;;  %v18936_v13 = vpack.c.bf16 %v24344_v24, %v24343_v19  ;;  %v18942_v53 = vpack.c.bf16 %v24347_v44, %v24346_v42  ;;  %v24353_v24 = vand.u32 4294901760, %v18664_v52  ;;  %v24355_v44 = vand.u32 4294901760, %v18728_v2  ;;  %15963 = vmatpush3.bf16.msra.mxu0 %v15962_v6 }
  0x4d   :  { %24342 = vst [vmem:[#allocation25_spill] sm:$0xff] %v18930_v15  ;;  %v18949_v1 = vpack.c.bf16 %v24350_v27, %v24349_v22  ;;  %v24352_v15 = vand.u32 4294901760, %v18660_v47  ;;  %v18967_v30 = vpack.c.bf16 %v260_v16, %v253_v12  ;;  %v18969_v22 = vpack.c.bf16 %v1584_v17, %v1577_v18  ;;  %16251 = vmatpush3.bf16.msra.mxu1 %v16250_v0  ;;  %v24374_v18 = vld [vmem:[#allocation23_spill] sm:$0xff] }
  0x4e   :  { %24345 = vst [vmem:[#allocation26_spill] sm:$0xff] %v18936_v13  ;;  %24348 = vst [vmem:[#allocation27_spill] sm:$0xff] %v18942_v53  ;;  %v24354_v13 = vand.u32 4294901760, %v18671_v57  ;;  %v18965_v53 = vpack.c.bf16 %v1570_v51, %v24355_v44  ;;  %v15965_v27 = vpack.c.bf16 %v262_v3, %v255_v29  ;;  %15964 = vmatprep.subr.bf16.mxu0 %v24307_v56  ;;  %16252 = vmatprep.subr.bf16.mxu1 %v24307_v56  ;;  %vm10627_vm1 = vcmask 523264  }
  0x4f   :  { %v18955_v19 = vpack.c.bf16 %v24352_v15, %v24351_v9  ;;  %v16253_v15 = vpack.c.bf16 %v1586_v8, %v1579_v10  ;;  %v16256_v51 = vpack.c.bf16 %v18527_v37, %v18519_v34  ;;  %v15971_v17 = vpack.c.bf16 %v18531_v39, %v18529_v38  ;;  %v29_v10 = vld [vmem:[%s23950_s2] sm:$0xff]  ;;  %v31_v8 = vld [vmem:[%s23950_s2 + $0x10] sm:$0xff]  ;;  %v10682_v9 = vld [vmem:[%s23950_s2 + $0x98] sm:$0xff] }
  0x50   :  { %v18961_v42 = vpack.c.bf16 %v24354_v13, %v24353_v24  ;;  %15966 = vmatpush3.bf16.msra.mxu0 %v15965_v27  ;;  %v15968_v13 = vpack.c.bf16 %v18517_v33, %v18515_v32  ;;  %v16259_v32 = vpack.c.bf16 %v18551_v49, %v18540_v43  ;;  %v15974_v33 = vpack.c.bf16 %v18562_v54, %v18554_v50 }
  0x51   :  { %16254 = vmatpush3.bf16.msra.mxu1 %v16253_v15  ;;  %15967 = vmatprep.subr.bf16.mxu0 %v24307_v56  ;;  %v16262_v34 = vpack.c.bf16 %v18576_v61, %v18564_v55  ;;  %v15977_v37 = vpack.c.bf16 %v18589_v5, %v18578_v62  ;;  %v16265_v38 = vpack.c.bf16 %v18612_v14, %v18593_v7  ;;  %v24356_v55 = vld [vmem:[#allocation21_spill] sm:$0xff]  ;;  %v24357_v7 = vld [vmem:[#allocation19_spill] sm:$0xff]  ;;  %v709_v24 = vand.u32 4294901760, %v31_v8 }
  0x52   :  { %16255 = vmatprep.subr.bf16.mxu1 %v24307_v56  ;;  %v15980_v39 = vpack.c.bf16 %v18618_v23, %v18616_v20  ;;  %v16268_v43 = vpack.c.bf16 %v18628_v26, %v18622_v25  ;;  %v15983_v49 = vpack.c.bf16 %v18638_v36, %v18636_v31  ;;  %v16271_v50 = vpack.c.bf16 %v18660_v47, %v18658_v46  ;;  %v24358_v14 = vld [vmem:[#allocation5_spill] sm:$0xff]  ;;  %v24359_v20 = vld [vmem:[#allocation20_spill] sm:$0xff]  ;;  %v24360_v23 = vld [vmem:[#allocation6_spill] sm:$0xff] }
  0x53   :  { %12627 = vmatmul.mubr.f32.vlgmr.msra.gmra.mrb[0].mxu0 %v18673_v58  ;;  %v15986_v54 = vpack.c.bf16 %v18671_v57, %v18664_v52  ;;  %v16274_v61 = vpack.c.bf16 %v24356_v55, %v18728_v2  ;;  %v15989_v62 = vpack.c.bf16 %v18808_v35, %v18790_v28  ;;  %v16277_v5 = vpack.c.bf16 %v18838_v4, %v18813_v48  ;;  %v24361_v25 = vld [vmem:[#allocation7_spill] sm:$0xff]  ;;  %v24362_v26 = vld [vmem:[#allocation8_spill] sm:$0xff]  ;;  %v24363_v31 = vld [vmem:[#allocation9_spill] sm:$0xff] }
  0x54   :  { %15969 = vmatpush3.bf16.msra.mxu0 %v15968_v13  ;;  %13047 = vmatmul.mubr.f32.vlgmr.msra.gmra.mrb[0].mxu1 %v18692_v11  ;;  %v24364_v36 = vld [vmem:[#allocation10_spill] sm:$0xff]  ;;  %v24365_v46 = vld [vmem:[#allocation11_spill] sm:$0xff]  ;;  %v24366_v47 = vld [vmem:[#allocation12_spill] sm:$0xff]  ;;  %v24375_v12 = vand.u32 4294901760, %v24357_v7  ;;  %v24376_v16 = vand.u32 4294901760, %v24359_v20  ;;  %v2036_v27 = vand.u32 4294901760, %v10682_v9 }
  0x55   :  { %16257 = vmatpush3.bf16.msra.mxu1 %v16256_v51  ;;  %15970 = vmatprep.subr.bf16.mxu0 %v24307_v56  ;;  %v24367_v52 = vld [vmem:[#allocation13_spill] sm:$0xff]  ;;  %v24368_v57 = vld [vmem:[#allocation14_spill] sm:$0xff]  ;;  %v24369_v2 = vld [vmem:[#allocation15_spill] sm:$0xff] }
  0x56   :  { %16258 = vmatprep.subr.bf16.mxu1 %v24307_v56  ;;  %12661 = vmatprep.mubr.msk.f32.mxu0 %vm18420_vm0, %v24322_v63  ;;  %v24370_v28 = vld [vmem:[#allocation16_spill] sm:$0xff]  ;;  %v24371_v4 = vld [vmem:[#allocation17_spill] sm:$0xff]  ;;  %v24372_v35 = vld [vmem:[#allocation18_spill] sm:$0xff] }
  0x57   :  { %13081 = vmatprep.mubr.msk.f32.mxu1 %vm18420_vm0, %v24322_v63  ;;  %v24373_v48 = vld [vmem:[#allocation22_spill] sm:$0xff]  ;;  %v24377_v6 = vld [vmem:[#allocation24_spill] sm:$0xff]  ;;  %v24378_v0 = vld [vmem:[#allocation25_spill] sm:$0xff] }
  0x58   :  { %15972 = vmatpush3.bf16.msra.mxu0 %v15971_v17  ;;  %v24379_v29 = vld [vmem:[#allocation26_spill] sm:$0xff]  ;;  %v24380_v3 = vld [vmem:[#allocation27_spill] sm:$0xff]  ;;  %v33_v15 = vld [vmem:[%s23950_s2 + $0x20] sm:$0xff] }
  0x59   :  { %16260 = vmatpush3.bf16.msra.mxu1 %v16259_v32  ;;  %15973 = vmatprep.subr.bf16.mxu0 %v24307_v56  ;;  %v34_v13 = vld [vmem:[%s23950_s2 + $0x28] sm:$0xff]  ;;  %v10683_v51 = vld [vmem:[%s23950_s2 + $0xa0] sm:$0xff] }
  0x5a   :  { %16261 = vmatprep.subr.bf16.mxu1 %v24307_v56  ;;  %v10684_v17 = vld [vmem:[%s23950_s2 + $0xa8] sm:$0xff] }
  0x5c   :  { %15975 = vmatpush3.bf16.msra.mxu0 %v15974_v33  ;;  %v715_v33 = vand.u32 4294901760, %v33_v15 }
  0x5d   :  { %16263 = vmatpush3.bf16.msra.mxu1 %v16262_v34  ;;  %15976 = vmatprep.subr.bf16.mxu0 %v24307_v56  ;;  %v718_v34 = vand.u32 4294901760, %v34_v13 }
  0x5e   :  { %16264 = vmatprep.subr.bf16.mxu1 %v24307_v56 }
  0x60   :  { %15978 = vmatpush3.bf16.msra.mxu0 %v15977_v37 }
  0x61   :  { %16266 = vmatpush3.bf16.msra.mxu1 %v16265_v38  ;;  %15979 = vmatprep.subr.bf16.mxu0 %v24307_v56  ;;  %v2039_v38 = vand.u32 4294901760, %v10683_v51 }
  0x62   :  { %16267 = vmatprep.subr.bf16.mxu1 %v24307_v56 }
  0x64   :  { %15981 = vmatpush3.bf16.msra.mxu0 %v15980_v39  ;;  %v2042_v39 = vand.u32 4294901760, %v10684_v17 }
  0x65   :  { %16269 = vmatpush3.bf16.msra.mxu1 %v16268_v43  ;;  %15982 = vmatprep.subr.bf16.mxu0 %v24307_v56  ;;  %v10685_v43 = vld [vmem:[%s23950_s2 + $0xb0] sm:$0xff] }
  0x66   :  { %16270 = vmatprep.subr.bf16.mxu1 %v24307_v56 }
  0x68   :  { %15984 = vmatpush3.bf16.msra.mxu0 %v15983_v49  ;;  %v10686_v49 = vld [vmem:[%s23950_s2 + $0xb8] sm:$0xff] }
  0x69   :  { %16272 = vmatpush3.bf16.msra.mxu1 %v16271_v50  ;;  %15985 = vmatprep.subr.bf16.mxu0 %v24307_v56 }
  0x6a   :  { %16273 = vmatprep.subr.bf16.mxu1 %v24307_v56 }
  0x6c   :  { %15987 = vmatpush3.bf16.msra.mxu0 %v15986_v54 }
  0x6d   :  { %16275 = vmatpush3.bf16.msra.mxu1 %v16274_v61  ;;  %15988 = vmatprep.subr.bf16.mxu0 %v24307_v56  ;;  %v19227_v61 = vpack.c.bf16 %v718_v34, %v715_v33 }
  0x6e   :  { %16276 = vmatprep.subr.bf16.mxu1 %v24307_v56 }
  0x6f   :  { %24384 = vst [vmem:[#allocation20_spill] sm:$0xff] %v19227_v61 }
  0x70   :  { %15990 = vmatpush3.bf16.msra.mxu0 %v15989_v62 }
  0x71   :  { %16278 = vmatpush3.bf16.msra.mxu1 %v16277_v5  ;;  %15991 = vmatprep.subr.bf16.mxu0 %v24307_v56 }
  0x72   :  { %16279 = vmatprep.subr.bf16.mxu1 %v24307_v56 }
  0x73   :  { %12662 = vmatmul.mubr.f32.vlgmr.msra.gmra.mrb[0].mxu0 %v24357_v7  ;;  %v37_v7 = vld [vmem:[%s23950_s2 + $0x40] sm:$0xff] }
  0x74   :  { %15993 = vmatpush3.bf16.msra.mxu0 %v24358_v14  ;;  %13082 = vmatmul.mubr.f32.vlgmr.msra.gmra.mrb[0].mxu1 %v24359_v20 }
  0x75   :  { %16281 = vmatpush3.bf16.msra.mxu1 %v24360_v23  ;;  %15994 = vmatprep.subr.bf16.mxu0 %v24307_v56 }
  0x76   :  { %16282 = vmatprep.subr.bf16.mxu1 %v24307_v56  ;;  %12696 = vmatprep.mubr.msk.f32.mxu0 %vm18420_vm0, %v24322_v63 }
  0x77   :  { %13116 = vmatprep.mubr.msk.f32.mxu1 %vm18420_vm0, %v24322_v63 }
  0x78   :  { %15996 = vmatpush3.bf16.msra.mxu0 %v24361_v25 }
  0x79   :  { %16284 = vmatpush3.bf16.msra.mxu1 %v24362_v26  ;;  %15997 = vmatprep.subr.bf16.mxu0 %v24307_v56 }
  0x7a   :  { %16285 = vmatprep.subr.bf16.mxu1 %v24307_v56 }
  0x7c   :  { %15999 = vmatpush3.bf16.msra.mxu0 %v24363_v31 }
  0x7d   :  { %16287 = vmatpush3.bf16.msra.mxu1 %v24364_v36  ;;  %16000 = vmatprep.subr.bf16.mxu0 %v24307_v56 }
  0x7e   :  { %16288 = vmatprep.subr.bf16.mxu1 %v24307_v56 }
  0x80   :  { %16002 = vmatpush3.bf16.msra.mxu0 %v24365_v46 }
  0x81   :  { %16290 = vmatpush3.bf16.msra.mxu1 %v24366_v47  ;;  %16003 = vmatprep.subr.bf16.mxu0 %v24307_v56 }
  0x82   :  { %16291 = vmatprep.subr.bf16.mxu1 %v24307_v56 }
  0x84   :  { %16005 = vmatpush3.bf16.msra.mxu0 %v24367_v52 }
  0x85   :  { %16293 = vmatpush3.bf16.msra.mxu1 %v24368_v57  ;;  %16006 = vmatprep.subr.bf16.mxu0 %v24307_v56 }
  0x86   :  { %16294 = vmatprep.subr.bf16.mxu1 %v24307_v56 }
  0x88   :  { %16008 = vmatpush3.bf16.msra.mxu0 %v24369_v2 }
  0x89   :  { %16296 = vmatpush3.bf16.msra.mxu1 %v24370_v28  ;;  %16009 = vmatprep.subr.bf16.mxu0 %v24307_v56 }
  0x8a   :  { %16297 = vmatprep.subr.bf16.mxu1 %v24307_v56 }
  0x8c   :  { %16011 = vmatpush3.bf16.msra.mxu0 %v24371_v4 }
  0x8d   :  { %16299 = vmatpush3.bf16.msra.mxu1 %v24372_v35  ;;  %16012 = vmatprep.subr.bf16.mxu0 %v24307_v56 }
  0x8e   :  { %16300 = vmatprep.subr.bf16.mxu1 %v24307_v56 }
  0x90   :  { %16014 = vmatpush3.bf16.msra.mxu0 %v24373_v48 }
  0x91   :  { %16302 = vmatpush3.bf16.msra.mxu1 %v24374_v18  ;;  %16015 = vmatprep.subr.bf16.mxu0 %v24307_v56 }
  0x92   :  { %16303 = vmatprep.subr.bf16.mxu1 %v24307_v56 }
  0x93   :  { %12697 = vmatmul.mubr.f32.vlgmr.msra.gmra.mrb[0].mxu0 %v24375_v12  ;;  %v40_v12 = vld [vmem:[%s23950_s2 + $0x58] sm:$0xff] }
  0x94   :  { %16017 = vmatpush3.bf16.msra.mxu0 %v18887_v45  ;;  %13117 = vmatmul.mubr.f32.vlgmr.msra.gmra.mrb[0].mxu1 %v24376_v16  ;;  %v30_v45 = vld [vmem:[%s23950_s2 + $0x8] sm:$0xff]  ;;  %v1347_v16 = vld [vmem:[%s1346_s30] sm:$0xff]  ;;  %s21896_s30 = sld [smem:[#allocation3 + $0x5]] }
  0x95   :  { %16305 = vmatpush3.bf16.msra.mxu1 %v18893_v21  ;;  %16018 = vmatprep.subr.bf16.mxu0 %v24307_v56  ;;  %v10679_v21 = vld [vmem:[%s23950_s2 + $0x80] sm:$0xff] }
  0x96   :  { %16306 = vmatprep.subr.bf16.mxu1 %v24307_v56  ;;  %12731 = vmatprep.mubr.msk.f32.mxu0 %vm18420_vm0, %v24322_v63 }
  0x97   :  { %13151 = vmatprep.mubr.msk.f32.mxu1 %vm18420_vm0, %v24322_v63 }
  0x98   :  { %16020 = vmatpush3.bf16.msra.mxu0 %v18899_v40  ;;  %v10680_v40 = vld [vmem:[%s23950_s2 + $0x88] sm:$0xff] }
  0x99   :  { %16308 = vmatpush3.bf16.msra.mxu1 %v18905_v41  ;;  %16021 = vmatprep.subr.bf16.mxu0 %v24307_v56  ;;  %v703_v41 = vand.u32 4294901760, %v29_v10 }
  0x9a   :  { %16309 = vmatprep.subr.bf16.mxu1 %v24307_v56  ;;  %s10821_s0 = sshll.u32 %s21896_s30, 3 }
  0x9b   :  { %v19215_v50 = vsub.f32 %v29_v10, %v703_v41  ;;  %v19275_v10 = vsub.f32 %v10684_v17, %v2042_v39  ;;  %v19316_v17 = vld [vmem:[%s23950_s2 + $0x68] sm:$0xff] }
  0x9c   :  { %16023 = vmatpush3.bf16.msra.mxu0 %v18911_v60  ;;  %v706_v60 = vand.u32 4294901760, %v30_v45 }
  0x9d   :  { %16311 = vmatpush3.bf16.msra.mxu1 %v18917_v59  ;;  %16024 = vmatprep.subr.bf16.mxu0 %v24307_v56  ;;  %v2027_v59 = vand.u32 4294901760, %v10679_v21 }
  0x9e   :  { %16312 = vmatprep.subr.bf16.mxu1 %v24307_v56  ;;  %v19217_v54 = vsub.f32 %v30_v45, %v706_v60 }
  0x9f   :  { %v19224_v55 = vsub.f32 %v10679_v21, %v2027_v59 }
  0xa0   :  { %16026 = vmatpush3.bf16.msra.mxu0 %v24377_v6  ;;  %v19270_v6 = vsub.f32 %v10683_v51, %v2039_v38  ;;  %v19311_v51 = vld [vmem:[%s23950_s2 + $0x60] sm:$0xff] }
  0xa1   :  { %16314 = vmatpush3.bf16.msra.mxu1 %v24378_v0  ;;  %16027 = vmatprep.subr.bf16.mxu0 %v24307_v56 }
  0xa2   :  { %16315 = vmatprep.subr.bf16.mxu1 %v24307_v56 }
  0xa4   :  { %16029 = vmatpush3.bf16.msra.mxu0 %v24379_v29 }
  0xa5   :  { %16317 = vmatpush3.bf16.msra.mxu1 %v24380_v3  ;;  %16030 = vmatprep.subr.bf16.mxu0 %v24307_v56 }
  0xa6   :  { %16318 = vmatprep.subr.bf16.mxu1 %v24307_v56 }
  0xa8   :  { %16032 = vmatpush3.bf16.msra.mxu0 %v18949_v1  ;;  %v10681_v1 = vld [vmem:[%s23950_s2 + $0x90] sm:$0xff] }
  0xa9   :  { %16320 = vmatpush3.bf16.msra.mxu1 %v18955_v19  ;;  %16033 = vmatprep.subr.bf16.mxu0 %v24307_v56  ;;  %v19170_v19 = vpack.c.bf16 %v706_v60, %v703_v41  ;;  %v10690_v41 = vld [vmem:[%s23950_s2 + $0xd8] sm:$0xff] }
  0xaa   :  { %16321 = vmatprep.subr.bf16.mxu1 %v24307_v56 }
  0xac   :  { %16035 = vmatpush3.bf16.msra.mxu0 %v18961_v42 }
  0xad   :  { %16323 = vmatpush3.bf16.msra.mxu1 %v18965_v53  ;;  %16036 = vmatprep.subr.bf16.mxu0 %v24307_v56  ;;  %v32_v53 = vld [vmem:[%s23950_s2 + $0x18] sm:$0xff] }
  0xae   :  { %16324 = vmatprep.subr.bf16.mxu1 %v24307_v56  ;;  %v712_v42 = vand.u32 4294901760, %v32_v53 }
  0xb0   :  { %16038 = vmatpush3.bf16.msra.mxu0 %v18967_v30  ;;  %v2030_v30 = vand.u32 4294901760, %v10680_v40  ;;  %v19192_v32 = vpack.c.bf16 %v712_v42, %v709_v24 }
  0xb1   :  { %16326 = vmatpush3.bf16.msra.mxu1 %v18969_v22  ;;  %16039 = vmatprep.subr.bf16.mxu0 %v24307_v56  ;;  %v2033_v22 = vand.u32 4294901760, %v10681_v1 }
  0xb2   :  { %16327 = vmatprep.subr.bf16.mxu1 %v24307_v56  ;;  %v19174_v44 = vpack.c.bf16 %v2030_v30, %v2027_v59  ;;  %24382 = vst [vmem:[#allocation19_spill] sm:$0xff] %v19192_v32  ;;  %v19238_v20 = vsub.f32 %v10680_v40, %v2030_v30  ;;  %v10689_v40 = vld [vmem:[%s23950_s2 + $0xd0] sm:$0xff] }
  0xb3   :  { %12732 = vmatmul.mubr.f32.vlgmr.msra.gmra.mrb[0].mxu0 %v18673_v58  ;;  %v19197_v37 = vpack.c.bf16 %v2036_v27, %v2033_v22 }
  0xb4   :  { %16041 = vmatpush3.bf16.msra.mxu0 %v24358_v14  ;;  %13152 = vmatmul.mubr.f32.vlgmr.msra.gmra.mrb[0].mxu1 %v18692_v11  ;;  %24381 = vst [vmem:[#allocation21_spill] sm:$0xff] %v19174_v44  ;;  %v38_v14 = vld [vmem:[%s23950_s2 + $0x48] sm:$0xff] }
  0xb5   :  { %16329 = vmatpush3.bf16.msra.mxu1 %v24360_v23  ;;  %16042 = vmatprep.subr.bf16.mxu0 %v24307_v56  ;;  %24383 = vst [vmem:[#allocation5_spill] sm:$0xff] %v19197_v37  ;;  %v19242_v23 = vpack.c.bf16 %v2042_v39, %v2039_v38  ;;  %v19327_v38 = vld [vmem:[%s23950_s2 + $0xe0] sm:$0xff]  ;;  %v19332_v39 = vld [vmem:[%s23950_s2 + $0xe8] sm:$0xff] }
  0xb6   :  { %16330 = vmatprep.subr.bf16.mxu1 %v24307_v56  ;;  %12766 = vmatprep.mubr.msk.f32.mxu0 %vm18420_vm0, %v24322_v63 }
  0xb7   :  { %13186 = vmatprep.mubr.msk.f32.mxu1 %vm18420_vm0, %v24322_v63  ;;  %24385 = vst [vmem:[#allocation6_spill] sm:$0xff] %v19242_v23 }
  0xb8   :  { %16044 = vmatpush3.bf16.msra.mxu0 %v24361_v25  ;;  %v2045_v25 = vand.u32 4294901760, %v10685_v43 }
  0xb9   :  { %16332 = vmatpush3.bf16.msra.mxu1 %v24362_v26  ;;  %16045 = vmatprep.subr.bf16.mxu0 %v24307_v56  ;;  %v2048_v26 = vand.u32 4294901760, %v10686_v49 }
  0xba   :  { %16333 = vmatprep.subr.bf16.mxu1 %v24307_v56 }
  0xbb   :  { %v19280_v21 = vpack.c.bf16 %v2048_v26, %v2045_v25 }
  0xbc   :  { %16047 = vmatpush3.bf16.msra.mxu0 %v24363_v31  ;;  %v10687_v31 = vld [vmem:[%s23950_s2 + $0xc0] sm:$0xff] }
  0xbd   :  { %16335 = vmatpush3.bf16.msra.mxu1 %v24364_v36  ;;  %16048 = vmatprep.subr.bf16.mxu0 %v24307_v56  ;;  %v10688_v36 = vld [vmem:[%s23950_s2 + $0xc8] sm:$0xff]  ;;  %v2051_v29 = vand.u32 4294901760, %v10687_v31  ;;  %24387 = vst [vmem:[#allocation8_spill] sm:$0xff] %v19280_v21 }
  0xbe   :  { %16336 = vmatprep.subr.bf16.mxu1 %v24307_v56  ;;  %v2054_v3 = vand.u32 4294901760, %v10688_v36 }
  0xc0   :  { %16050 = vmatpush3.bf16.msra.mxu0 %v24365_v46  ;;  %v19250_v46 = vsub.f32 %v31_v8, %v709_v24  ;;  %v736_v8 = vand.u32 4294901760, %v40_v12 }
  0xc1   :  { %16338 = vmatpush3.bf16.msra.mxu1 %v24366_v47  ;;  %16051 = vmatprep.subr.bf16.mxu0 %v24307_v56  ;;  %v19252_v47 = vsub.f32 %v32_v53, %v712_v42  ;;  %v19293_v53 = vand.u32 4294901760, %v1347_v16 }
  0xc2   :  { %16339 = vmatprep.subr.bf16.mxu1 %v24307_v56 }
  0xc4   :  { %16053 = vmatpush3.bf16.msra.mxu0 %v24367_v52  ;;  %v19254_v52 = vsub.f32 %v10681_v1, %v2033_v22  ;;  %v19295_v1 = vsub.f32 %v10685_v43, %v2045_v25  ;;  %v742_v25 = vand.u32 4294901760, %v19316_v17 }
  0xc5   :  { %16341 = vmatpush3.bf16.msra.mxu1 %v24368_v57  ;;  %16054 = vmatprep.subr.bf16.mxu0 %v24307_v56  ;;  %v19256_v57 = vsub.f32 %v10682_v9, %v2036_v27  ;;  %v19297_v9 = vsub.f32 %v10686_v49, %v2048_v26  ;;  %v19306_v27 = vpack.c.bf16 %v2054_v3, %v2051_v29  ;;  %v24019_v49 = vand.u32 4294901760, %v19217_v54 }
  0xc6   :  { %16342 = vmatprep.subr.bf16.mxu1 %v24307_v56  ;;  %v24025_v26 = vand.u32 4294901760, %v19238_v20 }
  0xc7   :  { %24389 = vst [vmem:[#allocation10_spill] sm:$0xff] %v19306_v27 }
  0xc8   :  { %16056 = vmatpush3.bf16.msra.mxu0 %v24369_v2  ;;  %v25_v2 = vld [vmem:[%s24_s24] sm:$0xff]  ;;  %s3997_s24 = scalar_lea.vmem %s23949_s1, %s10750_s10  ;;  %s2670_s10 = scalar_lea.vmem %s23949_s1, %s10713_s25 }
  0xc9   :  { %16344 = vmatpush3.bf16.msra.mxu1 %v24370_v28  ;;  %16057 = vmatprep.subr.bf16.mxu0 %v24307_v56  ;;  %v19259_v28 = vsub.f32 %v33_v15, %v715_v33  ;;  %v19288_v60 = vand.u32 4294901760, %v25_v2  ;;  %v2057_v15 = vand.u32 4294901760, %v10689_v40  ;;  %v19320_v33 = vsub.f32 %v10687_v31, %v2051_v29 }
  0xca   :  { %16345 = vmatprep.subr.bf16.mxu1 %v24307_v56  ;;  %v19352_v31 = vsub.f32 %v40_v12, %v736_v8  ;;  %v19372_v12 = vld [vmem:[%s23950_s2 + $0x78] sm:$0xff]  ;;  %v2128_v29 = vsub.f32 %v19238_v20, %v24025_v26 }
  0xcc   :  { %16059 = vmatpush3.bf16.msra.mxu0 %v24371_v4  ;;  %v19261_v4 = vsub.f32 %v34_v13, %v718_v34  ;;  %v2060_v13 = vand.u32 4294901760, %v10690_v41  ;;  %v19322_v34 = vsub.f32 %v10688_v36, %v2054_v3  ;;  %v2129_v26 = vand.u32 4294901760, %v2128_v29 }
  0xcd   :  { %16347 = vmatpush3.bf16.msra.mxu1 %v24372_v35  ;;  %16060 = vmatprep.subr.bf16.mxu0 %v24307_v56  ;;  %v727_v35 = vand.u32 4294901760, %v37_v7 }
  0xce   :  { %16348 = vmatprep.subr.bf16.mxu1 %v24307_v56  ;;  %v19354_v36 = vpack.c.bf16 %v2060_v13, %v2057_v15 }
  0xcf   :  { %v19301_v42 = vsub.f32 %v37_v7, %v727_v35 }
  0xd0   :  { %16062 = vmatpush3.bf16.msra.mxu0 %v24373_v48  ;;  %v730_v48 = vand.u32 4294901760, %v38_v14  ;;  %24391 = vst [vmem:[#allocation12_spill] sm:$0xff] %v19354_v36 }
  0xd1   :  { %16350 = vmatpush3.bf16.msra.mxu1 %v24374_v18  ;;  %16063 = vmatprep.subr.bf16.mxu0 %v24307_v56  ;;  %v39_v18 = vld [vmem:[%s23950_s2 + $0x50] sm:$0xff] }
  0xd2   :  { %16351 = vmatprep.subr.bf16.mxu1 %v24307_v56  ;;  %v733_v30 = vand.u32 4294901760, %v39_v18  ;;  %v19299_v24 = vpack.c.bf16 %v730_v48, %v727_v35  ;;  %v19304_v22 = vsub.f32 %v38_v14, %v730_v48  ;;  %v739_v14 = vand.u32 4294901760, %v19311_v51 }
  0xd3   :  { %12767 = vmatmul.mubr.f32.vlgmr.msra.gmra.mrb[0].mxu0 %v18673_v58  ;;  %v35_v58 = vld [vmem:[%s23950_s2 + $0x30] sm:$0xff]  ;;  %v19360_v48 = vsub.f32 %v10689_v40, %v2057_v15 }
  0xd4   :  { %16065 = vmatpush3.bf16.msra.mxu0 %v19170_v19  ;;  %13187 = vmatmul.mubr.f32.vlgmr.msra.gmra.mrb[0].mxu1 %v18692_v11  ;;  %v36_v11 = vld [vmem:[%s23950_s2 + $0x38] sm:$0xff]  ;;  %v721_v62 = vand.u32 4294901760, %v35_v58  ;;  %24388 = vst [vmem:[#allocation9_spill] sm:$0xff] %v19299_v24  ;;  %v19339_v43 = vpack.c.bf16 %v736_v8, %v733_v30  ;;  %v19346_v7 = vsub.f32 %v39_v18, %v733_v30  ;;  %v19382_v40 = vld [vmem:[%s23950_s2 + $0xf0] sm:$0xff]  ;;  %v24394_v8 = vand.u32 4294901760, %v19332_v39 }
  0xd5   :  { %16353 = vmatpush3.bf16.msra.mxu1 %v19174_v44  ;;  %16066 = vmatprep.subr.bf16.mxu0 %v24307_v56  ;;  %v724_v5 = vand.u32 4294901760, %v36_v11  ;;  %v19362_v18 = vsub.f32 %v10690_v41, %v2060_v13  ;;  %v19387_v41 = vld [vmem:[%s23950_s2 + $0xf8] sm:$0xff]  ;;  %v804_v30 = vsub.f32 %v19217_v54, %v24019_v49  ;;  %v24393_v49 = vand.u32 4294901760, %v19327_v38 }
  0xd6   :  { %16354 = vmatprep.subr.bf16.mxu1 %v24307_v56  ;;  %12801 = vmatprep.mubr.msk.f32.mxu0 %vm18420_vm0, %v24322_v63  ;;  %v19278_v45 = vsub.f32 %v35_v58, %v721_v62  ;;  %v19335_v58 = vsub.f32 %v25_v2, %v19288_v60  ;;  %24390 = vst [vmem:[#allocation11_spill] sm:$0xff] %v19339_v43  ;;  %v24399_v2 = vand.u32 4294901760, %v19252_v47 }
  0xd7   :  { %13221 = vmatprep.mubr.msk.f32.mxu1 %vm18420_vm0, %v24322_v63  ;;  %v19272_v0 = vpack.c.bf16 %v724_v5, %v721_v62  ;;  %v19291_v59 = vsub.f32 %v36_v11, %v724_v5  ;;  %v24018_v11 = vand.u32 4294901760, %v19215_v50  ;;  %v19343_v62 = vsub.f32 %v1347_v16, %v19293_v53  ;;  %v19367_v16 = vld [vmem:[%s23950_s2 + $0x70] sm:$0xff] }
  0xd8   :  { %16068 = vmatpush3.bf16.msra.mxu0 %v19192_v32  ;;  %v24022_v5 = vand.u32 4294901760, %v19224_v55  ;;  %v24396_v35 = vand.u32 4294901760, %v19335_v58  ;;  %v24407_v32 = vand.u32 4294901760, %v19259_v28 }
  0xd9   :  { %16356 = vmatpush3.bf16.msra.mxu1 %v19197_v37  ;;  %16069 = vmatprep.subr.bf16.mxu0 %v24307_v56  ;;  %24386 = vst [vmem:[#allocation7_spill] sm:$0xff] %v19272_v0  ;;  %v797_v3 = vsub.f32 %v19215_v50, %v24018_v11  ;;  %v19397_v11 = vpack.c.bf16 %v742_v25, %v739_v14  ;;  %v24397_v13 = vand.u32 4294901760, %v19343_v62 }
  0xda   :  { %16357 = vmatprep.subr.bf16.mxu1 %v24307_v56  ;;  %v2121_v15 = vsub.f32 %v19224_v55, %v24022_v5  ;;  %v825_v44 = vsub.f32 %v19259_v28, %v24407_v32  ;;  %v24410_v32 = vand.u32 4294901760, %v19275_v10 }
  0xdb   :  { %24392 = vst [vmem:[#allocation13_spill] sm:$0xff] %v19397_v11 }
  0xdc   :  { %16071 = vmatpush3.bf16.msra.mxu0 %v19227_v61  ;;  %v2122_v5 = vand.u32 4294901760, %v2121_v15  ;;  %v24401_v15 = vand.u32 4294901760, %v19367_v16 }
  0xdd   :  { %16359 = vmatpush3.bf16.msra.mxu1 %v19242_v23  ;;  %16072 = vmatprep.subr.bf16.mxu0 %v24307_v56  ;;  %v24403_v23 = vand.u32 4294901760, %v19256_v57 }
  0xde   :  { %16360 = vmatprep.subr.bf16.mxu1 %v24307_v56 }
  0xe0   :  { %16074 = vmatpush3.bf16.msra.mxu0 %v19272_v0  ;;  %v818_v0 = vsub.f32 %v19252_v47, %v24399_v2  ;;  %v2142_v2 = vsub.f32 %v19256_v57, %v24403_v23 }
  0xe1   :  { %16362 = vmatpush3.bf16.msra.mxu1 %v19280_v21  ;;  %16075 = vmatprep.subr.bf16.mxu0 %v24307_v56 }
  0xe2   :  { %16363 = vmatprep.subr.bf16.mxu1 %v24307_v56 }
  0xe4   :  { %16077 = vmatpush3.bf16.msra.mxu0 %v19299_v24  ;;  %v2110_v24 = vsub.f32 %v19343_v62, %v24397_v13  ;;  %v19437_v13 = vsub.f32 %v19311_v51, %v739_v14  ;;  %v24404_v51 = vand.u32 4294901760, %v19382_v40  ;;  %v24405_v14 = vand.u32 4294901760, %v19387_v41 }
  0xe5   :  { %16365 = vmatpush3.bf16.msra.mxu1 %v19306_v27  ;;  %16078 = vmatprep.subr.bf16.mxu0 %v24307_v56  ;;  %v19409_v27 = vpack.c.bf16 %v24394_v8, %v24393_v49  ;;  %v798_v49 = vand.u32 4294901760, %v797_v3  ;;  %v805_v8 = vand.u32 4294901760, %v804_v30 }
  0xe6   :  { %16366 = vmatprep.subr.bf16.mxu1 %v24307_v56  ;;  %v19458_v30 = vpack.c.bf16 %v24405_v14, %v24404_v51  ;;  %v2143_v51 = vand.u32 4294901760, %v2142_v2  ;;  %v24408_v14 = vand.u32 4294901760, %v19261_v4 }
  0xe7   :  { %24395 = vst [vmem:[#allocation14_spill] sm:$0xff] %v19409_v27  ;;  %v16088_v61 = vpack.c.bf16 %v805_v8, %v798_v49  ;;  %v24411_v49 = vand.u32 4294901760, %v19327_v38 }
  0xe8   :  { %16080 = vmatpush3.bf16.msra.mxu0 %v19339_v43  ;;  %v786_v43 = vsub.f32 %v19335_v58, %v24396_v35  ;;  %v24400_v35 = vand.u32 4294901760, %v19254_v52  ;;  %24406 = vst [vmem:[#allocation15_spill] sm:$0xff] %v19458_v30 }
  0xe9   :  { %16368 = vmatpush3.bf16.msra.mxu1 %v19354_v36  ;;  %16081 = vmatprep.subr.bf16.mxu0 %v24307_v56  ;;  %v24398_v36 = vand.u32 4294901760, %v19250_v46  ;;  %v19485_v8 = vsub.f32 %v19327_v38, %v24411_v49 }
  0xea   :  { %16369 = vmatprep.subr.bf16.mxu1 %v24307_v56  ;;  %v2135_v3 = vsub.f32 %v19254_v52, %v24400_v35  ;;  %v19450_v35 = vsub.f32 %v19316_v17, %v742_v25  ;;  %v787_v23 = vand.u32 4294901760, %v786_v43  ;;  %v2111_v17 = vand.u32 4294901760, %v2110_v24 }
  0xeb   :  { %v811_v21 = vsub.f32 %v19250_v46, %v24398_v36  ;;  %v24402_v36 = vand.u32 4294901760, %v19372_v12  ;;  %v2156_v24 = vsub.f32 %v19275_v10, %v24410_v32  ;;  %v24049_v43 = vand.u32 4294901760, %v19322_v34 }
  0xec   :  { %16083 = vmatpush3.bf16.msra.mxu0 %v19397_v11  ;;  %v16376_v11 = vpack.c.bf16 %v2129_v26, %v2122_v5  ;;  %v2136_v37 = vand.u32 4294901760, %v2135_v3  ;;  %v826_v5 = vand.u32 4294901760, %v825_v44  ;;  %v24414_v44 = vand.u32 4294901760, %v19295_v1 }
  0xed   :  { %v19443_v29 = vpack.c.bf16 %v24402_v36, %v24401_v15  ;;  %16371 = vmatpush3.bf16.msra.mxu1 %v19409_v27  ;;  %16084 = vmatprep.subr.bf16.mxu0 %v24307_v56  ;;  %v812_v25 = vand.u32 4294901760, %v811_v21  ;;  %v819_v27 = vand.u32 4294901760, %v818_v0  ;;  %v832_v36 = vsub.f32 %v19261_v4, %v24408_v14 }
  0xee   :  { %16372 = vmatprep.subr.bf16.mxu1 %v24307_v56  ;;  %v24048_v15 = vand.u32 4294901760, %v19278_v45  ;;  %v24409_v0 = vand.u32 4294901760, %v19270_v6  ;;  %v16379_v38 = vpack.c.bf16 %v2143_v51, %v2136_v37  ;;  %v24413_v14 = vand.u32 4294901760, %v19291_v59 }
  0xef   :  { %v16091_v26 = vpack.c.bf16 %v819_v27, %v812_v25  ;;  %v833_v49 = vand.u32 4294901760, %v832_v36  ;;  %v2157_v27 = vand.u32 4294901760, %v2156_v24  ;;  %v24415_v37 = vand.u32 4294901760, %v19297_v9 }
  0xf0   :  { %16086 = vmatpush3.bf16.msra.mxu0 %v19443_v29  ;;  %v2149_v21 = vsub.f32 %v19270_v6, %v24409_v0  ;;  %v24412_v0 = vand.u32 4294901760, %v19332_v39  ;;  %v839_v2 = vsub.f32 %v19278_v45, %v24048_v15  ;;  %v846_v3 = vsub.f32 %v19291_v59, %v24413_v14 }
  0xf1   :  { %16374 = vmatpush3.bf16.msra.mxu1 %v19458_v30  ;;  %16087 = vmatprep.subr.bf16.mxu0 %v24307_v56  ;;  %v2170_v36 = vsub.f32 %v19297_v9, %v24415_v37  ;;  %v24418_v51 = vand.u32 4294901760, %v19320_v33  ;;  %v24419_v14 = vand.u32 4294901760, %v19367_v16  ;;  %v24422_v24 = vand.u32 4294901760, %v19352_v31 }
  0xf2   :  { %16375 = vmatprep.subr.bf16.mxu1 %v24307_v56  ;;  %v19494_v32 = vsub.f32 %v19332_v39, %v24412_v0  ;;  %v2150_v39 = vand.u32 4294901760, %v2149_v21  ;;  %v847_v15 = vand.u32 4294901760, %v846_v3  ;;  %v24421_v3 = vand.u32 4294901760, %v19346_v7 }
  0xf3   :  { %12802 = vmatmul.mubr.f32.vlgmr.msra.gmra.mrb[0].mxu0 %v787_v23  ;;  %v24416_v23 = vand.u32 4294901760, %v19301_v42  ;;  %v2177_v21 = vsub.f32 %v19320_v33, %v24418_v51  ;;  %v19526_v0 = vsub.f32 %v19367_v16, %v24419_v14  ;;  %v840_v51 = vand.u32 4294901760, %v839_v2 }
  0xf4   :  { %16089 = vmatpush3.bf16.msra.mxu0 %v16088_v61  ;;  %13222 = vmatmul.mubr.f32.vlgmr.msra.gmra.mrb[0].mxu1 %v2111_v17  ;;  %v2163_v61 = vsub.f32 %v19295_v1, %v24414_v44  ;;  %v2184_v44 = vsub.f32 %v19322_v34, %v24049_v43  ;;  %v24420_v16 = vand.u32 4294901760, %v19372_v12  ;;  %v16382_v43 = vpack.c.bf16 %v2157_v27, %v2150_v39 }
  0xf5   :  { %16377 = vmatpush3.bf16.msra.mxu1 %v16376_v11  ;;  %16090 = vmatprep.subr.bf16.mxu0 %v24307_v56  ;;  %v853_v17 = vsub.f32 %v19301_v42, %v24416_v23  ;;  %v24417_v11 = vand.u32 4294901760, %v19304_v22  ;;  %v2171_v23 = vand.u32 4294901760, %v2170_v36  ;;  %v867_v2 = vsub.f32 %v19346_v7, %v24421_v3 }
  0xf6   :  { %16378 = vmatprep.subr.bf16.mxu1 %v24307_v56  ;;  %12836 = vmatprep.mubr.msk.f32.mxu0 %vm18420_vm0, %v24322_v63  ;;  %v19539_v14 = vsub.f32 %v19372_v12, %v24420_v16  ;;  %v2164_v37 = vand.u32 4294901760, %v2163_v61  ;;  %v874_v12 = vsub.f32 %v19352_v31, %v24422_v24  ;;  %v880_v27 = vand.u32 4294901760, %v19437_v13 }
  0xf7   :  { %v860_v25 = vsub.f32 %v19304_v22, %v24417_v11  ;;  %13256 = vmatprep.mubr.msk.f32.mxu1 %vm18420_vm0, %v24322_v63  ;;  %v16094_v11 = vpack.c.bf16 %v833_v49, %v826_v5  ;;  %v854_v30 = vand.u32 4294901760, %v853_v17  ;;  %v2178_v5 = vand.u32 4294901760, %v2177_v21 }
  0xf8   :  { %16092 = vmatpush3.bf16.msra.mxu0 %v16091_v26  ;;  %v2185_v49 = vand.u32 4294901760, %v2184_v44  ;;  %v24424_v61 = vand.u32 4294901760, %v19382_v40  ;;  %v16097_v17 = vpack.c.bf16 %v847_v15, %v840_v51  ;;  %v887_v44 = vand.u32 4294901760, %v19450_v35 }
  0xf9   :  { %16380 = vmatpush3.bf16.msra.mxu1 %v16379_v38  ;;  %16093 = vmatprep.subr.bf16.mxu0 %v24307_v56  ;;  %v861_v26 = vand.u32 4294901760, %v860_v25  ;;  %v24423_v38 = vand.u32 4294901760, %v19360_v48  ;;  %v24425_v25 = vand.u32 4294901760, %v19362_v18  ;;  %v24426_v24 = vand.u32 4294901760, %v19387_v41 }
  0xfa   :  { %16381 = vmatprep.subr.bf16.mxu1 %v24307_v56  ;;  %v19556_v36 = vsub.f32 %v19382_v40, %v24424_v61  ;;  %v16385_v3 = vpack.c.bf16 %v2171_v23, %v2164_v37  ;;  %v24053_v40 = vand.u32 4294901760, %v19485_v8  ;;  %v868_v51 = vand.u32 4294901760, %v867_v2 }
  0xfb   :  { %v2191_v39 = vsub.f32 %v19360_v48, %v24423_v38  ;;  %v2198_v21 = vsub.f32 %v19362_v18, %v24425_v25  ;;  %v19565_v16 = vsub.f32 %v19387_v41, %v24426_v24  ;;  %v16100_v15 = vpack.c.bf16 %v861_v26, %v854_v30 }
  0xfc   :  { %16095 = vmatpush3.bf16.msra.mxu0 %v16094_v11  ;;  %v24052_v11 = vand.u32 4294901760, %v19494_v32  ;;  %v16388_v38 = vpack.c.bf16 %v2185_v49, %v2178_v5  ;;  %v875_v61 = vand.u32 4294901760, %v874_v12  ;;  %v881_v41 = vsub.f32 %v19437_v13, %v880_v27 }
  0xfd   :  { %16383 = vmatpush3.bf16.msra.mxu1 %v16382_v43  ;;  %16096 = vmatprep.subr.bf16.mxu0 %v24307_v56  ;;  %v2192_v25 = vand.u32 4294901760, %v2191_v39  ;;  %v2199_v43 = vand.u32 4294901760, %v2198_v21  ;;  %v888_v37 = vsub.f32 %v19450_v35, %v887_v44  ;;  %v894_v23 = vand.u32 4294901760, %v19526_v0 }
  0xfe   :  { %16384 = vmatprep.subr.bf16.mxu1 %v24307_v56  ;;  %v24056_v24 = vand.u32 4294901760, %v19539_v14  ;;  %v2205_v30 = vsub.f32 %v19485_v8, %v24053_v40  ;;  %v2212_v26 = vsub.f32 %v19494_v32, %v24052_v11  ;;  %v24055_v5 = vand.u32 4294901760, %v19556_v36 }
  0xff   :  { %v24054_v2 = vand.u32 4294901760, %v19565_v16  ;;  %v16103_v49 = vpack.c.bf16 %v875_v61, %v868_v51  ;;  %v882_v12 = vand.u32 4294901760, %v881_v41  ;;  %v16391_v39 = vpack.c.bf16 %v2199_v43, %v2192_v25 }
 0x100   :  { %16098 = vmatpush3.bf16.msra.mxu0 %v16097_v17  ;;  %v889_v17 = vand.u32 4294901760, %v888_v37  ;;  %v895_v21 = vsub.f32 %v19526_v0, %v894_v23  ;;  %v2206_v11 = vand.u32 4294901760, %v2205_v30  ;;  %v2213_v40 = vand.u32 4294901760, %v2212_v26 }
 0x101   :  { %16386 = vmatpush3.bf16.msra.mxu1 %v16385_v3  ;;  %16099 = vmatprep.subr.bf16.mxu0 %v24307_v56  ;;  %v902_v3 = vsub.f32 %v19539_v14, %v24056_v24  ;;  %v2219_v51 = vsub.f32 %v19556_v36, %v24055_v5  ;;  %v24445_v24 = vand.u32 4294901760, %v19335_v58 }
 0x102   :  { %16387 = vmatprep.subr.bf16.mxu1 %v24307_v56  ;;  %v16106_v61 = vpack.c.bf16 %v889_v17, %v882_v12  ;;  %v896_v25 = vand.u32 4294901760, %v895_v21  ;;  %v16403_v12 = vpack.c.bf16 %v19256_v57, %v19254_v52  ;;  %v16406_v17 = vpack.c.bf16 %v19275_v10, %v19270_v6 }
 0x103   :  { %v903_v41 = vand.u32 4294901760, %v902_v3  ;;  %v2220_v43 = vand.u32 4294901760, %v2219_v51  ;;  %v16121_v21 = vpack.c.bf16 %v19291_v59, %v19278_v45  ;;  %v16409_v3 = vpack.c.bf16 %v19297_v9, %v19295_v1 }
 0x104   :  { %16101 = vmatpush3.bf16.msra.mxu0 %v16100_v15  ;;  %v2226_v15 = vsub.f32 %v19565_v16, %v24054_v2  ;;  %v16124_v51 = vpack.c.bf16 %v19304_v22, %v19301_v42  ;;  %v24444_v2 = vand.u32 4294901760, %v19238_v20 }
 0x105   :  { %16389 = vmatpush3.bf16.msra.mxu1 %v16388_v38  ;;  %16102 = vmatprep.subr.bf16.mxu0 %v24307_v56  ;;  %v16394_v38 = vpack.c.bf16 %v2213_v40, %v2206_v11  ;;  %v16109_v30 = vpack.c.bf16 %v903_v41, %v896_v25  ;;  %v16400_v40 = vpack.c.bf16 %v19238_v20, %v19224_v55  ;;  %v24450_v20 = vand.u32 4294901760, %v19256_v57 }
 0x106   :  { %16390 = vmatprep.subr.bf16.mxu1 %v24307_v56  ;;  %v2227_v37 = vand.u32 4294901760, %v2226_v15  ;;  %v16115_v11 = vpack.c.bf16 %v19252_v47, %v19250_v46  ;;  %v16412_v15 = vpack.c.bf16 %v19322_v34, %v19320_v33  ;;  %v16415_v25 = vpack.c.bf16 %v19362_v18, %v19360_v48 }
 0x107   :  { %v16130_v41 = vpack.c.bf16 %v19450_v35, %v19437_v13  ;;  %v24454_v57 = vand.u32 4294901760, %v19275_v10  ;;  %v24460_v10 = vand.u32 4294901760, %v19304_v22  ;;  %v24466_v22 = vand.u32 4294901760, %v19362_v18 }
 0x108   :  { %16104 = vmatpush3.bf16.msra.mxu0 %v16103_v49  ;;  %v16397_v26 = vpack.c.bf16 %v2227_v37, %v2220_v43  ;;  %v16112_v49 = vpack.c.bf16 %v19217_v54, %v19215_v50  ;;  %v16133_v43 = vpack.c.bf16 %v19539_v14, %v19526_v0  ;;  %v16421_v37 = vpack.c.bf16 %v19565_v16, %v19556_v36  ;;  %v10768_v0 = vld [vmem:[%s23951_s3 + $0x188] sm:$0xff] }
 0x109   :  { %16392 = vmatpush3.bf16.msra.mxu1 %v16391_v39  ;;  %16105 = vmatprep.subr.bf16.mxu0 %v24307_v56  ;;  %v16118_v39 = vpack.c.bf16 %v19261_v4, %v19259_v28  ;;  %v24470_v13 = vand.u32 4294901760, %v19556_v36  ;;  %v24471_v35 = vand.u32 4294901760, %v19565_v16  ;;  %v4037_v16 = vand.u32 4294901760, %v10768_v0 }
 0x10a   :  { %16393 = vmatprep.subr.bf16.mxu1 %v24307_v56 }
 0x10c   :  { %16107 = vmatpush3.bf16.msra.mxu0 %v16106_v61  ;;  %v16127_v61 = vpack.c.bf16 %v19352_v31, %v19346_v7 }
 0x10d   :  { %16395 = vmatpush3.bf16.msra.mxu1 %v16394_v38  ;;  %16108 = vmatprep.subr.bf16.mxu0 %v24307_v56  ;;  %v16418_v38 = vpack.c.bf16 %v19494_v32, %v19485_v8 }
 0x10e   :  { %16396 = vmatprep.subr.bf16.mxu1 %v24307_v56 }
 0x110   :  { %16110 = vmatpush3.bf16.msra.mxu0 %v16109_v30  ;;  %v24427_v30 = vld [vmem:[#allocation21_spill] sm:$0xff] }
 0x111   :  { %16398 = vmatpush3.bf16.msra.mxu1 %v16397_v26  ;;  %16111 = vmatprep.subr.bf16.mxu0 %v24307_v56  ;;  %v24428_v26 = vld [vmem:[#allocation19_spill] sm:$0xff] }
 0x112   :  { %16399 = vmatprep.subr.bf16.mxu1 %v24307_v56 }
 0x113   :  { %12837 = vmatmul.mubr.f32.vlgmr.msra.gmra.mrb[0].mxu0 %v19288_v60 }
 0x114   :  { %16113 = vmatpush3.bf16.msra.mxu0 %v16112_v49  ;;  %13257 = vmatmul.mubr.f32.vlgmr.msra.gmra.mrb[0].mxu1 %v19293_v53  ;;  %v24429_v49 = vld [vmem:[#allocation5_spill] sm:$0xff] }
 0x115   :  { %16401 = vmatpush3.bf16.msra.mxu1 %v16400_v40  ;;  %16114 = vmatprep.subr.bf16.mxu0 %v24307_v56  ;;  %v24430_v40 = vld [vmem:[#allocation20_spill] sm:$0xff] }
 0x116   :  { %16402 = vmatprep.subr.bf16.mxu1 %v24307_v56  ;;  %12871 = vmatprep.mubr.msk.f32.mxu0 %vm18420_vm0, %v24322_v63 }
 0x117   :  { %13291 = vmatprep.mubr.msk.f32.mxu1 %vm18420_vm0, %v24322_v63 }
 0x118   :  { %16116 = vmatpush3.bf16.msra.mxu0 %v16115_v11  ;;  %v24431_v11 = vld [vmem:[#allocation6_spill] sm:$0xff] }
 0x119   :  { %16404 = vmatpush3.bf16.msra.mxu1 %v16403_v12  ;;  %16117 = vmatprep.subr.bf16.mxu0 %v24307_v56  ;;  %v24432_v12 = vld [vmem:[#allocation7_spill] sm:$0xff] }
 0x11a   :  { %16405 = vmatprep.subr.bf16.mxu1 %v24307_v56 }
 0x11c   :  { %16119 = vmatpush3.bf16.msra.mxu0 %v16118_v39  ;;  %v24433_v39 = vld [vmem:[#allocation8_spill] sm:$0xff] }
 0x11d   :  { %16407 = vmatpush3.bf16.msra.mxu1 %v16406_v17  ;;  %16120 = vmatprep.subr.bf16.mxu0 %v24307_v56  ;;  %v24434_v17 = vld [vmem:[#allocation9_spill] sm:$0xff] }
 0x11e   :  { %16408 = vmatprep.subr.bf16.mxu1 %v24307_v56 }
 0x120   :  { %16122 = vmatpush3.bf16.msra.mxu0 %v16121_v21  ;;  %v24435_v21 = vld [vmem:[#allocation10_spill] sm:$0xff] }
 0x121   :  { %16410 = vmatpush3.bf16.msra.mxu1 %v16409_v3  ;;  %16123 = vmatprep.subr.bf16.mxu0 %v24307_v56  ;;  %v24436_v3 = vld [vmem:[#allocation11_spill] sm:$0xff] }
 0x122   :  { %16411 = vmatprep.subr.bf16.mxu1 %v24307_v56 }
 0x124   :  { %16125 = vmatpush3.bf16.msra.mxu0 %v16124_v51  ;;  %v24437_v51 = vld [vmem:[#allocation12_spill] sm:$0xff] }
 0x125   :  { %16413 = vmatpush3.bf16.msra.mxu1 %v16412_v15  ;;  %16126 = vmatprep.subr.bf16.mxu0 %v24307_v56  ;;  %v24438_v15 = vld [vmem:[#allocation13_spill] sm:$0xff] }
 0x126   :  { %16414 = vmatprep.subr.bf16.mxu1 %v24307_v56 }
 0x128   :  { %16128 = vmatpush3.bf16.msra.mxu0 %v16127_v61  ;;  %v24439_v61 = vld [vmem:[#allocation14_spill] sm:$0xff] }
 0x129   :  { %16416 = vmatpush3.bf16.msra.mxu1 %v16415_v25  ;;  %16129 = vmatprep.subr.bf16.mxu0 %v24307_v56  ;;  %v24440_v25 = vand.u32 4294901760, %v19215_v50  ;;  %v24446_v50 = vand.u32 4294901760, %v19343_v62 }
 0x12a   :  { %16417 = vmatprep.subr.bf16.mxu1 %v24307_v56 }
 0x12c   :  { %16131 = vmatpush3.bf16.msra.mxu0 %v16130_v41  ;;  %v24441_v41 = vand.u32 4294901760, %v19217_v54  ;;  %v24447_v54 = vand.u32 4294901760, %v19250_v46  ;;  %v24451_v46 = vand.u32 4294901760, %v19259_v28  ;;  %v24457_v28 = vand.u32 4294901760, %v19295_v1 }
 0x12d   :  { %16419 = vmatpush3.bf16.msra.mxu1 %v16418_v38  ;;  %16132 = vmatprep.subr.bf16.mxu0 %v24307_v56  ;;  %v24463_v1 = vand.u32 4294901760, %v19346_v7  ;;  %v24468_v7 = vand.u32 4294901760, %v19494_v32  ;;  %v10767_v32 = vld [vmem:[%s23951_s3 + $0x180] sm:$0xff] }
 0x12e   :  { %16420 = vmatprep.subr.bf16.mxu1 %v24307_v56  ;;  %v16160_v38 = vpack.c.bf16 %v24441_v41, %v24440_v25  ;;  %v24448_v25 = vand.u32 4294901760, %v19252_v47  ;;  %v24452_v47 = vand.u32 4294901760, %v19261_v4  ;;  %v24458_v4 = vand.u32 4294901760, %v19297_v9 }
 0x12f   :  { %v24464_v9 = vand.u32 4294901760, %v19352_v31 }
 0x130   :  { %16134 = vmatpush3.bf16.msra.mxu0 %v16133_v43  ;;  %v24442_v43 = vld [vmem:[#allocation15_spill] sm:$0xff]  ;;  %v16163_v41 = vpack.c.bf16 %v24448_v25, %v24447_v54 }
 0x131   :  { %16422 = vmatpush3.bf16.msra.mxu1 %v16421_v37  ;;  %16135 = vmatprep.subr.bf16.mxu0 %v24307_v56  ;;  %v24443_v37 = vand.u32 4294901760, %v19224_v55  ;;  %v24449_v55 = vand.u32 4294901760, %v19254_v52  ;;  %v24453_v52 = vand.u32 4294901760, %v19270_v6  ;;  %v24459_v6 = vand.u32 4294901760, %v19301_v42 }
 0x132   :  { %16423 = vmatprep.subr.bf16.mxu1 %v24307_v56  ;;  %v16175_v25 = vpack.c.bf16 %v24464_v9, %v24463_v1  ;;  %v24465_v42 = vand.u32 4294901760, %v19360_v48  ;;  %v24469_v48 = vand.u32 4294901760, %v19539_v14 }
 0x133   :  { %12872 = vmatmul.mubr.f32.vlgmr.msra.gmra.mrb[0].mxu0 %v19335_v58  ;;  %v16448_v5 = vpack.c.bf16 %v24444_v2, %v24443_v37  ;;  %v16451_v2 = vpack.c.bf16 %v24450_v20, %v24449_v55  ;;  %v16166_v58 = vpack.c.bf16 %v24452_v47, %v24451_v46  ;;  %v16457_v37 = vpack.c.bf16 %v24458_v4, %v24457_v28  ;;  %v10773_v47 = vld [vmem:[%s23951_s3 + $0x1b0] sm:$0xff]  ;;  %v10739_v28 = vld [vmem:[%s23951_s3 + $0x140] sm:$0xff]  ;;  %v10740_v4 = vld [vmem:[%s23951_s3 + $0x148] sm:$0xff] }
 0x134   :  { %16137 = vmatpush3.bf16.msra.mxu0 %v19170_v19  ;;  %13292 = vmatmul.mubr.f32.vlgmr.msra.gmra.mrb[0].mxu1 %v19343_v62  ;;  %v16454_v62 = vpack.c.bf16 %v24454_v57, %v24453_v52  ;;  %v16181_v18 = vpack.c.bf16 %v24469_v48, %v894_v23  ;;  %v10733_v23 = vld [vmem:[%s23951_s3 + $0x110] sm:$0xff]  ;;  %v3998_v48 = vld [vmem:[%s3997_s24] sm:$0xff]  ;;  %s22576_s24 = sld [smem:[#allocation3 + $0x86]] }
 0x135   :  { %16425 = vmatpush3.bf16.msra.mxu1 %v24427_v30  ;;  %16138 = vmatprep.subr.bf16.mxu0 %v24307_v56 }
 0x136   :  { %16426 = vmatprep.subr.bf16.mxu1 %v24307_v56  ;;  %12906 = vmatprep.mubr.msk.f32.mxu0 %vm18420_vm0, %v24322_v63 }
 0x137   :  { %13326 = vmatprep.mubr.msk.f32.mxu1 %vm18420_vm0, %v24322_v63 }
 0x138   :  { %16140 = vmatpush3.bf16.msra.mxu0 %v24428_v26 }
 0x139   :  { %16428 = vmatpush3.bf16.msra.mxu1 %v24429_v49  ;;  %16141 = vmatprep.subr.bf16.mxu0 %v24307_v56 }
 0x13a   :  { %16429 = vmatprep.subr.bf16.mxu1 %v24307_v56  ;;  %s10858_s15 = sshll.u32 %s22576_s24, 3  ;;  %s23268_s24 = sld [smem:[#allocation3 + $0x7]] }
 0x13b   :  { %s7969_s27 = scalar_lea.vmem %s23949_s1, %s10858_s15 }
 0x13c   :  { %16143 = vmatpush3.bf16.msra.mxu0 %v24430_v40 }
 0x13d   :  { %16431 = vmatpush3.bf16.msra.mxu1 %v24431_v11  ;;  %16144 = vmatprep.subr.bf16.mxu0 %v24307_v56 }
 0x13e   :  { %16432 = vmatprep.subr.bf16.mxu1 %v24307_v56 }
 0x140   :  { %16146 = vmatpush3.bf16.msra.mxu0 %v24432_v12 }
 0x141   :  { %16434 = vmatpush3.bf16.msra.mxu1 %v24433_v39  ;;  %16147 = vmatprep.subr.bf16.mxu0 %v24307_v56 }
 0x142   :  { %16435 = vmatprep.subr.bf16.mxu1 %v24307_v56 }
 0x144   :  { %16149 = vmatpush3.bf16.msra.mxu0 %v24434_v17 }
 0x145   :  { %16437 = vmatpush3.bf16.msra.mxu1 %v24435_v21  ;;  %16150 = vmatprep.subr.bf16.mxu0 %v24307_v56 }
 0x146   :  { %16438 = vmatprep.subr.bf16.mxu1 %v24307_v56 }
 0x148   :  { %16152 = vmatpush3.bf16.msra.mxu0 %v24436_v3 }
 0x149   :  { %16440 = vmatpush3.bf16.msra.mxu1 %v24437_v51  ;;  %16153 = vmatprep.subr.bf16.mxu0 %v24307_v56 }
 0x14a   :  { %16441 = vmatprep.subr.bf16.mxu1 %v24307_v56 }
 0x14c   :  { %16155 = vmatpush3.bf16.msra.mxu0 %v24438_v15 }
 0x14d   :  { %16443 = vmatpush3.bf16.msra.mxu1 %v24439_v61  ;;  %16156 = vmatprep.subr.bf16.mxu0 %v24307_v56 }
 0x14e   :  { %16444 = vmatprep.subr.bf16.mxu1 %v24307_v56 }
 0x150   :  { %16158 = vmatpush3.bf16.msra.mxu0 %v19443_v29 }
 0x151   :  { %16446 = vmatpush3.bf16.msra.mxu1 %v24442_v43  ;;  %16159 = vmatprep.subr.bf16.mxu0 %v24307_v56 }
 0x152   :  { %16447 = vmatprep.subr.bf16.mxu1 %v24307_v56 }
 0x153   :  { %12907 = vmatmul.mubr.f32.vlgmr.msra.gmra.mrb[0].mxu0 %v24445_v24  ;;  %v24455_v24 = vand.u32 4294901760, %v19278_v45  ;;  %v24461_v45 = vand.u32 4294901760, %v19320_v33  ;;  %v16178_v33 = vpack.c.bf16 %v887_v44, %v880_v27  ;;  %v16469_v27 = vpack.c.bf16 %v24471_v35, %v24470_v13 }
 0x154   :  { %16161 = vmatpush3.bf16.msra.mxu0 %v16160_v38  ;;  %13327 = vmatmul.mubr.f32.vlgmr.msra.gmra.mrb[0].mxu1 %v24446_v50  ;;  %v16172_v50 = vpack.c.bf16 %v24460_v10, %v24459_v6  ;;  %v4034_v44 = vand.u32 4294901760, %v10767_v32  ;;  %v4052_v10 = vand.u32 4294901760, %v10773_v47 }
 0x155   :  { %16449 = vmatpush3.bf16.msra.mxu1 %v16448_v5  ;;  %16162 = vmatprep.subr.bf16.mxu0 %v24307_v56  ;;  %v24456_v5 = vand.u32 4294901760, %v19291_v59  ;;  %v24462_v59 = vand.u32 4294901760, %v19322_v34  ;;  %v24467_v34 = vand.u32 4294901760, %v19485_v8  ;;  %v10732_v8 = vld [vmem:[%s23951_s3 + $0x108] sm:$0xff] }
 0x156   :  { %16450 = vmatprep.subr.bf16.mxu1 %v24307_v56  ;;  %12941 = vmatprep.mubr.msk.f32.mxu0 %vm18420_vm0, %v24322_v63  ;;  %v2713_v36 = vand.u32 4294901760, %v10732_v8 }
 0x157   :  { %13361 = vmatprep.mubr.msk.f32.mxu1 %vm18420_vm0, %v24322_v63  ;;  %v16169_v38 = vpack.c.bf16 %v24456_v5, %v24455_v24  ;;  %v16460_v54 = vpack.c.bf16 %v24462_v59, %v24461_v45  ;;  %v16466_v31 = vpack.c.bf16 %v24468_v7, %v24467_v34  ;;  %v10775_v45 = vld [vmem:[%s23951_s3 + $0x1c0] sm:$0xff]  ;;  %v10776_v59 = vld [vmem:[%s23951_s3 + $0x1c8] sm:$0xff]  ;;  %v2737_v34 = vand.u32 4294901760, %v10740_v4  ;;  %v10741_v7 = vld [vmem:[%s23951_s3 + $0x150] sm:$0xff] }
 0x158   :  { %16164 = vmatpush3.bf16.msra.mxu0 %v16163_v41  ;;  %v16463_v41 = vpack.c.bf16 %v24466_v22, %v24465_v42  ;;  %v19899_v57 = vsub.f32 %v10732_v8, %v2713_v36  ;;  %v2674_v42 = vld [vmem:[%s2673_s18] sm:$0xff]  ;;  %v4058_v35 = vand.u32 4294901760, %v10775_v45  ;;  %s3994_s18 = scalar_lea.vmem %s23949_s1, %s10749_s29  ;;  %s21204_s29 = sld [smem:[#allocation3 + $0x84]] }
 0x159   :  { %16452 = vmatpush3.bf16.msra.mxu1 %v16451_v2  ;;  %16165 = vmatprep.subr.bf16.mxu0 %v24307_v56 }
 0x15a   :  { %16453 = vmatprep.subr.bf16.mxu1 %v24307_v56 }
 0x15c   :  { %16167 = vmatpush3.bf16.msra.mxu0 %v16166_v58  ;;  %v10774_v58 = vld [vmem:[%s23951_s3 + $0x1b8] sm:$0xff] }
 0x15d   :  { %16455 = vmatpush3.bf16.msra.mxu1 %v16454_v62  ;;  %16168 = vmatprep.subr.bf16.mxu0 %v24307_v56  ;;  %v19906_v62 = vsub.f32 %v10767_v32, %v4034_v44 }
 0x15e   :  { %16456 = vmatprep.subr.bf16.mxu1 %v24307_v56  ;;  %s10786_s23 = sshll.u32 %s21204_s29, 3 }
 0x15f   :  { %s5321_s7 = scalar_lea.vmem %s23949_s1, %s10786_s23 }
 0x160   :  { %16170 = vmatpush3.bf16.msra.mxu0 %v16169_v38 }
 0x161   :  { %16458 = vmatpush3.bf16.msra.mxu1 %v16457_v37  ;;  %16171 = vmatprep.subr.bf16.mxu0 %v24307_v56  ;;  %v19920_v37 = vsub.f32 %v10768_v0, %v4037_v16  ;;  %v10777_v0 = vld [vmem:[%s23951_s3 + $0x1d0] sm:$0xff] }
 0x162   :  { %16459 = vmatprep.subr.bf16.mxu1 %v24307_v56 }
 0x164   :  { %16173 = vmatpush3.bf16.msra.mxu0 %v16172_v50  ;;  %v4055_v50 = vand.u32 4294901760, %v10774_v58 }
 0x165   :  { %16461 = vmatpush3.bf16.msra.mxu1 %v16460_v54  ;;  %16174 = vmatprep.subr.bf16.mxu0 %v24307_v56 }
 0x166   :  { %16462 = vmatprep.subr.bf16.mxu1 %v24307_v56  ;;  %v19962_v32 = vpack.c.bf16 %v4055_v50, %v4052_v10 }
 0x168   :  { %16176 = vmatpush3.bf16.msra.mxu0 %v16175_v25  ;;  %24478 = vst [vmem:[#allocation25_spill] sm:$0xff] %v19962_v32 }
 0x169   :  { %16464 = vmatpush3.bf16.msra.mxu1 %v16463_v41  ;;  %16177 = vmatprep.subr.bf16.mxu0 %v24307_v56 }
 0x16a   :  { %16465 = vmatprep.subr.bf16.mxu1 %v24307_v56 }
 0x16c   :  { %16179 = vmatpush3.bf16.msra.mxu0 %v16178_v33  ;;  %v2734_v33 = vand.u32 4294901760, %v10739_v28 }
 0x16d   :  { %16467 = vmatpush3.bf16.msra.mxu1 %v16466_v31  ;;  %16180 = vmatprep.subr.bf16.mxu0 %v24307_v56  ;;  %v10742_v31 = vld [vmem:[%s23951_s3 + $0x158] sm:$0xff] }
 0x16e   :  { %16468 = vmatprep.subr.bf16.mxu1 %v24307_v56 }
 0x170   :  { %16182 = vmatpush3.bf16.msra.mxu0 %v16181_v18 }
 0x171   :  { %16470 = vmatpush3.bf16.msra.mxu1 %v16469_v27  ;;  %16183 = vmatprep.subr.bf16.mxu0 %v24307_v56  ;;  %v4061_v27 = vand.u32 4294901760, %v10776_v59 }
 0x172   :  { %16471 = vmatprep.subr.bf16.mxu1 %v24307_v56 }
 0x173   :  { %12942 = vmatmul.mubr.f32.vlgmr.msra.gmra.mrb[0].mxu0 %v19288_v60 }
 0x174   :  { %16185 = vmatpush3.bf16.msra.mxu0 %v19170_v19  ;;  %13362 = vmatmul.mubr.f32.vlgmr.msra.gmra.mrb[0].mxu1 %v19293_v53  ;;  %v10731_v19 = vld [vmem:[%s23951_s3 + $0x100] sm:$0xff] }
 0x175   :  { %16473 = vmatpush3.bf16.msra.mxu1 %v24427_v30  ;;  %16186 = vmatprep.subr.bf16.mxu0 %v24307_v56  ;;  %v2710_v14 = vand.u32 4294901760, %v10731_v19  ;;  %v10734_v30 = vld [vmem:[%s23951_s3 + $0x118] sm:$0xff] }
 0x176   :  { %16474 = vmatprep.subr.bf16.mxu1 %v24307_v56  ;;  %12976 = vmatprep.mubr.msk.f32.mxu0 %vm18420_vm0, %v24322_v63 }
 0x177   :  { %13396 = vmatprep.mubr.msk.f32.mxu1 %vm18420_vm0, %v24322_v63  ;;  %v19897_v52 = vsub.f32 %v10731_v19, %v2710_v14 }
 0x178   :  { %16188 = vmatpush3.bf16.msra.mxu0 %v24428_v26  ;;  %v10769_v26 = vld [vmem:[%s23951_s3 + $0x190] sm:$0xff] }
 0x179   :  { %16476 = vmatpush3.bf16.msra.mxu1 %v24429_v49  ;;  %16189 = vmatprep.subr.bf16.mxu0 %v24307_v56  ;;  %v10770_v49 = vld [vmem:[%s23951_s3 + $0x198] sm:$0xff] }
 0x17a   :  { %16477 = vmatprep.subr.bf16.mxu1 %v24307_v56 }
 0x17c   :  { %16191 = vmatpush3.bf16.msra.mxu0 %v24430_v40  ;;  %v19852_v40 = vpack.c.bf16 %v2713_v36, %v2710_v14  ;;  %v10778_v14 = vld [vmem:[%s23951_s3 + $0x1d8] sm:$0xff]  ;;  %v19970_v36 = vand.u32 4294901760, %v2674_v42 }
 0x17d   :  { %16479 = vmatpush3.bf16.msra.mxu1 %v24431_v11  ;;  %16192 = vmatprep.subr.bf16.mxu0 %v24307_v56  ;;  %v2716_v11 = vand.u32 4294901760, %v10733_v23 }
 0x17e   :  { %16480 = vmatprep.subr.bf16.mxu1 %v24307_v56 }
 0x17f   :  { %v19932_v54 = vsub.f32 %v10733_v23, %v2716_v11  ;;  %v2743_v23 = vand.u32 4294901760, %v10742_v31 }
 0x180   :  { %16194 = vmatpush3.bf16.msra.mxu0 %v24432_v12  ;;  %v2719_v12 = vand.u32 4294901760, %v10734_v30 }
 0x181   :  { %16482 = vmatpush3.bf16.msra.mxu1 %v24433_v39  ;;  %16195 = vmatprep.subr.bf16.mxu0 %v24307_v56  ;;  %v19856_v39 = vpack.c.bf16 %v4037_v16, %v4034_v44  ;;  %v2740_v16 = vand.u32 4294901760, %v10741_v7 }
 0x182   :  { %16483 = vmatprep.subr.bf16.mxu1 %v24307_v56  ;;  %v19934_v1 = vsub.f32 %v10734_v30, %v2719_v12  ;;  %v19975_v30 = vand.u32 4294901760, %v3998_v48 }
 0x183   :  { %24472 = vst [vmem:[#allocation16_spill] sm:$0xff] %v19856_v39 }
 0x184   :  { %16197 = vmatpush3.bf16.msra.mxu0 %v24434_v17  ;;  %v4040_v17 = vand.u32 4294901760, %v10769_v26 }
 0x185   :  { %16485 = vmatpush3.bf16.msra.mxu1 %v24435_v21  ;;  %16198 = vmatprep.subr.bf16.mxu0 %v24307_v56  ;;  %v4043_v21 = vand.u32 4294901760, %v10770_v49 }
 0x186   :  { %16486 = vmatprep.subr.bf16.mxu1 %v24307_v56  ;;  %v19936_v9 = vsub.f32 %v10769_v26, %v4040_v17  ;;  %v19977_v26 = vsub.f32 %v10773_v47, %v4052_v10  ;;  %v20021_v47 = vpack.c.bf16 %v2743_v23, %v2740_v16 }
 0x187   :  { %v19879_v20 = vpack.c.bf16 %v4043_v21, %v4040_v17  ;;  %v19938_v25 = vsub.f32 %v10770_v49, %v4043_v21  ;;  %v19979_v49 = vsub.f32 %v10774_v58, %v4055_v50  ;;  %v19986_v17 = vsub.f32 %v10740_v4, %v2737_v34 }
 0x188   :  { %16200 = vmatpush3.bf16.msra.mxu0 %v24436_v3  ;;  %v10735_v3 = vld [vmem:[%s23951_s3 + $0x120] sm:$0xff]  ;;  %v19988_v21 = vpack.c.bf16 %v4061_v27, %v4058_v35  ;;  %24481 = vst [vmem:[#allocation21_spill] sm:$0xff] %v20021_v47  ;;  %v24058_v58 = vand.u32 4294901760, %v19899_v57  ;;  %v24064_v50 = vand.u32 4294901760, %v19920_v37 }
 0x189   :  { %16488 = vmatpush3.bf16.msra.mxu1 %v24437_v51  ;;  %16201 = vmatprep.subr.bf16.mxu0 %v24307_v56  ;;  %v10771_v51 = vld [vmem:[%s23951_s3 + $0x1a0] sm:$0xff]  ;;  %24474 = vst [vmem:[#allocation18_spill] sm:$0xff] %v19879_v20 }
 0x18a   :  { %16489 = vmatprep.subr.bf16.mxu1 %v24307_v56  ;;  %v4046_v2 = vand.u32 4294901760, %v10771_v51  ;;  %24480 = vst [vmem:[#allocation27_spill] sm:$0xff] %v19988_v21 }
 0x18c   :  { %16203 = vmatpush3.bf16.msra.mxu0 %v24438_v15  ;;  %v10772_v15 = vld [vmem:[%s23951_s3 + $0x1a8] sm:$0xff]  ;;  %v19952_v18 = vsub.f32 %v10771_v51, %v4046_v2  ;;  %v19993_v51 = vld [vmem:[%s23951_s3 + $0x160] sm:$0xff] }
 0x18d   :  { %16491 = vmatpush3.bf16.msra.mxu1 %v24439_v61  ;;  %16204 = vmatprep.subr.bf16.mxu0 %v24307_v56  ;;  %v19874_v61 = vpack.c.bf16 %v2719_v12, %v2716_v11  ;;  %v4049_v46 = vand.u32 4294901760, %v10772_v15  ;;  %v19981_v11 = vpack.c.bf16 %v2737_v34, %v2734_v33  ;;  %v19983_v12 = vsub.f32 %v10739_v28, %v2734_v33 }
 0x18e   :  { %16492 = vmatprep.subr.bf16.mxu1 %v24307_v56  ;;  %v20028_v28 = vsub.f32 %v10741_v7, %v2740_v16  ;;  %v2746_v4 = vand.u32 4294901760, %v19993_v51  ;;  %v2811_v16 = vsub.f32 %v19899_v57, %v24058_v58 }
 0x18f   :  { %24473 = vst [vmem:[#allocation17_spill] sm:$0xff] %v19874_v61  ;;  %v19924_v6 = vpack.c.bf16 %v4049_v46, %v4046_v2  ;;  %v19957_v19 = vsub.f32 %v10772_v15, %v4049_v46  ;;  %24479 = vst [vmem:[#allocation26_spill] sm:$0xff] %v19981_v11  ;;  %v19998_v15 = vld [vmem:[%s23951_s3 + $0x168] sm:$0xff]  ;;  %v20009_v2 = vld [vmem:[%s23951_s3 + $0x1e0] sm:$0xff] }
 0x190   :  { %16206 = vmatpush3.bf16.msra.mxu0 %v19443_v29  ;;  %v10736_v29 = vld [vmem:[%s23951_s3 + $0x128] sm:$0xff]  ;;  %v2749_v10 = vand.u32 4294901760, %v19998_v15  ;;  %v24484_v58 = vand.u32 4294901760, %v20009_v2 }
 0x191   :  { %16494 = vmatpush3.bf16.msra.mxu1 %v24442_v43  ;;  %16495 = vmatprep.subr.bf16.mxu0 %v24307_v56  ;;  %v2722_v43 = vand.u32 4294901760, %v10735_v3  ;;  %v2725_v55 = vand.u32 4294901760, %v10736_v29  ;;  %24476 = vst [vmem:[#allocation23_spill] sm:$0xff] %v19924_v6  ;;  %v20014_v46 = vld [vmem:[%s23951_s3 + $0x1e8] sm:$0xff] }
 0x192   :  { %16783 = vmatprep.subr.bf16.mxu1 %v24307_v56 }
 0x193   :  { %12977 = vmatmul.mubr.f32.vlgmr.msra.gmra.mrb[0].mxu0 %v19288_v60  ;;  %v10737_v60 = vld [vmem:[%s23951_s3 + $0x130] sm:$0xff]  ;;  %v19909_v24 = vpack.c.bf16 %v2725_v55, %v2722_v43  ;;  %v19941_v22 = vsub.f32 %v10735_v3, %v2722_v43  ;;  %v19943_v41 = vsub.f32 %v10736_v29, %v2725_v55  ;;  %v4064_v3 = vand.u32 4294901760, %v10777_v0 }
 0x194   :  { %13397 = vmatmul.mubr.f32.vlgmr.msra.gmra.mrb[0].mxu1 %v19293_v53  ;;  %16497 = vmatpush3.bf16.msra.mxu0 %v19852_v40  ;;  %v10738_v53 = vld [vmem:[%s23951_s3 + $0x138] sm:$0xff]  ;;  %v2728_v5 = vand.u32 4294901760, %v10737_v60  ;;  %v4067_v29 = vand.u32 4294901760, %v10778_v14  ;;  %v20002_v43 = vsub.f32 %v10775_v45, %v4058_v35  ;;  %v20004_v55 = vsub.f32 %v10776_v59, %v4061_v27 }
 0x195   :  { %16785 = vmatpush3.bf16.msra.mxu1 %v19856_v39  ;;  %16498 = vmatprep.subr.bf16.mxu0 %v24307_v56  ;;  %24475 = vst [vmem:[#allocation22_spill] sm:$0xff] %v19909_v24  ;;  %v2731_v38 = vand.u32 4294901760, %v10738_v53  ;;  %v20034_v45 = vsub.f32 %v10742_v31, %v2743_v23  ;;  %v20042_v34 = vsub.f32 %v10777_v0, %v4064_v3  ;;  %v20054_v31 = vld [vmem:[%s23951_s3 + $0x178] sm:$0xff]  ;;  %v20064_v0 = vld [vmem:[%s23951_s3 + $0x1f0] sm:$0xff]  ;;  %v24485_v23 = vand.u32 4294901760, %v20014_v46 }
 0x196   :  { %16786 = vmatprep.subr.bf16.mxu1 %v24307_v56  ;;  %13431 = vmatprep.mubr.msk.f32.mxu0 %vm18420_vm0, %v24322_v63  ;;  %v19960_v8 = vsub.f32 %v10737_v60, %v2728_v5  ;;  %v20017_v60 = vsub.f32 %v2674_v42, %v19970_v36  ;;  %v20036_v59 = vpack.c.bf16 %v4067_v29, %v4064_v3  ;;  %v24490_v42 = vand.u32 4294901760, %v19934_v1 }
 0x197   :  { %13851 = vmatprep.mubr.msk.f32.mxu1 %vm18420_vm0, %v24322_v63  ;;  %v19954_v13 = vpack.c.bf16 %v2731_v38, %v2728_v5  ;;  %v19973_v44 = vsub.f32 %v10738_v53, %v2731_v38  ;;  %v24057_v53 = vand.u32 4294901760, %v19897_v52  ;;  %v20025_v5 = vsub.f32 %v3998_v48, %v19975_v30  ;;  %v20049_v48 = vld [vmem:[%s23951_s3 + $0x170] sm:$0xff] }
 0x198   :  { %16500 = vmatpush3.bf16.msra.mxu0 %v19874_v61  ;;  %v24061_v38 = vand.u32 4294901760, %v19906_v62  ;;  %24482 = vst [vmem:[#allocation19_spill] sm:$0xff] %v20036_v59  ;;  %v20044_v7 = vsub.f32 %v10778_v14, %v4067_v29  ;;  %v20069_v14 = vld [vmem:[%s23951_s3 + $0x1f8] sm:$0xff]  ;;  %v4135_v35 = vsub.f32 %v19920_v37, %v24064_v50  ;;  %v24487_v33 = vand.u32 4294901760, %v20017_v60 }
 0x199   :  { %16788 = vmatpush3.bf16.msra.mxu1 %v19879_v20  ;;  %16501 = vmatprep.subr.bf16.mxu0 %v24307_v56  ;;  %24477 = vst [vmem:[#allocation24_spill] sm:$0xff] %v19954_v13  ;;  %v2804_v27 = vsub.f32 %v19897_v52, %v24057_v53  ;;  %v20079_v53 = vpack.c.bf16 %v2749_v10, %v2746_v4  ;;  %v24488_v29 = vand.u32 4294901760, %v20025_v5  ;;  %v24498_v61 = vand.u32 4294901760, %v19941_v22 }
 0x19a   :  { %16789 = vmatprep.subr.bf16.mxu1 %v24307_v56  ;;  %v4128_v3 = vsub.f32 %v19906_v62, %v24061_v38  ;;  %v4136_v50 = vand.u32 4294901760, %v4135_v35 }
 0x19b   :  { %24483 = vst [vmem:[#allocation5_spill] sm:$0xff] %v20079_v53  ;;  %v2832_v39 = vsub.f32 %v19941_v22, %v24498_v61  ;;  %v24501_v61 = vand.u32 4294901760, %v19957_v19 }
 0x19c   :  { %16503 = vmatpush3.bf16.msra.mxu0 %v19909_v24  ;;  %v4129_v38 = vand.u32 4294901760, %v4128_v3  ;;  %v24492_v3 = vand.u32 4294901760, %v20049_v48 }
 0x19d   :  { %16791 = vmatpush3.bf16.msra.mxu1 %v19924_v6  ;;  %16504 = vmatprep.subr.bf16.mxu0 %v24307_v56  ;;  %v24494_v6 = vand.u32 4294901760, %v19938_v25 }
 0x19e   :  { %16792 = vmatprep.subr.bf16.mxu1 %v24307_v56 }
 0x1a0   :  { %16506 = vmatpush3.bf16.msra.mxu0 %v19954_v13  ;;  %v2825_v13 = vsub.f32 %v19934_v1, %v24490_v42  ;;  %v4149_v42 = vsub.f32 %v19938_v25, %v24494_v6 }
 0x1a1   :  { %16794 = vmatpush3.bf16.msra.mxu1 %v19962_v32  ;;  %16507 = vmatprep.subr.bf16.mxu0 %v24307_v56 }
 0x1a2   :  { %16795 = vmatprep.subr.bf16.mxu1 %v24307_v56 }
 0x1a4   :  { %16509 = vmatpush3.bf16.msra.mxu0 %v19981_v11  ;;  %v4117_v11 = vsub.f32 %v20025_v5, %v24488_v29  ;;  %v20119_v29 = vsub.f32 %v19993_v51, %v2746_v4  ;;  %v24495_v51 = vand.u32 4294901760, %v20064_v0  ;;  %v24496_v4 = vand.u32 4294901760, %v20069_v14 }
 0x1a5   :  { %16797 = vmatpush3.bf16.msra.mxu1 %v19988_v21  ;;  %16510 = vmatprep.subr.bf16.mxu0 %v24307_v56  ;;  %v20091_v21 = vpack.c.bf16 %v24485_v23, %v24484_v58  ;;  %v2805_v58 = vand.u32 4294901760, %v2804_v27  ;;  %v2812_v23 = vand.u32 4294901760, %v2811_v16 }
 0x1a6   :  { %16798 = vmatprep.subr.bf16.mxu1 %v24307_v56  ;;  %v20140_v16 = vpack.c.bf16 %v24496_v4, %v24495_v51  ;;  %v4150_v51 = vand.u32 4294901760, %v4149_v42  ;;  %v24499_v4 = vand.u32 4294901760, %v19943_v41 }
 0x1a7   :  { %24486 = vst [vmem:[#allocation20_spill] sm:$0xff] %v20091_v21  ;;  %v16520_v24 = vpack.c.bf16 %v2812_v23, %v2805_v58  ;;  %v24502_v58 = vand.u32 4294901760, %v20009_v2 }
 0x1a8   :  { %16512 = vmatpush3.bf16.msra.mxu0 %v20021_v47  ;;  %v2793_v47 = vsub.f32 %v20017_v60, %v24487_v33  ;;  %v24491_v33 = vand.u32 4294901760, %v19936_v9  ;;  %24497 = vst [vmem:[#allocation6_spill] sm:$0xff] %v20140_v16 }
 0x1a9   :  { %16800 = vmatpush3.bf16.msra.mxu1 %v20036_v59  ;;  %16513 = vmatprep.subr.bf16.mxu0 %v24307_v56  ;;  %v24489_v59 = vand.u32 4294901760, %v19932_v54  ;;  %v20167_v23 = vsub.f32 %v20009_v2, %v24502_v58 }
 0x1aa   :  { %16801 = vmatprep.subr.bf16.mxu1 %v24307_v56  ;;  %v4142_v27 = vsub.f32 %v19936_v9, %v24491_v33  ;;  %v20132_v33 = vsub.f32 %v19998_v15, %v2749_v10  ;;  %v2794_v6 = vand.u32 4294901760, %v2793_v47  ;;  %v4118_v15 = vand.u32 4294901760, %v4117_v11 }
 0x1ab   :  { %v2818_v32 = vsub.f32 %v19932_v54, %v24489_v59  ;;  %v24493_v59 = vand.u32 4294901760, %v20054_v31  ;;  %v4163_v11 = vsub.f32 %v19957_v19, %v24501_v61  ;;  %v24088_v47 = vand.u32 4294901760, %v20004_v55 }
 0x1ac   :  { %16515 = vmatpush3.bf16.msra.mxu0 %v20079_v53  ;;  %v16808_v53 = vpack.c.bf16 %v4136_v50, %v4129_v38  ;;  %v4143_v20 = vand.u32 4294901760, %v4142_v27  ;;  %v2833_v38 = vand.u32 4294901760, %v2832_v39  ;;  %v24505_v39 = vand.u32 4294901760, %v19977_v26 }
 0x1ad   :  { %v20125_v35 = vpack.c.bf16 %v24493_v59, %v24492_v3  ;;  %16803 = vmatpush3.bf16.msra.mxu1 %v20091_v21  ;;  %16516 = vmatprep.subr.bf16.mxu0 %v24307_v56  ;;  %v2819_v10 = vand.u32 4294901760, %v2818_v32  ;;  %v2826_v21 = vand.u32 4294901760, %v2825_v13  ;;  %v2839_v59 = vsub.f32 %v19943_v41, %v24499_v4 }
 0x1ae   :  { %16804 = vmatprep.subr.bf16.mxu1 %v24307_v56  ;;  %v24087_v3 = vand.u32 4294901760, %v19960_v8  ;;  %v24500_v13 = vand.u32 4294901760, %v19952_v18  ;;  %v16811_v2 = vpack.c.bf16 %v4150_v51, %v4143_v20  ;;  %v24504_v4 = vand.u32 4294901760, %v19973_v44 }
 0x1af   :  { %v16523_v50 = vpack.c.bf16 %v2826_v21, %v2819_v10  ;;  %v2840_v58 = vand.u32 4294901760, %v2839_v59  ;;  %v4164_v21 = vand.u32 4294901760, %v4163_v11  ;;  %v24506_v20 = vand.u32 4294901760, %v19979_v49 }
 0x1b0   :  { %16518 = vmatpush3.bf16.msra.mxu0 %v20125_v35  ;;  %v4156_v32 = vsub.f32 %v19952_v18, %v24500_v13  ;;  %v24503_v13 = vand.u32 4294901760, %v20014_v46  ;;  %v2846_v42 = vsub.f32 %v19960_v8, %v24087_v3  ;;  %v2853_v27 = vsub.f32 %v19973_v44, %v24504_v4 }
 0x1b1   :  { %16806 = vmatpush3.bf16.msra.mxu1 %v20140_v16  ;;  %16519 = vmatprep.subr.bf16.mxu0 %v24307_v56  ;;  %v4177_v59 = vsub.f32 %v19979_v49, %v24506_v20  ;;  %v24509_v51 = vand.u32 4294901760, %v20002_v43  ;;  %v24510_v4 = vand.u32 4294901760, %v20049_v48  ;;  %v24513_v11 = vand.u32 4294901760, %v20034_v45 }
 0x1b2   :  { %16807 = vmatprep.subr.bf16.mxu1 %v24307_v56  ;;  %v20176_v61 = vsub.f32 %v20014_v46, %v24503_v13  ;;  %v4157_v46 = vand.u32 4294901760, %v4156_v32  ;;  %v2854_v3 = vand.u32 4294901760, %v2853_v27  ;;  %v24512_v27 = vand.u32 4294901760, %v20028_v28 }
 0x1b3   :  { %13432 = vmatmul.mubr.f32.vlgmr.msra.gmra.mrb[2].mxu0 %v2794_v6  ;;  %v24507_v6 = vand.u32 4294901760, %v19983_v12  ;;  %v4184_v32 = vsub.f32 %v20002_v43, %v24509_v51  ;;  %v20208_v13 = vsub.f32 %v20049_v48, %v24510_v4  ;;  %v2847_v51 = vand.u32 4294901760, %v2846_v42 }
 0x1b4   :  { %16521 = vmatpush3.bf16.msra.mxu0 %v16520_v24  ;;  %13852 = vmatmul.mubr.f32.vlgmr.msra.gmra.mrb[2].mxu1 %v4118_v15  ;;  %v4170_v24 = vsub.f32 %v19977_v26, %v24505_v39  ;;  %v4191_v39 = vsub.f32 %v20004_v55, %v24088_v47  ;;  %v24511_v48 = vand.u32 4294901760, %v20054_v31  ;;  %v16814_v47 = vpack.c.bf16 %v4164_v21, %v4157_v46 }
 0x1b5   :  { %16809 = vmatpush3.bf16.msra.mxu1 %v16808_v53  ;;  %16522 = vmatprep.subr.bf16.mxu0 %v24307_v56  ;;  %v2860_v15 = vsub.f32 %v19983_v12, %v24507_v6  ;;  %v24508_v53 = vand.u32 4294901760, %v19986_v17  ;;  %v4178_v6 = vand.u32 4294901760, %v4177_v59  ;;  %v2874_v42 = vsub.f32 %v20028_v28, %v24512_v27 }
 0x1b6   :  { %16810 = vmatprep.subr.bf16.mxu1 %v24307_v56  ;;  %13466 = vmatprep.mubr.msk.f32.mxu0 %vm18420_vm0, %v24322_v63  ;;  %v20221_v4 = vsub.f32 %v20054_v31, %v24511_v48  ;;  %v4171_v20 = vand.u32 4294901760, %v4170_v24  ;;  %v2881_v31 = vsub.f32 %v20034_v45, %v24513_v11  ;;  %v2887_v21 = vand.u32 4294901760, %v20119_v29 }
 0x1b7   :  { %v2867_v10 = vsub.f32 %v19986_v17, %v24508_v53  ;;  %13886 = vmatprep.mubr.msk.f32.mxu1 %vm18420_vm0, %v24322_v63  ;;  %v16526_v53 = vpack.c.bf16 %v2840_v58, %v2833_v38  ;;  %v2861_v16 = vand.u32 4294901760, %v2860_v15  ;;  %v4185_v38 = vand.u32 4294901760, %v4184_v32 }
 0x1b8   :  { %16524 = vmatpush3.bf16.msra.mxu0 %v16523_v50  ;;  %v4192_v58 = vand.u32 4294901760, %v4191_v39  ;;  %v24515_v24 = vand.u32 4294901760, %v20064_v0  ;;  %v16529_v15 = vpack.c.bf16 %v2854_v3, %v2847_v51  ;;  %v2894_v39 = vand.u32 4294901760, %v20132_v33 }
 0x1b9   :  { %16812 = vmatpush3.bf16.msra.mxu1 %v16811_v2  ;;  %16525 = vmatprep.subr.bf16.mxu0 %v24307_v56  ;;  %v2868_v50 = vand.u32 4294901760, %v2867_v10  ;;  %v24514_v2 = vand.u32 4294901760, %v20042_v34  ;;  %v24516_v10 = vand.u32 4294901760, %v20044_v7  ;;  %v24517_v11 = vand.u32 4294901760, %v20069_v14 }
 0x1ba   :  { %16813 = vmatprep.subr.bf16.mxu1 %v24307_v56  ;;  %v20238_v59 = vsub.f32 %v20064_v0, %v24515_v24  ;;  %v16817_v27 = vpack.c.bf16 %v4178_v6, %v4171_v20  ;;  %v24092_v0 = vand.u32 4294901760, %v20167_v23  ;;  %v2875_v51 = vand.u32 4294901760, %v2874_v42 }
 0x1bb   :  { %v4198_v46 = vsub.f32 %v20042_v34, %v24514_v2  ;;  %v4205_v32 = vsub.f32 %v20044_v7, %v24516_v10  ;;  %v20247_v48 = vsub.f32 %v20069_v14, %v24517_v11  ;;  %v16532_v3 = vpack.c.bf16 %v2868_v50, %v2861_v16 }
 0x1bc   :  { %16527 = vmatpush3.bf16.msra.mxu0 %v16526_v53  ;;  %v24091_v53 = vand.u32 4294901760, %v20176_v61  ;;  %v16820_v2 = vpack.c.bf16 %v4192_v58, %v4185_v38  ;;  %v2882_v24 = vand.u32 4294901760, %v2881_v31  ;;  %v2888_v14 = vsub.f32 %v20119_v29, %v2887_v21 }
 0x1bd   :  { %16815 = vmatpush3.bf16.msra.mxu1 %v16814_v47  ;;  %16528 = vmatprep.subr.bf16.mxu0 %v24307_v56  ;;  %v4199_v10 = vand.u32 4294901760, %v4198_v46  ;;  %v4206_v47 = vand.u32 4294901760, %v4205_v32  ;;  %v2895_v20 = vsub.f32 %v20132_v33, %v2894_v39  ;;  %v2901_v6 = vand.u32 4294901760, %v20208_v13 }
 0x1be   :  { %16816 = vmatprep.subr.bf16.mxu1 %v24307_v56  ;;  %v24095_v11 = vand.u32 4294901760, %v20221_v4  ;;  %v4212_v16 = vsub.f32 %v20167_v23, %v24092_v0  ;;  %v4219_v50 = vsub.f32 %v20176_v61, %v24091_v53  ;;  %v24094_v38 = vand.u32 4294901760, %v20238_v59 }
 0x1bf   :  { %v24093_v42 = vand.u32 4294901760, %v20247_v48  ;;  %v16535_v58 = vpack.c.bf16 %v2882_v24, %v2875_v51  ;;  %v2889_v31 = vand.u32 4294901760, %v2888_v14  ;;  %v16823_v46 = vpack.c.bf16 %v4206_v47, %v4199_v10 }
 0x1c0   :  { %16530 = vmatpush3.bf16.msra.mxu0 %v16529_v15  ;;  %v2896_v15 = vand.u32 4294901760, %v2895_v20  ;;  %v2902_v32 = vsub.f32 %v20208_v13, %v2901_v6  ;;  %v4213_v53 = vand.u32 4294901760, %v4212_v16  ;;  %v4220_v0 = vand.u32 4294901760, %v4219_v50 }
 0x1c1   :  { %16818 = vmatpush3.bf16.msra.mxu1 %v16817_v27  ;;  %16531 = vmatprep.subr.bf16.mxu0 %v24307_v56  ;;  %v2909_v27 = vsub.f32 %v20221_v4, %v24095_v11  ;;  %v4226_v51 = vsub.f32 %v20238_v59, %v24094_v38  ;;  %v24536_v11 = vand.u32 4294901760, %v20017_v60 }
 0x1c2   :  { %16819 = vmatprep.subr.bf16.mxu1 %v24307_v56  ;;  %v16538_v24 = vpack.c.bf16 %v2896_v15, %v2889_v31  ;;  %v2903_v10 = vand.u32 4294901760, %v2902_v32  ;;  %v16835_v31 = vpack.c.bf16 %v19938_v25, %v19936_v9  ;;  %v16838_v15 = vpack.c.bf16 %v19957_v19, %v19952_v18 }
 0x1c3   :  { %v2910_v14 = vand.u32 4294901760, %v2909_v27  ;;  %v4227_v47 = vand.u32 4294901760, %v4226_v51  ;;  %v16553_v32 = vpack.c.bf16 %v19973_v44, %v19960_v8  ;;  %v16841_v27 = vpack.c.bf16 %v19979_v49, %v19977_v26 }
 0x1c4   :  { %16533 = vmatpush3.bf16.msra.mxu0 %v16532_v3  ;;  %v4233_v3 = vsub.f32 %v20247_v48, %v24093_v42  ;;  %v16556_v51 = vpack.c.bf16 %v19986_v17, %v19983_v12  ;;  %v24535_v42 = vand.u32 4294901760, %v19920_v37 }
 0x1c5   :  { %16821 = vmatpush3.bf16.msra.mxu1 %v16820_v2  ;;  %16534 = vmatprep.subr.bf16.mxu0 %v24307_v56  ;;  %v16826_v2 = vpack.c.bf16 %v4220_v0, %v4213_v53  ;;  %v16541_v16 = vpack.c.bf16 %v2910_v14, %v2903_v10  ;;  %v16832_v0 = vpack.c.bf16 %v19920_v37, %v19906_v62  ;;  %v24541_v37 = vand.u32 4294901760, %v19938_v25 }
 0x1c6   :  { %16822 = vmatprep.subr.bf16.mxu1 %v24307_v56  ;;  %v4234_v20 = vand.u32 4294901760, %v4233_v3  ;;  %v16547_v53 = vpack.c.bf16 %v19934_v1, %v19932_v54  ;;  %v16844_v3 = vpack.c.bf16 %v20004_v55, %v20002_v43  ;;  %v16847_v10 = vpack.c.bf16 %v20044_v7, %v20042_v34 }
 0x1c7   :  { %v16562_v14 = vpack.c.bf16 %v20132_v33, %v20119_v29  ;;  %v24545_v25 = vand.u32 4294901760, %v19957_v19  ;;  %v24551_v19 = vand.u32 4294901760, %v19986_v17  ;;  %v24557_v17 = vand.u32 4294901760, %v20044_v7 }
 0x1c8   :  { %16536 = vmatpush3.bf16.msra.mxu0 %v16535_v58  ;;  %v16829_v50 = vpack.c.bf16 %v4234_v20, %v4227_v47  ;;  %v16544_v58 = vpack.c.bf16 %v19899_v57, %v19897_v52  ;;  %v16565_v47 = vpack.c.bf16 %v20221_v4, %v20208_v13  ;;  %v16853_v20 = vpack.c.bf16 %v20247_v48, %v20238_v59  ;;  %v10752_v13 = vld [vmem:[%s23950_s2 + $0x188] sm:$0xff] }
 0x1c9   :  { %16824 = vmatpush3.bf16.msra.mxu1 %v16823_v46  ;;  %16537 = vmatprep.subr.bf16.mxu0 %v24307_v56  ;;  %v16550_v46 = vpack.c.bf16 %v19943_v41, %v19941_v22  ;;  %v24561_v29 = vand.u32 4294901760, %v20238_v59  ;;  %v24562_v33 = vand.u32 4294901760, %v20247_v48  ;;  %v4678_v48 = vand.u32 4294901760, %v10752_v13 }
 0x1ca   :  { %16825 = vmatprep.subr.bf16.mxu1 %v24307_v56 }
 0x1cc   :  { %16539 = vmatpush3.bf16.msra.mxu0 %v16538_v24  ;;  %v16559_v24 = vpack.c.bf16 %v20034_v45, %v20028_v28 }
 0x1cd   :  { %16827 = vmatpush3.bf16.msra.mxu1 %v16826_v2  ;;  %16540 = vmatprep.subr.bf16.mxu0 %v24307_v56  ;;  %v16850_v2 = vpack.c.bf16 %v20176_v61, %v20167_v23 }
 0x1ce   :  { %16828 = vmatprep.subr.bf16.mxu1 %v24307_v56 }
 0x1d0   :  { %16542 = vmatpush3.bf16.msra.mxu0 %v16541_v16  ;;  %v24518_v16 = vld [vmem:[#allocation16_spill] sm:$0xff] }
 0x1d1   :  { %16830 = vmatpush3.bf16.msra.mxu1 %v16829_v50  ;;  %16543 = vmatprep.subr.bf16.mxu0 %v24307_v56  ;;  %v24519_v50 = vld [vmem:[#allocation17_spill] sm:$0xff] }
 0x1d2   :  { %16831 = vmatprep.subr.bf16.mxu1 %v24307_v56 }
 0x1d3   :  { %13467 = vmatmul.mubr.f32.vlgmr.msra.gmra.mrb[2].mxu0 %v19970_v36 }
 0x1d4   :  { %16545 = vmatpush3.bf16.msra.mxu0 %v16544_v58  ;;  %13887 = vmatmul.mubr.f32.vlgmr.msra.gmra.mrb[2].mxu1 %v19975_v30  ;;  %v24520_v58 = vld [vmem:[#allocation18_spill] sm:$0xff] }
 0x1d5   :  { %16833 = vmatpush3.bf16.msra.mxu1 %v16832_v0  ;;  %16546 = vmatprep.subr.bf16.mxu0 %v24307_v56  ;;  %v24521_v0 = vld [vmem:[#allocation22_spill] sm:$0xff] }
 0x1d6   :  { %16834 = vmatprep.subr.bf16.mxu1 %v24307_v56  ;;  %13501 = vmatprep.mubr.msk.f32.mxu0 %vm18420_vm0, %v24322_v63 }
 0x1d7   :  { %13921 = vmatprep.mubr.msk.f32.mxu1 %vm18420_vm0, %v24322_v63 }
 0x1d8   :  { %16548 = vmatpush3.bf16.msra.mxu0 %v16547_v53  ;;  %v24522_v53 = vld [vmem:[#allocation23_spill] sm:$0xff] }
 0x1d9   :  { %16836 = vmatpush3.bf16.msra.mxu1 %v16835_v31  ;;  %16549 = vmatprep.subr.bf16.mxu0 %v24307_v56  ;;  %v24523_v31 = vld [vmem:[#allocation24_spill] sm:$0xff] }
 0x1da   :  { %16837 = vmatprep.subr.bf16.mxu1 %v24307_v56 }
 0x1dc   :  { %16551 = vmatpush3.bf16.msra.mxu0 %v16550_v46  ;;  %v24524_v46 = vld [vmem:[#allocation25_spill] sm:$0xff] }
 0x1dd   :  { %16839 = vmatpush3.bf16.msra.mxu1 %v16838_v15  ;;  %16552 = vmatprep.subr.bf16.mxu0 %v24307_v56  ;;  %v24525_v15 = vld [vmem:[#allocation26_spill] sm:$0xff] }
 0x1de   :  { %16840 = vmatprep.subr.bf16.mxu1 %v24307_v56 }
 0x1e0   :  { %16554 = vmatpush3.bf16.msra.mxu0 %v16553_v32  ;;  %v24526_v32 = vld [vmem:[#allocation27_spill] sm:$0xff] }
 0x1e1   :  { %16842 = vmatpush3.bf16.msra.mxu1 %v16841_v27  ;;  %16555 = vmatprep.subr.bf16.mxu0 %v24307_v56  ;;  %v24527_v27 = vld [vmem:[#allocation21_spill] sm:$0xff] }
 0x1e2   :  { %16843 = vmatprep.subr.bf16.mxu1 %v24307_v56 }
 0x1e4   :  { %16557 = vmatpush3.bf16.msra.mxu0 %v16556_v51  ;;  %v24528_v51 = vld [vmem:[#allocation19_spill] sm:$0xff] }
 0x1e5   :  { %16845 = vmatpush3.bf16.msra.mxu1 %v16844_v3  ;;  %16558 = vmatprep.subr.bf16.mxu0 %v24307_v56  ;;  %v24529_v3 = vld [vmem:[#allocation5_spill] sm:$0xff] }
 0x1e6   :  { %16846 = vmatprep.subr.bf16.mxu1 %v24307_v56 }
 0x1e8   :  { %16560 = vmatpush3.bf16.msra.mxu0 %v16559_v24  ;;  %v24530_v24 = vld [vmem:[#allocation20_spill] sm:$0xff] }
 0x1e9   :  { %16848 = vmatpush3.bf16.msra.mxu1 %v16847_v10  ;;  %16561 = vmatprep.subr.bf16.mxu0 %v24307_v56  ;;  %v24531_v10 = vand.u32 4294901760, %v19897_v52  ;;  %v24537_v52 = vand.u32 4294901760, %v20025_v5 }
 0x1ea   :  { %16849 = vmatprep.subr.bf16.mxu1 %v24307_v56 }
 0x1ec   :  { %16563 = vmatpush3.bf16.msra.mxu0 %v16562_v14  ;;  %v24532_v14 = vand.u32 4294901760, %v19899_v57  ;;  %v24538_v57 = vand.u32 4294901760, %v19932_v54  ;;  %v24542_v54 = vand.u32 4294901760, %v19941_v22  ;;  %v24548_v22 = vand.u32 4294901760, %v19977_v26 }
 0x1ed   :  { %16851 = vmatpush3.bf16.msra.mxu1 %v16850_v2  ;;  %16564 = vmatprep.subr.bf16.mxu0 %v24307_v56  ;;  %v24554_v26 = vand.u32 4294901760, %v20028_v28  ;;  %v24559_v28 = vand.u32 4294901760, %v20176_v61  ;;  %v10751_v61 = vld [vmem:[%s23950_s2 + $0x180] sm:$0xff] }
 0x1ee   :  { %16852 = vmatprep.subr.bf16.mxu1 %v24307_v56  ;;  %v16592_v2 = vpack.c.bf16 %v24532_v14, %v24531_v10  ;;  %v24539_v10 = vand.u32 4294901760, %v19934_v1  ;;  %v24543_v1 = vand.u32 4294901760, %v19943_v41  ;;  %v24549_v41 = vand.u32 4294901760, %v19979_v49 }
 0x1ef   :  { %v24555_v49 = vand.u32 4294901760, %v20034_v45 }
 0x1f0   :  { %16566 = vmatpush3.bf16.msra.mxu0 %v16565_v47  ;;  %v24533_v47 = vld [vmem:[#allocation6_spill] sm:$0xff]  ;;  %v16595_v14 = vpack.c.bf16 %v24539_v10, %v24538_v57 }
 0x1f1   :  { %16854 = vmatpush3.bf16.msra.mxu1 %v16853_v20  ;;  %16567 = vmatprep.subr.bf16.mxu0 %v24307_v56  ;;  %v24534_v20 = vand.u32 4294901760, %v19906_v62  ;;  %v24540_v62 = vand.u32 4294901760, %v19936_v9  ;;  %v24544_v9 = vand.u32 4294901760, %v19952_v18  ;;  %v24550_v18 = vand.u32 4294901760, %v19983_v12 }
 0x1f2   :  { %16855 = vmatprep.subr.bf16.mxu1 %v24307_v56  ;;  %v16607_v10 = vpack.c.bf16 %v24555_v49, %v24554_v26  ;;  %v24556_v12 = vand.u32 4294901760, %v20042_v34  ;;  %v24560_v34 = vand.u32 4294901760, %v20221_v4 }
 0x1f3   :  { %13502 = vmatmul.mubr.f32.vlgmr.msra.gmra.mrb[2].mxu0 %v20017_v60  ;;  %v16880_v38 = vpack.c.bf16 %v24535_v42, %v24534_v20  ;;  %v16883_v42 = vpack.c.bf16 %v24541_v37, %v24540_v62  ;;  %v16598_v60 = vpack.c.bf16 %v24543_v1, %v24542_v54  ;;  %v16889_v20 = vpack.c.bf16 %v24549_v41, %v24548_v22  ;;  %v10757_v1 = vld [vmem:[%s23950_s2 + $0x1b0] sm:$0xff]  ;;  %v10723_v22 = vld [vmem:[%s23950_s2 + $0x140] sm:$0xff]  ;;  %v10724_v41 = vld [vmem:[%s23950_s2 + $0x148] sm:$0xff] }
 0x1f4   :  { %16569 = vmatpush3.bf16.msra.mxu0 %v19852_v40  ;;  %13922 = vmatmul.mubr.f32.vlgmr.msra.gmra.mrb[2].mxu1 %v20025_v5  ;;  %v16886_v5 = vpack.c.bf16 %v24545_v25, %v24544_v9  ;;  %v16613_v7 = vpack.c.bf16 %v24560_v34, %v2901_v6  ;;  %v10717_v6 = vld [vmem:[%s23950_s2 + $0x110] sm:$0xff]  ;;  %v3995_v34 = vld [vmem:[%s3994_s18] sm:$0xff]  ;;  %s10785_s18 = sshll.u32 %s21886_s26, 3 }
 0x1f5   :  { %16857 = vmatpush3.bf16.msra.mxu1 %v24518_v16  ;;  %16570 = vmatprep.subr.bf16.mxu0 %v24307_v56  ;;  %s5318_s29 = scalar_lea.vmem %s23949_s1, %s10785_s18 }
 0x1f6   :  { %16858 = vmatprep.subr.bf16.mxu1 %v24307_v56  ;;  %13536 = vmatprep.mubr.msk.f32.mxu0 %vm18420_vm0, %v24322_v63 }
 0x1f7   :  { %13956 = vmatprep.mubr.msk.f32.mxu1 %vm18420_vm0, %v24322_v63 }
 0x1f8   :  { %16572 = vmatpush3.bf16.msra.mxu0 %v24519_v50 }
 0x1f9   :  { %16860 = vmatpush3.bf16.msra.mxu1 %v24520_v58  ;;  %16573 = vmatprep.subr.bf16.mxu0 %v24307_v56 }
 0x1fa   :  { %16861 = vmatprep.subr.bf16.mxu1 %v24307_v56 }
 0x1fc   :  { %16575 = vmatpush3.bf16.msra.mxu0 %v24521_v0 }
 0x1fd   :  { %16863 = vmatpush3.bf16.msra.mxu1 %v24522_v53  ;;  %16576 = vmatprep.subr.bf16.mxu0 %v24307_v56 }
 0x1fe   :  { %16864 = vmatprep.subr.bf16.mxu1 %v24307_v56 }
 0x200   :  { %16578 = vmatpush3.bf16.msra.mxu0 %v24523_v31 }
 0x201   :  { %16866 = vmatpush3.bf16.msra.mxu1 %v24524_v46  ;;  %16579 = vmatprep.subr.bf16.mxu0 %v24307_v56 }
 0x202   :  { %16867 = vmatprep.subr.bf16.mxu1 %v24307_v56 }
 0x204   :  { %16581 = vmatpush3.bf16.msra.mxu0 %v24525_v15 }
 0x205   :  { %16869 = vmatpush3.bf16.msra.mxu1 %v24526_v32  ;;  %16582 = vmatprep.subr.bf16.mxu0 %v24307_v56 }
 0x206   :  { %16870 = vmatprep.subr.bf16.mxu1 %v24307_v56 }
 0x208   :  { %16584 = vmatpush3.bf16.msra.mxu0 %v24527_v27 }
 0x209   :  { %16872 = vmatpush3.bf16.msra.mxu1 %v24528_v51  ;;  %16585 = vmatprep.subr.bf16.mxu0 %v24307_v56 }
 0x20a   :  { %16873 = vmatprep.subr.bf16.mxu1 %v24307_v56 }
 0x20c   :  { %16587 = vmatpush3.bf16.msra.mxu0 %v24529_v3 }
 0x20d   :  { %16875 = vmatpush3.bf16.msra.mxu1 %v24530_v24  ;;  %16588 = vmatprep.subr.bf16.mxu0 %v24307_v56 }
 0x20e   :  { %16876 = vmatprep.subr.bf16.mxu1 %v24307_v56 }
 0x210   :  { %16590 = vmatpush3.bf16.msra.mxu0 %v20125_v35 }
 0x211   :  { %16878 = vmatpush3.bf16.msra.mxu1 %v24533_v47  ;;  %16591 = vmatprep.subr.bf16.mxu0 %v24307_v56 }
 0x212   :  { %16879 = vmatprep.subr.bf16.mxu1 %v24307_v56 }
 0x213   :  { %13537 = vmatmul.mubr.f32.vlgmr.msra.gmra.mrb[2].mxu0 %v24536_v11  ;;  %v24546_v11 = vand.u32 4294901760, %v19960_v8  ;;  %v24552_v8 = vand.u32 4294901760, %v20002_v43  ;;  %v16610_v43 = vpack.c.bf16 %v2894_v39, %v2887_v21  ;;  %v16901_v21 = vpack.c.bf16 %v24562_v33, %v24561_v29 }
 0x214   :  { %16593 = vmatpush3.bf16.msra.mxu0 %v16592_v2  ;;  %13957 = vmatmul.mubr.f32.vlgmr.msra.gmra.mrb[2].mxu1 %v24537_v52  ;;  %v16604_v52 = vpack.c.bf16 %v24551_v19, %v24550_v18  ;;  %v4675_v39 = vand.u32 4294901760, %v10751_v61  ;;  %v4693_v19 = vand.u32 4294901760, %v10757_v1 }
 0x215   :  { %16881 = vmatpush3.bf16.msra.mxu1 %v16880_v38  ;;  %16594 = vmatprep.subr.bf16.mxu0 %v24307_v56  ;;  %v24547_v38 = vand.u32 4294901760, %v19973_v44  ;;  %v24553_v44 = vand.u32 4294901760, %v20004_v55  ;;  %v24558_v55 = vand.u32 4294901760, %v20167_v23  ;;  %v10716_v23 = vld [vmem:[%s23950_s2 + $0x108] sm:$0xff] }
 0x216   :  { %16882 = vmatprep.subr.bf16.mxu1 %v24307_v56  ;;  %13571 = vmatprep.mubr.msk.f32.mxu0 %vm18420_vm0, %v24322_v63  ;;  %v3354_v59 = vand.u32 4294901760, %v10716_v23 }
 0x217   :  { %13991 = vmatprep.mubr.msk.f32.mxu1 %vm18420_vm0, %v24322_v63  ;;  %v16601_v2 = vpack.c.bf16 %v24547_v38, %v24546_v11  ;;  %v16892_v57 = vpack.c.bf16 %v24553_v44, %v24552_v8  ;;  %v16898_v45 = vpack.c.bf16 %v24559_v28, %v24558_v55  ;;  %v10759_v8 = vld [vmem:[%s23950_s2 + $0x1c0] sm:$0xff]  ;;  %v10760_v44 = vld [vmem:[%s23950_s2 + $0x1c8] sm:$0xff]  ;;  %v3378_v55 = vand.u32 4294901760, %v10724_v41  ;;  %v10725_v28 = vld [vmem:[%s23950_s2 + $0x150] sm:$0xff] }
 0x218   :  { %16596 = vmatpush3.bf16.msra.mxu0 %v16595_v14  ;;  %v16895_v14 = vpack.c.bf16 %v24557_v17, %v24556_v12  ;;  %v20581_v25 = vsub.f32 %v10716_v23, %v3354_v59  ;;  %v2671_v12 = vld [vmem:[%s2670_s10] sm:$0xff]  ;;  %v4699_v33 = vand.u32 4294901760, %v10759_v8  ;;  %s6642_s10 = scalar_lea.vmem %s23949_s1, %s10821_s0 }
 0x219   :  { %16884 = vmatpush3.bf16.msra.mxu1 %v16883_v42  ;;  %16597 = vmatprep.subr.bf16.mxu0 %v24307_v56 }
 0x21a   :  { %16885 = vmatprep.subr.bf16.mxu1 %v24307_v56 }
 0x21c   :  { %16599 = vmatpush3.bf16.msra.mxu0 %v16598_v60  ;;  %v10758_v60 = vld [vmem:[%s23950_s2 + $0x1b8] sm:$0xff] }
 0x21d   :  { %16887 = vmatpush3.bf16.msra.mxu1 %v16886_v5  ;;  %16600 = vmatprep.subr.bf16.mxu0 %v24307_v56  ;;  %v20588_v5 = vsub.f32 %v10751_v61, %v4675_v39 }
 0x21e   :  { %16888 = vmatprep.subr.bf16.mxu1 %v24307_v56 }
 0x220   :  { %16602 = vmatpush3.bf16.msra.mxu0 %v16601_v2 }
 0x221   :  { %16890 = vmatpush3.bf16.msra.mxu1 %v16889_v20  ;;  %16603 = vmatprep.subr.bf16.mxu0 %v24307_v56  ;;  %v20602_v20 = vsub.f32 %v10752_v13, %v4678_v48  ;;  %v10761_v13 = vld [vmem:[%s23950_s2 + $0x1d0] sm:$0xff] }
 0x222   :  { %16891 = vmatprep.subr.bf16.mxu1 %v24307_v56 }
 0x224   :  { %16605 = vmatpush3.bf16.msra.mxu0 %v16604_v52  ;;  %v4696_v52 = vand.u32 4294901760, %v10758_v60 }
 0x225   :  { %16893 = vmatpush3.bf16.msra.mxu1 %v16892_v57  ;;  %16606 = vmatprep.subr.bf16.mxu0 %v24307_v56 }
 0x226   :  { %16894 = vmatprep.subr.bf16.mxu1 %v24307_v56  ;;  %v20644_v61 = vpack.c.bf16 %v4696_v52, %v4693_v19 }
 0x228   :  { %16608 = vmatpush3.bf16.msra.mxu0 %v16607_v10  ;;  %24569 = vst [vmem:[#allocation13_spill] sm:$0xff] %v20644_v61 }
 0x229   :  { %16896 = vmatpush3.bf16.msra.mxu1 %v16895_v14  ;;  %16609 = vmatprep.subr.bf16.mxu0 %v24307_v56 }
 0x22a   :  { %16897 = vmatprep.subr.bf16.mxu1 %v24307_v56 }
 0x22c   :  { %16611 = vmatpush3.bf16.msra.mxu0 %v16610_v43  ;;  %v3375_v43 = vand.u32 4294901760, %v10723_v22 }
 0x22d   :  { %16899 = vmatpush3.bf16.msra.mxu1 %v16898_v45  ;;  %16612 = vmatprep.subr.bf16.mxu0 %v24307_v56  ;;  %v10726_v45 = vld [vmem:[%s23950_s2 + $0x158] sm:$0xff] }
 0x22e   :  { %16900 = vmatprep.subr.bf16.mxu1 %v24307_v56 }
 0x230   :  { %16614 = vmatpush3.bf16.msra.mxu0 %v16613_v7 }
 0x231   :  { %16902 = vmatpush3.bf16.msra.mxu1 %v16901_v21  ;;  %16615 = vmatprep.subr.bf16.mxu0 %v24307_v56  ;;  %v4702_v21 = vand.u32 4294901760, %v10760_v44 }
 0x232   :  { %16903 = vmatprep.subr.bf16.mxu1 %v24307_v56 }
 0x233   :  { %13572 = vmatmul.mubr.f32.vlgmr.msra.gmra.mrb[2].mxu0 %v19970_v36 }
 0x234   :  { %16617 = vmatpush3.bf16.msra.mxu0 %v19852_v40  ;;  %13992 = vmatmul.mubr.f32.vlgmr.msra.gmra.mrb[2].mxu1 %v19975_v30  ;;  %v10715_v40 = vld [vmem:[%s23950_s2 + $0x100] sm:$0xff] }
 0x235   :  { %16905 = vmatpush3.bf16.msra.mxu1 %v24518_v16  ;;  %16618 = vmatprep.subr.bf16.mxu0 %v24307_v56  ;;  %v3351_v4 = vand.u32 4294901760, %v10715_v40  ;;  %v10718_v16 = vld [vmem:[%s23950_s2 + $0x118] sm:$0xff] }
 0x236   :  { %16906 = vmatprep.subr.bf16.mxu1 %v24307_v56  ;;  %13606 = vmatprep.mubr.msk.f32.mxu0 %vm18420_vm0, %v24322_v63 }
 0x237   :  { %14026 = vmatprep.mubr.msk.f32.mxu1 %vm18420_vm0, %v24322_v63  ;;  %v20579_v9 = vsub.f32 %v10715_v40, %v3351_v4 }
 0x238   :  { %16620 = vmatpush3.bf16.msra.mxu0 %v24519_v50  ;;  %v10753_v50 = vld [vmem:[%s23950_s2 + $0x190] sm:$0xff] }
 0x239   :  { %16908 = vmatpush3.bf16.msra.mxu1 %v24520_v58  ;;  %16621 = vmatprep.subr.bf16.mxu0 %v24307_v56  ;;  %v10754_v58 = vld [vmem:[%s23950_s2 + $0x198] sm:$0xff] }
 0x23a   :  { %16909 = vmatprep.subr.bf16.mxu1 %v24307_v56 }
 0x23c   :  { %16623 = vmatpush3.bf16.msra.mxu0 %v24521_v0  ;;  %v20534_v0 = vpack.c.bf16 %v3354_v59, %v3351_v4  ;;  %v10762_v4 = vld [vmem:[%s23950_s2 + $0x1d8] sm:$0xff]  ;;  %v20652_v59 = vand.u32 4294901760, %v2671_v12 }
 0x23d   :  { %16911 = vmatpush3.bf16.msra.mxu1 %v24522_v53  ;;  %16624 = vmatprep.subr.bf16.mxu0 %v24307_v56  ;;  %v3357_v53 = vand.u32 4294901760, %v10717_v6 }
 0x23e   :  { %16912 = vmatprep.subr.bf16.mxu1 %v24307_v56 }
 0x23f   :  { %v20614_v57 = vsub.f32 %v10717_v6, %v3357_v53  ;;  %v3384_v6 = vand.u32 4294901760, %v10726_v45 }
 0x240   :  { %16626 = vmatpush3.bf16.msra.mxu0 %v24523_v31  ;;  %v3360_v31 = vand.u32 4294901760, %v10718_v16 }
 0x241   :  { %16914 = vmatpush3.bf16.msra.mxu1 %v24524_v46  ;;  %16627 = vmatprep.subr.bf16.mxu0 %v24307_v56  ;;  %v20538_v46 = vpack.c.bf16 %v4678_v48, %v4675_v39  ;;  %v3381_v48 = vand.u32 4294901760, %v10725_v28 }
 0x242   :  { %16915 = vmatprep.subr.bf16.mxu1 %v24307_v56  ;;  %v20616_v26 = vsub.f32 %v10718_v16, %v3360_v31  ;;  %v20657_v16 = vand.u32 4294901760, %v3995_v34 }
 0x243   :  { %24563 = vst [vmem:[#allocation7_spill] sm:$0xff] %v20538_v46 }
 0x244   :  { %16629 = vmatpush3.bf16.msra.mxu0 %v24525_v15  ;;  %v4681_v15 = vand.u32 4294901760, %v10753_v50 }
 0x245   :  { %16917 = vmatpush3.bf16.msra.mxu1 %v24526_v32  ;;  %16630 = vmatprep.subr.bf16.mxu0 %v24307_v56  ;;  %v4684_v32 = vand.u32 4294901760, %v10754_v58 }
 0x246   :  { %16918 = vmatprep.subr.bf16.mxu1 %v24307_v56  ;;  %v20618_v49 = vsub.f32 %v10753_v50, %v4681_v15  ;;  %v20659_v50 = vsub.f32 %v10757_v1, %v4693_v19  ;;  %v20703_v1 = vpack.c.bf16 %v3384_v6, %v3381_v48 }
 0x247   :  { %v20561_v37 = vpack.c.bf16 %v4684_v32, %v4681_v15  ;;  %v20620_v10 = vsub.f32 %v10754_v58, %v4684_v32  ;;  %v20661_v58 = vsub.f32 %v10758_v60, %v4696_v52  ;;  %v20668_v15 = vsub.f32 %v10724_v41, %v3378_v55 }
 0x248   :  { %16632 = vmatpush3.bf16.msra.mxu0 %v24527_v27  ;;  %v10719_v27 = vld [vmem:[%s23950_s2 + $0x120] sm:$0xff]  ;;  %v20670_v32 = vpack.c.bf16 %v4702_v21, %v4699_v33  ;;  %24572 = vst [vmem:[#allocation16_spill] sm:$0xff] %v20703_v1  ;;  %v24099_v60 = vand.u32 4294901760, %v20581_v25  ;;  %v24103_v52 = vand.u32 4294901760, %v20602_v20 }
 0x249   :  { %16920 = vmatpush3.bf16.msra.mxu1 %v24528_v51  ;;  %16633 = vmatprep.subr.bf16.mxu0 %v24307_v56  ;;  %v10755_v51 = vld [vmem:[%s23950_s2 + $0x1a0] sm:$0xff]  ;;  %24565 = vst [vmem:[#allocation9_spill] sm:$0xff] %v20561_v37 }
 0x24a   :  { %16921 = vmatprep.subr.bf16.mxu1 %v24307_v56  ;;  %v4687_v42 = vand.u32 4294901760, %v10755_v51  ;;  %24571 = vst [vmem:[#allocation15_spill] sm:$0xff] %v20670_v32 }
 0x24c   :  { %16635 = vmatpush3.bf16.msra.mxu0 %v24529_v3  ;;  %v10756_v3 = vld [vmem:[%s23950_s2 + $0x1a8] sm:$0xff]  ;;  %v20634_v7 = vsub.f32 %v10755_v51, %v4687_v42  ;;  %v20675_v51 = vld [vmem:[%s23950_s2 + $0x160] sm:$0xff] }
 0x24d   :  { %16923 = vmatpush3.bf16.msra.mxu1 %v24530_v24  ;;  %16636 = vmatprep.subr.bf16.mxu0 %v24307_v56  ;;  %v20556_v24 = vpack.c.bf16 %v3360_v31, %v3357_v53  ;;  %v4690_v54 = vand.u32 4294901760, %v10756_v3  ;;  %v20663_v53 = vpack.c.bf16 %v3378_v55, %v3375_v43  ;;  %v20665_v31 = vsub.f32 %v10723_v22, %v3375_v43 }
 0x24e   :  { %16924 = vmatprep.subr.bf16.mxu1 %v24307_v56  ;;  %v20710_v22 = vsub.f32 %v10725_v28, %v3381_v48  ;;  %v3387_v41 = vand.u32 4294901760, %v20675_v51  ;;  %v20753_v48 = vld [vmem:[%s23950_s2 + $0x1f8] sm:$0xff] }
 0x24f   :  { %24564 = vst [vmem:[#allocation8_spill] sm:$0xff] %v20556_v24  ;;  %v20606_v18 = vpack.c.bf16 %v4690_v54, %v4687_v42  ;;  %v20639_v40 = vsub.f32 %v10756_v3, %v4690_v54  ;;  %24570 = vst [vmem:[#allocation14_spill] sm:$0xff] %v20663_v53  ;;  %v20680_v3 = vld [vmem:[%s23950_s2 + $0x168] sm:$0xff]  ;;  %v20691_v42 = vld [vmem:[%s23950_s2 + $0x1e0] sm:$0xff] }
 0x250   :  { %16638 = vmatpush3.bf16.msra.mxu0 %v20125_v35  ;;  %v10720_v35 = vld [vmem:[%s23950_s2 + $0x128] sm:$0xff]  ;;  %v3390_v19 = vand.u32 4294901760, %v20680_v3 }
 0x251   :  { %16926 = vmatpush3.bf16.msra.mxu1 %v24533_v47  ;;  %16639 = vmatprep.subr.bf16.mxu0 %v24307_v56  ;;  %v3363_v47 = vand.u32 4294901760, %v10719_v27  ;;  %v3366_v62 = vand.u32 4294901760, %v10720_v35  ;;  %24567 = vst [vmem:[#allocation11_spill] sm:$0xff] %v20606_v18  ;;  %v20696_v54 = vld [vmem:[%s23950_s2 + $0x1e8] sm:$0xff] }
 0x252   :  { %16927 = vmatprep.subr.bf16.mxu1 %v24307_v56 }
 0x253   :  { %13607 = vmatmul.mubr.f32.vlgmr.msra.gmra.mrb[2].mxu0 %v19970_v36  ;;  %v10721_v36 = vld [vmem:[%s23950_s2 + $0x130] sm:$0xff]  ;;  %v20591_v11 = vpack.c.bf16 %v3366_v62, %v3363_v47  ;;  %v20623_v17 = vsub.f32 %v10719_v27, %v3363_v47  ;;  %v20625_v14 = vsub.f32 %v10720_v35, %v3366_v62  ;;  %v4705_v27 = vand.u32 4294901760, %v10761_v13 }
 0x254   :  { %16641 = vmatpush3.bf16.msra.mxu0 %v20534_v0  ;;  %14027 = vmatmul.mubr.f32.vlgmr.msra.gmra.mrb[2].mxu1 %v19975_v30  ;;  %v10722_v30 = vld [vmem:[%s23950_s2 + $0x138] sm:$0xff]  ;;  %v3369_v38 = vand.u32 4294901760, %v10721_v36  ;;  %v4708_v35 = vand.u32 4294901760, %v10762_v4  ;;  %v20684_v47 = vsub.f32 %v10759_v8, %v4699_v33  ;;  %v20686_v62 = vsub.f32 %v10760_v44, %v4702_v21 }
 0x255   :  { %16929 = vmatpush3.bf16.msra.mxu1 %v20538_v46  ;;  %16642 = vmatprep.subr.bf16.mxu0 %v24307_v56  ;;  %24566 = vst [vmem:[#allocation10_spill] sm:$0xff] %v20591_v11  ;;  %v3372_v2 = vand.u32 4294901760, %v10722_v30  ;;  %v20716_v8 = vsub.f32 %v10726_v45, %v3384_v6  ;;  %v20724_v55 = vsub.f32 %v10761_v13, %v4705_v27  ;;  %v20736_v45 = vld [vmem:[%s23950_s2 + $0x178] sm:$0xff] }
 0x256   :  { %16930 = vmatprep.subr.bf16.mxu1 %v24307_v56  ;;  %13641 = vmatprep.mubr.msk.f32.mxu0 %vm18420_vm0, %v24322_v63  ;;  %v20642_v23 = vsub.f32 %v10721_v36, %v3369_v38  ;;  %v20699_v36 = vsub.f32 %v2671_v12, %v20652_v59  ;;  %v20718_v44 = vpack.c.bf16 %v4708_v35, %v4705_v27 }
 0x257   :  { %14061 = vmatprep.mubr.msk.f32.mxu1 %vm18420_vm0, %v24322_v63  ;;  %v20636_v29 = vpack.c.bf16 %v3372_v2, %v3369_v38  ;;  %v20655_v39 = vsub.f32 %v10722_v30, %v3372_v2  ;;  %v24096_v30 = vand.u32 4294901760, %v20579_v9  ;;  %v20707_v38 = vsub.f32 %v3995_v34, %v20657_v16  ;;  %v20731_v34 = vld [vmem:[%s23950_s2 + $0x170] sm:$0xff] }
 0x258   :  { %16644 = vmatpush3.bf16.msra.mxu0 %v20556_v24  ;;  %v24100_v2 = vand.u32 4294901760, %v20588_v5  ;;  %24573 = vst [vmem:[#allocation17_spill] sm:$0xff] %v20718_v44  ;;  %v20726_v28 = vsub.f32 %v10762_v4, %v4708_v35  ;;  %v20748_v4 = vld [vmem:[%s23950_s2 + $0x1f0] sm:$0xff]  ;;  %v3452_v6 = vsub.f32 %v20581_v25, %v24099_v60  ;;  %v20763_v12 = vpack.c.bf16 %v3390_v19, %v3387_v41 }
 0x259   :  { %16932 = vmatpush3.bf16.msra.mxu1 %v20561_v37  ;;  %16645 = vmatprep.subr.bf16.mxu0 %v24307_v56  ;;  %24568 = vst [vmem:[#allocation12_spill] sm:$0xff] %v20636_v29  ;;  %v3445_v21 = vsub.f32 %v20579_v9, %v24096_v30  ;;  %v24579_v60 = vand.u32 4294901760, %v20699_v36  ;;  %v24590_v24 = vand.u32 4294901760, %v20623_v17 }
 0x25a   :  { %16933 = vmatprep.subr.bf16.mxu1 %v24307_v56  ;;  %v4769_v35 = vsub.f32 %v20588_v5, %v24100_v2  ;;  %24575 = vst [vmem:[#allocation22_spill] sm:$0xff] %v20763_v12  ;;  %v24576_v2 = vand.u32 4294901760, %v20691_v42 }
 0x25b   :  { %v3473_v46 = vsub.f32 %v20623_v17, %v24590_v24  ;;  %v24593_v24 = vand.u32 4294901760, %v20639_v40 }
 0x25c   :  { %16647 = vmatpush3.bf16.msra.mxu0 %v20591_v11 }
 0x25d   :  { %16935 = vmatpush3.bf16.msra.mxu1 %v20606_v18  ;;  %16648 = vmatprep.subr.bf16.mxu0 %v24307_v56  ;;  %v24586_v18 = vand.u32 4294901760, %v20620_v10 }
 0x25e   :  { %16936 = vmatprep.subr.bf16.mxu1 %v24307_v56 }
 0x260   :  { %16650 = vmatpush3.bf16.msra.mxu0 %v20636_v29 }
 0x261   :  { %16938 = vmatpush3.bf16.msra.mxu1 %v20644_v61  ;;  %16651 = vmatprep.subr.bf16.mxu0 %v24307_v56 }
 0x262   :  { %16939 = vmatprep.subr.bf16.mxu1 %v24307_v56 }
 0x264   :  { %16653 = vmatpush3.bf16.msra.mxu0 %v20663_v53  ;;  %v4770_v53 = vand.u32 4294901760, %v4769_v35  ;;  %v24584_v35 = vand.u32 4294901760, %v20731_v34 }
 0x265   :  { %16941 = vmatpush3.bf16.msra.mxu1 %v20670_v32  ;;  %16654 = vmatprep.subr.bf16.mxu0 %v24307_v56 }
 0x266   :  { %v20742_v13 = vpop.f32.mrb[0].mxu0  ;;  %16942 = vmatprep.subr.bf16.mxu1 %v24307_v56 }
 0x267   :  { %24574 = vst [vmem:[#allocation18_spill] sm:$0xff] %v20742_v13  ;;  %v2663_v33 = vpop.f32.mrb[0].mxu1  ;;  %v12978_v43 = vpop.f32.mrb[1].mxu0  ;;  %v4776_v13 = vsub.f32 %v20602_v20, %v24103_v52  ;;  %v24580_v52 = vand.u32 4294901760, %v20707_v38 }
 0x268   :  { %10612 = vrot.lane.b32.xlu0 %v2663_v33, %s18422_s21  ;;  %v13398_v27 = vpop.f32.mrb[1].mxu1  ;;  %16656 = vmatpush3.bf16.msra.mxu0 %v20703_v1  ;;  %v24577_v43 = vand.u32 4294901760, %v20696_v54  ;;  %v3434_v1 = vsub.f32 %v20699_v36, %v24579_v60  ;;  %v24583_v60 = vand.u32 4294901760, %v20618_v49 }
 0x269   :  { %16944 = vmatpush3.bf16.msra.mxu1 %v20718_v44  ;;  %16657 = vmatprep.subr.bf16.mxu0 %v24307_v56  ;;  %v4758_v32 = vsub.f32 %v20707_v38, %v24580_v52  ;;  %v24581_v44 = vand.u32 4294901760, %v20614_v57  ;;  %v4777_v33 = vand.u32 4294901760, %v4776_v13  ;;  %v24582_v27 = vand.u32 4294901760, %v20616_v26 }
 0x26a   :  { %v20776_v30 = vpack.c.bf16 %v24577_v43, %v24576_v2  ;;  %v3446_v2 = vand.u32 4294901760, %v3445_v21  ;;  %16945 = vmatprep.subr.bf16.mxu1 %v24307_v56  ;;  %v3453_v43 = vand.u32 4294901760, %v3452_v6  ;;  %v4783_v21 = vsub.f32 %v20618_v49, %v24583_v60 }
 0x26b   :  { %v3459_v61 = vsub.f32 %v20614_v57, %v24581_v44  ;;  %v3466_v29 = vsub.f32 %v20616_v26, %v24582_v27  ;;  %v20804_v52 = vsub.f32 %v20675_v51, %v3387_v41  ;;  %v24585_v44 = vand.u32 4294901760, %v20736_v45 }
 0x26c   :  { %24578 = vst [vmem:[#allocation23_spill] sm:$0xff] %v20776_v30  ;;  %16659 = vmatpush3.bf16.msra.mxu0 %v20763_v12  ;;  %v4790_v27 = vsub.f32 %v20620_v10, %v24586_v18  ;;  %v20817_v60 = vsub.f32 %v20680_v3, %v3390_v19  ;;  %v24587_v51 = vand.u32 4294901760, %v20748_v4  ;;  %v24588_v41 = vand.u32 4294901760, %v20753_v48 }
 0x26d   :  { %v20810_v13 = vpack.c.bf16 %v24585_v44, %v24584_v35  ;;  %16947 = vmatpush3.bf16.msra.mxu1 %v20776_v30  ;;  %16660 = vmatprep.subr.bf16.mxu0 %v24307_v56  ;;  %v3435_v18 = vand.u32 4294901760, %v3434_v1  ;;  %v16664_v11 = vpack.c.bf16 %v3453_v43, %v3446_v2  ;;  %v4759_v3 = vand.u32 4294901760, %v4758_v32 }
 0x26e   :  { %v20825_v6 = vpack.c.bf16 %v24588_v41, %v24587_v51  ;;  %16948 = vmatprep.subr.bf16.mxu1 %v24307_v56  ;;  %v3460_v19 = vand.u32 4294901760, %v3459_v61  ;;  %v16952_v12 = vpack.c.bf16 %v4777_v33, %v4770_v53  ;;  %v3467_v30 = vand.u32 4294901760, %v3466_v29 }
 0x26f   :  { %v4784_v37 = vand.u32 4294901760, %v4783_v21  ;;  %v4791_v51 = vand.u32 4294901760, %v4790_v27  ;;  %v24591_v41 = vand.u32 4294901760, %v20625_v14  ;;  %v24126_v35 = vand.u32 4294901760, %v20642_v23 }
 0x270   :  { %24589 = vst [vmem:[#allocation24_spill] sm:$0xff] %v20825_v6  ;;  %16662 = vmatpush3.bf16.msra.mxu0 %v20810_v13  ;;  %v24592_v29 = vand.u32 4294901760, %v20634_v7  ;;  %v4804_v53 = vsub.f32 %v20639_v40, %v24593_v24  ;;  %v24594_v2 = vand.u32 4294901760, %v20691_v42  ;;  %v16667_v33 = vpack.c.bf16 %v3467_v30, %v3460_v19 }
 0x271   :  { %v3480_v44 = vsub.f32 %v20625_v14, %v24591_v41  ;;  %16950 = vmatpush3.bf16.msra.mxu1 %v20825_v6  ;;  %16663 = vmatprep.subr.bf16.mxu0 %v24307_v56  ;;  %v3474_v32 = vand.u32 4294901760, %v3473_v46  ;;  %v24127_v1 = vand.u32 4294901760, %v20686_v62  ;;  %v3487_v27 = vsub.f32 %v20642_v23, %v24126_v35 }
 0x272   :  { %v4797_v61 = vsub.f32 %v20634_v7, %v24592_v29  ;;  %v20852_v43 = vsub.f32 %v20691_v42, %v24594_v2  ;;  %16951 = vmatprep.subr.bf16.mxu1 %v24307_v56  ;;  %v24595_v29 = vand.u32 4294901760, %v20696_v54  ;;  %v16955_v42 = vpack.c.bf16 %v4791_v51, %v4784_v37 }
 0x273   :  { %13642 = vmatmul.mubr.f32.vlgmr.msra.gmra.mrb[2].mxu0 %v3435_v18  ;;  %v3481_v2 = vand.u32 4294901760, %v3480_v44  ;;  %v24596_v41 = vand.u32 4294901760, %v20655_v39  ;;  %v4805_v30 = vand.u32 4294901760, %v4804_v53  ;;  %v24597_v46 = vand.u32 4294901760, %v20659_v50 }
 0x274   :  { %v20861_v24 = vsub.f32 %v20696_v54, %v24595_v29  ;;  %16665 = vmatpush3.bf16.msra.mxu0 %v16664_v11  ;;  %14062 = vmatmul.mubr.f32.vlgmr.msra.gmra.mrb[2].mxu1 %v4759_v3  ;;  %v4798_v54 = vand.u32 4294901760, %v4797_v61  ;;  %v24598_v37 = vand.u32 4294901760, %v20661_v58  ;;  %v24599_v18 = vand.u32 4294901760, %v20665_v31 }
 0x275   :  { %v3494_v21 = vsub.f32 %v20655_v39, %v24596_v41  ;;  %16953 = vmatpush3.bf16.msra.mxu1 %v16952_v12  ;;  %16666 = vmatprep.subr.bf16.mxu0 %v24307_v56  ;;  %v4811_v11 = vsub.f32 %v20659_v50, %v24597_v46  ;;  %v24600_v12 = vand.u32 4294901760, %v20668_v15  ;;  %v24601_v51 = vand.u32 4294901760, %v20684_v47 }
 0x276   :  { %v4818_v44 = vsub.f32 %v20661_v58, %v24598_v37  ;;  %16954 = vmatprep.subr.bf16.mxu1 %v24307_v56  ;;  %v3501_v3 = vsub.f32 %v20665_v31, %v24599_v18  ;;  %13676 = vmatprep.mubr.msk.f32.mxu0 %vm18420_vm0, %v24322_v63  ;;  %v24602_v41 = vand.u32 4294901760, %v20731_v34  ;;  %v4832_v46 = vsub.f32 %v20686_v62, %v24127_v1 }
 0x277   :  { %v3508_v19 = vsub.f32 %v20668_v15, %v24600_v12  ;;  %v4825_v61 = vsub.f32 %v20684_v47, %v24601_v51  ;;  %14096 = vmatprep.mubr.msk.f32.mxu1 %vm18420_vm0, %v24322_v63  ;;  %v16670_v12 = vpack.c.bf16 %v3481_v2, %v3474_v32  ;;  %v3488_v51 = vand.u32 4294901760, %v3487_v27 }
 0x278   :  { %v20893_v29 = vsub.f32 %v20731_v34, %v24602_v41  ;;  %16668 = vmatpush3.bf16.msra.mxu0 %v16667_v33  ;;  %v3495_v35 = vand.u32 4294901760, %v3494_v21  ;;  %v24603_v34 = vand.u32 4294901760, %v20736_v45  ;;  %v16958_v1 = vpack.c.bf16 %v4805_v30, %v4798_v54 }
 0x279   :  { %16956 = vmatpush3.bf16.msra.mxu1 %v16955_v42  ;;  %16669 = vmatprep.subr.bf16.mxu0 %v24307_v56  ;;  %v4812_v37 = vand.u32 4294901760, %v4811_v11  ;;  %v4819_v18 = vand.u32 4294901760, %v4818_v44  ;;  %v3502_v6 = vand.u32 4294901760, %v3501_v3  ;;  %v3509_v33 = vand.u32 4294901760, %v3508_v19 }
 0x27a   :  { %v20906_v41 = vsub.f32 %v20736_v45, %v24603_v34  ;;  %16957 = vmatprep.subr.bf16.mxu1 %v24307_v56  ;;  %v4826_v32 = vand.u32 4294901760, %v4825_v61  ;;  %v24604_v21 = vand.u32 4294901760, %v20710_v22  ;;  %v4833_v2 = vand.u32 4294901760, %v4832_v46 }
 0x27b   :  { %v24605_v53 = vand.u32 4294901760, %v20716_v8  ;;  %v24606_v42 = vand.u32 4294901760, %v20724_v55  ;;  %v3528_v30 = vand.u32 4294901760, %v20804_v52  ;;  %v24607_v11 = vand.u32 4294901760, %v20748_v4 }
 0x27c   :  { %v3515_v27 = vsub.f32 %v20710_v22, %v24604_v21  ;;  %16671 = vmatpush3.bf16.msra.mxu0 %v16670_v12  ;;  %v16673_v3 = vpack.c.bf16 %v3495_v35, %v3488_v51  ;;  %v24608_v19 = vand.u32 4294901760, %v20726_v28  ;;  %v3535_v46 = vand.u32 4294901760, %v20817_v60 }
 0x27d   :  { %v3522_v45 = vsub.f32 %v20716_v8, %v24605_v53  ;;  %v4839_v54 = vsub.f32 %v20724_v55, %v24606_v42  ;;  %v20923_v44 = vsub.f32 %v20748_v4, %v24607_v11  ;;  %v24609_v53 = vand.u32 4294901760, %v20753_v48  ;;  %16959 = vmatpush3.bf16.msra.mxu1 %v16958_v1  ;;  %16672 = vmatprep.subr.bf16.mxu0 %v24307_v56 }
 0x27e   :  { %v4846_v61 = vsub.f32 %v20726_v28, %v24608_v19  ;;  %v16961_v21 = vpack.c.bf16 %v4819_v18, %v4812_v37  ;;  %v24131_v4 = vand.u32 4294901760, %v20852_v43  ;;  %v24130_v12 = vand.u32 4294901760, %v20861_v24  ;;  %16960 = vmatprep.subr.bf16.mxu1 %v24307_v56 }
 0x27f   :  { %v20932_v34 = vsub.f32 %v20753_v48, %v24609_v53  ;;  %v16676_v35 = vpack.c.bf16 %v3509_v33, %v3502_v6  ;;  %v3516_v51 = vand.u32 4294901760, %v3515_v27  ;;  %v16964_v42 = vpack.c.bf16 %v4833_v2, %v4826_v32 }
 0x280   :  { %v3523_v11 = vand.u32 4294901760, %v3522_v45  ;;  %v4840_v19 = vand.u32 4294901760, %v4839_v54  ;;  %v3529_v48 = vsub.f32 %v20804_v52, %v3528_v30  ;;  %16674 = vmatpush3.bf16.msra.mxu0 %v16673_v3  ;;  %v4847_v1 = vand.u32 4294901760, %v4846_v61 }
 0x281   :  { %v3536_v37 = vsub.f32 %v20817_v60, %v3535_v46  ;;  %v3542_v18 = vand.u32 4294901760, %v20893_v29  ;;  %v24134_v53 = vand.u32 4294901760, %v20906_v41  ;;  %16962 = vmatpush3.bf16.msra.mxu1 %v16961_v21  ;;  %16675 = vmatprep.subr.bf16.mxu0 %v24307_v56  ;;  %v4853_v6 = vsub.f32 %v20852_v43, %v24131_v4 }
 0x282   :  { %v4860_v33 = vsub.f32 %v20861_v24, %v24130_v12  ;;  %v24133_v32 = vand.u32 4294901760, %v20923_v44  ;;  %v24132_v27 = vand.u32 4294901760, %v20932_v34  ;;  %16963 = vmatprep.subr.bf16.mxu1 %v24307_v56  ;;  %v16679_v2 = vpack.c.bf16 %v3523_v11, %v3516_v51 }
 0x283   :  { %v3530_v45 = vand.u32 4294901760, %v3529_v48  ;;  %v16967_v54 = vpack.c.bf16 %v4847_v1, %v4840_v19  ;;  %v3537_v3 = vand.u32 4294901760, %v3536_v37  ;;  %v3543_v61 = vsub.f32 %v20893_v29, %v3542_v18 }
 0x284   :  { %16677 = vmatpush3.bf16.msra.mxu0 %v16676_v35  ;;  %v3550_v21 = vsub.f32 %v20906_v41, %v24134_v53  ;;  %v4854_v12 = vand.u32 4294901760, %v4853_v6  ;;  %v4861_v4 = vand.u32 4294901760, %v4860_v33  ;;  %v4867_v51 = vsub.f32 %v20923_v44, %v24133_v32 }
 0x285   :  { %16965 = vmatpush3.bf16.msra.mxu1 %v16964_v42  ;;  %16678 = vmatprep.subr.bf16.mxu0 %v24307_v56  ;;  %v4874_v35 = vsub.f32 %v20932_v34, %v24132_v27  ;;  %v16682_v11 = vpack.c.bf16 %v3537_v3, %v3530_v45  ;;  %v3544_v19 = vand.u32 4294901760, %v3543_v61  ;;  %v16979_v45 = vpack.c.bf16 %v20620_v10, %v20618_v49 }
 0x286   :  { %16966 = vmatprep.subr.bf16.mxu1 %v24307_v56  ;;  %v3551_v48 = vand.u32 4294901760, %v3550_v21  ;;  %v16970_v42 = vpack.c.bf16 %v4861_v4, %v4854_v12  ;;  %v4868_v1 = vand.u32 4294901760, %v4867_v51  ;;  %v16976_v4 = vpack.c.bf16 %v20602_v20, %v20588_v5 }
 0x287   :  { %v4875_v37 = vand.u32 4294901760, %v4874_v35  ;;  %v16691_v12 = vpack.c.bf16 %v20616_v26, %v20614_v57  ;;  %v16982_v3 = vpack.c.bf16 %v20639_v40, %v20634_v7  ;;  %v16697_v61 = vpack.c.bf16 %v20655_v39, %v20642_v23 }
 0x288   :  { %16680 = vmatpush3.bf16.msra.mxu0 %v16679_v2  ;;  %v16685_v6 = vpack.c.bf16 %v3551_v48, %v3544_v19  ;;  %v16688_v2 = vpack.c.bf16 %v20581_v25, %v20579_v9  ;;  %v16985_v21 = vpack.c.bf16 %v20661_v58, %v20659_v50  ;;  %v16700_v51 = vpack.c.bf16 %v20668_v15, %v20665_v31 }
 0x289   :  { %16968 = vmatpush3.bf16.msra.mxu1 %v16967_v54  ;;  %16681 = vmatprep.subr.bf16.mxu0 %v24307_v56  ;;  %v16973_v33 = vpack.c.bf16 %v4875_v37, %v4868_v1  ;;  %v16694_v54 = vpack.c.bf16 %v20625_v14, %v20623_v17  ;;  %v16988_v35 = vpack.c.bf16 %v20686_v62, %v20684_v47  ;;  %v24627_v27 = vand.u32 4294901760, %v20602_v20 }
 0x28a   :  { %16969 = vmatprep.subr.bf16.mxu1 %v24307_v56  ;;  %v16991_v19 = vpack.c.bf16 %v20726_v28, %v20724_v55  ;;  %v16706_v48 = vpack.c.bf16 %v20817_v60, %v20804_v52  ;;  %v16709_v1 = vpack.c.bf16 %v20906_v41, %v20893_v29  ;;  %v16997_v37 = vpack.c.bf16 %v20932_v34, %v20923_v44  ;;  %v10840_v29 = vld [vmem:[%s23951_s3 + $0x288] sm:$0xff] }
 0x28b   :  { %v24628_v53 = vand.u32 4294901760, %v20699_v36  ;;  %v24633_v20 = vand.u32 4294901760, %v20620_v10  ;;  %v24637_v10 = vand.u32 4294901760, %v20639_v40  ;;  %v24642_v40 = vand.u32 4294901760, %v20661_v58 }
 0x28c   :  { %16683 = vmatpush3.bf16.msra.mxu0 %v16682_v11  ;;  %v16703_v11 = vpack.c.bf16 %v20716_v8, %v20710_v22  ;;  %v24648_v58 = vand.u32 4294901760, %v20716_v8  ;;  %v24654_v52 = vand.u32 4294901760, %v20923_v44  ;;  %v24655_v60 = vand.u32 4294901760, %v20932_v34 }
 0x28d   :  { %16971 = vmatpush3.bf16.msra.mxu1 %v16970_v42  ;;  %16684 = vmatprep.subr.bf16.mxu0 %v24307_v56  ;;  %v16994_v42 = vpack.c.bf16 %v20861_v24, %v20852_v43  ;;  %v6685_v34 = vand.u32 4294901760, %v10840_v29 }
 0x28e   :  { %16972 = vmatprep.subr.bf16.mxu1 %v24307_v56 }
 0x290   :  { %16686 = vmatpush3.bf16.msra.mxu0 %v16685_v6  ;;  %v24610_v6 = vld [vmem:[#allocation7_spill] sm:$0xff] }
 0x291   :  { %16974 = vmatpush3.bf16.msra.mxu1 %v16973_v33  ;;  %16687 = vmatprep.subr.bf16.mxu0 %v24307_v56  ;;  %v24611_v33 = vld [vmem:[#allocation8_spill] sm:$0xff] }
 0x292   :  { %16975 = vmatprep.subr.bf16.mxu1 %v24307_v56 }
 0x293   :  { %13677 = vmatmul.mubr.f32.vlgmr.msra.gmra.mrb[2].mxu0 %v20652_v59 }
 0x294   :  { %16689 = vmatpush3.bf16.msra.mxu0 %v16688_v2  ;;  %14097 = vmatmul.mubr.f32.vlgmr.msra.gmra.mrb[2].mxu1 %v20657_v16  ;;  %v24612_v2 = vld [vmem:[#allocation9_spill] sm:$0xff] }
 0x295   :  { %16977 = vmatpush3.bf16.msra.mxu1 %v16976_v4  ;;  %16690 = vmatprep.subr.bf16.mxu0 %v24307_v56  ;;  %v24613_v4 = vld [vmem:[#allocation10_spill] sm:$0xff] }
 0x296   :  { %16978 = vmatprep.subr.bf16.mxu1 %v24307_v56  ;;  %13711 = vmatprep.mubr.msk.f32.mxu0 %vm18420_vm0, %v24322_v63 }
 0x297   :  { %14131 = vmatprep.mubr.msk.f32.mxu1 %vm18420_vm0, %v24322_v63 }
 0x298   :  { %16692 = vmatpush3.bf16.msra.mxu0 %v16691_v12  ;;  %v24614_v12 = vld [vmem:[#allocation11_spill] sm:$0xff] }
 0x299   :  { %16980 = vmatpush3.bf16.msra.mxu1 %v16979_v45  ;;  %16693 = vmatprep.subr.bf16.mxu0 %v24307_v56  ;;  %v24615_v45 = vld [vmem:[#allocation12_spill] sm:$0xff] }
 0x29a   :  { %16981 = vmatprep.subr.bf16.mxu1 %v24307_v56 }
 0x29c   :  { %16695 = vmatpush3.bf16.msra.mxu0 %v16694_v54  ;;  %v24616_v54 = vld [vmem:[#allocation13_spill] sm:$0xff] }
 0x29d   :  { %16983 = vmatpush3.bf16.msra.mxu1 %v16982_v3  ;;  %16696 = vmatprep.subr.bf16.mxu0 %v24307_v56  ;;  %v24617_v3 = vld [vmem:[#allocation14_spill] sm:$0xff] }
 0x29e   :  { %16984 = vmatprep.subr.bf16.mxu1 %v24307_v56 }
 0x2a0   :  { %16698 = vmatpush3.bf16.msra.mxu0 %v16697_v61  ;;  %v24618_v61 = vld [vmem:[#allocation15_spill] sm:$0xff] }
 0x2a1   :  { %16986 = vmatpush3.bf16.msra.mxu1 %v16985_v21  ;;  %16699 = vmatprep.subr.bf16.mxu0 %v24307_v56  ;;  %v24619_v21 = vld [vmem:[#allocation16_spill] sm:$0xff] }
 0x2a2   :  { %16987 = vmatprep.subr.bf16.mxu1 %v24307_v56 }
 0x2a4   :  { %16701 = vmatpush3.bf16.msra.mxu0 %v16700_v51  ;;  %v24620_v51 = vld [vmem:[#allocation17_spill] sm:$0xff] }
 0x2a5   :  { %16989 = vmatpush3.bf16.msra.mxu1 %v16988_v35  ;;  %16702 = vmatprep.subr.bf16.mxu0 %v24307_v56  ;;  %v24621_v35 = vld [vmem:[#allocation22_spill] sm:$0xff] }
 0x2a6   :  { %16990 = vmatprep.subr.bf16.mxu1 %v24307_v56 }
 0x2a8   :  { %16704 = vmatpush3.bf16.msra.mxu0 %v16703_v11  ;;  %v24622_v11 = vld [vmem:[#allocation23_spill] sm:$0xff] }
 0x2a9   :  { %16992 = vmatpush3.bf16.msra.mxu1 %v16991_v19  ;;  %16705 = vmatprep.subr.bf16.mxu0 %v24307_v56  ;;  %v24623_v19 = vand.u32 4294901760, %v20579_v9  ;;  %v24629_v9 = vand.u32 4294901760, %v20707_v38 }
 0x2aa   :  { %16993 = vmatprep.subr.bf16.mxu1 %v24307_v56 }
 0x2ac   :  { %16707 = vmatpush3.bf16.msra.mxu0 %v16706_v48  ;;  %v24624_v48 = vand.u32 4294901760, %v20581_v25  ;;  %v24630_v25 = vand.u32 4294901760, %v20614_v57  ;;  %v24634_v57 = vand.u32 4294901760, %v20623_v17  ;;  %v24639_v17 = vand.u32 4294901760, %v20642_v23 }
 0x2ad   :  { %16995 = vmatpush3.bf16.msra.mxu1 %v16994_v42  ;;  %16708 = vmatprep.subr.bf16.mxu0 %v24307_v56  ;;  %v24645_v23 = vand.u32 4294901760, %v20684_v47  ;;  %v16754_v47 = vpack.c.bf16 %v3535_v46, %v3528_v30  ;;  %v17045_v30 = vpack.c.bf16 %v24655_v60, %v24654_v52 }
 0x2ae   :  { %16996 = vmatprep.subr.bf16.mxu1 %v24307_v56  ;;  %v16736_v42 = vpack.c.bf16 %v24624_v48, %v24623_v19  ;;  %v24631_v19 = vand.u32 4294901760, %v20616_v26  ;;  %v24635_v26 = vand.u32 4294901760, %v20625_v14  ;;  %v24640_v14 = vand.u32 4294901760, %v20655_v39 }
 0x2af   :  { %v24646_v39 = vand.u32 4294901760, %v20686_v62  ;;  %v24651_v62 = vand.u32 4294901760, %v20852_v43  ;;  %v10804_v43 = vld [vmem:[%s23951_s3 + $0x208] sm:$0xff] }
 0x2b0   :  { %16710 = vmatpush3.bf16.msra.mxu0 %v16709_v1  ;;  %v24625_v1 = vld [vmem:[#allocation24_spill] sm:$0xff]  ;;  %v16739_v48 = vpack.c.bf16 %v24631_v19, %v24630_v25  ;;  %v24643_v25 = vand.u32 4294901760, %v20665_v31  ;;  %v24644_v19 = vand.u32 4294901760, %v20668_v15  ;;  %v24649_v31 = vand.u32 4294901760, %v20724_v55 }
 0x2b1   :  { %16998 = vmatpush3.bf16.msra.mxu1 %v16997_v37  ;;  %16711 = vmatprep.subr.bf16.mxu0 %v24307_v56  ;;  %v24626_v37 = vand.u32 4294901760, %v20588_v5  ;;  %v24632_v5 = vand.u32 4294901760, %v20618_v49  ;;  %v24636_v49 = vand.u32 4294901760, %v20634_v7  ;;  %v24641_v7 = vand.u32 4294901760, %v20659_v50 }
 0x2b2   :  { %16999 = vmatprep.subr.bf16.mxu1 %v24307_v56  ;;  %v24647_v50 = vand.u32 4294901760, %v20710_v22  ;;  %v24650_v15 = vand.u32 4294901760, %v20726_v28  ;;  %v24652_v22 = vand.u32 4294901760, %v20861_v24  ;;  %v24653_v55 = vand.u32 4294901760, %v20906_v41  ;;  %v10839_v24 = vld [vmem:[%s23951_s3 + $0x280] sm:$0xff] }
 0x2b3   :  { %13712 = vmatmul.mubr.f32.vlgmr.msra.gmra.mrb[2].mxu0 %v20699_v36  ;;  %v17024_v32 = vpack.c.bf16 %v24627_v27, %v24626_v37  ;;  %v17027_v27 = vpack.c.bf16 %v24633_v20, %v24632_v5  ;;  %v16742_v36 = vpack.c.bf16 %v24635_v26, %v24634_v57  ;;  %v16745_v37 = vpack.c.bf16 %v24640_v14, %v24639_v17 }
 0x2b4   :  { %16713 = vmatpush3.bf16.msra.mxu0 %v20534_v0  ;;  %14132 = vmatmul.mubr.f32.vlgmr.msra.gmra.mrb[2].mxu1 %v20707_v38  ;;  %v17030_v38 = vpack.c.bf16 %v24637_v10, %v24636_v49  ;;  %v17036_v5 = vpack.c.bf16 %v24646_v39, %v24645_v23  ;;  %v16751_v20 = vpack.c.bf16 %v24648_v58, %v24647_v50  ;;  %v5361_v44 = vand.u32 4294901760, %v10804_v43  ;;  %v10845_v10 = vld [vmem:[%s23951_s3 + $0x2b0] sm:$0xff]  ;;  %v10847_v23 = vld [vmem:[%s23951_s3 + $0x2c0] sm:$0xff]  ;;  %v10848_v39 = vld [vmem:[%s23951_s3 + $0x2c8] sm:$0xff] }
 0x2b5   :  { %17001 = vmatpush3.bf16.msra.mxu1 %v24610_v6  ;;  %16714 = vmatprep.subr.bf16.mxu0 %v24307_v56  ;;  %v17042_v8 = vpack.c.bf16 %v24652_v22, %v24651_v62  ;;  %v16757_v28 = vpack.c.bf16 %v24653_v55, %v3542_v18  ;;  %v6682_v46 = vand.u32 4294901760, %v10839_v24  ;;  %v10805_v18 = vld [vmem:[%s23951_s3 + $0x210] sm:$0xff]  ;;  %v6646_v55 = vld [vmem:[%s6645_s14] sm:$0xff]  ;;  %v6706_v60 = vand.u32 4294901760, %v10847_v23  ;;  %s10893_s14 = sshll.u32 %s23268_s24, 3 }
 0x2b6   :  { %17002 = vmatprep.subr.bf16.mxu1 %v24307_v56  ;;  %13746 = vmatprep.mubr.msk.f32.mxu0 %vm18420_vm0, %v24322_v63  ;;  %v10813_v22 = vld [vmem:[%s23951_s3 + $0x250] sm:$0xff]  ;;  %s9290_s28 = scalar_lea.vmem %s23949_s1, %s10893_s14 }
 0x2b7   :  { %14166 = vmatprep.mubr.msk.f32.mxu1 %vm18420_vm0, %v24322_v63 }
 0x2b8   :  { %16716 = vmatpush3.bf16.msra.mxu0 %v24611_v33 }
 0x2b9   :  { %17004 = vmatpush3.bf16.msra.mxu1 %v24612_v2  ;;  %16717 = vmatprep.subr.bf16.mxu0 %v24307_v56 }
 0x2ba   :  { %17005 = vmatprep.subr.bf16.mxu1 %v24307_v56 }
 0x2bc   :  { %16719 = vmatpush3.bf16.msra.mxu0 %v24613_v4 }
 0x2bd   :  { %17007 = vmatpush3.bf16.msra.mxu1 %v24614_v12  ;;  %16720 = vmatprep.subr.bf16.mxu0 %v24307_v56 }
 0x2be   :  { %17008 = vmatprep.subr.bf16.mxu1 %v24307_v56 }
 0x2c0   :  { %16722 = vmatpush3.bf16.msra.mxu0 %v24615_v45 }
 0x2c1   :  { %17010 = vmatpush3.bf16.msra.mxu1 %v24616_v54  ;;  %16723 = vmatprep.subr.bf16.mxu0 %v24307_v56 }
 0x2c2   :  { %17011 = vmatprep.subr.bf16.mxu1 %v24307_v56 }
 0x2c4   :  { %16725 = vmatpush3.bf16.msra.mxu0 %v24617_v3 }
 0x2c5   :  { %17013 = vmatpush3.bf16.msra.mxu1 %v24618_v61  ;;  %16726 = vmatprep.subr.bf16.mxu0 %v24307_v56 }
 0x2c6   :  { %17014 = vmatprep.subr.bf16.mxu1 %v24307_v56 }
 0x2c8   :  { %16728 = vmatpush3.bf16.msra.mxu0 %v24619_v21 }
 0x2c9   :  { %17016 = vmatpush3.bf16.msra.mxu1 %v24620_v51  ;;  %16729 = vmatprep.subr.bf16.mxu0 %v24307_v56 }
 0x2ca   :  { %17017 = vmatprep.subr.bf16.mxu1 %v24307_v56 }
 0x2cc   :  { %16731 = vmatpush3.bf16.msra.mxu0 %v24621_v35 }
 0x2cd   :  { %17019 = vmatpush3.bf16.msra.mxu1 %v24622_v11  ;;  %16732 = vmatprep.subr.bf16.mxu0 %v24307_v56 }
 0x2ce   :  { %17020 = vmatprep.subr.bf16.mxu1 %v24307_v56 }
 0x2d0   :  { %16734 = vmatpush3.bf16.msra.mxu0 %v20810_v13 }
 0x2d1   :  { %17022 = vmatpush3.bf16.msra.mxu1 %v24625_v1  ;;  %16735 = vmatprep.subr.bf16.mxu0 %v24307_v56 }
 0x2d2   :  { %17023 = vmatprep.subr.bf16.mxu1 %v24307_v56 }
 0x2d3   :  { %13747 = vmatmul.mubr.f32.vlgmr.msra.gmra.mrb[2].mxu0 %v24628_v53 }
 0x2d4   :  { %16737 = vmatpush3.bf16.msra.mxu0 %v16736_v42  ;;  %14167 = vmatmul.mubr.f32.vlgmr.msra.gmra.mrb[2].mxu1 %v24629_v9  ;;  %v17033_v9 = vpack.c.bf16 %v24642_v40, %v24641_v7  ;;  %v10811_v7 = vld [vmem:[%s23951_s3 + $0x240] sm:$0xff]  ;;  %v10812_v40 = vld [vmem:[%s23951_s3 + $0x248] sm:$0xff] }
 0x2d5   :  { %17025 = vmatpush3.bf16.msra.mxu1 %v17024_v32  ;;  %16738 = vmatprep.subr.bf16.mxu0 %v24307_v56  ;;  %v24638_v32 = vld [vmem:[#allocation18_spill] sm:$0xff]  ;;  %v5385_v62 = vand.u32 4294901760, %v10812_v40 }
 0x2d6   :  { %17026 = vmatprep.subr.bf16.mxu1 %v24307_v56  ;;  %13781 = vmatprep.mubr.msk.f32.mxu0 %vm18420_vm0, %v24322_v63 }
 0x2d7   :  { %14201 = vmatprep.mubr.msk.f32.mxu1 %vm18420_vm0, %v24322_v63 }
 0x2d8   :  { %16740 = vmatpush3.bf16.msra.mxu0 %v16739_v48  ;;  %v16748_v48 = vpack.c.bf16 %v24644_v19, %v24643_v25  ;;  %v6700_v19 = vand.u32 4294901760, %v10845_v10 }
 0x2d9   :  { %17028 = vmatpush3.bf16.msra.mxu1 %v17027_v27  ;;  %16741 = vmatprep.subr.bf16.mxu0 %v24307_v56  ;;  %v17039_v27 = vpack.c.bf16 %v24650_v15, %v24649_v31  ;;  %v5322_v31 = vld [vmem:[%s5321_s7] sm:$0xff] }
 0x2da   :  { %v10613_v53 = vpop.permute.xlu0 %10612  ;;  %17029 = vmatprep.subr.bf16.mxu1 %v24307_v56 }
 0x2db   :  { %v10628_v42 = vsel %vm10627_vm1, %v24638_v32, %v10613_v53  ;;  %v21271_v32 = vsub.f32 %v10804_v43, %v5361_v44 }
 0x2dc   :  { %10632 = vst [vmem:[%s23952_s4] sm:$0xff] %v10628_v42  ;;  %16743 = vmatpush3.bf16.msra.mxu0 %v16742_v36  ;;  %v21278_v42 = vsub.f32 %v10839_v24, %v6682_v46 }
 0x2dd   :  { %17031 = vmatpush3.bf16.msra.mxu1 %v17030_v38  ;;  %16744 = vmatprep.subr.bf16.mxu0 %v24307_v56  ;;  %v10846_v38 = vld [vmem:[%s23951_s3 + $0x2b8] sm:$0xff] }
 0x2de   :  { %17032 = vmatprep.subr.bf16.mxu1 %v24307_v56 }
 0x2e0   :  { %16746 = vmatpush3.bf16.msra.mxu0 %v16745_v37 }
 0x2e1   :  { %17034 = vmatpush3.bf16.msra.mxu1 %v17033_v9  ;;  %16747 = vmatprep.subr.bf16.mxu0 %v24307_v56  ;;  %v21292_v9 = vsub.f32 %v10840_v29, %v6685_v34  ;;  %v10849_v29 = vld [vmem:[%s23951_s3 + $0x2d0] sm:$0xff] }
 0x2e2   :  { %17035 = vmatprep.subr.bf16.mxu1 %v24307_v56 }
 0x2e4   :  { %16749 = vmatpush3.bf16.msra.mxu0 %v16748_v48  ;;  %v6703_v48 = vand.u32 4294901760, %v10846_v38 }
 0x2e5   :  { %17037 = vmatpush3.bf16.msra.mxu1 %v17036_v5  ;;  %16750 = vmatprep.subr.bf16.mxu0 %v24307_v56 }
 0x2e6   :  { %17038 = vmatprep.subr.bf16.mxu1 %v24307_v56  ;;  %v21334_v24 = vpack.c.bf16 %v6703_v48, %v6700_v19 }
 0x2e8   :  { %16752 = vmatpush3.bf16.msra.mxu0 %v16751_v20  ;;  %24662 = vst [vmem:[#allocation20_spill] sm:$0xff] %v21334_v24 }
 0x2e9   :  { %17040 = vmatpush3.bf16.msra.mxu1 %v17039_v27  ;;  %16753 = vmatprep.subr.bf16.mxu0 %v24307_v56 }
 0x2ea   :  { %17041 = vmatprep.subr.bf16.mxu1 %v24307_v56 }
 0x2ec   :  { %16755 = vmatpush3.bf16.msra.mxu0 %v16754_v47  ;;  %v5382_v47 = vand.u32 4294901760, %v10811_v7 }
 0x2ed   :  { %17043 = vmatpush3.bf16.msra.mxu1 %v17042_v8  ;;  %16756 = vmatprep.subr.bf16.mxu0 %v24307_v56  ;;  %v10814_v8 = vld [vmem:[%s23951_s3 + $0x258] sm:$0xff] }
 0x2ee   :  { %17044 = vmatprep.subr.bf16.mxu1 %v24307_v56 }
 0x2f0   :  { %16758 = vmatpush3.bf16.msra.mxu0 %v16757_v28 }
 0x2f1   :  { %17046 = vmatpush3.bf16.msra.mxu1 %v17045_v30  ;;  %16759 = vmatprep.subr.bf16.mxu0 %v24307_v56  ;;  %v6709_v30 = vand.u32 4294901760, %v10848_v39 }
 0x2f2   :  { %17047 = vmatprep.subr.bf16.mxu1 %v24307_v56 }
 0x2f3   :  { %13782 = vmatmul.mubr.f32.vlgmr.msra.gmra.mrb[2].mxu0 %v20652_v59 }
 0x2f4   :  { %16761 = vmatpush3.bf16.msra.mxu0 %v20534_v0  ;;  %14202 = vmatmul.mubr.f32.vlgmr.msra.gmra.mrb[2].mxu1 %v20657_v16  ;;  %v10803_v0 = vld [vmem:[%s23951_s3 + $0x200] sm:$0xff] }
 0x2f5   :  { %17049 = vmatpush3.bf16.msra.mxu1 %v24610_v6  ;;  %16762 = vmatprep.subr.bf16.mxu0 %v24307_v56  ;;  %v5358_v41 = vand.u32 4294901760, %v10803_v0  ;;  %v10806_v6 = vld [vmem:[%s23951_s3 + $0x218] sm:$0xff] }
 0x2f6   :  { %17050 = vmatprep.subr.bf16.mxu1 %v24307_v56  ;;  %13816 = vmatprep.mubr.msk.f32.mxu0 %vm18420_vm0, %v24322_v63 }
 0x2f7   :  { %14236 = vmatprep.mubr.msk.f32.mxu1 %vm18420_vm0, %v24322_v63  ;;  %v21269_v53 = vsub.f32 %v10803_v0, %v5358_v41 }
 0x2f8   :  { %16764 = vmatpush3.bf16.msra.mxu0 %v24611_v33  ;;  %v10841_v33 = vld [vmem:[%s23951_s3 + $0x290] sm:$0xff] }
 0x2f9   :  { %17052 = vmatpush3.bf16.msra.mxu1 %v24612_v2  ;;  %16765 = vmatprep.subr.bf16.mxu0 %v24307_v56  ;;  %v10842_v2 = vld [vmem:[%s23951_s3 + $0x298] sm:$0xff] }
 0x2fa   :  { %17053 = vmatprep.subr.bf16.mxu1 %v24307_v56 }
 0x2fc   :  { %16767 = vmatpush3.bf16.msra.mxu0 %v24613_v4  ;;  %v21224_v4 = vpack.c.bf16 %v5361_v44, %v5358_v41  ;;  %v10850_v41 = vld [vmem:[%s23951_s3 + $0x2d8] sm:$0xff]  ;;  %v21342_v44 = vand.u32 4294901760, %v5322_v31 }
 0x2fd   :  { %17055 = vmatpush3.bf16.msra.mxu1 %v24614_v12  ;;  %16768 = vmatprep.subr.bf16.mxu0 %v24307_v56  ;;  %v5364_v12 = vand.u32 4294901760, %v10805_v18 }
 0x2fe   :  { %17056 = vmatprep.subr.bf16.mxu1 %v24307_v56 }
 0x2ff   :  { %v21304_v5 = vsub.f32 %v10805_v18, %v5364_v12  ;;  %v5391_v18 = vand.u32 4294901760, %v10814_v8 }
 0x300   :  { %16770 = vmatpush3.bf16.msra.mxu0 %v24615_v45  ;;  %v5367_v45 = vand.u32 4294901760, %v10806_v6 }
 0x301   :  { %17058 = vmatpush3.bf16.msra.mxu1 %v24616_v54  ;;  %16771 = vmatprep.subr.bf16.mxu0 %v24307_v56  ;;  %v21228_v54 = vpack.c.bf16 %v6685_v34, %v6682_v46  ;;  %v5388_v34 = vand.u32 4294901760, %v10813_v22 }
 0x302   :  { %17059 = vmatprep.subr.bf16.mxu1 %v24307_v56  ;;  %v21306_v50 = vsub.f32 %v10806_v6, %v5367_v45  ;;  %v21347_v6 = vand.u32 4294901760, %v6646_v55 }
 0x303   :  { %24656 = vst [vmem:[#allocation25_spill] sm:$0xff] %v21228_v54 }
 0x304   :  { %16773 = vmatpush3.bf16.msra.mxu0 %v24617_v3  ;;  %v6688_v3 = vand.u32 4294901760, %v10841_v33 }
 0x305   :  { %17061 = vmatpush3.bf16.msra.mxu1 %v24618_v61  ;;  %16774 = vmatprep.subr.bf16.mxu0 %v24307_v56  ;;  %v6691_v61 = vand.u32 4294901760, %v10842_v2 }
 0x306   :  { %17062 = vmatprep.subr.bf16.mxu1 %v24307_v56  ;;  %v21308_v58 = vsub.f32 %v10841_v33, %v6688_v3  ;;  %v21349_v33 = vsub.f32 %v10845_v10, %v6700_v19  ;;  %v21393_v10 = vpack.c.bf16 %v5391_v18, %v5388_v34 }
 0x307   :  { %v21251_v26 = vpack.c.bf16 %v6691_v61, %v6688_v3  ;;  %v21310_v20 = vsub.f32 %v10842_v2, %v6691_v61  ;;  %v21351_v2 = vsub.f32 %v10846_v38, %v6703_v48  ;;  %v21358_v3 = vsub.f32 %v10812_v40, %v5385_v62 }
 0x308   :  { %16776 = vmatpush3.bf16.msra.mxu0 %v24619_v21  ;;  %v10807_v21 = vld [vmem:[%s23951_s3 + $0x220] sm:$0xff]  ;;  %v21360_v61 = vpack.c.bf16 %v6709_v30, %v6706_v60  ;;  %24665 = vst [vmem:[#allocation8_spill] sm:$0xff] %v21393_v10  ;;  %v24136_v38 = vand.u32 4294901760, %v21271_v32  ;;  %v24142_v48 = vand.u32 4294901760, %v21292_v9 }
 0x309   :  { %17064 = vmatpush3.bf16.msra.mxu1 %v24620_v51  ;;  %16777 = vmatprep.subr.bf16.mxu0 %v24307_v56  ;;  %v10843_v51 = vld [vmem:[%s23951_s3 + $0x2a0] sm:$0xff]  ;;  %24658 = vst [vmem:[#allocation27_spill] sm:$0xff] %v21251_v26 }
 0x30a   :  { %17065 = vmatprep.subr.bf16.mxu1 %v24307_v56  ;;  %v6694_v36 = vand.u32 4294901760, %v10843_v51  ;;  %24664 = vst [vmem:[#allocation7_spill] sm:$0xff] %v21360_v61 }
 0x30c   :  { %16779 = vmatpush3.bf16.msra.mxu0 %v24621_v35  ;;  %v10844_v35 = vld [vmem:[%s23951_s3 + $0x2a8] sm:$0xff]  ;;  %v21324_v28 = vsub.f32 %v10843_v51, %v6694_v36  ;;  %v21365_v51 = vld [vmem:[%s23951_s3 + $0x260] sm:$0xff] }
 0x30d   :  { %17067 = vmatpush3.bf16.msra.mxu1 %v24622_v11  ;;  %16780 = vmatprep.subr.bf16.mxu0 %v24307_v56  ;;  %v21246_v11 = vpack.c.bf16 %v5367_v45, %v5364_v12  ;;  %v6697_v49 = vand.u32 4294901760, %v10844_v35  ;;  %v21353_v12 = vpack.c.bf16 %v5385_v62, %v5382_v47  ;;  %v21355_v45 = vsub.f32 %v10811_v7, %v5382_v47 }
 0x30e   :  { %17068 = vmatprep.subr.bf16.mxu1 %v24307_v56  ;;  %v21400_v7 = vsub.f32 %v10813_v22, %v5388_v34  ;;  %v5394_v40 = vand.u32 4294901760, %v21365_v51  ;;  %v5459_v34 = vsub.f32 %v21271_v32, %v24136_v38 }
 0x30f   :  { %24657 = vst [vmem:[#allocation26_spill] sm:$0xff] %v21246_v11  ;;  %v21296_v25 = vpack.c.bf16 %v6697_v49, %v6694_v36  ;;  %v21329_v0 = vsub.f32 %v10844_v35, %v6697_v49  ;;  %24663 = vst [vmem:[#allocation6_spill] sm:$0xff] %v21353_v12  ;;  %v21370_v35 = vld [vmem:[%s23951_s3 + $0x268] sm:$0xff]  ;;  %v21381_v36 = vld [vmem:[%s23951_s3 + $0x2e0] sm:$0xff] }
 0x310   :  { %16782 = vmatpush3.bf16.msra.mxu0 %v20810_v13  ;;  %v10808_v13 = vld [vmem:[%s23951_s3 + $0x228] sm:$0xff]  ;;  %v5397_v19 = vand.u32 4294901760, %v21370_v35  ;;  %v24668_v38 = vand.u32 4294901760, %v21381_v36 }
 0x311   :  { %17070 = vmatpush3.bf16.msra.mxu1 %v24625_v1  ;;  %17071 = vmatprep.subr.bf16.mxu0 %v24307_v56  ;;  %v5370_v1 = vand.u32 4294901760, %v10807_v21  ;;  %v5373_v57 = vand.u32 4294901760, %v10808_v13  ;;  %24660 = vst [vmem:[#allocation19_spill] sm:$0xff] %v21296_v25  ;;  %v21386_v49 = vld [vmem:[%s23951_s3 + $0x2e8] sm:$0xff] }
 0x312   :  { %17359 = vmatprep.subr.bf16.mxu1 %v24307_v56 }
 0x313   :  { %13817 = vmatmul.mubr.f32.vlgmr.msra.gmra.mrb[2].mxu0 %v20652_v59  ;;  %v10809_v59 = vld [vmem:[%s23951_s3 + $0x230] sm:$0xff]  ;;  %v21281_v17 = vpack.c.bf16 %v5373_v57, %v5370_v1  ;;  %v21313_v15 = vsub.f32 %v10807_v21, %v5370_v1  ;;  %v21315_v27 = vsub.f32 %v10808_v13, %v5373_v57  ;;  %v6712_v21 = vand.u32 4294901760, %v10849_v29 }
 0x314   :  { %14237 = vmatmul.mubr.f32.vlgmr.msra.gmra.mrb[2].mxu1 %v20657_v16  ;;  %17073 = vmatpush3.bf16.msra.mxu0 %v21224_v4  ;;  %v10810_v16 = vld [vmem:[%s23951_s3 + $0x238] sm:$0xff]  ;;  %v5376_v14 = vand.u32 4294901760, %v10809_v59  ;;  %v6715_v13 = vand.u32 4294901760, %v10850_v41  ;;  %v21374_v1 = vsub.f32 %v10847_v23, %v6706_v60  ;;  %v21376_v57 = vsub.f32 %v10848_v39, %v6709_v30 }
 0x315   :  { %17361 = vmatpush3.bf16.msra.mxu1 %v21228_v54  ;;  %17074 = vmatprep.subr.bf16.mxu0 %v24307_v56  ;;  %24659 = vst [vmem:[#allocation21_spill] sm:$0xff] %v21281_v17  ;;  %v5379_v37 = vand.u32 4294901760, %v10810_v16  ;;  %v21406_v23 = vsub.f32 %v10814_v8, %v5391_v18  ;;  %v21414_v62 = vsub.f32 %v10849_v29, %v6712_v21  ;;  %v21426_v8 = vld [vmem:[%s23951_s3 + $0x278] sm:$0xff]  ;;  %v21436_v29 = vld [vmem:[%s23951_s3 + $0x2f0] sm:$0xff]  ;;  %v24669_v18 = vand.u32 4294901760, %v21386_v49 }
 0x316   :  { %17362 = vmatprep.subr.bf16.mxu1 %v24307_v56  ;;  %14271 = vmatprep.mubr.msk.f32.mxu0 %vm18420_vm0, %v24322_v63  ;;  %v21332_v43 = vsub.f32 %v10809_v59, %v5376_v14  ;;  %v21389_v59 = vsub.f32 %v5322_v31, %v21342_v44  ;;  %v21408_v39 = vpack.c.bf16 %v6715_v13, %v6712_v21  ;;  %v24674_v31 = vand.u32 4294901760, %v21306_v50 }
 0x317   :  { %14691 = vmatprep.mubr.msk.f32.mxu1 %vm18420_vm0, %v24322_v63  ;;  %v21326_v52 = vpack.c.bf16 %v5379_v37, %v5376_v14  ;;  %v21345_v46 = vsub.f32 %v10810_v16, %v5379_v37  ;;  %v24135_v16 = vand.u32 4294901760, %v21269_v53  ;;  %v21397_v14 = vsub.f32 %v6646_v55, %v21347_v6  ;;  %v21421_v55 = vld [vmem:[%s23951_s3 + $0x270] sm:$0xff] }
 0x318   :  { %17076 = vmatpush3.bf16.msra.mxu0 %v21246_v11  ;;  %v24139_v37 = vand.u32 4294901760, %v21278_v42  ;;  %24666 = vst [vmem:[#allocation9_spill] sm:$0xff] %v21408_v39  ;;  %v21416_v22 = vsub.f32 %v10850_v41, %v6715_v13  ;;  %v21441_v41 = vld [vmem:[%s23951_s3 + $0x2f8] sm:$0xff]  ;;  %v6783_v60 = vsub.f32 %v21292_v9, %v24142_v48  ;;  %v24671_v47 = vand.u32 4294901760, %v21389_v59 }
 0x319   :  { %17364 = vmatpush3.bf16.msra.mxu1 %v21251_v26  ;;  %17077 = vmatprep.subr.bf16.mxu0 %v24307_v56  ;;  %24661 = vst [vmem:[#allocation5_spill] sm:$0xff] %v21326_v52  ;;  %v5452_v30 = vsub.f32 %v21269_v53, %v24135_v16  ;;  %v21451_v16 = vpack.c.bf16 %v5397_v19, %v5394_v40  ;;  %v24672_v13 = vand.u32 4294901760, %v21397_v14  ;;  %v24682_v11 = vand.u32 4294901760, %v21313_v15 }
 0x31a   :  { %17365 = vmatprep.subr.bf16.mxu1 %v24307_v56  ;;  %v6776_v21 = vsub.f32 %v21278_v42, %v24139_v37  ;;  %v6784_v48 = vand.u32 4294901760, %v6783_v60 }
 0x31b   :  { %24667 = vst [vmem:[#allocation10_spill] sm:$0xff] %v21451_v16  ;;  %v5480_v54 = vsub.f32 %v21313_v15, %v24682_v11  ;;  %v24685_v11 = vand.u32 4294901760, %v21329_v0 }
 0x31c   :  { %17079 = vmatpush3.bf16.msra.mxu0 %v21281_v17  ;;  %v6777_v37 = vand.u32 4294901760, %v6776_v21  ;;  %v24676_v21 = vand.u32 4294901760, %v21421_v55 }
 0x31d   :  { %17367 = vmatpush3.bf16.msra.mxu1 %v21296_v25  ;;  %17080 = vmatprep.subr.bf16.mxu0 %v24307_v56  ;;  %v24678_v25 = vand.u32 4294901760, %v21310_v20 }
 0x31e   :  { %17368 = vmatprep.subr.bf16.mxu1 %v24307_v56 }
 0x320   :  { %17082 = vmatpush3.bf16.msra.mxu0 %v21326_v52  ;;  %v5473_v52 = vsub.f32 %v21306_v50, %v24674_v31  ;;  %v6797_v31 = vsub.f32 %v21310_v20, %v24678_v25 }
 0x321   :  { %17370 = vmatpush3.bf16.msra.mxu1 %v21334_v24  ;;  %17083 = vmatprep.subr.bf16.mxu0 %v24307_v56 }
 0x322   :  { %17371 = vmatprep.subr.bf16.mxu1 %v24307_v56 }
 0x324   :  { %17085 = vmatpush3.bf16.msra.mxu0 %v21353_v12  ;;  %v6765_v12 = vsub.f32 %v21397_v14, %v24672_v13  ;;  %v21491_v13 = vsub.f32 %v21365_v51, %v5394_v40  ;;  %v24679_v51 = vand.u32 4294901760, %v21436_v29  ;;  %v24680_v40 = vand.u32 4294901760, %v21441_v41 }
 0x325   :  { %17373 = vmatpush3.bf16.msra.mxu1 %v21360_v61  ;;  %17086 = vmatprep.subr.bf16.mxu0 %v24307_v56  ;;  %v21463_v61 = vpack.c.bf16 %v24669_v18, %v24668_v38  ;;  %v5453_v38 = vand.u32 4294901760, %v5452_v30  ;;  %v5460_v18 = vand.u32 4294901760, %v5459_v34 }
 0x326   :  { %17374 = vmatprep.subr.bf16.mxu1 %v24307_v56  ;;  %v21512_v34 = vpack.c.bf16 %v24680_v40, %v24679_v51  ;;  %v6798_v51 = vand.u32 4294901760, %v6797_v31  ;;  %v24683_v40 = vand.u32 4294901760, %v21315_v27 }
 0x327   :  { %24670 = vst [vmem:[#allocation11_spill] sm:$0xff] %v21463_v61  ;;  %v17096_v17 = vpack.c.bf16 %v5460_v18, %v5453_v38  ;;  %v24686_v38 = vand.u32 4294901760, %v21381_v36 }
 0x328   :  { %17088 = vmatpush3.bf16.msra.mxu0 %v21393_v10  ;;  %v5441_v10 = vsub.f32 %v21389_v59, %v24671_v47  ;;  %v24675_v47 = vand.u32 4294901760, %v21308_v58  ;;  %24681 = vst [vmem:[#allocation12_spill] sm:$0xff] %v21512_v34 }
 0x329   :  { %17376 = vmatpush3.bf16.msra.mxu1 %v21408_v39  ;;  %17089 = vmatprep.subr.bf16.mxu0 %v24307_v56  ;;  %v24673_v39 = vand.u32 4294901760, %v21304_v5  ;;  %v21539_v18 = vsub.f32 %v21381_v36, %v24686_v38 }
 0x32a   :  { %17377 = vmatprep.subr.bf16.mxu1 %v24307_v56  ;;  %v6790_v30 = vsub.f32 %v21308_v58, %v24675_v47  ;;  %v21504_v47 = vsub.f32 %v21370_v35, %v5397_v19  ;;  %v5442_v25 = vand.u32 4294901760, %v5441_v10  ;;  %v6766_v35 = vand.u32 4294901760, %v6765_v12 }
 0x32b   :  { %v5466_v24 = vsub.f32 %v21304_v5, %v24673_v39  ;;  %v24677_v39 = vand.u32 4294901760, %v21426_v8  ;;  %v6811_v12 = vsub.f32 %v21329_v0, %v24685_v11  ;;  %v24166_v10 = vand.u32 4294901760, %v21376_v57 }
 0x32c   :  { %17091 = vmatpush3.bf16.msra.mxu0 %v21451_v16  ;;  %v17384_v16 = vpack.c.bf16 %v6784_v48, %v6777_v37  ;;  %v6791_v26 = vand.u32 4294901760, %v6790_v30  ;;  %v5481_v37 = vand.u32 4294901760, %v5480_v54  ;;  %v24689_v54 = vand.u32 4294901760, %v21349_v33 }
 0x32d   :  { %v21497_v60 = vpack.c.bf16 %v24677_v39, %v24676_v21  ;;  %17379 = vmatpush3.bf16.msra.mxu1 %v21463_v61  ;;  %17092 = vmatprep.subr.bf16.mxu0 %v24307_v56  ;;  %v5467_v19 = vand.u32 4294901760, %v5466_v24  ;;  %v5474_v61 = vand.u32 4294901760, %v5473_v52  ;;  %v5487_v39 = vsub.f32 %v21315_v27, %v24683_v40 }
 0x32e   :  { %17380 = vmatprep.subr.bf16.mxu1 %v24307_v56  ;;  %v24165_v21 = vand.u32 4294901760, %v21332_v43  ;;  %v24684_v52 = vand.u32 4294901760, %v21324_v28  ;;  %v17387_v36 = vpack.c.bf16 %v6798_v51, %v6791_v26  ;;  %v24688_v40 = vand.u32 4294901760, %v21345_v46 }
 0x32f   :  { %v17099_v48 = vpack.c.bf16 %v5474_v61, %v5467_v19  ;;  %v5488_v38 = vand.u32 4294901760, %v5487_v39  ;;  %v6812_v61 = vand.u32 4294901760, %v6811_v12  ;;  %v24690_v26 = vand.u32 4294901760, %v21351_v2 }
 0x330   :  { %17094 = vmatpush3.bf16.msra.mxu0 %v21497_v60  ;;  %v6804_v24 = vsub.f32 %v21324_v28, %v24684_v52  ;;  %v24687_v52 = vand.u32 4294901760, %v21386_v49  ;;  %v5494_v31 = vsub.f32 %v21332_v43, %v24165_v21  ;;  %v5501_v30 = vsub.f32 %v21345_v46, %v24688_v40 }
 0x331   :  { %17382 = vmatpush3.bf16.msra.mxu1 %v21512_v34  ;;  %17095 = vmatprep.subr.bf16.mxu0 %v24307_v56  ;;  %v6825_v39 = vsub.f32 %v21351_v2, %v24690_v26  ;;  %v24693_v51 = vand.u32 4294901760, %v21374_v1  ;;  %v24694_v40 = vand.u32 4294901760, %v21421_v55  ;;  %v24697_v12 = vand.u32 4294901760, %v21406_v23 }
 0x332   :  { %17383 = vmatprep.subr.bf16.mxu1 %v24307_v56  ;;  %v21548_v11 = vsub.f32 %v21386_v49, %v24687_v52  ;;  %v6805_v49 = vand.u32 4294901760, %v6804_v24  ;;  %v5502_v21 = vand.u32 4294901760, %v5501_v30  ;;  %v24696_v30 = vand.u32 4294901760, %v21400_v7 }
 0x333   :  { %14272 = vmatmul.mubr.f32.vlgmr.msra.gmra.mrb[4].mxu0 %v5442_v25  ;;  %v24691_v25 = vand.u32 4294901760, %v21355_v45  ;;  %v6832_v24 = vsub.f32 %v21374_v1, %v24693_v51  ;;  %v21580_v52 = vsub.f32 %v21421_v55, %v24694_v40  ;;  %v5495_v51 = vand.u32 4294901760, %v5494_v31 }
 0x334   :  { %17097 = vmatpush3.bf16.msra.mxu0 %v17096_v17  ;;  %14692 = vmatmul.mubr.f32.vlgmr.msra.gmra.mrb[4].mxu1 %v6766_v35  ;;  %v6818_v17 = vsub.f32 %v21349_v33, %v24689_v54  ;;  %v6839_v54 = vsub.f32 %v21376_v57, %v24166_v10  ;;  %v24695_v55 = vand.u32 4294901760, %v21426_v8  ;;  %v17390_v10 = vpack.c.bf16 %v6812_v61, %v6805_v49 }
 0x335   :  { %17385 = vmatpush3.bf16.msra.mxu1 %v17384_v16  ;;  %17098 = vmatprep.subr.bf16.mxu0 %v24307_v56  ;;  %v5508_v35 = vsub.f32 %v21355_v45, %v24691_v25  ;;  %v24692_v16 = vand.u32 4294901760, %v21358_v3  ;;  %v6826_v25 = vand.u32 4294901760, %v6825_v39  ;;  %v5522_v31 = vsub.f32 %v21400_v7, %v24696_v30 }
 0x336   :  { %17386 = vmatprep.subr.bf16.mxu1 %v24307_v56  ;;  %14306 = vmatprep.mubr.msk.f32.mxu0 %vm18420_vm0, %v24322_v63  ;;  %v21593_v40 = vsub.f32 %v21426_v8, %v24695_v55  ;;  %v6819_v26 = vand.u32 4294901760, %v6818_v17  ;;  %v5529_v8 = vsub.f32 %v21406_v23, %v24697_v12  ;;  %v5535_v61 = vand.u32 4294901760, %v21491_v13 }
 0x337   :  { %v5515_v19 = vsub.f32 %v21358_v3, %v24692_v16  ;;  %14726 = vmatprep.mubr.msk.f32.mxu1 %vm18420_vm0, %v24322_v63  ;;  %v17102_v16 = vpack.c.bf16 %v5488_v38, %v5481_v37  ;;  %v5509_v34 = vand.u32 4294901760, %v5508_v35  ;;  %v6833_v37 = vand.u32 4294901760, %v6832_v24 }
 0x338   :  { %17100 = vmatpush3.bf16.msra.mxu0 %v17099_v48  ;;  %v6840_v38 = vand.u32 4294901760, %v6839_v54  ;;  %v24699_v17 = vand.u32 4294901760, %v21436_v29  ;;  %v17105_v35 = vpack.c.bf16 %v5502_v21, %v5495_v51  ;;  %v5542_v54 = vand.u32 4294901760, %v21504_v47 }
 0x339   :  { %17388 = vmatpush3.bf16.msra.mxu1 %v17387_v36  ;;  %17101 = vmatprep.subr.bf16.mxu0 %v24307_v56  ;;  %v5516_v48 = vand.u32 4294901760, %v5515_v19  ;;  %v24698_v36 = vand.u32 4294901760, %v21414_v62  ;;  %v24700_v19 = vand.u32 4294901760, %v21416_v22  ;;  %v24701_v12 = vand.u32 4294901760, %v21441_v41 }
 0x33a   :  { %17389 = vmatprep.subr.bf16.mxu1 %v24307_v56  ;;  %v21610_v39 = vsub.f32 %v21436_v29, %v24699_v17  ;;  %v17393_v30 = vpack.c.bf16 %v6826_v25, %v6819_v26  ;;  %v24170_v29 = vand.u32 4294901760, %v21539_v18  ;;  %v5523_v51 = vand.u32 4294901760, %v5522_v31 }
 0x33b   :  { %v6846_v49 = vsub.f32 %v21414_v62, %v24698_v36  ;;  %v6853_v24 = vsub.f32 %v21416_v22, %v24700_v19  ;;  %v21619_v55 = vsub.f32 %v21441_v41, %v24701_v12  ;;  %v17108_v21 = vpack.c.bf16 %v5516_v48, %v5509_v34 }
 0x33c   :  { %17103 = vmatpush3.bf16.msra.mxu0 %v17102_v16  ;;  %v24169_v16 = vand.u32 4294901760, %v21548_v11  ;;  %v17396_v36 = vpack.c.bf16 %v6840_v38, %v6833_v37  ;;  %v5530_v17 = vand.u32 4294901760, %v5529_v8  ;;  %v5536_v41 = vsub.f32 %v21491_v13, %v5535_v61 }
 0x33d   :  { %17391 = vmatpush3.bf16.msra.mxu1 %v17390_v10  ;;  %17104 = vmatprep.subr.bf16.mxu0 %v24307_v56  ;;  %v6847_v19 = vand.u32 4294901760, %v6846_v49  ;;  %v6854_v10 = vand.u32 4294901760, %v6853_v24  ;;  %v5543_v26 = vsub.f32 %v21504_v47, %v5542_v54  ;;  %v5549_v25 = vand.u32 4294901760, %v21580_v52 }
 0x33e   :  { %17392 = vmatprep.subr.bf16.mxu1 %v24307_v56  ;;  %v24173_v12 = vand.u32 4294901760, %v21593_v40  ;;  %v6860_v34 = vsub.f32 %v21539_v18, %v24170_v29  ;;  %v6867_v48 = vsub.f32 %v21548_v11, %v24169_v16  ;;  %v24172_v37 = vand.u32 4294901760, %v21610_v39 }
 0x33f   :  { %v24171_v31 = vand.u32 4294901760, %v21619_v55  ;;  %v17111_v38 = vpack.c.bf16 %v5530_v17, %v5523_v51  ;;  %v5537_v8 = vand.u32 4294901760, %v5536_v41  ;;  %v17399_v49 = vpack.c.bf16 %v6854_v10, %v6847_v19 }
 0x340   :  { %17106 = vmatpush3.bf16.msra.mxu0 %v17105_v35  ;;  %v5544_v35 = vand.u32 4294901760, %v5543_v26  ;;  %v5550_v24 = vsub.f32 %v21580_v52, %v5549_v25  ;;  %v6861_v16 = vand.u32 4294901760, %v6860_v34  ;;  %v6868_v29 = vand.u32 4294901760, %v6867_v48 }
 0x341   :  { %17394 = vmatpush3.bf16.msra.mxu1 %v17393_v30  ;;  %17107 = vmatprep.subr.bf16.mxu0 %v24307_v56  ;;  %v5557_v30 = vsub.f32 %v21593_v40, %v24173_v12  ;;  %v6874_v51 = vsub.f32 %v21610_v39, %v24172_v37  ;;  %v24720_v12 = vand.u32 4294901760, %v21389_v59 }
 0x342   :  { %17395 = vmatprep.subr.bf16.mxu1 %v24307_v56  ;;  %v17114_v17 = vpack.c.bf16 %v5544_v35, %v5537_v8  ;;  %v5551_v19 = vand.u32 4294901760, %v5550_v24  ;;  %v17411_v8 = vpack.c.bf16 %v21310_v20, %v21308_v58  ;;  %v17414_v35 = vpack.c.bf16 %v21329_v0, %v21324_v28 }
 0x343   :  { %v5558_v41 = vand.u32 4294901760, %v5557_v30  ;;  %v6875_v10 = vand.u32 4294901760, %v6874_v51  ;;  %v17129_v24 = vpack.c.bf16 %v21345_v46, %v21332_v43  ;;  %v17417_v30 = vpack.c.bf16 %v21351_v2, %v21349_v33 }
 0x344   :  { %17109 = vmatpush3.bf16.msra.mxu0 %v17108_v21  ;;  %v6881_v21 = vsub.f32 %v21619_v55, %v24171_v31  ;;  %v17132_v51 = vpack.c.bf16 %v21358_v3, %v21355_v45  ;;  %v24719_v31 = vand.u32 4294901760, %v21292_v9 }
 0x345   :  { %17397 = vmatpush3.bf16.msra.mxu1 %v17396_v36  ;;  %17110 = vmatprep.subr.bf16.mxu0 %v24307_v56  ;;  %v17402_v36 = vpack.c.bf16 %v6868_v29, %v6861_v16  ;;  %v17117_v34 = vpack.c.bf16 %v5558_v41, %v5551_v19  ;;  %v17408_v29 = vpack.c.bf16 %v21292_v9, %v21278_v42  ;;  %v24725_v9 = vand.u32 4294901760, %v21310_v20 }
 0x346   :  { %17398 = vmatprep.subr.bf16.mxu1 %v24307_v56  ;;  %v6882_v26 = vand.u32 4294901760, %v6881_v21  ;;  %v17123_v16 = vpack.c.bf16 %v21306_v50, %v21304_v5  ;;  %v17420_v21 = vpack.c.bf16 %v21376_v57, %v21374_v1  ;;  %v17423_v19 = vpack.c.bf16 %v21416_v22, %v21414_v62 }
 0x347   :  { %v17138_v41 = vpack.c.bf16 %v21504_v47, %v21491_v13  ;;  %v24729_v20 = vand.u32 4294901760, %v21329_v0  ;;  %v24735_v0 = vand.u32 4294901760, %v21358_v3  ;;  %v24741_v3 = vand.u32 4294901760, %v21416_v22 }
 0x348   :  { %17112 = vmatpush3.bf16.msra.mxu0 %v17111_v38  ;;  %v17405_v48 = vpack.c.bf16 %v6882_v26, %v6875_v10  ;;  %v17120_v38 = vpack.c.bf16 %v21271_v32, %v21269_v53  ;;  %v17141_v10 = vpack.c.bf16 %v21593_v40, %v21580_v52  ;;  %v17429_v26 = vpack.c.bf16 %v21619_v55, %v21610_v39  ;;  %v10824_v52 = vld [vmem:[%s23950_s2 + $0x288] sm:$0xff] }
 0x349   :  { %17400 = vmatpush3.bf16.msra.mxu1 %v17399_v49  ;;  %17113 = vmatprep.subr.bf16.mxu0 %v24307_v56  ;;  %v17126_v49 = vpack.c.bf16 %v21315_v27, %v21313_v15  ;;  %v24745_v13 = vand.u32 4294901760, %v21610_v39  ;;  %v24746_v47 = vand.u32 4294901760, %v21619_v55  ;;  %v7326_v55 = vand.u32 4294901760, %v10824_v52 }
 0x34a   :  { %17401 = vmatprep.subr.bf16.mxu1 %v24307_v56 }
 0x34c   :  { %17115 = vmatpush3.bf16.msra.mxu0 %v17114_v17  ;;  %v17135_v17 = vpack.c.bf16 %v21406_v23, %v21400_v7 }
 0x34d   :  { %17403 = vmatpush3.bf16.msra.mxu1 %v17402_v36  ;;  %17116 = vmatprep.subr.bf16.mxu0 %v24307_v56  ;;  %v17426_v36 = vpack.c.bf16 %v21548_v11, %v21539_v18 }
 0x34e   :  { %17404 = vmatprep.subr.bf16.mxu1 %v24307_v56 }
 0x350   :  { %17118 = vmatpush3.bf16.msra.mxu0 %v17117_v34  ;;  %v24702_v34 = vld [vmem:[#allocation25_spill] sm:$0xff] }
 0x351   :  { %17406 = vmatpush3.bf16.msra.mxu1 %v17405_v48  ;;  %17119 = vmatprep.subr.bf16.mxu0 %v24307_v56  ;;  %v24703_v48 = vld [vmem:[#allocation26_spill] sm:$0xff] }
 0x352   :  { %17407 = vmatprep.subr.bf16.mxu1 %v24307_v56 }
 0x353   :  { %14307 = vmatmul.mubr.f32.vlgmr.msra.gmra.mrb[4].mxu0 %v21342_v44 }
 0x354   :  { %17121 = vmatpush3.bf16.msra.mxu0 %v17120_v38  ;;  %14727 = vmatmul.mubr.f32.vlgmr.msra.gmra.mrb[4].mxu1 %v21347_v6  ;;  %v24704_v38 = vld [vmem:[#allocation27_spill] sm:$0xff] }
 0x355   :  { %17409 = vmatpush3.bf16.msra.mxu1 %v17408_v29  ;;  %17122 = vmatprep.subr.bf16.mxu0 %v24307_v56  ;;  %v24705_v29 = vld [vmem:[#allocation21_spill] sm:$0xff] }
 0x356   :  { %17410 = vmatprep.subr.bf16.mxu1 %v24307_v56  ;;  %14341 = vmatprep.mubr.msk.f32.mxu0 %vm18420_vm0, %v24322_v63 }
 0x357   :  { %14761 = vmatprep.mubr.msk.f32.mxu1 %vm18420_vm0, %v24322_v63 }
 0x358   :  { %17124 = vmatpush3.bf16.msra.mxu0 %v17123_v16  ;;  %v24706_v16 = vld [vmem:[#allocation19_spill] sm:$0xff] }
 0x359   :  { %17412 = vmatpush3.bf16.msra.mxu1 %v17411_v8  ;;  %17125 = vmatprep.subr.bf16.mxu0 %v24307_v56  ;;  %v24707_v8 = vld [vmem:[#allocation5_spill] sm:$0xff] }
 0x35a   :  { %17413 = vmatprep.subr.bf16.mxu1 %v24307_v56 }
 0x35c   :  { %17127 = vmatpush3.bf16.msra.mxu0 %v17126_v49  ;;  %v24708_v49 = vld [vmem:[#allocation20_spill] sm:$0xff] }
 0x35d   :  { %17415 = vmatpush3.bf16.msra.mxu1 %v17414_v35  ;;  %17128 = vmatprep.subr.bf16.mxu0 %v24307_v56  ;;  %v24709_v35 = vld [vmem:[#allocation6_spill] sm:$0xff] }
 0x35e   :  { %17416 = vmatprep.subr.bf16.mxu1 %v24307_v56 }
 0x360   :  { %17130 = vmatpush3.bf16.msra.mxu0 %v17129_v24  ;;  %v24710_v24 = vld [vmem:[#allocation7_spill] sm:$0xff] }
 0x361   :  { %17418 = vmatpush3.bf16.msra.mxu1 %v17417_v30  ;;  %17131 = vmatprep.subr.bf16.mxu0 %v24307_v56  ;;  %v24711_v30 = vld [vmem:[#allocation8_spill] sm:$0xff] }
 0x362   :  { %17419 = vmatprep.subr.bf16.mxu1 %v24307_v56 }
 0x364   :  { %17133 = vmatpush3.bf16.msra.mxu0 %v17132_v51  ;;  %v24712_v51 = vld [vmem:[#allocation9_spill] sm:$0xff] }
 0x365   :  { %17421 = vmatpush3.bf16.msra.mxu1 %v17420_v21  ;;  %17134 = vmatprep.subr.bf16.mxu0 %v24307_v56  ;;  %v24713_v21 = vld [vmem:[#allocation10_spill] sm:$0xff] }
 0x366   :  { %17422 = vmatprep.subr.bf16.mxu1 %v24307_v56 }
 0x368   :  { %17136 = vmatpush3.bf16.msra.mxu0 %v17135_v17  ;;  %v24714_v17 = vld [vmem:[#allocation11_spill] sm:$0xff] }
 0x369   :  { %17424 = vmatpush3.bf16.msra.mxu1 %v17423_v19  ;;  %17137 = vmatprep.subr.bf16.mxu0 %v24307_v56  ;;  %v24715_v19 = vand.u32 4294901760, %v21269_v53  ;;  %v24721_v53 = vand.u32 4294901760, %v21397_v14 }
 0x36a   :  { %17425 = vmatprep.subr.bf16.mxu1 %v24307_v56 }
 0x36c   :  { %17139 = vmatpush3.bf16.msra.mxu0 %v17138_v41  ;;  %v24716_v41 = vand.u32 4294901760, %v21271_v32  ;;  %v24722_v32 = vand.u32 4294901760, %v21304_v5  ;;  %v24726_v5 = vand.u32 4294901760, %v21313_v15  ;;  %v24732_v15 = vand.u32 4294901760, %v21349_v33 }
 0x36d   :  { %17427 = vmatpush3.bf16.msra.mxu1 %v17426_v36  ;;  %17140 = vmatprep.subr.bf16.mxu0 %v24307_v56  ;;  %v24738_v33 = vand.u32 4294901760, %v21400_v7  ;;  %v24743_v7 = vand.u32 4294901760, %v21548_v11  ;;  %v10823_v11 = vld [vmem:[%s23950_s2 + $0x280] sm:$0xff] }
 0x36e   :  { %17428 = vmatprep.subr.bf16.mxu1 %v24307_v56  ;;  %v17168_v36 = vpack.c.bf16 %v24716_v41, %v24715_v19  ;;  %v24723_v19 = vand.u32 4294901760, %v21306_v50  ;;  %v24727_v50 = vand.u32 4294901760, %v21315_v27  ;;  %v24733_v27 = vand.u32 4294901760, %v21351_v2 }
 0x36f   :  { %v24739_v2 = vand.u32 4294901760, %v21406_v23 }
 0x370   :  { %17142 = vmatpush3.bf16.msra.mxu0 %v17141_v10  ;;  %v24717_v10 = vld [vmem:[#allocation12_spill] sm:$0xff]  ;;  %v17171_v41 = vpack.c.bf16 %v24723_v19, %v24722_v32 }
 0x371   :  { %17430 = vmatpush3.bf16.msra.mxu1 %v17429_v26  ;;  %17143 = vmatprep.subr.bf16.mxu0 %v24307_v56  ;;  %v24718_v26 = vand.u32 4294901760, %v21278_v42  ;;  %v24724_v42 = vand.u32 4294901760, %v21308_v58  ;;  %v24728_v58 = vand.u32 4294901760, %v21324_v28  ;;  %v24734_v28 = vand.u32 4294901760, %v21355_v45 }
 0x372   :  { %17431 = vmatprep.subr.bf16.mxu1 %v24307_v56  ;;  %v17183_v19 = vpack.c.bf16 %v24739_v2, %v24738_v33  ;;  %v24740_v45 = vand.u32 4294901760, %v21414_v62  ;;  %v24744_v62 = vand.u32 4294901760, %v21593_v40 }
 0x373   :  { %14342 = vmatmul.mubr.f32.vlgmr.msra.gmra.mrb[4].mxu0 %v21389_v59  ;;  %v17456_v37 = vpack.c.bf16 %v24719_v31, %v24718_v26  ;;  %v17459_v31 = vpack.c.bf16 %v24725_v9, %v24724_v42  ;;  %v17174_v59 = vpack.c.bf16 %v24727_v50, %v24726_v5  ;;  %v17465_v26 = vpack.c.bf16 %v24733_v27, %v24732_v15  ;;  %v10829_v50 = vld [vmem:[%s23950_s2 + $0x2b0] sm:$0xff]  ;;  %v10795_v15 = vld [vmem:[%s23950_s2 + $0x240] sm:$0xff]  ;;  %v10796_v27 = vld [vmem:[%s23950_s2 + $0x248] sm:$0xff] }
 0x374   :  { %17145 = vmatpush3.bf16.msra.mxu0 %v21224_v4  ;;  %14762 = vmatmul.mubr.f32.vlgmr.msra.gmra.mrb[4].mxu1 %v21397_v14  ;;  %v17462_v14 = vpack.c.bf16 %v24729_v20, %v24728_v58  ;;  %v17189_v22 = vpack.c.bf16 %v24744_v62, %v5549_v25  ;;  %v10789_v25 = vld [vmem:[%s23950_s2 + $0x210] sm:$0xff]  ;;  %v6643_v62 = vld [vmem:[%s6642_s10] sm:$0xff]  ;;  %s10857_s10 = sshll.u32 %s23258_s19, 3 }
 0x375   :  { %17433 = vmatpush3.bf16.msra.mxu1 %v24702_v34  ;;  %17146 = vmatprep.subr.bf16.mxu0 %v24307_v56  ;;  %s7966_s23 = scalar_lea.vmem %s23949_s1, %s10857_s10 }
 0x376   :  { %17434 = vmatprep.subr.bf16.mxu1 %v24307_v56  ;;  %14376 = vmatprep.mubr.msk.f32.mxu0 %vm18420_vm0, %v24322_v63 }
 0x377   :  { %14796 = vmatprep.mubr.msk.f32.mxu1 %vm18420_vm0, %v24322_v63 }
 0x378   :  { %17148 = vmatpush3.bf16.msra.mxu0 %v24703_v48 }
 0x379   :  { %17436 = vmatpush3.bf16.msra.mxu1 %v24704_v38  ;;  %17149 = vmatprep.subr.bf16.mxu0 %v24307_v56 }
 0x37a   :  { %17437 = vmatprep.subr.bf16.mxu1 %v24307_v56 }
 0x37c   :  { %17151 = vmatpush3.bf16.msra.mxu0 %v24705_v29 }
 0x37d   :  { %17439 = vmatpush3.bf16.msra.mxu1 %v24706_v16  ;;  %17152 = vmatprep.subr.bf16.mxu0 %v24307_v56 }
 0x37e   :  { %17440 = vmatprep.subr.bf16.mxu1 %v24307_v56 }
 0x380   :  { %17154 = vmatpush3.bf16.msra.mxu0 %v24707_v8 }
 0x381   :  { %17442 = vmatpush3.bf16.msra.mxu1 %v24708_v49  ;;  %17155 = vmatprep.subr.bf16.mxu0 %v24307_v56 }
 0x382   :  { %17443 = vmatprep.subr.bf16.mxu1 %v24307_v56 }
 0x384   :  { %17157 = vmatpush3.bf16.msra.mxu0 %v24709_v35 }
 0x385   :  { %17445 = vmatpush3.bf16.msra.mxu1 %v24710_v24  ;;  %17158 = vmatprep.subr.bf16.mxu0 %v24307_v56 }
 0x386   :  { %17446 = vmatprep.subr.bf16.mxu1 %v24307_v56 }
 0x388   :  { %17160 = vmatpush3.bf16.msra.mxu0 %v24711_v30 }
 0x389   :  { %17448 = vmatpush3.bf16.msra.mxu1 %v24712_v51  ;;  %17161 = vmatprep.subr.bf16.mxu0 %v24307_v56 }
 0x38a   :  { %17449 = vmatprep.subr.bf16.mxu1 %v24307_v56 }
 0x38c   :  { %17163 = vmatpush3.bf16.msra.mxu0 %v24713_v21 }
 0x38d   :  { %17451 = vmatpush3.bf16.msra.mxu1 %v24714_v17  ;;  %17164 = vmatprep.subr.bf16.mxu0 %v24307_v56 }
 0x38e   :  { %17452 = vmatprep.subr.bf16.mxu1 %v24307_v56 }
 0x390   :  { %17166 = vmatpush3.bf16.msra.mxu0 %v21497_v60 }
 0x391   :  { %17454 = vmatpush3.bf16.msra.mxu1 %v24717_v10  ;;  %17167 = vmatprep.subr.bf16.mxu0 %v24307_v56 }
 0x392   :  { %17455 = vmatprep.subr.bf16.mxu1 %v24307_v56 }
 0x393   :  { %14377 = vmatmul.mubr.f32.vlgmr.msra.gmra.mrb[4].mxu0 %v24720_v12  ;;  %v24730_v12 = vand.u32 4294901760, %v21332_v43  ;;  %v24736_v43 = vand.u32 4294901760, %v21374_v1  ;;  %v17186_v1 = vpack.c.bf16 %v5542_v54, %v5535_v61  ;;  %v17477_v61 = vpack.c.bf16 %v24746_v47, %v24745_v13 }
 0x394   :  { %17169 = vmatpush3.bf16.msra.mxu0 %v17168_v36  ;;  %14797 = vmatmul.mubr.f32.vlgmr.msra.gmra.mrb[4].mxu1 %v24721_v53  ;;  %v17180_v53 = vpack.c.bf16 %v24735_v0, %v24734_v28  ;;  %v7323_v54 = vand.u32 4294901760, %v10823_v11  ;;  %v7341_v0 = vand.u32 4294901760, %v10829_v50 }
 0x395   :  { %17457 = vmatpush3.bf16.msra.mxu1 %v17456_v37  ;;  %17170 = vmatprep.subr.bf16.mxu0 %v24307_v56  ;;  %v24731_v37 = vand.u32 4294901760, %v21345_v46  ;;  %v24737_v46 = vand.u32 4294901760, %v21376_v57  ;;  %v24742_v57 = vand.u32 4294901760, %v21539_v18  ;;  %v10788_v18 = vld [vmem:[%s23950_s2 + $0x208] sm:$0xff] }
 0x396   :  { %17458 = vmatprep.subr.bf16.mxu1 %v24307_v56  ;;  %14411 = vmatprep.mubr.msk.f32.mxu0 %vm18420_vm0, %v24322_v63  ;;  %v6002_v39 = vand.u32 4294901760, %v10788_v18 }
 0x397   :  { %14831 = vmatprep.mubr.msk.f32.mxu1 %vm18420_vm0, %v24322_v63  ;;  %v17177_v36 = vpack.c.bf16 %v24731_v37, %v24730_v12  ;;  %v17468_v32 = vpack.c.bf16 %v24737_v46, %v24736_v43  ;;  %v17474_v23 = vpack.c.bf16 %v24743_v7, %v24742_v57  ;;  %v10831_v43 = vld [vmem:[%s23950_s2 + $0x2c0] sm:$0xff]  ;;  %v10832_v46 = vld [vmem:[%s23950_s2 + $0x2c8] sm:$0xff]  ;;  %v6026_v57 = vand.u32 4294901760, %v10796_v27  ;;  %v10797_v7 = vld [vmem:[%s23950_s2 + $0x250] sm:$0xff] }
 0x398   :  { %17172 = vmatpush3.bf16.msra.mxu0 %v17171_v41  ;;  %v17471_v41 = vpack.c.bf16 %v24741_v3, %v24740_v45  ;;  %v21953_v20 = vsub.f32 %v10788_v18, %v6002_v39  ;;  %v5319_v45 = vld [vmem:[%s5318_s29] sm:$0xff]  ;;  %v7347_v47 = vand.u32 4294901760, %v10831_v43 }
 0x399   :  { %17460 = vmatpush3.bf16.msra.mxu1 %v17459_v31  ;;  %17173 = vmatprep.subr.bf16.mxu0 %v24307_v56 }
 0x39a   :  { %17461 = vmatprep.subr.bf16.mxu1 %v24307_v56 }
 0x39c   :  { %17175 = vmatpush3.bf16.msra.mxu0 %v17174_v59  ;;  %v10830_v59 = vld [vmem:[%s23950_s2 + $0x2b8] sm:$0xff] }
 0x39d   :  { %17463 = vmatpush3.bf16.msra.mxu1 %v17462_v14  ;;  %17176 = vmatprep.subr.bf16.mxu0 %v24307_v56  ;;  %v21960_v14 = vsub.f32 %v10823_v11, %v7323_v54 }
 0x39e   :  { %17464 = vmatprep.subr.bf16.mxu1 %v24307_v56 }
 0x3a0   :  { %17178 = vmatpush3.bf16.msra.mxu0 %v17177_v36 }
 0x3a1   :  { %17466 = vmatpush3.bf16.msra.mxu1 %v17465_v26  ;;  %17179 = vmatprep.subr.bf16.mxu0 %v24307_v56  ;;  %v21974_v26 = vsub.f32 %v10824_v52, %v7326_v55  ;;  %v10833_v52 = vld [vmem:[%s23950_s2 + $0x2d0] sm:$0xff] }
 0x3a2   :  { %17467 = vmatprep.subr.bf16.mxu1 %v24307_v56 }
 0x3a4   :  { %17181 = vmatpush3.bf16.msra.mxu0 %v17180_v53  ;;  %v7344_v53 = vand.u32 4294901760, %v10830_v59 }
 0x3a5   :  { %17469 = vmatpush3.bf16.msra.mxu1 %v17468_v32  ;;  %17182 = vmatprep.subr.bf16.mxu0 %v24307_v56 }
 0x3a6   :  { %17470 = vmatprep.subr.bf16.mxu1 %v24307_v56  ;;  %v22016_v11 = vpack.c.bf16 %v7344_v53, %v7341_v0 }
 0x3a8   :  { %17184 = vmatpush3.bf16.msra.mxu0 %v17183_v19  ;;  %24753 = vst [vmem:[#allocation23_spill] sm:$0xff] %v22016_v11 }
 0x3a9   :  { %17472 = vmatpush3.bf16.msra.mxu1 %v17471_v41  ;;  %17185 = vmatprep.subr.bf16.mxu0 %v24307_v56 }
 0x3aa   :  { %17473 = vmatprep.subr.bf16.mxu1 %v24307_v56 }
 0x3ac   :  { %17187 = vmatpush3.bf16.msra.mxu0 %v17186_v1  ;;  %v6023_v1 = vand.u32 4294901760, %v10795_v15 }
 0x3ad   :  { %17475 = vmatpush3.bf16.msra.mxu1 %v17474_v23  ;;  %17188 = vmatprep.subr.bf16.mxu0 %v24307_v56  ;;  %v10798_v23 = vld [vmem:[%s23950_s2 + $0x258] sm:$0xff] }
 0x3ae   :  { %17476 = vmatprep.subr.bf16.mxu1 %v24307_v56 }
 0x3b0   :  { %17190 = vmatpush3.bf16.msra.mxu0 %v17189_v22 }
 0x3b1   :  { %17478 = vmatpush3.bf16.msra.mxu1 %v17477_v61  ;;  %17191 = vmatprep.subr.bf16.mxu0 %v24307_v56  ;;  %v7350_v61 = vand.u32 4294901760, %v10832_v46 }
 0x3b2   :  { %17479 = vmatprep.subr.bf16.mxu1 %v24307_v56 }
 0x3b3   :  { %14412 = vmatmul.mubr.f32.vlgmr.msra.gmra.mrb[4].mxu0 %v21342_v44 }
 0x3b4   :  { %17193 = vmatpush3.bf16.msra.mxu0 %v21224_v4  ;;  %14832 = vmatmul.mubr.f32.vlgmr.msra.gmra.mrb[4].mxu1 %v21347_v6  ;;  %v10787_v4 = vld [vmem:[%s23950_s2 + $0x200] sm:$0xff] }
 0x3b5   :  { %17481 = vmatpush3.bf16.msra.mxu1 %v24702_v34  ;;  %17194 = vmatprep.subr.bf16.mxu0 %v24307_v56  ;;  %v5999_v40 = vand.u32 4294901760, %v10787_v4  ;;  %v10790_v34 = vld [vmem:[%s23950_s2 + $0x218] sm:$0xff] }
 0x3b6   :  { %17482 = vmatprep.subr.bf16.mxu1 %v24307_v56  ;;  %14446 = vmatprep.mubr.msk.f32.mxu0 %vm18420_vm0, %v24322_v63 }
 0x3b7   :  { %14866 = vmatprep.mubr.msk.f32.mxu1 %vm18420_vm0, %v24322_v63  ;;  %v21951_v58 = vsub.f32 %v10787_v4, %v5999_v40 }
 0x3b8   :  { %17196 = vmatpush3.bf16.msra.mxu0 %v24703_v48  ;;  %v10825_v48 = vld [vmem:[%s23950_s2 + $0x290] sm:$0xff] }
 0x3b9   :  { %17484 = vmatpush3.bf16.msra.mxu1 %v24704_v38  ;;  %17197 = vmatprep.subr.bf16.mxu0 %v24307_v56  ;;  %v10826_v38 = vld [vmem:[%s23950_s2 + $0x298] sm:$0xff] }
 0x3ba   :  { %17485 = vmatprep.subr.bf16.mxu1 %v24307_v56 }
 0x3bc   :  { %17199 = vmatpush3.bf16.msra.mxu0 %v24705_v29  ;;  %v21906_v29 = vpack.c.bf16 %v6002_v39, %v5999_v40  ;;  %v10834_v40 = vld [vmem:[%s23950_s2 + $0x2d8] sm:$0xff]  ;;  %v22024_v39 = vand.u32 4294901760, %v5319_v45 }
 0x3bd   :  { %17487 = vmatpush3.bf16.msra.mxu1 %v24706_v16  ;;  %17200 = vmatprep.subr.bf16.mxu0 %v24307_v56  ;;  %v6005_v16 = vand.u32 4294901760, %v10789_v25 }
 0x3be   :  { %17488 = vmatprep.subr.bf16.mxu1 %v24307_v56 }
 0x3bf   :  { %v21986_v32 = vsub.f32 %v10789_v25, %v6005_v16  ;;  %v6032_v25 = vand.u32 4294901760, %v10798_v23 }
 0x3c0   :  { %17202 = vmatpush3.bf16.msra.mxu0 %v24707_v8  ;;  %v6008_v8 = vand.u32 4294901760, %v10790_v34 }
 0x3c1   :  { %17490 = vmatpush3.bf16.msra.mxu1 %v24708_v49  ;;  %17203 = vmatprep.subr.bf16.mxu0 %v24307_v56  ;;  %v21910_v49 = vpack.c.bf16 %v7326_v55, %v7323_v54  ;;  %v6029_v55 = vand.u32 4294901760, %v10797_v7 }
 0x3c2   :  { %17491 = vmatprep.subr.bf16.mxu1 %v24307_v56  ;;  %v21988_v33 = vsub.f32 %v10790_v34, %v6008_v8  ;;  %v22029_v34 = vand.u32 4294901760, %v6643_v62 }
 0x3c3   :  { %24747 = vst [vmem:[#allocation13_spill] sm:$0xff] %v21910_v49 }
 0x3c4   :  { %17205 = vmatpush3.bf16.msra.mxu0 %v24709_v35  ;;  %v7329_v35 = vand.u32 4294901760, %v10825_v48 }
 0x3c5   :  { %17493 = vmatpush3.bf16.msra.mxu1 %v24710_v24  ;;  %17206 = vmatprep.subr.bf16.mxu0 %v24307_v56  ;;  %v7332_v24 = vand.u32 4294901760, %v10826_v38 }
 0x3c6   :  { %17494 = vmatprep.subr.bf16.mxu1 %v24307_v56  ;;  %v21990_v2 = vsub.f32 %v10825_v48, %v7329_v35  ;;  %v22031_v48 = vsub.f32 %v10829_v50, %v7341_v0  ;;  %v22075_v50 = vpack.c.bf16 %v6032_v25, %v6029_v55 }
 0x3c7   :  { %v21933_v9 = vpack.c.bf16 %v7332_v24, %v7329_v35  ;;  %v21992_v19 = vsub.f32 %v10826_v38, %v7332_v24  ;;  %v22033_v38 = vsub.f32 %v10830_v59, %v7344_v53  ;;  %v22040_v35 = vsub.f32 %v10796_v27, %v6026_v57 }
 0x3c8   :  { %17208 = vmatpush3.bf16.msra.mxu0 %v24711_v30  ;;  %v10791_v30 = vld [vmem:[%s23950_s2 + $0x220] sm:$0xff]  ;;  %v22042_v24 = vpack.c.bf16 %v7350_v61, %v7347_v47  ;;  %24756 = vst [vmem:[#allocation25_spill] sm:$0xff] %v22075_v50  ;;  %v24177_v59 = vand.u32 4294901760, %v21953_v20  ;;  %v24183_v53 = vand.u32 4294901760, %v21974_v26 }
 0x3c9   :  { %17496 = vmatpush3.bf16.msra.mxu1 %v24712_v51  ;;  %17209 = vmatprep.subr.bf16.mxu0 %v24307_v56  ;;  %v10827_v51 = vld [vmem:[%s23950_s2 + $0x2a0] sm:$0xff]  ;;  %24749 = vst [vmem:[#allocation15_spill] sm:$0xff] %v21933_v9 }
 0x3ca   :  { %17497 = vmatprep.subr.bf16.mxu1 %v24307_v56  ;;  %v7335_v31 = vand.u32 4294901760, %v10827_v51  ;;  %24755 = vst [vmem:[#allocation18_spill] sm:$0xff] %v22042_v24 }
 0x3cc   :  { %17211 = vmatpush3.bf16.msra.mxu0 %v24713_v21  ;;  %v10828_v21 = vld [vmem:[%s23950_s2 + $0x2a8] sm:$0xff]  ;;  %v22006_v22 = vsub.f32 %v10827_v51, %v7335_v31  ;;  %v22047_v51 = vld [vmem:[%s23950_s2 + $0x260] sm:$0xff] }
 0x3cd   :  { %17499 = vmatpush3.bf16.msra.mxu1 %v24714_v17  ;;  %17212 = vmatprep.subr.bf16.mxu0 %v24307_v56  ;;  %v21928_v17 = vpack.c.bf16 %v6008_v8, %v6005_v16  ;;  %v7338_v5 = vand.u32 4294901760, %v10828_v21  ;;  %v22035_v16 = vpack.c.bf16 %v6026_v57, %v6023_v1  ;;  %v22037_v8 = vsub.f32 %v10795_v15, %v6023_v1 }
 0x3ce   :  { %17500 = vmatprep.subr.bf16.mxu1 %v24307_v56  ;;  %v22082_v15 = vsub.f32 %v10797_v7, %v6029_v55  ;;  %v6035_v27 = vand.u32 4294901760, %v22047_v51  ;;  %v22125_v55 = vld [vmem:[%s23950_s2 + $0x2f8] sm:$0xff] }
 0x3cf   :  { %24748 = vst [vmem:[#allocation14_spill] sm:$0xff] %v21928_v17  ;;  %v21978_v28 = vpack.c.bf16 %v7338_v5, %v7335_v31  ;;  %v22011_v4 = vsub.f32 %v10828_v21, %v7338_v5  ;;  %24754 = vst [vmem:[#allocation24_spill] sm:$0xff] %v22035_v16  ;;  %v22052_v21 = vld [vmem:[%s23950_s2 + $0x268] sm:$0xff]  ;;  %v22063_v31 = vld [vmem:[%s23950_s2 + $0x2e0] sm:$0xff] }
 0x3d0   :  { %17214 = vmatpush3.bf16.msra.mxu0 %v21497_v60  ;;  %v10792_v60 = vld [vmem:[%s23950_s2 + $0x228] sm:$0xff]  ;;  %v6038_v0 = vand.u32 4294901760, %v22052_v21 }
 0x3d1   :  { %17502 = vmatpush3.bf16.msra.mxu1 %v24717_v10  ;;  %17215 = vmatprep.subr.bf16.mxu0 %v24307_v56  ;;  %v6011_v10 = vand.u32 4294901760, %v10791_v30  ;;  %v6014_v42 = vand.u32 4294901760, %v10792_v60  ;;  %24751 = vst [vmem:[#allocation17_spill] sm:$0xff] %v21978_v28  ;;  %v22068_v5 = vld [vmem:[%s23950_s2 + $0x2e8] sm:$0xff] }
 0x3d2   :  { %17503 = vmatprep.subr.bf16.mxu1 %v24307_v56 }
 0x3d3   :  { %14447 = vmatmul.mubr.f32.vlgmr.msra.gmra.mrb[4].mxu0 %v21342_v44  ;;  %v10793_v44 = vld [vmem:[%s23950_s2 + $0x230] sm:$0xff]  ;;  %v21963_v12 = vpack.c.bf16 %v6014_v42, %v6011_v10  ;;  %v21995_v3 = vsub.f32 %v10791_v30, %v6011_v10  ;;  %v21997_v41 = vsub.f32 %v10792_v60, %v6014_v42  ;;  %v7353_v30 = vand.u32 4294901760, %v10833_v52 }
 0x3d4   :  { %17217 = vmatpush3.bf16.msra.mxu0 %v21906_v29  ;;  %14867 = vmatmul.mubr.f32.vlgmr.msra.gmra.mrb[4].mxu1 %v21347_v6  ;;  %v10794_v6 = vld [vmem:[%s23950_s2 + $0x238] sm:$0xff]  ;;  %v6017_v37 = vand.u32 4294901760, %v10793_v44  ;;  %v7356_v60 = vand.u32 4294901760, %v10834_v40  ;;  %v22056_v10 = vsub.f32 %v10831_v43, %v7347_v47  ;;  %v22058_v42 = vsub.f32 %v10832_v46, %v7350_v61 }
 0x3d5   :  { %17505 = vmatpush3.bf16.msra.mxu1 %v21910_v49  ;;  %17218 = vmatprep.subr.bf16.mxu0 %v24307_v56  ;;  %24750 = vst [vmem:[#allocation16_spill] sm:$0xff] %v21963_v12  ;;  %v6020_v36 = vand.u32 4294901760, %v10794_v6  ;;  %v22088_v43 = vsub.f32 %v10798_v23, %v6032_v25  ;;  %v22096_v57 = vsub.f32 %v10833_v52, %v7353_v30  ;;  %v22108_v23 = vld [vmem:[%s23950_s2 + $0x278] sm:$0xff] }
 0x3d6   :  { %17506 = vmatprep.subr.bf16.mxu1 %v24307_v56  ;;  %14481 = vmatprep.mubr.msk.f32.mxu0 %vm18420_vm0, %v24322_v63  ;;  %v22014_v18 = vsub.f32 %v10793_v44, %v6017_v37  ;;  %v22071_v44 = vsub.f32 %v5319_v45, %v22024_v39  ;;  %v22090_v46 = vpack.c.bf16 %v7356_v60, %v7353_v30 }
 0x3d7   :  { %14901 = vmatprep.mubr.msk.f32.mxu1 %vm18420_vm0, %v24322_v63  ;;  %v22008_v13 = vpack.c.bf16 %v6020_v36, %v6017_v37  ;;  %v22027_v54 = vsub.f32 %v10794_v6, %v6020_v36  ;;  %v24174_v6 = vand.u32 4294901760, %v21951_v58  ;;  %v22079_v37 = vsub.f32 %v6643_v62, %v22029_v34  ;;  %v22103_v62 = vld [vmem:[%s23950_s2 + $0x270] sm:$0xff] }
 0x3d8   :  { %17220 = vmatpush3.bf16.msra.mxu0 %v21928_v17  ;;  %v24178_v36 = vand.u32 4294901760, %v21960_v14  ;;  %24757 = vst [vmem:[#allocation26_spill] sm:$0xff] %v22090_v46  ;;  %v22098_v7 = vsub.f32 %v10834_v40, %v7356_v60  ;;  %v22120_v40 = vld [vmem:[%s23950_s2 + $0x2f0] sm:$0xff]  ;;  %v6100_v25 = vsub.f32 %v21953_v20, %v24177_v59  ;;  %v22135_v45 = vpack.c.bf16 %v6038_v0, %v6035_v27 }
 0x3d9   :  { %17508 = vmatpush3.bf16.msra.mxu1 %v21933_v9  ;;  %17221 = vmatprep.subr.bf16.mxu0 %v24307_v56  ;;  %24752 = vst [vmem:[#allocation22_spill] sm:$0xff] %v22008_v13  ;;  %v6093_v61 = vsub.f32 %v21951_v58, %v24174_v6  ;;  %v24761_v6 = vand.u32 4294901760, %v22068_v5  ;;  %v24763_v59 = vand.u32 4294901760, %v22071_v44  ;;  %v24774_v17 = vand.u32 4294901760, %v21995_v3 }
 0x3da   :  { %17509 = vmatprep.subr.bf16.mxu1 %v24307_v56  ;;  %v7417_v60 = vsub.f32 %v21960_v14, %v24178_v36  ;;  %24759 = vst [vmem:[#allocation21_spill] sm:$0xff] %v22135_v45  ;;  %v24760_v36 = vand.u32 4294901760, %v22063_v31 }
 0x3db   :  { %v6121_v49 = vsub.f32 %v21995_v3, %v24774_v17  ;;  %v24777_v17 = vand.u32 4294901760, %v22011_v4 }
 0x3dc   :  { %17223 = vmatpush3.bf16.msra.mxu0 %v21963_v12 }
 0x3dd   :  { %17511 = vmatpush3.bf16.msra.mxu1 %v21978_v28  ;;  %17224 = vmatprep.subr.bf16.mxu0 %v24307_v56  ;;  %v24770_v28 = vand.u32 4294901760, %v21992_v19 }
 0x3de   :  { %17512 = vmatprep.subr.bf16.mxu1 %v24307_v56 }
 0x3e0   :  { %17226 = vmatpush3.bf16.msra.mxu0 %v22008_v13 }
 0x3e1   :  { %17514 = vmatpush3.bf16.msra.mxu1 %v22016_v11  ;;  %17227 = vmatprep.subr.bf16.mxu0 %v24307_v56  ;;  %v24764_v11 = vand.u32 4294901760, %v22079_v37 }
 0x3e2   :  { %17515 = vmatprep.subr.bf16.mxu1 %v24307_v56 }
 0x3e4   :  { %17229 = vmatpush3.bf16.msra.mxu0 %v22035_v16  ;;  %v7418_v16 = vand.u32 4294901760, %v7417_v60  ;;  %v24768_v60 = vand.u32 4294901760, %v22103_v62 }
 0x3e5   :  { %17517 = vmatpush3.bf16.msra.mxu1 %v22042_v24  ;;  %17230 = vmatprep.subr.bf16.mxu0 %v24307_v56  ;;  %v6082_v24 = vsub.f32 %v22071_v44, %v24763_v59  ;;  %v24767_v59 = vand.u32 4294901760, %v21990_v2 }
 0x3e6   :  { %v22114_v52 = vpop.f32.mrb[2].mxu0  ;;  %17518 = vmatprep.subr.bf16.mxu1 %v24307_v56 }
 0x3e7   :  { %24758 = vst [vmem:[#allocation27_spill] sm:$0xff] %v22114_v52  ;;  %v5311_v47 = vpop.f32.mrb[2].mxu1  ;;  %v13818_v1 = vpop.f32.mrb[3].mxu0  ;;  %v7424_v52 = vsub.f32 %v21974_v26, %v24183_v53  ;;  %v7406_v53 = vsub.f32 %v22079_v37, %v24764_v11  ;;  %v22176_v11 = vsub.f32 %v22047_v51, %v6035_v27  ;;  %v24771_v51 = vand.u32 4294901760, %v22120_v40 }
 0x3e8   :  { %10616 = vrot.lane.b32.xlu0 %v5311_v47, %s18422_s21  ;;  %v14238_v30 = vpop.f32.mrb[3].mxu1  ;;  %17232 = vmatpush3.bf16.msra.mxu0 %v22075_v50  ;;  %v22148_v1 = vpack.c.bf16 %v24761_v6, %v24760_v36  ;;  %v6094_v6 = vand.u32 4294901760, %v6093_v61  ;;  %v6101_v36 = vand.u32 4294901760, %v6100_v25  ;;  %v7431_v61 = vsub.f32 %v21990_v2, %v24767_v59 }
 0x3e9   :  { %17520 = vmatpush3.bf16.msra.mxu1 %v22090_v46  ;;  %17233 = vmatprep.subr.bf16.mxu0 %v24307_v56  ;;  %v24765_v46 = vand.u32 4294901760, %v21986_v32  ;;  %v7425_v47 = vand.u32 4294901760, %v7424_v52  ;;  %v24766_v30 = vand.u32 4294901760, %v21988_v33  ;;  %v22189_v59 = vsub.f32 %v22052_v21, %v6038_v0 }
 0x3ea   :  { %24762 = vst [vmem:[#allocation19_spill] sm:$0xff] %v22148_v1  ;;  %17521 = vmatprep.subr.bf16.mxu1 %v24307_v56  ;;  %v24772_v27 = vand.u32 4294901760, %v22125_v55  ;;  %v17240_v12 = vpack.c.bf16 %v6101_v36, %v6094_v6  ;;  %v7407_v21 = vand.u32 4294901760, %v7406_v53  ;;  %v7432_v9 = vand.u32 4294901760, %v7431_v61 }
 0x3eb   :  { %v6107_v50 = vsub.f32 %v21986_v32, %v24765_v46  ;;  %v6114_v13 = vsub.f32 %v21988_v33, %v24766_v30  ;;  %v24769_v46 = vand.u32 4294901760, %v22108_v23  ;;  %v7438_v30 = vsub.f32 %v21992_v19, %v24770_v28 }
 0x3ec   :  { %17235 = vmatpush3.bf16.msra.mxu0 %v22135_v45  ;;  %v22197_v25 = vpack.c.bf16 %v24772_v27, %v24771_v51  ;;  %v6083_v28 = vand.u32 4294901760, %v6082_v24  ;;  %v17528_v45 = vpack.c.bf16 %v7425_v47, %v7418_v16  ;;  %v24775_v27 = vand.u32 4294901760, %v21997_v41 }
 0x3ed   :  { %v22182_v52 = vpack.c.bf16 %v24769_v46, %v24768_v60  ;;  %17523 = vmatpush3.bf16.msra.mxu1 %v22148_v1  ;;  %17236 = vmatprep.subr.bf16.mxu0 %v24307_v56  ;;  %v6108_v0 = vand.u32 4294901760, %v6107_v50  ;;  %v6115_v1 = vand.u32 4294901760, %v6114_v13  ;;  %v7439_v51 = vand.u32 4294901760, %v7438_v30 }
 0x3ee   :  { %24773 = vst [vmem:[#allocation5_spill] sm:$0xff] %v22197_v25  ;;  %17524 = vmatprep.subr.bf16.mxu1 %v24307_v56  ;;  %v6128_v46 = vsub.f32 %v21997_v41, %v24775_v27  ;;  %v24204_v60 = vand.u32 4294901760, %v22014_v18  ;;  %v24776_v13 = vand.u32 4294901760, %v22006_v22  ;;  %v7452_v50 = vsub.f32 %v22011_v4, %v24777_v17 }
 0x3ef   :  { %v24778_v6 = vand.u32 4294901760, %v22063_v31  ;;  %v17243_v47 = vpack.c.bf16 %v6115_v1, %v6108_v0  ;;  %v6122_v53 = vand.u32 4294901760, %v6121_v49  ;;  %v24205_v24 = vand.u32 4294901760, %v22058_v42 }
 0x3f0   :  { %17238 = vmatpush3.bf16.msra.mxu0 %v22182_v52  ;;  %v7445_v16 = vsub.f32 %v22006_v22, %v24776_v13  ;;  %v24779_v13 = vand.u32 4294901760, %v22068_v5  ;;  %v6135_v30 = vsub.f32 %v22014_v18, %v24204_v60  ;;  %v24780_v27 = vand.u32 4294901760, %v22027_v54 }
 0x3f1   :  { %17526 = vmatpush3.bf16.msra.mxu1 %v22197_v25  ;;  %17239 = vmatprep.subr.bf16.mxu0 %v24307_v56  ;;  %v22224_v36 = vsub.f32 %v22063_v31, %v24778_v6  ;;  %v17531_v31 = vpack.c.bf16 %v7439_v51, %v7432_v9  ;;  %v6129_v6 = vand.u32 4294901760, %v6128_v46  ;;  %v7453_v1 = vand.u32 4294901760, %v7452_v50 }
 0x3f2   :  { %17527 = vmatprep.subr.bf16.mxu1 %v24307_v56  ;;  %v22233_v17 = vsub.f32 %v22068_v5, %v24779_v13  ;;  %v6142_v61 = vsub.f32 %v22027_v54, %v24780_v27  ;;  %v7446_v5 = vand.u32 4294901760, %v7445_v16  ;;  %v24781_v49 = vand.u32 4294901760, %v22031_v48 }
 0x3f3   :  { %14482 = vmatmul.mubr.f32.vlgmr.msra.gmra.mrb[4].mxu0 %v6083_v28  ;;  %v24782_v9 = vand.u32 4294901760, %v22033_v38  ;;  %v24783_v28 = vand.u32 4294901760, %v22037_v8  ;;  %v24785_v51 = vand.u32 4294901760, %v22056_v10  ;;  %v24786_v27 = vand.u32 4294901760, %v22103_v62 }
 0x3f4   :  { %17241 = vmatpush3.bf16.msra.mxu0 %v17240_v12  ;;  %14902 = vmatmul.mubr.f32.vlgmr.msra.gmra.mrb[4].mxu1 %v7407_v21  ;;  %v7459_v12 = vsub.f32 %v22031_v48, %v24781_v49  ;;  %v7480_v49 = vsub.f32 %v22058_v42, %v24205_v24  ;;  %v6143_v60 = vand.u32 4294901760, %v6142_v61  ;;  %v17534_v24 = vpack.c.bf16 %v7453_v1, %v7446_v5 }
 0x3f5   :  { %17529 = vmatpush3.bf16.msra.mxu1 %v17528_v45  ;;  %17242 = vmatprep.subr.bf16.mxu0 %v24307_v56  ;;  %v7466_v46 = vsub.f32 %v22033_v38, %v24782_v9  ;;  %v6149_v21 = vsub.f32 %v22037_v8, %v24783_v28  ;;  %v24784_v45 = vand.u32 4294901760, %v22040_v35  ;;  %v7473_v16 = vsub.f32 %v22056_v10, %v24785_v51 }
 0x3f6   :  { %17530 = vmatprep.subr.bf16.mxu1 %v24307_v56  ;;  %14516 = vmatprep.mubr.msk.f32.mxu0 %vm18420_vm0, %v24322_v63  ;;  %v22265_v13 = vsub.f32 %v22103_v62, %v24786_v27  ;;  %v6136_v51 = vand.u32 4294901760, %v6135_v30  ;;  %v24787_v62 = vand.u32 4294901760, %v22108_v23  ;;  %v7460_v9 = vand.u32 4294901760, %v7459_v12 }
 0x3f7   :  { %v6156_v0 = vsub.f32 %v22040_v35, %v24784_v45  ;;  %14936 = vmatprep.mubr.msk.f32.mxu1 %vm18420_vm0, %v24322_v63  ;;  %v17246_v45 = vpack.c.bf16 %v6129_v6, %v6122_v53  ;;  %v7467_v28 = vand.u32 4294901760, %v7466_v46  ;;  %v6150_v25 = vand.u32 4294901760, %v6149_v21 }
 0x3f8   :  { %17244 = vmatpush3.bf16.msra.mxu0 %v17243_v47  ;;  %v22278_v27 = vsub.f32 %v22108_v23, %v24787_v62  ;;  %v7474_v53 = vand.u32 4294901760, %v7473_v16  ;;  %v24788_v61 = vand.u32 4294901760, %v22082_v15  ;;  %v7481_v6 = vand.u32 4294901760, %v7480_v49 }
 0x3f9   :  { %17532 = vmatpush3.bf16.msra.mxu1 %v17531_v31  ;;  %17245 = vmatprep.subr.bf16.mxu0 %v24307_v56  ;;  %v6157_v47 = vand.u32 4294901760, %v6156_v0  ;;  %v24789_v50 = vand.u32 4294901760, %v22088_v43  ;;  %v24790_v31 = vand.u32 4294901760, %v22096_v57  ;;  %v6176_v1 = vand.u32 4294901760, %v22176_v11 }
 0x3fa   :  { %17533 = vmatprep.subr.bf16.mxu1 %v24307_v56  ;;  %v6163_v30 = vsub.f32 %v22082_v15, %v24788_v61  ;;  %v24791_v12 = vand.u32 4294901760, %v22120_v40  ;;  %v17249_v21 = vpack.c.bf16 %v6143_v60, %v6136_v51  ;;  %v24792_v0 = vand.u32 4294901760, %v22098_v7 }
 0x3fb   :  { %v6170_v23 = vsub.f32 %v22088_v43, %v24789_v50  ;;  %v7487_v5 = vsub.f32 %v22096_v57, %v24790_v31  ;;  %v6183_v49 = vand.u32 4294901760, %v22189_v59  ;;  %v24793_v50 = vand.u32 4294901760, %v22125_v55 }
 0x3fc   :  { %v22295_v46 = vsub.f32 %v22120_v40, %v24791_v12  ;;  %17247 = vmatpush3.bf16.msra.mxu0 %v17246_v45  ;;  %v7494_v16 = vsub.f32 %v22098_v7, %v24792_v0  ;;  %v17537_v61 = vpack.c.bf16 %v7467_v28, %v7460_v9  ;;  %v24209_v40 = vand.u32 4294901760, %v22224_v36 }
 0x3fd   :  { %v22304_v62 = vsub.f32 %v22125_v55, %v24793_v50  ;;  %17535 = vmatpush3.bf16.msra.mxu1 %v17534_v24  ;;  %17248 = vmatprep.subr.bf16.mxu0 %v24307_v56  ;;  %v24208_v45 = vand.u32 4294901760, %v22233_v17  ;;  %v17252_v60 = vpack.c.bf16 %v6157_v47, %v6150_v25  ;;  %v6164_v51 = vand.u32 4294901760, %v6163_v30 }
 0x3fe   :  { %17536 = vmatprep.subr.bf16.mxu1 %v24307_v56  ;;  %v17540_v31 = vpack.c.bf16 %v7481_v6, %v7474_v53  ;;  %v6171_v12 = vand.u32 4294901760, %v6170_v23  ;;  %v7488_v0 = vand.u32 4294901760, %v7487_v5  ;;  %v6177_v55 = vsub.f32 %v22176_v11, %v6176_v1 }
 0x3ff   :  { %v7495_v24 = vand.u32 4294901760, %v7494_v16  ;;  %v6184_v9 = vsub.f32 %v22189_v59, %v6183_v49  ;;  %v6190_v28 = vand.u32 4294901760, %v22265_v13  ;;  %v24212_v50 = vand.u32 4294901760, %v22278_v27 }
 0x400   :  { %17250 = vmatpush3.bf16.msra.mxu0 %v17249_v21  ;;  %v7501_v25 = vsub.f32 %v22224_v36, %v24209_v40  ;;  %v7508_v47 = vsub.f32 %v22233_v17, %v24208_v45  ;;  %v24211_v53 = vand.u32 4294901760, %v22295_v46  ;;  %v24210_v30 = vand.u32 4294901760, %v22304_v62 }
 0x401   :  { %17538 = vmatpush3.bf16.msra.mxu1 %v17537_v61  ;;  %17251 = vmatprep.subr.bf16.mxu0 %v24307_v56  ;;  %v17255_v6 = vpack.c.bf16 %v6171_v12, %v6164_v51  ;;  %v6178_v23 = vand.u32 4294901760, %v6177_v55  ;;  %v17543_v5 = vpack.c.bf16 %v7495_v24, %v7488_v0  ;;  %v6185_v21 = vand.u32 4294901760, %v6184_v9 }
 0x402   :  { %17539 = vmatprep.subr.bf16.mxu1 %v24307_v56  ;;  %v6191_v16 = vsub.f32 %v22265_v13, %v6190_v28  ;;  %v6198_v61 = vsub.f32 %v22278_v27, %v24212_v50  ;;  %v7502_v45 = vand.u32 4294901760, %v7501_v25  ;;  %v7509_v40 = vand.u32 4294901760, %v7508_v47 }
 0x403   :  { %v7515_v51 = vsub.f32 %v22295_v46, %v24211_v53  ;;  %v17258_v12 = vpack.c.bf16 %v6185_v21, %v6178_v23  ;;  %v17555_v23 = vpack.c.bf16 %v21992_v19, %v21990_v2  ;;  %v17558_v21 = vpack.c.bf16 %v22011_v4, %v22006_v22 }
 0x404   :  { %17253 = vmatpush3.bf16.msra.mxu0 %v17252_v60  ;;  %v7522_v60 = vsub.f32 %v22304_v62, %v24210_v30  ;;  %v6192_v0 = vand.u32 4294901760, %v6191_v16  ;;  %v6199_v55 = vand.u32 4294901760, %v6198_v61  ;;  %v17273_v16 = vpack.c.bf16 %v22027_v54, %v22014_v18 }
 0x405   :  { %17541 = vmatpush3.bf16.msra.mxu1 %v17540_v31  ;;  %17254 = vmatprep.subr.bf16.mxu0 %v24307_v56  ;;  %v17546_v31 = vpack.c.bf16 %v7509_v40, %v7502_v45  ;;  %v7516_v24 = vand.u32 4294901760, %v7515_v51  ;;  %v17552_v40 = vpack.c.bf16 %v21974_v26, %v21960_v14  ;;  %v17267_v45 = vpack.c.bf16 %v21988_v33, %v21986_v32 }
 0x406   :  { %17542 = vmatprep.subr.bf16.mxu1 %v24307_v56  ;;  %v7523_v9 = vand.u32 4294901760, %v7522_v60  ;;  %v17261_v25 = vpack.c.bf16 %v6199_v55, %v6192_v0  ;;  %v17561_v61 = vpack.c.bf16 %v22033_v38, %v22031_v48  ;;  %v17276_v51 = vpack.c.bf16 %v22040_v35, %v22037_v8 }
 0x407   :  { %v17564_v60 = vpack.c.bf16 %v22058_v42, %v22056_v10  ;;  %v17567_v0 = vpack.c.bf16 %v22098_v7, %v22096_v57  ;;  %v17282_v55 = vpack.c.bf16 %v22189_v59, %v22176_v11  ;;  %v24811_v30 = vand.u32 4294901760, %v21974_v26 }
 0x408   :  { %17256 = vmatpush3.bf16.msra.mxu0 %v17255_v6  ;;  %v17549_v47 = vpack.c.bf16 %v7523_v9, %v7516_v24  ;;  %v17264_v6 = vpack.c.bf16 %v21953_v20, %v21951_v58  ;;  %v17285_v24 = vpack.c.bf16 %v22278_v27, %v22265_v13  ;;  %v17573_v9 = vpack.c.bf16 %v22304_v62, %v22295_v46  ;;  %v10912_v13 = vld [vmem:[%s23951_s3 + $0x388] sm:$0xff] }
 0x409   :  { %17544 = vmatpush3.bf16.msra.mxu1 %v17543_v5  ;;  %17257 = vmatprep.subr.bf16.mxu0 %v24307_v56  ;;  %v17270_v5 = vpack.c.bf16 %v21997_v41, %v21995_v3  ;;  %v24812_v50 = vand.u32 4294901760, %v22071_v44  ;;  %v24817_v26 = vand.u32 4294901760, %v21992_v19  ;;  %v24821_v19 = vand.u32 4294901760, %v22011_v4 }
 0x40a   :  { %17545 = vmatprep.subr.bf16.mxu1 %v24307_v56  ;;  %v24826_v4 = vand.u32 4294901760, %v22033_v38  ;;  %v24832_v38 = vand.u32 4294901760, %v22088_v43  ;;  %v24838_v11 = vand.u32 4294901760, %v22295_v46  ;;  %v24839_v59 = vand.u32 4294901760, %v22304_v62 }
 0x40b   :  { %v9333_v62 = vand.u32 4294901760, %v10912_v13 }
 0x40c   :  { %17259 = vmatpush3.bf16.msra.mxu0 %v17258_v12  ;;  %v17279_v12 = vpack.c.bf16 %v22088_v43, %v22082_v15 }
 0x40d   :  { %17547 = vmatpush3.bf16.msra.mxu1 %v17546_v31  ;;  %17260 = vmatprep.subr.bf16.mxu0 %v24307_v56  ;;  %v17570_v31 = vpack.c.bf16 %v22233_v17, %v22224_v36 }
 0x40e   :  { %17548 = vmatprep.subr.bf16.mxu1 %v24307_v56 }
 0x410   :  { %17262 = vmatpush3.bf16.msra.mxu0 %v17261_v25  ;;  %v24794_v25 = vld [vmem:[#allocation13_spill] sm:$0xff] }
 0x411   :  { %17550 = vmatpush3.bf16.msra.mxu1 %v17549_v47  ;;  %17263 = vmatprep.subr.bf16.mxu0 %v24307_v56  ;;  %v24795_v47 = vld [vmem:[#allocation14_spill] sm:$0xff] }
 0x412   :  { %17551 = vmatprep.subr.bf16.mxu1 %v24307_v56 }
 0x413   :  { %14517 = vmatmul.mubr.f32.vlgmr.msra.gmra.mrb[4].mxu0 %v22024_v39 }
 0x414   :  { %17265 = vmatpush3.bf16.msra.mxu0 %v17264_v6  ;;  %14937 = vmatmul.mubr.f32.vlgmr.msra.gmra.mrb[4].mxu1 %v22029_v34  ;;  %v24796_v6 = vld [vmem:[#allocation15_spill] sm:$0xff] }
 0x415   :  { %17553 = vmatpush3.bf16.msra.mxu1 %v17552_v40  ;;  %17266 = vmatprep.subr.bf16.mxu0 %v24307_v56  ;;  %v24797_v40 = vld [vmem:[#allocation16_spill] sm:$0xff] }
 0x416   :  { %17554 = vmatprep.subr.bf16.mxu1 %v24307_v56  ;;  %14551 = vmatprep.mubr.msk.f32.mxu0 %vm18420_vm0, %v24322_v63 }
 0x417   :  { %14971 = vmatprep.mubr.msk.f32.mxu1 %vm18420_vm0, %v24322_v63 }
 0x418   :  { %17268 = vmatpush3.bf16.msra.mxu0 %v17267_v45  ;;  %v24798_v45 = vld [vmem:[#allocation17_spill] sm:$0xff] }
 0x419   :  { %17556 = vmatpush3.bf16.msra.mxu1 %v17555_v23  ;;  %17269 = vmatprep.subr.bf16.mxu0 %v24307_v56  ;;  %v24799_v23 = vld [vmem:[#allocation22_spill] sm:$0xff] }
 0x41a   :  { %17557 = vmatprep.subr.bf16.mxu1 %v24307_v56 }
 0x41c   :  { %17271 = vmatpush3.bf16.msra.mxu0 %v17270_v5  ;;  %v24800_v5 = vld [vmem:[#allocation23_spill] sm:$0xff] }
 0x41d   :  { %17559 = vmatpush3.bf16.msra.mxu1 %v17558_v21  ;;  %17272 = vmatprep.subr.bf16.mxu0 %v24307_v56  ;;  %v24801_v21 = vld [vmem:[#allocation24_spill] sm:$0xff] }
 0x41e   :  { %17560 = vmatprep.subr.bf16.mxu1 %v24307_v56 }
 0x420   :  { %17274 = vmatpush3.bf16.msra.mxu0 %v17273_v16  ;;  %v24802_v16 = vld [vmem:[#allocation18_spill] sm:$0xff] }
 0x421   :  { %17562 = vmatpush3.bf16.msra.mxu1 %v17561_v61  ;;  %17275 = vmatprep.subr.bf16.mxu0 %v24307_v56  ;;  %v24803_v61 = vld [vmem:[#allocation25_spill] sm:$0xff] }
 0x422   :  { %17563 = vmatprep.subr.bf16.mxu1 %v24307_v56 }
 0x424   :  { %17277 = vmatpush3.bf16.msra.mxu0 %v17276_v51  ;;  %v24804_v51 = vld [vmem:[#allocation26_spill] sm:$0xff] }
 0x425   :  { %17565 = vmatpush3.bf16.msra.mxu1 %v17564_v60  ;;  %17278 = vmatprep.subr.bf16.mxu0 %v24307_v56  ;;  %v24805_v60 = vld [vmem:[#allocation21_spill] sm:$0xff] }
 0x426   :  { %17566 = vmatprep.subr.bf16.mxu1 %v24307_v56 }
 0x428   :  { %17280 = vmatpush3.bf16.msra.mxu0 %v17279_v12  ;;  %v24806_v12 = vld [vmem:[#allocation19_spill] sm:$0xff] }
 0x429   :  { %17568 = vmatpush3.bf16.msra.mxu1 %v17567_v0  ;;  %17281 = vmatprep.subr.bf16.mxu0 %v24307_v56  ;;  %v24807_v0 = vand.u32 4294901760, %v21951_v58  ;;  %v24813_v58 = vand.u32 4294901760, %v22079_v37 }
 0x42a   :  { %17569 = vmatprep.subr.bf16.mxu1 %v24307_v56 }
 0x42c   :  { %17283 = vmatpush3.bf16.msra.mxu0 %v17282_v55  ;;  %v24808_v55 = vand.u32 4294901760, %v21953_v20  ;;  %v24814_v20 = vand.u32 4294901760, %v21986_v32  ;;  %v24818_v32 = vand.u32 4294901760, %v21995_v3  ;;  %v24823_v3 = vand.u32 4294901760, %v22014_v18 }
 0x42d   :  { %17571 = vmatpush3.bf16.msra.mxu1 %v17570_v31  ;;  %17284 = vmatprep.subr.bf16.mxu0 %v24307_v56  ;;  %v24829_v18 = vand.u32 4294901760, %v22056_v10  ;;  %v17330_v10 = vpack.c.bf16 %v6183_v49, %v6176_v1  ;;  %v17621_v1 = vpack.c.bf16 %v24839_v59, %v24838_v11 }
 0x42e   :  { %17572 = vmatprep.subr.bf16.mxu1 %v24307_v56  ;;  %v17312_v31 = vpack.c.bf16 %v24808_v55, %v24807_v0  ;;  %v24815_v0 = vand.u32 4294901760, %v21988_v33  ;;  %v24819_v33 = vand.u32 4294901760, %v21997_v41  ;;  %v24824_v41 = vand.u32 4294901760, %v22027_v54 }
 0x42f   :  { %v24830_v54 = vand.u32 4294901760, %v22058_v42  ;;  %v24835_v42 = vand.u32 4294901760, %v22224_v36  ;;  %v10876_v36 = vld [vmem:[%s23951_s3 + $0x308] sm:$0xff] }
 0x430   :  { %17286 = vmatpush3.bf16.msra.mxu0 %v17285_v24  ;;  %v24809_v24 = vld [vmem:[#allocation5_spill] sm:$0xff]  ;;  %v17315_v55 = vpack.c.bf16 %v24815_v0, %v24814_v20  ;;  %v24827_v20 = vand.u32 4294901760, %v22037_v8  ;;  %v24828_v0 = vand.u32 4294901760, %v22040_v35  ;;  %v24833_v8 = vand.u32 4294901760, %v22096_v57 }
 0x431   :  { %17574 = vmatpush3.bf16.msra.mxu1 %v17573_v9  ;;  %17287 = vmatprep.subr.bf16.mxu0 %v24307_v56  ;;  %v24810_v9 = vand.u32 4294901760, %v21960_v14  ;;  %v24816_v14 = vand.u32 4294901760, %v21990_v2  ;;  %v24820_v2 = vand.u32 4294901760, %v22006_v22  ;;  %v24825_v22 = vand.u32 4294901760, %v22031_v48 }
 0x432   :  { %17575 = vmatprep.subr.bf16.mxu1 %v24307_v56  ;;  %v24831_v48 = vand.u32 4294901760, %v22082_v15  ;;  %v24834_v35 = vand.u32 4294901760, %v22098_v7  ;;  %v24836_v15 = vand.u32 4294901760, %v22233_v17  ;;  %v24837_v57 = vand.u32 4294901760, %v22278_v27  ;;  %v10911_v17 = vld [vmem:[%s23951_s3 + $0x380] sm:$0xff] }
 0x433   :  { %14552 = vmatmul.mubr.f32.vlgmr.msra.gmra.mrb[4].mxu0 %v22071_v44  ;;  %v17600_v53 = vpack.c.bf16 %v24811_v30, %v24810_v9  ;;  %v17603_v30 = vpack.c.bf16 %v24817_v26, %v24816_v14  ;;  %v17318_v44 = vpack.c.bf16 %v24819_v33, %v24818_v32  ;;  %v17321_v9 = vpack.c.bf16 %v24824_v41, %v24823_v3 }
 0x434   :  { %17289 = vmatpush3.bf16.msra.mxu0 %v21906_v29  ;;  %14972 = vmatmul.mubr.f32.vlgmr.msra.gmra.mrb[4].mxu1 %v22079_v37  ;;  %v17606_v37 = vpack.c.bf16 %v24821_v19, %v24820_v2  ;;  %v17612_v14 = vpack.c.bf16 %v24830_v54, %v24829_v18  ;;  %v17327_v26 = vpack.c.bf16 %v24832_v38, %v24831_v48  ;;  %v8009_v46 = vand.u32 4294901760, %v10876_v36  ;;  %v10917_v19 = vld [vmem:[%s23951_s3 + $0x3b0] sm:$0xff]  ;;  %v10919_v18 = vld [vmem:[%s23951_s3 + $0x3c0] sm:$0xff]  ;;  %v10920_v54 = vld [vmem:[%s23951_s3 + $0x3c8] sm:$0xff] }
 0x435   :  { %17577 = vmatpush3.bf16.msra.mxu1 %v24794_v25  ;;  %17290 = vmatprep.subr.bf16.mxu0 %v24307_v56  ;;  %v17618_v43 = vpack.c.bf16 %v24836_v15, %v24835_v42  ;;  %v17333_v7 = vpack.c.bf16 %v24837_v57, %v6190_v28  ;;  %v9330_v49 = vand.u32 4294901760, %v10911_v17  ;;  %v10877_v28 = vld [vmem:[%s23951_s3 + $0x310] sm:$0xff]  ;;  %v9294_v57 = vld [vmem:[%s9293_s8] sm:$0xff]  ;;  %v9354_v59 = vand.u32 4294901760, %v10919_v18 }
 0x436   :  { %17578 = vmatprep.subr.bf16.mxu1 %v24307_v56  ;;  %14586 = vmatprep.mubr.msk.f32.mxu0 %vm18420_vm0, %v24322_v63  ;;  %v10885_v15 = vld [vmem:[%s23951_s3 + $0x350] sm:$0xff] }
 0x437   :  { %15006 = vmatprep.mubr.msk.f32.mxu1 %vm18420_vm0, %v24322_v63 }
 0x438   :  { %17292 = vmatpush3.bf16.msra.mxu0 %v24795_v47 }
 0x439   :  { %17580 = vmatpush3.bf16.msra.mxu1 %v24796_v6  ;;  %17293 = vmatprep.subr.bf16.mxu0 %v24307_v56 }
 0x43a   :  { %17581 = vmatprep.subr.bf16.mxu1 %v24307_v56 }
 0x43c   :  { %17295 = vmatpush3.bf16.msra.mxu0 %v24797_v40 }
 0x43d   :  { %17583 = vmatpush3.bf16.msra.mxu1 %v24798_v45  ;;  %17296 = vmatprep.subr.bf16.mxu0 %v24307_v56 }
 0x43e   :  { %17584 = vmatprep.subr.bf16.mxu1 %v24307_v56 }
 0x440   :  { %17298 = vmatpush3.bf16.msra.mxu0 %v24799_v23 }
 0x441   :  { %17586 = vmatpush3.bf16.msra.mxu1 %v24800_v5  ;;  %17299 = vmatprep.subr.bf16.mxu0 %v24307_v56 }
 0x442   :  { %17587 = vmatprep.subr.bf16.mxu1 %v24307_v56 }
 0x444   :  { %17301 = vmatpush3.bf16.msra.mxu0 %v24801_v21 }
 0x445   :  { %17589 = vmatpush3.bf16.msra.mxu1 %v24802_v16  ;;  %17302 = vmatprep.subr.bf16.mxu0 %v24307_v56 }
 0x446   :  { %17590 = vmatprep.subr.bf16.mxu1 %v24307_v56 }
 0x448   :  { %17304 = vmatpush3.bf16.msra.mxu0 %v24803_v61 }
 0x449   :  { %17592 = vmatpush3.bf16.msra.mxu1 %v24804_v51  ;;  %17305 = vmatprep.subr.bf16.mxu0 %v24307_v56 }
 0x44a   :  { %17593 = vmatprep.subr.bf16.mxu1 %v24307_v56 }
 0x44c   :  { %17307 = vmatpush3.bf16.msra.mxu0 %v24805_v60 }
 0x44d   :  { %17595 = vmatpush3.bf16.msra.mxu1 %v24806_v12  ;;  %17308 = vmatprep.subr.bf16.mxu0 %v24307_v56 }
 0x44e   :  { %17596 = vmatprep.subr.bf16.mxu1 %v24307_v56 }
 0x450   :  { %17310 = vmatpush3.bf16.msra.mxu0 %v22182_v52 }
 0x451   :  { %17598 = vmatpush3.bf16.msra.mxu1 %v24809_v24  ;;  %17311 = vmatprep.subr.bf16.mxu0 %v24307_v56 }
 0x452   :  { %17599 = vmatprep.subr.bf16.mxu1 %v24307_v56 }
 0x453   :  { %14587 = vmatmul.mubr.f32.vlgmr.msra.gmra.mrb[4].mxu0 %v24812_v50 }
 0x454   :  { %17313 = vmatpush3.bf16.msra.mxu0 %v17312_v31  ;;  %15007 = vmatmul.mubr.f32.vlgmr.msra.gmra.mrb[4].mxu1 %v24813_v58  ;;  %v17609_v58 = vpack.c.bf16 %v24826_v4, %v24825_v22  ;;  %v10883_v22 = vld [vmem:[%s23951_s3 + $0x340] sm:$0xff]  ;;  %v10884_v4 = vld [vmem:[%s23951_s3 + $0x348] sm:$0xff] }
 0x455   :  { %17601 = vmatpush3.bf16.msra.mxu1 %v17600_v53  ;;  %17314 = vmatprep.subr.bf16.mxu0 %v24307_v56  ;;  %v24822_v53 = vld [vmem:[#allocation27_spill] sm:$0xff]  ;;  %v8033_v42 = vand.u32 4294901760, %v10884_v4 }
 0x456   :  { %17602 = vmatprep.subr.bf16.mxu1 %v24307_v56  ;;  %14621 = vmatprep.mubr.msk.f32.mxu0 %vm18420_vm0, %v24322_v63 }
 0x457   :  { %15041 = vmatprep.mubr.msk.f32.mxu1 %vm18420_vm0, %v24322_v63 }
 0x458   :  { %17316 = vmatpush3.bf16.msra.mxu0 %v17315_v55  ;;  %v17324_v55 = vpack.c.bf16 %v24828_v0, %v24827_v20  ;;  %v9348_v0 = vand.u32 4294901760, %v10917_v19 }
 0x459   :  { %17604 = vmatpush3.bf16.msra.mxu1 %v17603_v30  ;;  %17317 = vmatprep.subr.bf16.mxu0 %v24307_v56  ;;  %v17615_v30 = vpack.c.bf16 %v24834_v35, %v24833_v8  ;;  %v7970_v8 = vld [vmem:[%s7969_s27] sm:$0xff] }
 0x45a   :  { %v10617_v50 = vpop.permute.xlu0 %10616  ;;  %17605 = vmatprep.subr.bf16.mxu1 %v24307_v56 }
 0x45b   :  { %v10629_v31 = vsel %vm10627_vm1, %v24822_v53, %v10617_v50  ;;  %v22643_v53 = vsub.f32 %v10876_v36, %v8009_v46 }
 0x45c   :  { %10633 = vst [vmem:[%s23952_s4 + $0x8] sm:$0xff] %v10629_v31  ;;  %17319 = vmatpush3.bf16.msra.mxu0 %v17318_v44  ;;  %v22650_v31 = vsub.f32 %v10911_v17, %v9330_v49 }
 0x45d   :  { %17607 = vmatpush3.bf16.msra.mxu1 %v17606_v37  ;;  %17320 = vmatprep.subr.bf16.mxu0 %v24307_v56  ;;  %v10918_v37 = vld [vmem:[%s23951_s3 + $0x3b8] sm:$0xff] }
 0x45e   :  { %17608 = vmatprep.subr.bf16.mxu1 %v24307_v56 }
 0x460   :  { %17322 = vmatpush3.bf16.msra.mxu0 %v17321_v9 }
 0x461   :  { %17610 = vmatpush3.bf16.msra.mxu1 %v17609_v58  ;;  %17323 = vmatprep.subr.bf16.mxu0 %v24307_v56  ;;  %v22664_v58 = vsub.f32 %v10912_v13, %v9333_v62  ;;  %v10921_v13 = vld [vmem:[%s23951_s3 + $0x3d0] sm:$0xff] }
 0x462   :  { %17611 = vmatprep.subr.bf16.mxu1 %v24307_v56 }
 0x464   :  { %17325 = vmatpush3.bf16.msra.mxu0 %v17324_v55  ;;  %v9351_v55 = vand.u32 4294901760, %v10918_v37 }
 0x465   :  { %17613 = vmatpush3.bf16.msra.mxu1 %v17612_v14  ;;  %17326 = vmatprep.subr.bf16.mxu0 %v24307_v56 }
 0x466   :  { %17614 = vmatprep.subr.bf16.mxu1 %v24307_v56  ;;  %v22706_v17 = vpack.c.bf16 %v9351_v55, %v9348_v0 }
 0x468   :  { %17328 = vmatpush3.bf16.msra.mxu0 %v17327_v26  ;;  %24846 = vst [vmem:[#allocation11_spill] sm:$0xff] %v22706_v17 }
 0x469   :  { %17616 = vmatpush3.bf16.msra.mxu1 %v17615_v30  ;;  %17329 = vmatprep.subr.bf16.mxu0 %v24307_v56 }
 0x46a   :  { %17617 = vmatprep.subr.bf16.mxu1 %v24307_v56 }
 0x46c   :  { %17331 = vmatpush3.bf16.msra.mxu0 %v17330_v10  ;;  %v8030_v10 = vand.u32 4294901760, %v10883_v22 }
 0x46d   :  { %17619 = vmatpush3.bf16.msra.mxu1 %v17618_v43  ;;  %17332 = vmatprep.subr.bf16.mxu0 %v24307_v56  ;;  %v10886_v43 = vld [vmem:[%s23951_s3 + $0x358] sm:$0xff] }
 0x46e   :  { %17620 = vmatprep.subr.bf16.mxu1 %v24307_v56 }
 0x470   :  { %17334 = vmatpush3.bf16.msra.mxu0 %v17333_v7 }
 0x471   :  { %17622 = vmatpush3.bf16.msra.mxu1 %v17621_v1  ;;  %17335 = vmatprep.subr.bf16.mxu0 %v24307_v56  ;;  %v9357_v1 = vand.u32 4294901760, %v10920_v54 }
 0x472   :  { %17623 = vmatprep.subr.bf16.mxu1 %v24307_v56 }
 0x473   :  { %14622 = vmatmul.mubr.f32.vlgmr.msra.gmra.mrb[4].mxu0 %v22024_v39 }
 0x474   :  { %17337 = vmatpush3.bf16.msra.mxu0 %v21906_v29  ;;  %15042 = vmatmul.mubr.f32.vlgmr.msra.gmra.mrb[4].mxu1 %v22029_v34  ;;  %v10875_v29 = vld [vmem:[%s23951_s3 + $0x300] sm:$0xff] }
 0x475   :  { %17625 = vmatpush3.bf16.msra.mxu1 %v24794_v25  ;;  %17338 = vmatprep.subr.bf16.mxu0 %v24307_v56  ;;  %v8006_v27 = vand.u32 4294901760, %v10875_v29  ;;  %v10878_v25 = vld [vmem:[%s23951_s3 + $0x318] sm:$0xff] }
 0x476   :  { %17626 = vmatprep.subr.bf16.mxu1 %v24307_v56  ;;  %14656 = vmatprep.mubr.msk.f32.mxu0 %vm18420_vm0, %v24322_v63 }
 0x477   :  { %15076 = vmatprep.mubr.msk.f32.mxu1 %vm18420_vm0, %v24322_v63  ;;  %v22641_v50 = vsub.f32 %v10875_v29, %v8006_v27 }
 0x478   :  { %17340 = vmatpush3.bf16.msra.mxu0 %v24795_v47  ;;  %v10913_v47 = vld [vmem:[%s23951_s3 + $0x390] sm:$0xff] }
 0x479   :  { %17628 = vmatpush3.bf16.msra.mxu1 %v24796_v6  ;;  %17341 = vmatprep.subr.bf16.mxu0 %v24307_v56  ;;  %v10914_v6 = vld [vmem:[%s23951_s3 + $0x398] sm:$0xff] }
 0x47a   :  { %17629 = vmatprep.subr.bf16.mxu1 %v24307_v56 }
 0x47c   :  { %17343 = vmatpush3.bf16.msra.mxu0 %v24797_v40  ;;  %v22596_v40 = vpack.c.bf16 %v8009_v46, %v8006_v27  ;;  %v10922_v27 = vld [vmem:[%s23951_s3 + $0x3d8] sm:$0xff]  ;;  %v22714_v46 = vand.u32 4294901760, %v7970_v8 }
 0x47d   :  { %17631 = vmatpush3.bf16.msra.mxu1 %v24798_v45  ;;  %17344 = vmatprep.subr.bf16.mxu0 %v24307_v56  ;;  %v8012_v45 = vand.u32 4294901760, %v10877_v28 }
 0x47e   :  { %17632 = vmatprep.subr.bf16.mxu1 %v24307_v56 }
 0x47f   :  { %v22676_v14 = vsub.f32 %v10877_v28, %v8012_v45  ;;  %v8039_v28 = vand.u32 4294901760, %v10886_v43 }
 0x480   :  { %17346 = vmatpush3.bf16.msra.mxu0 %v24799_v23  ;;  %v8015_v23 = vand.u32 4294901760, %v10878_v25 }
 0x481   :  { %17634 = vmatpush3.bf16.msra.mxu1 %v24800_v5  ;;  %17347 = vmatprep.subr.bf16.mxu0 %v24307_v56  ;;  %v22600_v5 = vpack.c.bf16 %v9333_v62, %v9330_v49  ;;  %v8036_v62 = vand.u32 4294901760, %v10885_v15 }
 0x482   :  { %17635 = vmatprep.subr.bf16.mxu1 %v24307_v56  ;;  %v22678_v48 = vsub.f32 %v10878_v25, %v8015_v23  ;;  %v22719_v25 = vand.u32 4294901760, %v9294_v57 }
 0x483   :  { %24840 = vst [vmem:[#allocation20_spill] sm:$0xff] %v22600_v5 }
 0x484   :  { %17349 = vmatpush3.bf16.msra.mxu0 %v24801_v21  ;;  %v9336_v21 = vand.u32 4294901760, %v10913_v47 }
 0x485   :  { %17637 = vmatpush3.bf16.msra.mxu1 %v24802_v16  ;;  %17350 = vmatprep.subr.bf16.mxu0 %v24307_v56  ;;  %v9339_v16 = vand.u32 4294901760, %v10914_v6 }
 0x486   :  { %17638 = vmatprep.subr.bf16.mxu1 %v24307_v56  ;;  %v22680_v38 = vsub.f32 %v10913_v47, %v9336_v21  ;;  %v22721_v47 = vsub.f32 %v10917_v19, %v9348_v0  ;;  %v22765_v19 = vpack.c.bf16 %v8039_v28, %v8036_v62 }
 0x487   :  { %v22623_v33 = vpack.c.bf16 %v9339_v16, %v9336_v21  ;;  %v22682_v26 = vsub.f32 %v10914_v6, %v9339_v16  ;;  %v22723_v6 = vsub.f32 %v10918_v37, %v9351_v55  ;;  %v22730_v21 = vsub.f32 %v10884_v4, %v8033_v42 }
 0x488   :  { %17352 = vmatpush3.bf16.msra.mxu0 %v24803_v61  ;;  %v10879_v61 = vld [vmem:[%s23951_s3 + $0x320] sm:$0xff]  ;;  %v22732_v16 = vpack.c.bf16 %v9357_v1, %v9354_v59  ;;  %24849 = vst [vmem:[#allocation14_spill] sm:$0xff] %v22765_v19  ;;  %v24214_v37 = vand.u32 4294901760, %v22643_v53  ;;  %v24220_v55 = vand.u32 4294901760, %v22664_v58 }
 0x489   :  { %17640 = vmatpush3.bf16.msra.mxu1 %v24804_v51  ;;  %17353 = vmatprep.subr.bf16.mxu0 %v24307_v56  ;;  %v10915_v51 = vld [vmem:[%s23951_s3 + $0x3a0] sm:$0xff]  ;;  %24842 = vst [vmem:[#allocation7_spill] sm:$0xff] %v22623_v33 }
 0x48a   :  { %17641 = vmatprep.subr.bf16.mxu1 %v24307_v56  ;;  %v9342_v44 = vand.u32 4294901760, %v10915_v51  ;;  %24848 = vst [vmem:[#allocation13_spill] sm:$0xff] %v22732_v16 }
 0x48c   :  { %17355 = vmatpush3.bf16.msra.mxu0 %v24805_v60  ;;  %v10916_v60 = vld [vmem:[%s23951_s3 + $0x3a8] sm:$0xff]  ;;  %v22696_v7 = vsub.f32 %v10915_v51, %v9342_v44  ;;  %v22737_v51 = vld [vmem:[%s23951_s3 + $0x360] sm:$0xff] }
 0x48d   :  { %17643 = vmatpush3.bf16.msra.mxu1 %v24806_v12  ;;  %17356 = vmatprep.subr.bf16.mxu0 %v24307_v56  ;;  %v22618_v12 = vpack.c.bf16 %v8015_v23, %v8012_v45  ;;  %v9345_v2 = vand.u32 4294901760, %v10916_v60  ;;  %v22725_v45 = vpack.c.bf16 %v8033_v42, %v8030_v10  ;;  %v22727_v23 = vsub.f32 %v10883_v22, %v8030_v10 }
 0x48e   :  { %17644 = vmatprep.subr.bf16.mxu1 %v24307_v56  ;;  %v22772_v22 = vsub.f32 %v10885_v15, %v8036_v62  ;;  %v8042_v4 = vand.u32 4294901760, %v22737_v51  ;;  %v8107_v62 = vsub.f32 %v22643_v53, %v24214_v37 }
 0x48f   :  { %24841 = vst [vmem:[#allocation6_spill] sm:$0xff] %v22618_v12  ;;  %v22668_v20 = vpack.c.bf16 %v9345_v2, %v9342_v44  ;;  %v22701_v29 = vsub.f32 %v10916_v60, %v9345_v2  ;;  %24847 = vst [vmem:[#allocation12_spill] sm:$0xff] %v22725_v45  ;;  %v22742_v60 = vld [vmem:[%s23951_s3 + $0x368] sm:$0xff]  ;;  %v22753_v44 = vld [vmem:[%s23951_s3 + $0x3e0] sm:$0xff] }
 0x490   :  { %17358 = vmatpush3.bf16.msra.mxu0 %v22182_v52  ;;  %v10880_v52 = vld [vmem:[%s23951_s3 + $0x328] sm:$0xff]  ;;  %v8045_v0 = vand.u32 4294901760, %v22742_v60  ;;  %v24852_v37 = vand.u32 4294901760, %v22753_v44 }
 0x491   :  { %17646 = vmatpush3.bf16.msra.mxu1 %v24809_v24  ;;  %17647 = vmatprep.subr.bf16.mxu0 %v24307_v56  ;;  %v8018_v24 = vand.u32 4294901760, %v10879_v61  ;;  %v8021_v32 = vand.u32 4294901760, %v10880_v52  ;;  %24844 = vst [vmem:[#allocation9_spill] sm:$0xff] %v22668_v20  ;;  %v22758_v2 = vld [vmem:[%s23951_s3 + $0x3e8] sm:$0xff] }
 0x492   :  { %17935 = vmatprep.subr.bf16.mxu1 %v24307_v56 }
 0x493   :  { %14657 = vmatmul.mubr.f32.vlgmr.msra.gmra.mrb[4].mxu0 %v22024_v39  ;;  %v10881_v39 = vld [vmem:[%s23951_s3 + $0x330] sm:$0xff]  ;;  %v22653_v3 = vpack.c.bf16 %v8021_v32, %v8018_v24  ;;  %v22685_v35 = vsub.f32 %v10879_v61, %v8018_v24  ;;  %v22687_v30 = vsub.f32 %v10880_v52, %v8021_v32  ;;  %v9360_v61 = vand.u32 4294901760, %v10921_v13 }
 0x494   :  { %15077 = vmatmul.mubr.f32.vlgmr.msra.gmra.mrb[4].mxu1 %v22029_v34  ;;  %17649 = vmatpush3.bf16.msra.mxu0 %v22596_v40  ;;  %v10882_v34 = vld [vmem:[%s23951_s3 + $0x338] sm:$0xff]  ;;  %v8024_v41 = vand.u32 4294901760, %v10881_v39  ;;  %v9363_v52 = vand.u32 4294901760, %v10922_v27  ;;  %v22746_v24 = vsub.f32 %v10919_v18, %v9354_v59  ;;  %v22748_v32 = vsub.f32 %v10920_v54, %v9357_v1 }
 0x495   :  { %17937 = vmatpush3.bf16.msra.mxu1 %v22600_v5  ;;  %17650 = vmatprep.subr.bf16.mxu0 %v24307_v56  ;;  %24843 = vst [vmem:[#allocation8_spill] sm:$0xff] %v22653_v3  ;;  %v8027_v9 = vand.u32 4294901760, %v10882_v34  ;;  %v22778_v18 = vsub.f32 %v10886_v43, %v8039_v28  ;;  %v22786_v42 = vsub.f32 %v10921_v13, %v9360_v61  ;;  %v22798_v43 = vld [vmem:[%s23951_s3 + $0x378] sm:$0xff]  ;;  %v22808_v13 = vld [vmem:[%s23951_s3 + $0x3f0] sm:$0xff]  ;;  %v24853_v28 = vand.u32 4294901760, %v22758_v2 }
 0x496   :  { %17938 = vmatprep.subr.bf16.mxu1 %v24307_v56  ;;  %15111 = vmatprep.mubr.msk.f32.mxu0 %vm18420_vm0, %v24322_v63  ;;  %v22704_v36 = vsub.f32 %v10881_v39, %v8024_v41  ;;  %v22761_v39 = vsub.f32 %v7970_v8, %v22714_v46  ;;  %v22780_v54 = vpack.c.bf16 %v9363_v52, %v9360_v61  ;;  %v24858_v8 = vand.u32 4294901760, %v22678_v48 }
 0x497   :  { %15531 = vmatprep.mubr.msk.f32.mxu1 %vm18420_vm0, %v24322_v63  ;;  %v22698_v11 = vpack.c.bf16 %v8027_v9, %v8024_v41  ;;  %v22717_v49 = vsub.f32 %v10882_v34, %v8027_v9  ;;  %v24213_v34 = vand.u32 4294901760, %v22641_v50  ;;  %v22769_v41 = vsub.f32 %v9294_v57, %v22719_v25  ;;  %v22793_v57 = vld [vmem:[%s23951_s3 + $0x370] sm:$0xff] }
 0x498   :  { %17652 = vmatpush3.bf16.msra.mxu0 %v22618_v12  ;;  %v24217_v9 = vand.u32 4294901760, %v22650_v31  ;;  %24850 = vst [vmem:[#allocation15_spill] sm:$0xff] %v22780_v54  ;;  %v22788_v15 = vsub.f32 %v10922_v27, %v9363_v52  ;;  %v22813_v27 = vld [vmem:[%s23951_s3 + $0x3f8] sm:$0xff]  ;;  %v9431_v59 = vsub.f32 %v22664_v58, %v24220_v55  ;;  %v24855_v10 = vand.u32 4294901760, %v22761_v39 }
 0x499   :  { %17940 = vmatpush3.bf16.msra.mxu1 %v22623_v33  ;;  %17653 = vmatprep.subr.bf16.mxu0 %v24307_v56  ;;  %24845 = vst [vmem:[#allocation10_spill] sm:$0xff] %v22698_v11  ;;  %v8100_v1 = vsub.f32 %v22641_v50, %v24213_v34  ;;  %v22823_v34 = vpack.c.bf16 %v8045_v0, %v8042_v4  ;;  %v24856_v52 = vand.u32 4294901760, %v22769_v41  ;;  %v24866_v12 = vand.u32 4294901760, %v22685_v35 }
 0x49a   :  { %17941 = vmatprep.subr.bf16.mxu1 %v24307_v56  ;;  %v9424_v61 = vsub.f32 %v22650_v31, %v24217_v9  ;;  %v9432_v55 = vand.u32 4294901760, %v9431_v59 }
 0x49b   :  { %24851 = vst [vmem:[#allocation16_spill] sm:$0xff] %v22823_v34  ;;  %v8128_v5 = vsub.f32 %v22685_v35, %v24866_v12  ;;  %v24869_v12 = vand.u32 4294901760, %v22701_v29 }
 0x49c   :  { %17655 = vmatpush3.bf16.msra.mxu0 %v22653_v3  ;;  %v9425_v9 = vand.u32 4294901760, %v9424_v61  ;;  %v24860_v61 = vand.u32 4294901760, %v22793_v57 }
 0x49d   :  { %17943 = vmatpush3.bf16.msra.mxu1 %v22668_v20  ;;  %17656 = vmatprep.subr.bf16.mxu0 %v24307_v56  ;;  %v24862_v20 = vand.u32 4294901760, %v22682_v26 }
 0x49e   :  { %17944 = vmatprep.subr.bf16.mxu1 %v24307_v56 }
 0x4a0   :  { %17658 = vmatpush3.bf16.msra.mxu0 %v22698_v11  ;;  %v8121_v11 = vsub.f32 %v22678_v48, %v24858_v8  ;;  %v9445_v8 = vsub.f32 %v22682_v26, %v24862_v20 }
 0x4a1   :  { %17946 = vmatpush3.bf16.msra.mxu1 %v22706_v17  ;;  %17659 = vmatprep.subr.bf16.mxu0 %v24307_v56 }
 0x4a2   :  { %17947 = vmatprep.subr.bf16.mxu1 %v24307_v56 }
 0x4a4   :  { %17661 = vmatpush3.bf16.msra.mxu0 %v22725_v45  ;;  %v9413_v45 = vsub.f32 %v22769_v41, %v24856_v52  ;;  %v22863_v52 = vsub.f32 %v22737_v51, %v8042_v4  ;;  %v24863_v51 = vand.u32 4294901760, %v22808_v13  ;;  %v24864_v4 = vand.u32 4294901760, %v22813_v27 }
 0x4a5   :  { %17949 = vmatpush3.bf16.msra.mxu1 %v22732_v16  ;;  %17662 = vmatprep.subr.bf16.mxu0 %v24307_v56  ;;  %v22835_v16 = vpack.c.bf16 %v24853_v28, %v24852_v37  ;;  %v8101_v37 = vand.u32 4294901760, %v8100_v1  ;;  %v8108_v28 = vand.u32 4294901760, %v8107_v62 }
 0x4a6   :  { %17950 = vmatprep.subr.bf16.mxu1 %v24307_v56  ;;  %v22884_v62 = vpack.c.bf16 %v24864_v4, %v24863_v51  ;;  %v9446_v51 = vand.u32 4294901760, %v9445_v8  ;;  %v24867_v4 = vand.u32 4294901760, %v22687_v30 }
 0x4a7   :  { %24854 = vst [vmem:[#allocation17_spill] sm:$0xff] %v22835_v16  ;;  %v17672_v3 = vpack.c.bf16 %v8108_v28, %v8101_v37  ;;  %v24870_v37 = vand.u32 4294901760, %v22753_v44 }
 0x4a8   :  { %17664 = vmatpush3.bf16.msra.mxu0 %v22765_v19  ;;  %v8089_v19 = vsub.f32 %v22761_v39, %v24855_v10  ;;  %v24859_v10 = vand.u32 4294901760, %v22680_v38  ;;  %24865 = vst [vmem:[#allocation22_spill] sm:$0xff] %v22884_v62 }
 0x4a9   :  { %17952 = vmatpush3.bf16.msra.mxu1 %v22780_v54  ;;  %17665 = vmatprep.subr.bf16.mxu0 %v24307_v56  ;;  %v24857_v54 = vand.u32 4294901760, %v22676_v14  ;;  %v22911_v28 = vsub.f32 %v22753_v44, %v24870_v37 }
 0x4aa   :  { %17953 = vmatprep.subr.bf16.mxu1 %v24307_v56  ;;  %v9438_v1 = vsub.f32 %v22680_v38, %v24859_v10  ;;  %v22876_v10 = vsub.f32 %v22742_v60, %v8045_v0  ;;  %v8090_v20 = vand.u32 4294901760, %v8089_v19  ;;  %v9414_v60 = vand.u32 4294901760, %v9413_v45 }
 0x4ab   :  { %v8114_v17 = vsub.f32 %v22676_v14, %v24857_v54  ;;  %v24861_v54 = vand.u32 4294901760, %v22798_v43  ;;  %v9459_v45 = vsub.f32 %v22701_v29, %v24869_v12  ;;  %v24244_v19 = vand.u32 4294901760, %v22748_v32 }
 0x4ac   :  { %17667 = vmatpush3.bf16.msra.mxu0 %v22823_v34  ;;  %v17960_v34 = vpack.c.bf16 %v9432_v55, %v9425_v9  ;;  %v9439_v33 = vand.u32 4294901760, %v9438_v1  ;;  %v8129_v9 = vand.u32 4294901760, %v8128_v5  ;;  %v24873_v5 = vand.u32 4294901760, %v22721_v47 }
 0x4ad   :  { %v22869_v59 = vpack.c.bf16 %v24861_v54, %v24860_v61  ;;  %17955 = vmatpush3.bf16.msra.mxu1 %v22835_v16  ;;  %17668 = vmatprep.subr.bf16.mxu0 %v24307_v56  ;;  %v8115_v0 = vand.u32 4294901760, %v8114_v17  ;;  %v8122_v16 = vand.u32 4294901760, %v8121_v11  ;;  %v8135_v54 = vsub.f32 %v22687_v30, %v24867_v4 }
 0x4ae   :  { %17956 = vmatprep.subr.bf16.mxu1 %v24307_v56  ;;  %v24243_v61 = vand.u32 4294901760, %v22704_v36  ;;  %v24868_v11 = vand.u32 4294901760, %v22696_v7  ;;  %v17963_v44 = vpack.c.bf16 %v9446_v51, %v9439_v33  ;;  %v24872_v4 = vand.u32 4294901760, %v22717_v49 }
 0x4af   :  { %v17675_v55 = vpack.c.bf16 %v8122_v16, %v8115_v0  ;;  %v8136_v37 = vand.u32 4294901760, %v8135_v54  ;;  %v9460_v16 = vand.u32 4294901760, %v9459_v45  ;;  %v24874_v33 = vand.u32 4294901760, %v22723_v6 }
 0x4b0   :  { %17670 = vmatpush3.bf16.msra.mxu0 %v22869_v59  ;;  %v9452_v17 = vsub.f32 %v22696_v7, %v24868_v11  ;;  %v24871_v11 = vand.u32 4294901760, %v22758_v2  ;;  %v8142_v8 = vsub.f32 %v22704_v36, %v24243_v61  ;;  %v8149_v1 = vsub.f32 %v22717_v49, %v24872_v4 }
 0x4b1   :  { %17958 = vmatpush3.bf16.msra.mxu1 %v22884_v62  ;;  %17671 = vmatprep.subr.bf16.mxu0 %v24307_v56  ;;  %v9473_v54 = vsub.f32 %v22723_v6, %v24874_v33  ;;  %v24877_v51 = vand.u32 4294901760, %v22746_v24  ;;  %v24878_v4 = vand.u32 4294901760, %v22793_v57  ;;  %v24881_v45 = vand.u32 4294901760, %v22778_v18 }
 0x4b2   :  { %17959 = vmatprep.subr.bf16.mxu1 %v24307_v56  ;;  %v22920_v12 = vsub.f32 %v22758_v2, %v24871_v11  ;;  %v9453_v2 = vand.u32 4294901760, %v9452_v17  ;;  %v8150_v61 = vand.u32 4294901760, %v8149_v1  ;;  %v24880_v1 = vand.u32 4294901760, %v22772_v22 }
 0x4b3   :  { %15112 = vmatmul.mubr.f32.vlgmr.msra.gmra.mrb[6].mxu0 %v8090_v20  ;;  %v24875_v20 = vand.u32 4294901760, %v22727_v23  ;;  %v9480_v17 = vsub.f32 %v22746_v24, %v24877_v51  ;;  %v22952_v11 = vsub.f32 %v22793_v57, %v24878_v4  ;;  %v8143_v51 = vand.u32 4294901760, %v8142_v8 }
 0x4b4   :  { %17673 = vmatpush3.bf16.msra.mxu0 %v17672_v3  ;;  %15532 = vmatmul.mubr.f32.vlgmr.msra.gmra.mrb[6].mxu1 %v9414_v60  ;;  %v9466_v3 = vsub.f32 %v22721_v47, %v24873_v5  ;;  %v9487_v5 = vsub.f32 %v22748_v32, %v24244_v19  ;;  %v24879_v57 = vand.u32 4294901760, %v22798_v43  ;;  %v17966_v19 = vpack.c.bf16 %v9460_v16, %v9453_v2 }
 0x4b5   :  { %17961 = vmatpush3.bf16.msra.mxu1 %v17960_v34  ;;  %17674 = vmatprep.subr.bf16.mxu0 %v24307_v56  ;;  %v8156_v60 = vsub.f32 %v22727_v23, %v24875_v20  ;;  %v24876_v34 = vand.u32 4294901760, %v22730_v21  ;;  %v9474_v20 = vand.u32 4294901760, %v9473_v54  ;;  %v8170_v8 = vsub.f32 %v22772_v22, %v24880_v1 }
 0x4b6   :  { %17962 = vmatprep.subr.bf16.mxu1 %v24307_v56  ;;  %15146 = vmatprep.mubr.msk.f32.mxu0 %vm18420_vm0, %v24322_v63  ;;  %v22965_v4 = vsub.f32 %v22798_v43, %v24879_v57  ;;  %v9467_v33 = vand.u32 4294901760, %v9466_v3  ;;  %v8177_v43 = vsub.f32 %v22778_v18, %v24881_v45  ;;  %v8183_v16 = vand.u32 4294901760, %v22863_v52 }
 0x4b7   :  { %v8163_v0 = vsub.f32 %v22730_v21, %v24876_v34  ;;  %15566 = vmatprep.mubr.msk.f32.mxu1 %vm18420_vm0, %v24322_v63  ;;  %v17678_v34 = vpack.c.bf16 %v8136_v37, %v8129_v9  ;;  %v8157_v62 = vand.u32 4294901760, %v8156_v60  ;;  %v9481_v9 = vand.u32 4294901760, %v9480_v17 }
 0x4b8   :  { %17676 = vmatpush3.bf16.msra.mxu0 %v17675_v55  ;;  %v9488_v37 = vand.u32 4294901760, %v9487_v5  ;;  %v24883_v3 = vand.u32 4294901760, %v22808_v13  ;;  %v17681_v60 = vpack.c.bf16 %v8150_v61, %v8143_v51  ;;  %v8190_v5 = vand.u32 4294901760, %v22876_v10 }
 0x4b9   :  { %17964 = vmatpush3.bf16.msra.mxu1 %v17963_v44  ;;  %17677 = vmatprep.subr.bf16.mxu0 %v24307_v56  ;;  %v8164_v55 = vand.u32 4294901760, %v8163_v0  ;;  %v24882_v44 = vand.u32 4294901760, %v22786_v42  ;;  %v24884_v0 = vand.u32 4294901760, %v22788_v15  ;;  %v24885_v45 = vand.u32 4294901760, %v22813_v27 }
 0x4ba   :  { %17965 = vmatprep.subr.bf16.mxu1 %v24307_v56  ;;  %v22982_v54 = vsub.f32 %v22808_v13, %v24883_v3  ;;  %v17969_v1 = vpack.c.bf16 %v9474_v20, %v9467_v33  ;;  %v24248_v13 = vand.u32 4294901760, %v22911_v28  ;;  %v8171_v51 = vand.u32 4294901760, %v8170_v8 }
 0x4bb   :  { %v9494_v2 = vsub.f32 %v22786_v42, %v24882_v44  ;;  %v9501_v17 = vsub.f32 %v22788_v15, %v24884_v0  ;;  %v22991_v57 = vsub.f32 %v22813_v27, %v24885_v45  ;;  %v17684_v61 = vpack.c.bf16 %v8164_v55, %v8157_v62 }
 0x4bc   :  { %17679 = vmatpush3.bf16.msra.mxu0 %v17678_v34  ;;  %v24247_v34 = vand.u32 4294901760, %v22920_v12  ;;  %v17972_v44 = vpack.c.bf16 %v9488_v37, %v9481_v9  ;;  %v8178_v3 = vand.u32 4294901760, %v8177_v43  ;;  %v8184_v27 = vsub.f32 %v22863_v52, %v8183_v16 }
 0x4bd   :  { %17967 = vmatpush3.bf16.msra.mxu1 %v17966_v19  ;;  %17680 = vmatprep.subr.bf16.mxu0 %v24307_v56  ;;  %v9495_v0 = vand.u32 4294901760, %v9494_v2  ;;  %v9502_v19 = vand.u32 4294901760, %v9501_v17  ;;  %v8191_v33 = vsub.f32 %v22876_v10, %v8190_v5  ;;  %v8197_v20 = vand.u32 4294901760, %v22952_v11 }
 0x4be   :  { %17968 = vmatprep.subr.bf16.mxu1 %v24307_v56  ;;  %v24251_v45 = vand.u32 4294901760, %v22965_v4  ;;  %v9508_v62 = vsub.f32 %v22911_v28, %v24248_v13  ;;  %v9515_v55 = vsub.f32 %v22920_v12, %v24247_v34  ;;  %v24250_v9 = vand.u32 4294901760, %v22982_v54 }
 0x4bf   :  { %v24249_v8 = vand.u32 4294901760, %v22991_v57  ;;  %v17687_v37 = vpack.c.bf16 %v8178_v3, %v8171_v51  ;;  %v8185_v43 = vand.u32 4294901760, %v8184_v27  ;;  %v17975_v2 = vpack.c.bf16 %v9502_v19, %v9495_v0 }
 0x4c0   :  { %17682 = vmatpush3.bf16.msra.mxu0 %v17681_v60  ;;  %v8192_v60 = vand.u32 4294901760, %v8191_v33  ;;  %v8198_v17 = vsub.f32 %v22952_v11, %v8197_v20  ;;  %v9509_v34 = vand.u32 4294901760, %v9508_v62  ;;  %v9516_v13 = vand.u32 4294901760, %v9515_v55 }
 0x4c1   :  { %17970 = vmatpush3.bf16.msra.mxu1 %v17969_v1  ;;  %17683 = vmatprep.subr.bf16.mxu0 %v24307_v56  ;;  %v8205_v1 = vsub.f32 %v22965_v4, %v24251_v45  ;;  %v9522_v51 = vsub.f32 %v22982_v54, %v24250_v9  ;;  %v24904_v45 = vand.u32 4294901760, %v22761_v39 }
 0x4c2   :  { %17971 = vmatprep.subr.bf16.mxu1 %v24307_v56  ;;  %v17690_v3 = vpack.c.bf16 %v8192_v60, %v8185_v43  ;;  %v8199_v0 = vand.u32 4294901760, %v8198_v17  ;;  %v17987_v43 = vpack.c.bf16 %v22682_v26, %v22680_v38  ;;  %v17990_v60 = vpack.c.bf16 %v22701_v29, %v22696_v7 }
 0x4c3   :  { %v8206_v27 = vand.u32 4294901760, %v8205_v1  ;;  %v9523_v19 = vand.u32 4294901760, %v9522_v51  ;;  %v17705_v17 = vpack.c.bf16 %v22717_v49, %v22704_v36  ;;  %v17993_v1 = vpack.c.bf16 %v22723_v6, %v22721_v47 }
 0x4c4   :  { %17685 = vmatpush3.bf16.msra.mxu0 %v17684_v61  ;;  %v9529_v61 = vsub.f32 %v22991_v57, %v24249_v8  ;;  %v17708_v51 = vpack.c.bf16 %v22730_v21, %v22727_v23  ;;  %v24903_v8 = vand.u32 4294901760, %v22664_v58 }
 0x4c5   :  { %17973 = vmatpush3.bf16.msra.mxu1 %v17972_v44  ;;  %17686 = vmatprep.subr.bf16.mxu0 %v24307_v56  ;;  %v17978_v44 = vpack.c.bf16 %v9516_v13, %v9509_v34  ;;  %v17693_v62 = vpack.c.bf16 %v8206_v27, %v8199_v0  ;;  %v17984_v13 = vpack.c.bf16 %v22664_v58, %v22650_v31  ;;  %v24909_v58 = vand.u32 4294901760, %v22682_v26 }
 0x4c6   :  { %17974 = vmatprep.subr.bf16.mxu1 %v24307_v56  ;;  %v9530_v33 = vand.u32 4294901760, %v9529_v61  ;;  %v17699_v34 = vpack.c.bf16 %v22678_v48, %v22676_v14  ;;  %v17996_v61 = vpack.c.bf16 %v22748_v32, %v22746_v24  ;;  %v17999_v0 = vpack.c.bf16 %v22788_v15, %v22786_v42 }
 0x4c7   :  { %v17714_v27 = vpack.c.bf16 %v22876_v10, %v22863_v52  ;;  %v24913_v26 = vand.u32 4294901760, %v22701_v29  ;;  %v24919_v29 = vand.u32 4294901760, %v22730_v21  ;;  %v24925_v21 = vand.u32 4294901760, %v22788_v15 }
 0x4c8   :  { %17688 = vmatpush3.bf16.msra.mxu0 %v17687_v37  ;;  %v17981_v55 = vpack.c.bf16 %v9530_v33, %v9523_v19  ;;  %v17696_v37 = vpack.c.bf16 %v22643_v53, %v22641_v50  ;;  %v17717_v19 = vpack.c.bf16 %v22965_v4, %v22952_v11  ;;  %v18005_v33 = vpack.c.bf16 %v22991_v57, %v22982_v54  ;;  %v10896_v11 = vld [vmem:[%s23950_s2 + $0x388] sm:$0xff] }
 0x4c9   :  { %17976 = vmatpush3.bf16.msra.mxu1 %v17975_v2  ;;  %17689 = vmatprep.subr.bf16.mxu0 %v24307_v56  ;;  %v17702_v2 = vpack.c.bf16 %v22687_v30, %v22685_v35  ;;  %v24929_v52 = vand.u32 4294901760, %v22982_v54  ;;  %v24930_v10 = vand.u32 4294901760, %v22991_v57  ;;  %v9974_v57 = vand.u32 4294901760, %v10896_v11 }
 0x4ca   :  { %17977 = vmatprep.subr.bf16.mxu1 %v24307_v56 }
 0x4cc   :  { %17691 = vmatpush3.bf16.msra.mxu0 %v17690_v3  ;;  %v17711_v3 = vpack.c.bf16 %v22778_v18, %v22772_v22 }
 0x4cd   :  { %17979 = vmatpush3.bf16.msra.mxu1 %v17978_v44  ;;  %17692 = vmatprep.subr.bf16.mxu0 %v24307_v56  ;;  %v18002_v44 = vpack.c.bf16 %v22920_v12, %v22911_v28 }
 0x4ce   :  { %17980 = vmatprep.subr.bf16.mxu1 %v24307_v56 }
 0x4d0   :  { %17694 = vmatpush3.bf16.msra.mxu0 %v17693_v62  ;;  %v24886_v62 = vld [vmem:[#allocation20_spill] sm:$0xff] }
 0x4d1   :  { %17982 = vmatpush3.bf16.msra.mxu1 %v17981_v55  ;;  %17695 = vmatprep.subr.bf16.mxu0 %v24307_v56  ;;  %v24887_v55 = vld [vmem:[#allocation6_spill] sm:$0xff] }
 0x4d2   :  { %17983 = vmatprep.subr.bf16.mxu1 %v24307_v56 }
 0x4d3   :  { %15147 = vmatmul.mubr.f32.vlgmr.msra.gmra.mrb[6].mxu0 %v22714_v46 }
 0x4d4   :  { %17697 = vmatpush3.bf16.msra.mxu0 %v17696_v37  ;;  %15567 = vmatmul.mubr.f32.vlgmr.msra.gmra.mrb[6].mxu1 %v22719_v25  ;;  %v24888_v37 = vld [vmem:[#allocation7_spill] sm:$0xff] }
 0x4d5   :  { %17985 = vmatpush3.bf16.msra.mxu1 %v17984_v13  ;;  %17698 = vmatprep.subr.bf16.mxu0 %v24307_v56  ;;  %v24889_v13 = vld [vmem:[#allocation8_spill] sm:$0xff] }
 0x4d6   :  { %17986 = vmatprep.subr.bf16.mxu1 %v24307_v56  ;;  %15181 = vmatprep.mubr.msk.f32.mxu0 %vm18420_vm0, %v24322_v63 }
 0x4d7   :  { %15601 = vmatprep.mubr.msk.f32.mxu1 %vm18420_vm0, %v24322_v63 }
 0x4d8   :  { %17700 = vmatpush3.bf16.msra.mxu0 %v17699_v34  ;;  %v24890_v34 = vld [vmem:[#allocation9_spill] sm:$0xff] }
 0x4d9   :  { %17988 = vmatpush3.bf16.msra.mxu1 %v17987_v43  ;;  %17701 = vmatprep.subr.bf16.mxu0 %v24307_v56  ;;  %v24891_v43 = vld [vmem:[#allocation10_spill] sm:$0xff] }
 0x4da   :  { %17989 = vmatprep.subr.bf16.mxu1 %v24307_v56 }
 0x4dc   :  { %17703 = vmatpush3.bf16.msra.mxu0 %v17702_v2  ;;  %v24892_v2 = vld [vmem:[#allocation11_spill] sm:$0xff] }
 0x4dd   :  { %17991 = vmatpush3.bf16.msra.mxu1 %v17990_v60  ;;  %17704 = vmatprep.subr.bf16.mxu0 %v24307_v56  ;;  %v24893_v60 = vld [vmem:[#allocation12_spill] sm:$0xff] }
 0x4de   :  { %17992 = vmatprep.subr.bf16.mxu1 %v24307_v56 }
 0x4e0   :  { %17706 = vmatpush3.bf16.msra.mxu0 %v17705_v17  ;;  %v24894_v17 = vld [vmem:[#allocation13_spill] sm:$0xff] }
 0x4e1   :  { %17994 = vmatpush3.bf16.msra.mxu1 %v17993_v1  ;;  %17707 = vmatprep.subr.bf16.mxu0 %v24307_v56  ;;  %v24895_v1 = vld [vmem:[#allocation14_spill] sm:$0xff] }
 0x4e2   :  { %17995 = vmatprep.subr.bf16.mxu1 %v24307_v56 }
 0x4e4   :  { %17709 = vmatpush3.bf16.msra.mxu0 %v17708_v51  ;;  %v24896_v51 = vld [vmem:[#allocation15_spill] sm:$0xff] }
 0x4e5   :  { %17997 = vmatpush3.bf16.msra.mxu1 %v17996_v61  ;;  %17710 = vmatprep.subr.bf16.mxu0 %v24307_v56  ;;  %v24897_v61 = vld [vmem:[#allocation16_spill] sm:$0xff] }
 0x4e6   :  { %17998 = vmatprep.subr.bf16.mxu1 %v24307_v56 }
 0x4e8   :  { %17712 = vmatpush3.bf16.msra.mxu0 %v17711_v3  ;;  %v24898_v3 = vld [vmem:[#allocation17_spill] sm:$0xff] }
 0x4e9   :  { %18000 = vmatpush3.bf16.msra.mxu1 %v17999_v0  ;;  %17713 = vmatprep.subr.bf16.mxu0 %v24307_v56  ;;  %v24899_v0 = vand.u32 4294901760, %v22641_v50  ;;  %v24905_v50 = vand.u32 4294901760, %v22769_v41 }
 0x4ea   :  { %18001 = vmatprep.subr.bf16.mxu1 %v24307_v56 }
 0x4ec   :  { %17715 = vmatpush3.bf16.msra.mxu0 %v17714_v27  ;;  %v24900_v27 = vand.u32 4294901760, %v22643_v53  ;;  %v24906_v53 = vand.u32 4294901760, %v22676_v14  ;;  %v24910_v14 = vand.u32 4294901760, %v22685_v35  ;;  %v24916_v35 = vand.u32 4294901760, %v22721_v47 }
 0x4ed   :  { %18003 = vmatpush3.bf16.msra.mxu1 %v18002_v44  ;;  %17716 = vmatprep.subr.bf16.mxu0 %v24307_v56  ;;  %v24922_v47 = vand.u32 4294901760, %v22772_v22  ;;  %v24927_v22 = vand.u32 4294901760, %v22920_v12  ;;  %v10895_v12 = vld [vmem:[%s23950_s2 + $0x380] sm:$0xff] }
 0x4ee   :  { %18004 = vmatprep.subr.bf16.mxu1 %v24307_v56  ;;  %v17744_v44 = vpack.c.bf16 %v24900_v27, %v24899_v0  ;;  %v24907_v0 = vand.u32 4294901760, %v22678_v48  ;;  %v24911_v48 = vand.u32 4294901760, %v22687_v30  ;;  %v24917_v30 = vand.u32 4294901760, %v22723_v6 }
 0x4ef   :  { %v24923_v6 = vand.u32 4294901760, %v22778_v18 }
 0x4f0   :  { %17718 = vmatpush3.bf16.msra.mxu0 %v17717_v19  ;;  %v24901_v19 = vld [vmem:[#allocation22_spill] sm:$0xff]  ;;  %v17747_v27 = vpack.c.bf16 %v24907_v0, %v24906_v53 }
 0x4f1   :  { %18006 = vmatpush3.bf16.msra.mxu1 %v18005_v33  ;;  %17719 = vmatprep.subr.bf16.mxu0 %v24307_v56  ;;  %v24902_v33 = vand.u32 4294901760, %v22650_v31  ;;  %v24908_v31 = vand.u32 4294901760, %v22680_v38  ;;  %v24912_v38 = vand.u32 4294901760, %v22696_v7  ;;  %v24918_v7 = vand.u32 4294901760, %v22727_v23 }
 0x4f2   :  { %18007 = vmatprep.subr.bf16.mxu1 %v24307_v56  ;;  %v17759_v0 = vpack.c.bf16 %v24923_v6, %v24922_v47  ;;  %v24924_v23 = vand.u32 4294901760, %v22786_v42  ;;  %v24928_v42 = vand.u32 4294901760, %v22965_v4 }
 0x4f3   :  { %15182 = vmatmul.mubr.f32.vlgmr.msra.gmra.mrb[6].mxu0 %v22761_v39  ;;  %v18032_v9 = vpack.c.bf16 %v24903_v8, %v24902_v33  ;;  %v18035_v8 = vpack.c.bf16 %v24909_v58, %v24908_v31  ;;  %v17750_v39 = vpack.c.bf16 %v24911_v48, %v24910_v14  ;;  %v18041_v33 = vpack.c.bf16 %v24917_v30, %v24916_v35  ;;  %v10901_v48 = vld [vmem:[%s23950_s2 + $0x3b0] sm:$0xff]  ;;  %v10867_v35 = vld [vmem:[%s23950_s2 + $0x340] sm:$0xff]  ;;  %v10868_v30 = vld [vmem:[%s23950_s2 + $0x348] sm:$0xff] }
 0x4f4   :  { %17721 = vmatpush3.bf16.msra.mxu0 %v22596_v40  ;;  %15602 = vmatmul.mubr.f32.vlgmr.msra.gmra.mrb[6].mxu1 %v22769_v41  ;;  %v18038_v41 = vpack.c.bf16 %v24913_v26, %v24912_v38  ;;  %v17765_v15 = vpack.c.bf16 %v24928_v42, %v8197_v20  ;;  %v10861_v20 = vld [vmem:[%s23950_s2 + $0x310] sm:$0xff]  ;;  %v9291_v42 = vld [vmem:[%s9290_s28] sm:$0xff] }
 0x4f5   :  { %18009 = vmatpush3.bf16.msra.mxu1 %v24886_v62  ;;  %17722 = vmatprep.subr.bf16.mxu0 %v24307_v56 }
 0x4f6   :  { %18010 = vmatprep.subr.bf16.mxu1 %v24307_v56  ;;  %15216 = vmatprep.mubr.msk.f32.mxu0 %vm18420_vm0, %v24322_v63 }
 0x4f7   :  { %15636 = vmatprep.mubr.msk.f32.mxu1 %vm18420_vm0, %v24322_v63 }
 0x4f8   :  { %17724 = vmatpush3.bf16.msra.mxu0 %v24887_v55 }
 0x4f9   :  { %18012 = vmatpush3.bf16.msra.mxu1 %v24888_v37  ;;  %17725 = vmatprep.subr.bf16.mxu0 %v24307_v56 }
 0x4fa   :  { %18013 = vmatprep.subr.bf16.mxu1 %v24307_v56 }
 0x4fc   :  { %17727 = vmatpush3.bf16.msra.mxu0 %v24889_v13 }
 0x4fd   :  { %18015 = vmatpush3.bf16.msra.mxu1 %v24890_v34  ;;  %17728 = vmatprep.subr.bf16.mxu0 %v24307_v56 }
 0x4fe   :  { %18016 = vmatprep.subr.bf16.mxu1 %v24307_v56 }
 0x500   :  { %17730 = vmatpush3.bf16.msra.mxu0 %v24891_v43 }
 0x501   :  { %18018 = vmatpush3.bf16.msra.mxu1 %v24892_v2  ;;  %17731 = vmatprep.subr.bf16.mxu0 %v24307_v56 }
 0x502   :  { %18019 = vmatprep.subr.bf16.mxu1 %v24307_v56 }
 0x504   :  { %17733 = vmatpush3.bf16.msra.mxu0 %v24893_v60 }
 0x505   :  { %18021 = vmatpush3.bf16.msra.mxu1 %v24894_v17  ;;  %17734 = vmatprep.subr.bf16.mxu0 %v24307_v56 }
 0x506   :  { %18022 = vmatprep.subr.bf16.mxu1 %v24307_v56 }
 0x508   :  { %17736 = vmatpush3.bf16.msra.mxu0 %v24895_v1 }
 0x509   :  { %18024 = vmatpush3.bf16.msra.mxu1 %v24896_v51  ;;  %17737 = vmatprep.subr.bf16.mxu0 %v24307_v56 }
 0x50a   :  { %18025 = vmatprep.subr.bf16.mxu1 %v24307_v56 }
 0x50c   :  { %17739 = vmatpush3.bf16.msra.mxu0 %v24897_v61 }
 0x50d   :  { %18027 = vmatpush3.bf16.msra.mxu1 %v24898_v3  ;;  %17740 = vmatprep.subr.bf16.mxu0 %v24307_v56 }
 0x50e   :  { %18028 = vmatprep.subr.bf16.mxu1 %v24307_v56 }
 0x510   :  { %17742 = vmatpush3.bf16.msra.mxu0 %v22869_v59 }
 0x511   :  { %18030 = vmatpush3.bf16.msra.mxu1 %v24901_v19  ;;  %17743 = vmatprep.subr.bf16.mxu0 %v24307_v56 }
 0x512   :  { %18031 = vmatprep.subr.bf16.mxu1 %v24307_v56 }
 0x513   :  { %15217 = vmatmul.mubr.f32.vlgmr.msra.gmra.mrb[6].mxu0 %v24904_v45  ;;  %v24914_v45 = vand.u32 4294901760, %v22704_v36  ;;  %v24920_v36 = vand.u32 4294901760, %v22746_v24  ;;  %v17762_v24 = vpack.c.bf16 %v8190_v5, %v8183_v16  ;;  %v18053_v16 = vpack.c.bf16 %v24930_v10, %v24929_v52 }
 0x514   :  { %17745 = vmatpush3.bf16.msra.mxu0 %v17744_v44  ;;  %15637 = vmatmul.mubr.f32.vlgmr.msra.gmra.mrb[6].mxu1 %v24905_v50  ;;  %v17756_v50 = vpack.c.bf16 %v24919_v29, %v24918_v7  ;;  %v9971_v5 = vand.u32 4294901760, %v10895_v12  ;;  %v9989_v29 = vand.u32 4294901760, %v10901_v48 }
 0x515   :  { %18033 = vmatpush3.bf16.msra.mxu1 %v18032_v9  ;;  %17746 = vmatprep.subr.bf16.mxu0 %v24307_v56  ;;  %v24915_v9 = vand.u32 4294901760, %v22717_v49  ;;  %v24921_v49 = vand.u32 4294901760, %v22748_v32  ;;  %v24926_v32 = vand.u32 4294901760, %v22911_v28  ;;  %v10860_v28 = vld [vmem:[%s23950_s2 + $0x308] sm:$0xff] }
 0x516   :  { %18034 = vmatprep.subr.bf16.mxu1 %v24307_v56  ;;  %15251 = vmatprep.mubr.msk.f32.mxu0 %vm18420_vm0, %v24322_v63  ;;  %v8650_v54 = vand.u32 4294901760, %v10860_v28 }
 0x517   :  { %15671 = vmatprep.mubr.msk.f32.mxu1 %vm18420_vm0, %v24322_v63  ;;  %v17753_v44 = vpack.c.bf16 %v24915_v9, %v24914_v45  ;;  %v18044_v53 = vpack.c.bf16 %v24921_v49, %v24920_v36  ;;  %v18050_v18 = vpack.c.bf16 %v24927_v22, %v24926_v32  ;;  %v10903_v36 = vld [vmem:[%s23950_s2 + $0x3c0] sm:$0xff]  ;;  %v10904_v49 = vld [vmem:[%s23950_s2 + $0x3c8] sm:$0xff]  ;;  %v8674_v32 = vand.u32 4294901760, %v10868_v30  ;;  %v10869_v22 = vld [vmem:[%s23950_s2 + $0x350] sm:$0xff] }
 0x518   :  { %17748 = vmatpush3.bf16.msra.mxu0 %v17747_v27  ;;  %v18047_v27 = vpack.c.bf16 %v24925_v21, %v24924_v23  ;;  %v23325_v26 = vsub.f32 %v10860_v28, %v8650_v54  ;;  %v7967_v23 = vld [vmem:[%s7966_s23] sm:$0xff]  ;;  %v9995_v10 = vand.u32 4294901760, %v10903_v36 }
 0x519   :  { %18036 = vmatpush3.bf16.msra.mxu1 %v18035_v8  ;;  %17749 = vmatprep.subr.bf16.mxu0 %v24307_v56 }
 0x51a   :  { %18037 = vmatprep.subr.bf16.mxu1 %v24307_v56 }
 0x51c   :  { %17751 = vmatpush3.bf16.msra.mxu0 %v17750_v39  ;;  %v10902_v39 = vld [vmem:[%s23950_s2 + $0x3b8] sm:$0xff] }
 0x51d   :  { %18039 = vmatpush3.bf16.msra.mxu1 %v18038_v41  ;;  %17752 = vmatprep.subr.bf16.mxu0 %v24307_v56  ;;  %v23332_v41 = vsub.f32 %v10895_v12, %v9971_v5 }
 0x51e   :  { %18040 = vmatprep.subr.bf16.mxu1 %v24307_v56 }
 0x520   :  { %17754 = vmatpush3.bf16.msra.mxu0 %v17753_v44 }
 0x521   :  { %18042 = vmatpush3.bf16.msra.mxu1 %v18041_v33  ;;  %17755 = vmatprep.subr.bf16.mxu0 %v24307_v56  ;;  %v23346_v33 = vsub.f32 %v10896_v11, %v9974_v57  ;;  %v10905_v11 = vld [vmem:[%s23950_s2 + $0x3d0] sm:$0xff] }
 0x522   :  { %18043 = vmatprep.subr.bf16.mxu1 %v24307_v56 }
 0x524   :  { %17757 = vmatpush3.bf16.msra.mxu0 %v17756_v50  ;;  %v9992_v50 = vand.u32 4294901760, %v10902_v39 }
 0x525   :  { %18045 = vmatpush3.bf16.msra.mxu1 %v18044_v53  ;;  %17758 = vmatprep.subr.bf16.mxu0 %v24307_v56 }
 0x526   :  { %18046 = vmatprep.subr.bf16.mxu1 %v24307_v56  ;;  %v23388_v12 = vpack.c.bf16 %v9992_v50, %v9989_v29 }
 0x528   :  { %17760 = vmatpush3.bf16.msra.mxu0 %v17759_v0  ;;  %24937 = vst [vmem:[#allocation19_spill] sm:$0xff] %v23388_v12 }
 0x529   :  { %18048 = vmatpush3.bf16.msra.mxu1 %v18047_v27  ;;  %17761 = vmatprep.subr.bf16.mxu0 %v24307_v56 }
 0x52a   :  { %18049 = vmatprep.subr.bf16.mxu1 %v24307_v56 }
 0x52c   :  { %17763 = vmatpush3.bf16.msra.mxu0 %v17762_v24  ;;  %v8671_v24 = vand.u32 4294901760, %v10867_v35 }
 0x52d   :  { %18051 = vmatpush3.bf16.msra.mxu1 %v18050_v18  ;;  %17764 = vmatprep.subr.bf16.mxu0 %v24307_v56  ;;  %v10870_v18 = vld [vmem:[%s23950_s2 + $0x358] sm:$0xff] }
 0x52e   :  { %18052 = vmatprep.subr.bf16.mxu1 %v24307_v56 }
 0x530   :  { %17766 = vmatpush3.bf16.msra.mxu0 %v17765_v15 }
 0x531   :  { %18054 = vmatpush3.bf16.msra.mxu1 %v18053_v16  ;;  %17767 = vmatprep.subr.bf16.mxu0 %v24307_v56  ;;  %v9998_v16 = vand.u32 4294901760, %v10904_v49 }
 0x532   :  { %18055 = vmatprep.subr.bf16.mxu1 %v24307_v56 }
 0x533   :  { %15252 = vmatmul.mubr.f32.vlgmr.msra.gmra.mrb[6].mxu0 %v22714_v46 }
 0x534   :  { %17769 = vmatpush3.bf16.msra.mxu0 %v22596_v40  ;;  %15672 = vmatmul.mubr.f32.vlgmr.msra.gmra.mrb[6].mxu1 %v22719_v25  ;;  %v10859_v40 = vld [vmem:[%s23950_s2 + $0x300] sm:$0xff] }
 0x535   :  { %18057 = vmatpush3.bf16.msra.mxu1 %v24886_v62  ;;  %17770 = vmatprep.subr.bf16.mxu0 %v24307_v56  ;;  %v8647_v4 = vand.u32 4294901760, %v10859_v40  ;;  %v10862_v62 = vld [vmem:[%s23950_s2 + $0x318] sm:$0xff] }
 0x536   :  { %18058 = vmatprep.subr.bf16.mxu1 %v24307_v56  ;;  %15286 = vmatprep.mubr.msk.f32.mxu0 %vm18420_vm0, %v24322_v63 }
 0x537   :  { %15706 = vmatprep.mubr.msk.f32.mxu1 %vm18420_vm0, %v24322_v63  ;;  %v23323_v38 = vsub.f32 %v10859_v40, %v8647_v4 }
 0x538   :  { %17772 = vmatpush3.bf16.msra.mxu0 %v24887_v55  ;;  %v10897_v55 = vld [vmem:[%s23950_s2 + $0x390] sm:$0xff] }
 0x539   :  { %18060 = vmatpush3.bf16.msra.mxu1 %v24888_v37  ;;  %17773 = vmatprep.subr.bf16.mxu0 %v24307_v56  ;;  %v10898_v37 = vld [vmem:[%s23950_s2 + $0x398] sm:$0xff] }
 0x53a   :  { %18061 = vmatprep.subr.bf16.mxu1 %v24307_v56 }
 0x53c   :  { %17775 = vmatpush3.bf16.msra.mxu0 %v24889_v13  ;;  %v23278_v13 = vpack.c.bf16 %v8650_v54, %v8647_v4  ;;  %v10906_v4 = vld [vmem:[%s23950_s2 + $0x3d8] sm:$0xff]  ;;  %v23396_v54 = vand.u32 4294901760, %v7967_v23 }
 0x53d   :  { %18063 = vmatpush3.bf16.msra.mxu1 %v24890_v34  ;;  %17776 = vmatprep.subr.bf16.mxu0 %v24307_v56  ;;  %v8653_v34 = vand.u32 4294901760, %v10861_v20 }
 0x53e   :  { %18064 = vmatprep.subr.bf16.mxu1 %v24307_v56 }
 0x53f   :  { %v23358_v53 = vsub.f32 %v10861_v20, %v8653_v34  ;;  %v8680_v20 = vand.u32 4294901760, %v10870_v18 }
 0x540   :  { %17778 = vmatpush3.bf16.msra.mxu0 %v24891_v43  ;;  %v8656_v43 = vand.u32 4294901760, %v10862_v62 }
 0x541   :  { %18066 = vmatpush3.bf16.msra.mxu1 %v24892_v2  ;;  %17779 = vmatprep.subr.bf16.mxu0 %v24307_v56  ;;  %v23282_v2 = vpack.c.bf16 %v9974_v57, %v9971_v5  ;;  %v8677_v57 = vand.u32 4294901760, %v10869_v22 }
 0x542   :  { %18067 = vmatprep.subr.bf16.mxu1 %v24307_v56  ;;  %v23360_v47 = vsub.f32 %v10862_v62, %v8656_v43  ;;  %v23401_v62 = vand.u32 4294901760, %v9291_v42 }
 0x543   :  { %24931 = vst [vmem:[#allocation23_spill] sm:$0xff] %v23282_v2 }
 0x544   :  { %17781 = vmatpush3.bf16.msra.mxu0 %v24893_v60  ;;  %v9977_v60 = vand.u32 4294901760, %v10897_v55 }
 0x545   :  { %18069 = vmatpush3.bf16.msra.mxu1 %v24894_v17  ;;  %17782 = vmatprep.subr.bf16.mxu0 %v24307_v56  ;;  %v9980_v17 = vand.u32 4294901760, %v10898_v37 }
 0x546   :  { %18070 = vmatprep.subr.bf16.mxu1 %v24307_v56  ;;  %v23362_v6 = vsub.f32 %v10897_v55, %v9977_v60  ;;  %v23403_v55 = vsub.f32 %v10901_v48, %v9989_v29  ;;  %v23447_v48 = vpack.c.bf16 %v8680_v20, %v8677_v57 }
 0x547   :  { %v23305_v58 = vpack.c.bf16 %v9980_v17, %v9977_v60  ;;  %v23364_v0 = vsub.f32 %v10898_v37, %v9980_v17  ;;  %v23405_v37 = vsub.f32 %v10902_v39, %v9992_v50  ;;  %v23412_v60 = vsub.f32 %v10868_v30, %v8674_v32 }
 0x548   :  { %17784 = vmatpush3.bf16.msra.mxu0 %v24895_v1  ;;  %v10863_v1 = vld [vmem:[%s23950_s2 + $0x320] sm:$0xff]  ;;  %v23414_v17 = vpack.c.bf16 %v9998_v16, %v9995_v10  ;;  %24940 = vst [vmem:[#allocation20_spill] sm:$0xff] %v23447_v48  ;;  %v24255_v39 = vand.u32 4294901760, %v23325_v26  ;;  %v24261_v50 = vand.u32 4294901760, %v23346_v33 }
 0x549   :  { %18072 = vmatpush3.bf16.msra.mxu1 %v24896_v51  ;;  %17785 = vmatprep.subr.bf16.mxu0 %v24307_v56  ;;  %v10899_v51 = vld [vmem:[%s23950_s2 + $0x3a0] sm:$0xff]  ;;  %24933 = vst [vmem:[#allocation18_spill] sm:$0xff] %v23305_v58 }
 0x54a   :  { %18073 = vmatprep.subr.bf16.mxu1 %v24307_v56  ;;  %v9983_v8 = vand.u32 4294901760, %v10899_v51  ;;  %24939 = vst [vmem:[#allocation27_spill] sm:$0xff] %v23414_v17 }
 0x54c   :  { %17787 = vmatpush3.bf16.msra.mxu0 %v24897_v61  ;;  %v10900_v61 = vld [vmem:[%s23950_s2 + $0x3a8] sm:$0xff]  ;;  %v23378_v15 = vsub.f32 %v10899_v51, %v9983_v8  ;;  %v23419_v51 = vld [vmem:[%s23950_s2 + $0x360] sm:$0xff] }
 0x54d   :  { %18075 = vmatpush3.bf16.msra.mxu1 %v24898_v3  ;;  %17788 = vmatprep.subr.bf16.mxu0 %v24307_v56  ;;  %v23300_v3 = vpack.c.bf16 %v8656_v43, %v8653_v34  ;;  %v9986_v14 = vand.u32 4294901760, %v10900_v61  ;;  %v23407_v34 = vpack.c.bf16 %v8674_v32, %v8671_v24  ;;  %v23409_v43 = vsub.f32 %v10867_v35, %v8671_v24 }
 0x54e   :  { %18076 = vmatprep.subr.bf16.mxu1 %v24307_v56  ;;  %v23454_v35 = vsub.f32 %v10869_v22, %v8677_v57  ;;  %v8683_v30 = vand.u32 4294901760, %v23419_v51  ;;  %v23497_v57 = vld [vmem:[%s23950_s2 + $0x3f8] sm:$0xff] }
 0x54f   :  { %24932 = vst [vmem:[#allocation24_spill] sm:$0xff] %v23300_v3  ;;  %v23350_v7 = vpack.c.bf16 %v9986_v14, %v9983_v8  ;;  %v23383_v40 = vsub.f32 %v10900_v61, %v9986_v14  ;;  %24938 = vst [vmem:[#allocation5_spill] sm:$0xff] %v23407_v34  ;;  %v23424_v61 = vld [vmem:[%s23950_s2 + $0x368] sm:$0xff]  ;;  %v23435_v8 = vld [vmem:[%s23950_s2 + $0x3e0] sm:$0xff] }
 0x550   :  { %17790 = vmatpush3.bf16.msra.mxu0 %v22869_v59  ;;  %v10864_v59 = vld [vmem:[%s23950_s2 + $0x328] sm:$0xff]  ;;  %v8686_v29 = vand.u32 4294901760, %v23424_v61 }
 0x551   :  { %18078 = vmatpush3.bf16.msra.mxu1 %v24901_v19  ;;  %17791 = vmatprep.subr.bf16.mxu0 %v24307_v56  ;;  %v8659_v19 = vand.u32 4294901760, %v10863_v1  ;;  %v8662_v31 = vand.u32 4294901760, %v10864_v59  ;;  %24935 = vst [vmem:[#allocation26_spill] sm:$0xff] %v23350_v7  ;;  %v23440_v14 = vld [vmem:[%s23950_s2 + $0x3e8] sm:$0xff] }
 0x552   :  { %18079 = vmatprep.subr.bf16.mxu1 %v24307_v56 }
 0x553   :  { %15287 = vmatmul.mubr.f32.vlgmr.msra.gmra.mrb[6].mxu0 %v22714_v46  ;;  %v10865_v46 = vld [vmem:[%s23950_s2 + $0x330] sm:$0xff]  ;;  %v23335_v45 = vpack.c.bf16 %v8662_v31, %v8659_v19  ;;  %v23367_v21 = vsub.f32 %v10863_v1, %v8659_v19  ;;  %v23369_v27 = vsub.f32 %v10864_v59, %v8662_v31  ;;  %v10001_v1 = vand.u32 4294901760, %v10905_v11 }
 0x554   :  { %17793 = vmatpush3.bf16.msra.mxu0 %v23278_v13  ;;  %15707 = vmatmul.mubr.f32.vlgmr.msra.gmra.mrb[6].mxu1 %v22719_v25  ;;  %v10866_v25 = vld [vmem:[%s23950_s2 + $0x338] sm:$0xff]  ;;  %v8665_v9 = vand.u32 4294901760, %v10865_v46  ;;  %v10004_v59 = vand.u32 4294901760, %v10906_v4  ;;  %v23428_v19 = vsub.f32 %v10903_v36, %v9995_v10  ;;  %v23430_v31 = vsub.f32 %v10904_v49, %v9998_v16 }
 0x555   :  { %18081 = vmatpush3.bf16.msra.mxu1 %v23282_v2  ;;  %17794 = vmatprep.subr.bf16.mxu0 %v24307_v56  ;;  %24934 = vst [vmem:[#allocation25_spill] sm:$0xff] %v23335_v45  ;;  %v8668_v44 = vand.u32 4294901760, %v10866_v25  ;;  %v23460_v36 = vsub.f32 %v10870_v18, %v8680_v20  ;;  %v23468_v32 = vsub.f32 %v10905_v11, %v10001_v1  ;;  %v23480_v18 = vld [vmem:[%s23950_s2 + $0x378] sm:$0xff] }
 0x556   :  { %18082 = vmatprep.subr.bf16.mxu1 %v24307_v56  ;;  %15321 = vmatprep.mubr.msk.f32.mxu0 %vm18420_vm0, %v24322_v63  ;;  %v23386_v28 = vsub.f32 %v10865_v46, %v8665_v9  ;;  %v23443_v46 = vsub.f32 %v7967_v23, %v23396_v54  ;;  %v23462_v49 = vpack.c.bf16 %v10004_v59, %v10001_v1 }
 0x557   :  { %15741 = vmatprep.mubr.msk.f32.mxu1 %vm18420_vm0, %v24322_v63  ;;  %v23380_v52 = vpack.c.bf16 %v8668_v44, %v8665_v9  ;;  %v23399_v5 = vsub.f32 %v10866_v25, %v8668_v44  ;;  %v24252_v25 = vand.u32 4294901760, %v23323_v38  ;;  %v23451_v9 = vsub.f32 %v9291_v42, %v23401_v62  ;;  %v23475_v42 = vld [vmem:[%s23950_s2 + $0x370] sm:$0xff] }
 0x558   :  { %17796 = vmatpush3.bf16.msra.mxu0 %v23300_v3  ;;  %v24256_v44 = vand.u32 4294901760, %v23332_v41  ;;  %24941 = vst [vmem:[#allocation6_spill] sm:$0xff] %v23462_v49  ;;  %v23470_v22 = vsub.f32 %v10906_v4, %v10004_v59  ;;  %v23492_v4 = vld [vmem:[%s23950_s2 + $0x3f0] sm:$0xff]  ;;  %v8748_v20 = vsub.f32 %v23325_v26, %v24255_v39  ;;  %v23507_v23 = vpack.c.bf16 %v8686_v29, %v8683_v30 }
 0x559   :  { %18084 = vmatpush3.bf16.msra.mxu1 %v23305_v58  ;;  %17797 = vmatprep.subr.bf16.mxu0 %v24307_v56  ;;  %24936 = vst [vmem:[#allocation21_spill] sm:$0xff] %v23380_v52  ;;  %v8741_v16 = vsub.f32 %v23323_v38, %v24252_v25  ;;  %v24945_v25 = vand.u32 4294901760, %v23440_v14  ;;  %v24947_v39 = vand.u32 4294901760, %v23443_v46  ;;  %v24958_v3 = vand.u32 4294901760, %v23367_v21 }
 0x55a   :  { %18085 = vmatprep.subr.bf16.mxu1 %v24307_v56  ;;  %v10065_v59 = vsub.f32 %v23332_v41, %v24256_v44  ;;  %24943 = vst [vmem:[#allocation8_spill] sm:$0xff] %v23507_v23  ;;  %v24944_v44 = vand.u32 4294901760, %v23435_v8 }
 0x55b   :  { %v8769_v2 = vsub.f32 %v23367_v21, %v24958_v3  ;;  %v24961_v3 = vand.u32 4294901760, %v23383_v40 }
 0x55c   :  { %17799 = vmatpush3.bf16.msra.mxu0 %v23335_v45 }
 0x55d   :  { %18087 = vmatpush3.bf16.msra.mxu1 %v23350_v7  ;;  %17800 = vmatprep.subr.bf16.mxu0 %v24307_v56  ;;  %v24954_v7 = vand.u32 4294901760, %v23364_v0 }
 0x55e   :  { %18088 = vmatprep.subr.bf16.mxu1 %v24307_v56 }
 0x560   :  { %17802 = vmatpush3.bf16.msra.mxu0 %v23380_v52 }
 0x561   :  { %18090 = vmatpush3.bf16.msra.mxu1 %v23388_v12  ;;  %17803 = vmatprep.subr.bf16.mxu0 %v24307_v56  ;;  %v24948_v12 = vand.u32 4294901760, %v23451_v9 }
 0x562   :  { %18091 = vmatprep.subr.bf16.mxu1 %v24307_v56 }
 0x564   :  { %17805 = vmatpush3.bf16.msra.mxu0 %v23407_v34  ;;  %v10066_v34 = vand.u32 4294901760, %v10065_v59  ;;  %v24952_v59 = vand.u32 4294901760, %v23475_v42 }
 0x565   :  { %18093 = vmatpush3.bf16.msra.mxu1 %v23414_v17  ;;  %17806 = vmatprep.subr.bf16.mxu0 %v24307_v56  ;;  %v8730_v17 = vsub.f32 %v23443_v46, %v24947_v39  ;;  %v24951_v39 = vand.u32 4294901760, %v23362_v6 }
 0x566   :  { %v23486_v11 = vpop.f32.mrb[4].mxu0  ;;  %18094 = vmatprep.subr.bf16.mxu1 %v24307_v56 }
 0x567   :  { %24942 = vst [vmem:[#allocation7_spill] sm:$0xff] %v23486_v11  ;;  %v7959_v10 = vpop.f32.mrb[4].mxu1  ;;  %v14658_v24 = vpop.f32.mrb[5].mxu0  ;;  %v10072_v11 = vsub.f32 %v23346_v33, %v24261_v50  ;;  %v10054_v50 = vsub.f32 %v23451_v9, %v24948_v12  ;;  %v23548_v12 = vsub.f32 %v23419_v51, %v8683_v30  ;;  %v24955_v51 = vand.u32 4294901760, %v23492_v4 }
 0x568   :  { %10620 = vrot.lane.b32.xlu1 %v7959_v10, %s18422_s21  ;;  %v15078_v1 = vpop.f32.mrb[5].mxu1  ;;  %17808 = vmatpush3.bf16.msra.mxu0 %v23447_v48  ;;  %v23520_v24 = vpack.c.bf16 %v24945_v25, %v24944_v44  ;;  %v8742_v25 = vand.u32 4294901760, %v8741_v16  ;;  %v8749_v44 = vand.u32 4294901760, %v8748_v20  ;;  %v10079_v16 = vsub.f32 %v23362_v6, %v24951_v39 }
 0x569   :  { %18096 = vmatpush3.bf16.msra.mxu1 %v23462_v49  ;;  %17809 = vmatprep.subr.bf16.mxu0 %v24307_v56  ;;  %v24949_v49 = vand.u32 4294901760, %v23358_v53  ;;  %v10073_v10 = vand.u32 4294901760, %v10072_v11  ;;  %v24950_v1 = vand.u32 4294901760, %v23360_v47  ;;  %v23561_v39 = vsub.f32 %v23424_v61, %v8686_v29 }
 0x56a   :  { %24946 = vst [vmem:[#allocation9_spill] sm:$0xff] %v23520_v24  ;;  %18097 = vmatprep.subr.bf16.mxu1 %v24307_v56  ;;  %v24956_v30 = vand.u32 4294901760, %v23497_v57  ;;  %v17816_v45 = vpack.c.bf16 %v8749_v44, %v8742_v25  ;;  %v10055_v61 = vand.u32 4294901760, %v10054_v50  ;;  %v10080_v58 = vand.u32 4294901760, %v10079_v16 }
 0x56b   :  { %v8755_v48 = vsub.f32 %v23358_v53, %v24949_v49  ;;  %v8762_v52 = vsub.f32 %v23360_v47, %v24950_v1  ;;  %v24953_v49 = vand.u32 4294901760, %v23480_v18  ;;  %v10086_v1 = vsub.f32 %v23364_v0, %v24954_v7 }
 0x56c   :  { %17811 = vmatpush3.bf16.msra.mxu0 %v23507_v23  ;;  %v23569_v20 = vpack.c.bf16 %v24956_v30, %v24955_v51  ;;  %v8731_v7 = vand.u32 4294901760, %v8730_v17  ;;  %v18104_v23 = vpack.c.bf16 %v10073_v10, %v10066_v34  ;;  %v24959_v30 = vand.u32 4294901760, %v23369_v27 }
 0x56d   :  { %v23554_v11 = vpack.c.bf16 %v24953_v49, %v24952_v59  ;;  %18099 = vmatpush3.bf16.msra.mxu1 %v23520_v24  ;;  %17812 = vmatprep.subr.bf16.mxu0 %v24307_v56  ;;  %v8756_v29 = vand.u32 4294901760, %v8755_v48  ;;  %v8763_v24 = vand.u32 4294901760, %v8762_v52  ;;  %v10087_v51 = vand.u32 4294901760, %v10086_v1 }
 0x56e   :  { %24957 = vst [vmem:[#allocation10_spill] sm:$0xff] %v23569_v20  ;;  %18100 = vmatprep.subr.bf16.mxu1 %v24307_v56  ;;  %v8776_v49 = vsub.f32 %v23369_v27, %v24959_v30  ;;  %v24282_v59 = vand.u32 4294901760, %v23386_v28  ;;  %v24960_v52 = vand.u32 4294901760, %v23378_v15  ;;  %v10100_v48 = vsub.f32 %v23383_v40, %v24961_v3 }
 0x56f   :  { %v24962_v25 = vand.u32 4294901760, %v23435_v8  ;;  %v17819_v10 = vpack.c.bf16 %v8763_v24, %v8756_v29  ;;  %v8770_v50 = vand.u32 4294901760, %v8769_v2  ;;  %v24283_v17 = vand.u32 4294901760, %v23430_v31 }
 0x570   :  { %17814 = vmatpush3.bf16.msra.mxu0 %v23554_v11  ;;  %v10093_v34 = vsub.f32 %v23378_v15, %v24960_v52  ;;  %v24963_v52 = vand.u32 4294901760, %v23440_v14  ;;  %v8783_v1 = vsub.f32 %v23386_v28, %v24282_v59  ;;  %v24964_v30 = vand.u32 4294901760, %v23399_v5 }
 0x571   :  { %18102 = vmatpush3.bf16.msra.mxu1 %v23569_v20  ;;  %17815 = vmatprep.subr.bf16.mxu0 %v24307_v56  ;;  %v23596_v44 = vsub.f32 %v23435_v8, %v24962_v25  ;;  %v18107_v8 = vpack.c.bf16 %v10087_v51, %v10080_v58  ;;  %v8777_v25 = vand.u32 4294901760, %v8776_v49  ;;  %v10101_v24 = vand.u32 4294901760, %v10100_v48 }
 0x572   :  { %18103 = vmatprep.subr.bf16.mxu1 %v24307_v56  ;;  %v23605_v3 = vsub.f32 %v23440_v14, %v24963_v52  ;;  %v8790_v16 = vsub.f32 %v23399_v5, %v24964_v30  ;;  %v10094_v14 = vand.u32 4294901760, %v10093_v34  ;;  %v24965_v2 = vand.u32 4294901760, %v23403_v55 }
 0x573   :  { %15322 = vmatmul.mubr.f32.vlgmr.msra.gmra.mrb[6].mxu0 %v8731_v7  ;;  %v24966_v58 = vand.u32 4294901760, %v23405_v37  ;;  %v24967_v7 = vand.u32 4294901760, %v23409_v43  ;;  %v24969_v51 = vand.u32 4294901760, %v23428_v19  ;;  %v24970_v30 = vand.u32 4294901760, %v23475_v42 }
 0x574   :  { %17817 = vmatpush3.bf16.msra.mxu0 %v17816_v45  ;;  %15742 = vmatmul.mubr.f32.vlgmr.msra.gmra.mrb[6].mxu1 %v10055_v61  ;;  %v10107_v45 = vsub.f32 %v23403_v55, %v24965_v2  ;;  %v10128_v2 = vsub.f32 %v23430_v31, %v24283_v17  ;;  %v8791_v59 = vand.u32 4294901760, %v8790_v16  ;;  %v18110_v17 = vpack.c.bf16 %v10101_v24, %v10094_v14 }
 0x575   :  { %18105 = vmatpush3.bf16.msra.mxu1 %v18104_v23  ;;  %17818 = vmatprep.subr.bf16.mxu0 %v24307_v56  ;;  %v10114_v49 = vsub.f32 %v23405_v37, %v24966_v58  ;;  %v8797_v61 = vsub.f32 %v23409_v43, %v24967_v7  ;;  %v24968_v23 = vand.u32 4294901760, %v23412_v60  ;;  %v10121_v34 = vsub.f32 %v23428_v19, %v24969_v51 }
 0x576   :  { %18106 = vmatprep.subr.bf16.mxu1 %v24307_v56  ;;  %15356 = vmatprep.mubr.msk.f32.mxu0 %vm18420_vm0, %v24322_v63  ;;  %v23637_v52 = vsub.f32 %v23475_v42, %v24970_v30  ;;  %v8784_v51 = vand.u32 4294901760, %v8783_v1  ;;  %v24971_v42 = vand.u32 4294901760, %v23480_v18  ;;  %v10108_v58 = vand.u32 4294901760, %v10107_v45 }
 0x577   :  { %v8804_v29 = vsub.f32 %v23412_v60, %v24968_v23  ;;  %15776 = vmatprep.mubr.msk.f32.mxu1 %vm18420_vm0, %v24322_v63  ;;  %v17822_v23 = vpack.c.bf16 %v8777_v25, %v8770_v50  ;;  %v10115_v7 = vand.u32 4294901760, %v10114_v49  ;;  %v8798_v20 = vand.u32 4294901760, %v8797_v61 }
 0x578   :  { %17820 = vmatpush3.bf16.msra.mxu0 %v17819_v10  ;;  %v23650_v30 = vsub.f32 %v23480_v18, %v24971_v42  ;;  %v10122_v50 = vand.u32 4294901760, %v10121_v34  ;;  %v24972_v16 = vand.u32 4294901760, %v23454_v35  ;;  %v10129_v25 = vand.u32 4294901760, %v10128_v2 }
 0x579   :  { %18108 = vmatpush3.bf16.msra.mxu1 %v18107_v8  ;;  %17821 = vmatprep.subr.bf16.mxu0 %v24307_v56  ;;  %v8805_v10 = vand.u32 4294901760, %v8804_v29  ;;  %v24973_v48 = vand.u32 4294901760, %v23460_v36  ;;  %v24974_v8 = vand.u32 4294901760, %v23468_v32  ;;  %v8824_v24 = vand.u32 4294901760, %v23548_v12 }
 0x57a   :  { %18109 = vmatprep.subr.bf16.mxu1 %v24307_v56  ;;  %v8811_v1 = vsub.f32 %v23454_v35, %v24972_v16  ;;  %v24975_v45 = vand.u32 4294901760, %v23492_v4  ;;  %v17825_v61 = vpack.c.bf16 %v8791_v59, %v8784_v51  ;;  %v24976_v29 = vand.u32 4294901760, %v23470_v22 }
 0x57b   :  { %v8818_v18 = vsub.f32 %v23460_v36, %v24973_v48  ;;  %v10135_v14 = vsub.f32 %v23468_v32, %v24974_v8  ;;  %v8831_v2 = vand.u32 4294901760, %v23561_v39  ;;  %v24977_v48 = vand.u32 4294901760, %v23497_v57 }
 0x57c   :  { %v23667_v49 = vsub.f32 %v23492_v4, %v24975_v45  ;;  %17823 = vmatpush3.bf16.msra.mxu0 %v17822_v23  ;;  %v10142_v34 = vsub.f32 %v23470_v22, %v24976_v29  ;;  %v18113_v16 = vpack.c.bf16 %v10115_v7, %v10108_v58  ;;  %v24287_v4 = vand.u32 4294901760, %v23596_v44 }
 0x57d   :  { %v23676_v42 = vsub.f32 %v23497_v57, %v24977_v48  ;;  %18111 = vmatpush3.bf16.msra.mxu1 %v18110_v17  ;;  %17824 = vmatprep.subr.bf16.mxu0 %v24307_v56  ;;  %v24286_v23 = vand.u32 4294901760, %v23605_v3  ;;  %v17828_v59 = vpack.c.bf16 %v8805_v10, %v8798_v20  ;;  %v8812_v51 = vand.u32 4294901760, %v8811_v1 }
 0x57e   :  { %18112 = vmatprep.subr.bf16.mxu1 %v24307_v56  ;;  %v18116_v8 = vpack.c.bf16 %v10129_v25, %v10122_v50  ;;  %v8819_v45 = vand.u32 4294901760, %v8818_v18  ;;  %v10136_v29 = vand.u32 4294901760, %v10135_v14  ;;  %v8825_v57 = vsub.f32 %v23548_v12, %v8824_v24 }
 0x57f   :  { %v10143_v17 = vand.u32 4294901760, %v10142_v34  ;;  %v8832_v58 = vsub.f32 %v23561_v39, %v8831_v2  ;;  %v8838_v7 = vand.u32 4294901760, %v23637_v52  ;;  %v24290_v48 = vand.u32 4294901760, %v23650_v30 }
 0x580   :  { %17826 = vmatpush3.bf16.msra.mxu0 %v17825_v61  ;;  %v10149_v20 = vsub.f32 %v23596_v44, %v24287_v4  ;;  %v10156_v10 = vsub.f32 %v23605_v3, %v24286_v23  ;;  %v24289_v50 = vand.u32 4294901760, %v23667_v49  ;;  %v24288_v1 = vand.u32 4294901760, %v23676_v42 }
 0x581   :  { %18114 = vmatpush3.bf16.msra.mxu1 %v18113_v16  ;;  %17827 = vmatprep.subr.bf16.mxu0 %v24307_v56  ;;  %v17831_v25 = vpack.c.bf16 %v8819_v45, %v8812_v51  ;;  %v8826_v18 = vand.u32 4294901760, %v8825_v57  ;;  %v18119_v14 = vpack.c.bf16 %v10143_v17, %v10136_v29  ;;  %v8833_v61 = vand.u32 4294901760, %v8832_v58 }
 0x582   :  { %18115 = vmatprep.subr.bf16.mxu1 %v24307_v56  ;;  %v8839_v34 = vsub.f32 %v23637_v52, %v8838_v7  ;;  %v8846_v16 = vsub.f32 %v23650_v30, %v24290_v48  ;;  %v10150_v23 = vand.u32 4294901760, %v10149_v20  ;;  %v10157_v4 = vand.u32 4294901760, %v10156_v10 }
 0x583   :  { %v10163_v51 = vsub.f32 %v23667_v49, %v24289_v50  ;;  %v17834_v45 = vpack.c.bf16 %v8833_v61, %v8826_v18  ;;  %v18131_v18 = vpack.c.bf16 %v23364_v0, %v23362_v6  ;;  %v18134_v61 = vpack.c.bf16 %v23383_v40, %v23378_v15 }
 0x584   :  { %17829 = vmatpush3.bf16.msra.mxu0 %v17828_v59  ;;  %v10170_v59 = vsub.f32 %v23676_v42, %v24288_v1  ;;  %v8840_v29 = vand.u32 4294901760, %v8839_v34  ;;  %v8847_v57 = vand.u32 4294901760, %v8846_v16  ;;  %v17849_v34 = vpack.c.bf16 %v23399_v5, %v23386_v28 }
 0x585   :  { %18117 = vmatpush3.bf16.msra.mxu1 %v18116_v8  ;;  %17830 = vmatprep.subr.bf16.mxu0 %v24307_v56  ;;  %v18122_v8 = vpack.c.bf16 %v10157_v4, %v10150_v23  ;;  %v10164_v17 = vand.u32 4294901760, %v10163_v51  ;;  %v18128_v4 = vpack.c.bf16 %v23346_v33, %v23332_v41  ;;  %v17843_v23 = vpack.c.bf16 %v23360_v47, %v23358_v53 }
 0x586   :  { %18118 = vmatprep.subr.bf16.mxu1 %v24307_v56  ;;  %v10171_v58 = vand.u32 4294901760, %v10170_v59  ;;  %v17837_v20 = vpack.c.bf16 %v8847_v57, %v8840_v29  ;;  %v18137_v16 = vpack.c.bf16 %v23405_v37, %v23403_v55  ;;  %v17852_v51 = vpack.c.bf16 %v23412_v60, %v23409_v43 }
 0x587   :  { %v18140_v59 = vpack.c.bf16 %v23430_v31, %v23428_v19  ;;  %v18143_v29 = vpack.c.bf16 %v23470_v22, %v23468_v32  ;;  %v17858_v57 = vpack.c.bf16 %v23561_v39, %v23548_v12  ;;  %v24995_v1 = vand.u32 4294901760, %v23346_v33 }
 0x588   :  { %17832 = vmatpush3.bf16.msra.mxu0 %v17831_v25  ;;  %v18125_v10 = vpack.c.bf16 %v10171_v58, %v10164_v17  ;;  %v17840_v25 = vpack.c.bf16 %v23325_v26, %v23323_v38  ;;  %v17861_v17 = vpack.c.bf16 %v23650_v30, %v23637_v52  ;;  %v18149_v58 = vpack.c.bf16 %v23676_v42, %v23667_v49 }
 0x589   :  { %18120 = vmatpush3.bf16.msra.mxu1 %v18119_v14  ;;  %17833 = vmatprep.subr.bf16.mxu0 %v24307_v56  ;;  %v17846_v14 = vpack.c.bf16 %v23369_v27, %v23367_v21  ;;  %v24996_v48 = vand.u32 4294901760, %v23443_v46  ;;  %v25001_v33 = vand.u32 4294901760, %v23364_v0  ;;  %v25005_v0 = vand.u32 4294901760, %v23383_v40 }
 0x58a   :  { %18121 = vmatprep.subr.bf16.mxu1 %v24307_v56  ;;  %v25010_v40 = vand.u32 4294901760, %v23405_v37  ;;  %v25016_v37 = vand.u32 4294901760, %v23460_v36  ;;  %v25022_v12 = vand.u32 4294901760, %v23667_v49  ;;  %v25023_v39 = vand.u32 4294901760, %v23676_v42 }
 0x58c   :  { %17835 = vmatpush3.bf16.msra.mxu0 %v17834_v45  ;;  %v17855_v45 = vpack.c.bf16 %v23460_v36, %v23454_v35 }
 0x58d   :  { %18123 = vmatpush3.bf16.msra.mxu1 %v18122_v8  ;;  %17836 = vmatprep.subr.bf16.mxu0 %v24307_v56  ;;  %v18146_v8 = vpack.c.bf16 %v23605_v3, %v23596_v44 }
 0x58e   :  { %18124 = vmatprep.subr.bf16.mxu1 %v24307_v56 }
 0x590   :  { %17838 = vmatpush3.bf16.msra.mxu0 %v17837_v20  ;;  %v24978_v20 = vld [vmem:[#allocation23_spill] sm:$0xff] }
 0x591   :  { %18126 = vmatpush3.bf16.msra.mxu1 %v18125_v10  ;;  %17839 = vmatprep.subr.bf16.mxu0 %v24307_v56  ;;  %v24979_v10 = vld [vmem:[#allocation24_spill] sm:$0xff] }
 0x592   :  { %18127 = vmatprep.subr.bf16.mxu1 %v24307_v56 }
 0x593   :  { %15357 = vmatmul.mubr.f32.vlgmr.msra.gmra.mrb[6].mxu0 %v23396_v54 }
 0x594   :  { %17841 = vmatpush3.bf16.msra.mxu0 %v17840_v25  ;;  %15777 = vmatmul.mubr.f32.vlgmr.msra.gmra.mrb[6].mxu1 %v23401_v62  ;;  %v24980_v25 = vld [vmem:[#allocation18_spill] sm:$0xff] }
 0x595   :  { %18129 = vmatpush3.bf16.msra.mxu1 %v18128_v4  ;;  %17842 = vmatprep.subr.bf16.mxu0 %v24307_v56  ;;  %v24981_v4 = vld [vmem:[#allocation25_spill] sm:$0xff] }
 0x596   :  { %18130 = vmatprep.subr.bf16.mxu1 %v24307_v56  ;;  %15391 = vmatprep.mubr.msk.f32.mxu0 %vm18420_vm0, %v24322_v63 }
 0x597   :  { %15811 = vmatprep.mubr.msk.f32.mxu1 %vm18420_vm0, %v24322_v63 }
 0x598   :  { %17844 = vmatpush3.bf16.msra.mxu0 %v17843_v23  ;;  %v24982_v23 = vld [vmem:[#allocation26_spill] sm:$0xff] }
 0x599   :  { %18132 = vmatpush3.bf16.msra.mxu1 %v18131_v18  ;;  %17845 = vmatprep.subr.bf16.mxu0 %v24307_v56  ;;  %v24983_v18 = vld [vmem:[#allocation21_spill] sm:$0xff] }
 0x59a   :  { %18133 = vmatprep.subr.bf16.mxu1 %v24307_v56 }
 0x59c   :  { %17847 = vmatpush3.bf16.msra.mxu0 %v17846_v14  ;;  %v24984_v14 = vld [vmem:[#allocation19_spill] sm:$0xff] }
 0x59d   :  { %18135 = vmatpush3.bf16.msra.mxu1 %v18134_v61  ;;  %17848 = vmatprep.subr.bf16.mxu0 %v24307_v56  ;;  %v24985_v61 = vld [vmem:[#allocation5_spill] sm:$0xff] }
 0x59e   :  { %18136 = vmatprep.subr.bf16.mxu1 %v24307_v56 }
 0x5a0   :  { %17850 = vmatpush3.bf16.msra.mxu0 %v17849_v34  ;;  %v24986_v34 = vld [vmem:[#allocation27_spill] sm:$0xff] }
 0x5a1   :  { %18138 = vmatpush3.bf16.msra.mxu1 %v18137_v16  ;;  %17851 = vmatprep.subr.bf16.mxu0 %v24307_v56  ;;  %v24987_v16 = vld [vmem:[#allocation20_spill] sm:$0xff] }
 0x5a2   :  { %18139 = vmatprep.subr.bf16.mxu1 %v24307_v56 }
 0x5a4   :  { %17853 = vmatpush3.bf16.msra.mxu0 %v17852_v51  ;;  %v24988_v51 = vld [vmem:[#allocation6_spill] sm:$0xff] }
 0x5a5   :  { %18141 = vmatpush3.bf16.msra.mxu1 %v18140_v59  ;;  %17854 = vmatprep.subr.bf16.mxu0 %v24307_v56  ;;  %v24989_v59 = vld [vmem:[#allocation8_spill] sm:$0xff] }
 0x5a6   :  { %18142 = vmatprep.subr.bf16.mxu1 %v24307_v56 }
 0x5a8   :  { %17856 = vmatpush3.bf16.msra.mxu0 %v17855_v45  ;;  %v24990_v45 = vld [vmem:[#allocation9_spill] sm:$0xff] }
 0x5a9   :  { %18144 = vmatpush3.bf16.msra.mxu1 %v18143_v29  ;;  %17857 = vmatprep.subr.bf16.mxu0 %v24307_v56  ;;  %v24991_v29 = vand.u32 4294901760, %v23323_v38  ;;  %v24997_v38 = vand.u32 4294901760, %v23451_v9 }
 0x5aa   :  { %18145 = vmatprep.subr.bf16.mxu1 %v24307_v56 }
 0x5ac   :  { %17859 = vmatpush3.bf16.msra.mxu0 %v17858_v57  ;;  %v24992_v57 = vand.u32 4294901760, %v23325_v26  ;;  %v24998_v26 = vand.u32 4294901760, %v23358_v53  ;;  %v25002_v53 = vand.u32 4294901760, %v23367_v21  ;;  %v25007_v21 = vand.u32 4294901760, %v23386_v28 }
 0x5ad   :  { %18147 = vmatpush3.bf16.msra.mxu1 %v18146_v8  ;;  %17860 = vmatprep.subr.bf16.mxu0 %v24307_v56  ;;  %v25013_v28 = vand.u32 4294901760, %v23428_v19  ;;  %v17906_v19 = vpack.c.bf16 %v8831_v2, %v8824_v24  ;;  %v18197_v24 = vpack.c.bf16 %v25023_v39, %v25022_v12 }
 0x5ae   :  { %18148 = vmatprep.subr.bf16.mxu1 %v24307_v56  ;;  %v17888_v8 = vpack.c.bf16 %v24992_v57, %v24991_v29  ;;  %v24999_v29 = vand.u32 4294901760, %v23360_v47  ;;  %v25003_v47 = vand.u32 4294901760, %v23369_v27  ;;  %v25008_v27 = vand.u32 4294901760, %v23399_v5 }
 0x5af   :  { %v25014_v5 = vand.u32 4294901760, %v23430_v31  ;;  %v25019_v31 = vand.u32 4294901760, %v23596_v44 }
 0x5b0   :  { %17862 = vmatpush3.bf16.msra.mxu0 %v17861_v17  ;;  %v24993_v17 = vld [vmem:[#allocation10_spill] sm:$0xff]  ;;  %v17891_v57 = vpack.c.bf16 %v24999_v29, %v24998_v26  ;;  %v25011_v26 = vand.u32 4294901760, %v23409_v43  ;;  %v25012_v29 = vand.u32 4294901760, %v23412_v60  ;;  %v25017_v43 = vand.u32 4294901760, %v23468_v32 }
 0x5b1   :  { %18150 = vmatpush3.bf16.msra.mxu1 %v18149_v58  ;;  %17863 = vmatprep.subr.bf16.mxu0 %v24307_v56  ;;  %v24994_v58 = vand.u32 4294901760, %v23332_v41  ;;  %v25000_v41 = vand.u32 4294901760, %v23362_v6  ;;  %v25004_v6 = vand.u32 4294901760, %v23378_v15  ;;  %v25009_v15 = vand.u32 4294901760, %v23403_v55 }
 0x5b2   :  { %18151 = vmatprep.subr.bf16.mxu1 %v24307_v56  ;;  %v25015_v55 = vand.u32 4294901760, %v23454_v35  ;;  %v25018_v60 = vand.u32 4294901760, %v23470_v22  ;;  %v25020_v35 = vand.u32 4294901760, %v23605_v3  ;;  %v25021_v32 = vand.u32 4294901760, %v23650_v30 }
 0x5b3   :  { %15392 = vmatmul.mubr.f32.vlgmr.msra.gmra.mrb[6].mxu0 %v23443_v46  ;;  %v18176_v50 = vpack.c.bf16 %v24995_v1, %v24994_v58  ;;  %v18179_v1 = vpack.c.bf16 %v25001_v33, %v25000_v41  ;;  %v17894_v46 = vpack.c.bf16 %v25003_v47, %v25002_v53  ;;  %v17897_v58 = vpack.c.bf16 %v25008_v27, %v25007_v21 }
 0x5b4   :  { %17865 = vmatpush3.bf16.msra.mxu0 %v23278_v13  ;;  %15812 = vmatmul.mubr.f32.vlgmr.msra.gmra.mrb[6].mxu1 %v23451_v9  ;;  %v18182_v9 = vpack.c.bf16 %v25005_v0, %v25004_v6  ;;  %v18188_v41 = vpack.c.bf16 %v25014_v5, %v25013_v28  ;;  %v17903_v33 = vpack.c.bf16 %v25016_v37, %v25015_v55 }
 0x5b5   :  { %18153 = vmatpush3.bf16.msra.mxu1 %v24978_v20  ;;  %17866 = vmatprep.subr.bf16.mxu0 %v24307_v56  ;;  %v18194_v36 = vpack.c.bf16 %v25020_v35, %v25019_v31  ;;  %v17909_v22 = vpack.c.bf16 %v25021_v32, %v8838_v7 }
 0x5b6   :  { %18154 = vmatprep.subr.bf16.mxu1 %v24307_v56  ;;  %15426 = vmatprep.mubr.msk.f32.mxu0 %vm18420_vm0, %v24322_v63 }
 0x5b7   :  { %15846 = vmatprep.mubr.msk.f32.mxu1 %vm18420_vm0, %v24322_v63 }
 0x5b8   :  { %17868 = vmatpush3.bf16.msra.mxu0 %v24979_v10 }
 0x5b9   :  { %18156 = vmatpush3.bf16.msra.mxu1 %v24980_v25  ;;  %17869 = vmatprep.subr.bf16.mxu0 %v24307_v56 }
 0x5ba   :  { %18157 = vmatprep.subr.bf16.mxu1 %v24307_v56 }
 0x5bc   :  { %17871 = vmatpush3.bf16.msra.mxu0 %v24981_v4 }
 0x5bd   :  { %18159 = vmatpush3.bf16.msra.mxu1 %v24982_v23  ;;  %17872 = vmatprep.subr.bf16.mxu0 %v24307_v56 }
 0x5be   :  { %18160 = vmatprep.subr.bf16.mxu1 %v24307_v56 }
 0x5c0   :  { %17874 = vmatpush3.bf16.msra.mxu0 %v24983_v18 }
 0x5c1   :  { %18162 = vmatpush3.bf16.msra.mxu1 %v24984_v14  ;;  %17875 = vmatprep.subr.bf16.mxu0 %v24307_v56 }
 0x5c2   :  { %18163 = vmatprep.subr.bf16.mxu1 %v24307_v56 }
 0x5c4   :  { %17877 = vmatpush3.bf16.msra.mxu0 %v24985_v61 }
 0x5c5   :  { %18165 = vmatpush3.bf16.msra.mxu1 %v24986_v34  ;;  %17878 = vmatprep.subr.bf16.mxu0 %v24307_v56 }
 0x5c6   :  { %18166 = vmatprep.subr.bf16.mxu1 %v24307_v56 }
 0x5c8   :  { %17880 = vmatpush3.bf16.msra.mxu0 %v24987_v16 }
 0x5c9   :  { %18168 = vmatpush3.bf16.msra.mxu1 %v24988_v51  ;;  %17881 = vmatprep.subr.bf16.mxu0 %v24307_v56 }
 0x5ca   :  { %18169 = vmatprep.subr.bf16.mxu1 %v24307_v56 }
 0x5cc   :  { %17883 = vmatpush3.bf16.msra.mxu0 %v24989_v59 }
 0x5cd   :  { %18171 = vmatpush3.bf16.msra.mxu1 %v24990_v45  ;;  %17884 = vmatprep.subr.bf16.mxu0 %v24307_v56 }
 0x5ce   :  { %18172 = vmatprep.subr.bf16.mxu1 %v24307_v56 }
 0x5d0   :  { %17886 = vmatpush3.bf16.msra.mxu0 %v23554_v11 }
 0x5d1   :  { %18174 = vmatpush3.bf16.msra.mxu1 %v24993_v17  ;;  %17887 = vmatprep.subr.bf16.mxu0 %v24307_v56 }
 0x5d2   :  { %18175 = vmatprep.subr.bf16.mxu1 %v24307_v56 }
 0x5d3   :  { %15427 = vmatmul.mubr.f32.vlgmr.msra.gmra.mrb[6].mxu0 %v24996_v48 }
 0x5d4   :  { %17889 = vmatpush3.bf16.msra.mxu0 %v17888_v8  ;;  %15847 = vmatmul.mubr.f32.vlgmr.msra.gmra.mrb[6].mxu1 %v24997_v38  ;;  %v18185_v38 = vpack.c.bf16 %v25010_v40, %v25009_v15 }
 0x5d5   :  { %18177 = vmatpush3.bf16.msra.mxu1 %v18176_v50  ;;  %17890 = vmatprep.subr.bf16.mxu0 %v24307_v56  ;;  %v25006_v50 = vld [vmem:[#allocation7_spill] sm:$0xff] }
 0x5d6   :  { %18178 = vmatprep.subr.bf16.mxu1 %v24307_v56  ;;  %15461 = vmatprep.mubr.msk.f32.mxu0 %vm18420_vm0, %v24322_v63 }
 0x5d7   :  { %15881 = vmatprep.mubr.msk.f32.mxu1 %vm18420_vm0, %v24322_v63 }
 0x5d8   :  { %17892 = vmatpush3.bf16.msra.mxu0 %v17891_v57  ;;  %v17900_v57 = vpack.c.bf16 %v25012_v29, %v25011_v26 }
 0x5d9   :  { %18180 = vmatpush3.bf16.msra.mxu1 %v18179_v1  ;;  %17893 = vmatprep.subr.bf16.mxu0 %v24307_v56  ;;  %v18191_v1 = vpack.c.bf16 %v25018_v60, %v25017_v43 }
 0x5da   :  { %v10621_v48 = vpop.permute.xlu1 %10620  ;;  %18181 = vmatprep.subr.bf16.mxu1 %v24307_v56 }
 0x5db   :  { %v10630_v8 = vsel %vm10627_vm1, %v25006_v50, %v10621_v48 }
 0x5dc   :  { %10634 = vst [vmem:[%s23952_s4 + $0x10] sm:$0xff] %v10630_v8  ;;  %17895 = vmatpush3.bf16.msra.mxu0 %v17894_v46 }
 0x5dd   :  { %18183 = vmatpush3.bf16.msra.mxu1 %v18182_v9  ;;  %17896 = vmatprep.subr.bf16.mxu0 %v24307_v56 }
 0x5de   :  { %18184 = vmatprep.subr.bf16.mxu1 %v24307_v56 }
 0x5e0   :  { %17898 = vmatpush3.bf16.msra.mxu0 %v17897_v58 }
 0x5e1   :  { %18186 = vmatpush3.bf16.msra.mxu1 %v18185_v38  ;;  %17899 = vmatprep.subr.bf16.mxu0 %v24307_v56 }
 0x5e2   :  { %18187 = vmatprep.subr.bf16.mxu1 %v24307_v56 }
 0x5e4   :  { %17901 = vmatpush3.bf16.msra.mxu0 %v17900_v57 }
 0x5e5   :  { %18189 = vmatpush3.bf16.msra.mxu1 %v18188_v41  ;;  %17902 = vmatprep.subr.bf16.mxu0 %v24307_v56 }
 0x5e6   :  { %18190 = vmatprep.subr.bf16.mxu1 %v24307_v56 }
 0x5e8   :  { %17904 = vmatpush3.bf16.msra.mxu0 %v17903_v33 }
 0x5e9   :  { %18192 = vmatpush3.bf16.msra.mxu1 %v18191_v1  ;;  %17905 = vmatprep.subr.bf16.mxu0 %v24307_v56 }
 0x5ea   :  { %18193 = vmatprep.subr.bf16.mxu1 %v24307_v56 }
 0x5ec   :  { %17907 = vmatpush3.bf16.msra.mxu0 %v17906_v19 }
 0x5ed   :  { %18195 = vmatpush3.bf16.msra.mxu1 %v18194_v36  ;;  %17908 = vmatprep.subr.bf16.mxu0 %v24307_v56 }
 0x5ee   :  { %18196 = vmatprep.subr.bf16.mxu1 %v24307_v56 }
 0x5f0   :  { %17910 = vmatpush3.bf16.msra.mxu0 %v17909_v22 }
 0x5f1   :  { %18198 = vmatpush3.bf16.msra.mxu1 %v18197_v24  ;;  %17911 = vmatprep.subr.bf16.mxu0 %v24307_v56 }
 0x5f2   :  { %18199 = vmatprep.subr.bf16.mxu1 %v24307_v56 }
 0x5f3   :  { %15462 = vmatmul.mubr.f32.vlgmr.msra.gmra.mrb[6].mxu0 %v23396_v54 }
 0x5f4   :  { %17913 = vmatpush3.bf16.msra.mxu0 %v23278_v13  ;;  %15882 = vmatmul.mubr.f32.vlgmr.msra.gmra.mrb[6].mxu1 %v23401_v62 }
 0x5f5   :  { %18201 = vmatpush3.bf16.msra.mxu1 %v24978_v20  ;;  %17914 = vmatprep.subr.bf16.mxu0 %v24307_v56 }
 0x5f6   :  { %18202 = vmatprep.subr.bf16.mxu1 %v24307_v56  ;;  %15496 = vmatprep.mubr.msk.f32.mxu0 %vm18420_vm0, %v24322_v63 }
 0x5f7   :  { %15916 = vmatprep.mubr.msk.f32.mxu1 %vm18420_vm0, %v24322_v63 }
 0x5f8   :  { %17916 = vmatpush3.bf16.msra.mxu0 %v24979_v10 }
 0x5f9   :  { %18204 = vmatpush3.bf16.msra.mxu1 %v24980_v25  ;;  %17917 = vmatprep.subr.bf16.mxu0 %v24307_v56 }
 0x5fa   :  { %18205 = vmatprep.subr.bf16.mxu1 %v24307_v56 }
 0x5fc   :  { %17919 = vmatpush3.bf16.msra.mxu0 %v24981_v4 }
 0x5fd   :  { %18207 = vmatpush3.bf16.msra.mxu1 %v24982_v23  ;;  %17920 = vmatprep.subr.bf16.mxu0 %v24307_v56 }
 0x5fe   :  { %18208 = vmatprep.subr.bf16.mxu1 %v24307_v56 }
 0x600   :  { %17922 = vmatpush3.bf16.msra.mxu0 %v24983_v18 }
 0x601   :  { %18210 = vmatpush3.bf16.msra.mxu1 %v24984_v14  ;;  %17923 = vmatprep.subr.bf16.mxu0 %v24307_v56 }
 0x602   :  { %18211 = vmatprep.subr.bf16.mxu1 %v24307_v56 }
 0x604   :  { %17925 = vmatpush3.bf16.msra.mxu0 %v24985_v61 }
 0x605   :  { %18213 = vmatpush3.bf16.msra.mxu1 %v24986_v34  ;;  %17926 = vmatprep.subr.bf16.mxu0 %v24307_v56 }
 0x606   :  { %18214 = vmatprep.subr.bf16.mxu1 %v24307_v56 }
 0x608   :  { %17928 = vmatpush3.bf16.msra.mxu0 %v24987_v16 }
 0x609   :  { %18216 = vmatpush3.bf16.msra.mxu1 %v24988_v51  ;;  %17929 = vmatprep.subr.bf16.mxu0 %v24307_v56 }
 0x60a   :  { %18217 = vmatprep.subr.bf16.mxu1 %v24307_v56 }
 0x60c   :  { %17931 = vmatpush3.bf16.msra.mxu0 %v24989_v59 }
 0x60d   :  { %18219 = vmatpush3.bf16.msra.mxu1 %v24990_v45  ;;  %17932 = vmatprep.subr.bf16.mxu0 %v24307_v56 }
 0x60e   :  { %18220 = vmatprep.subr.bf16.mxu1 %v24307_v56 }
 0x610   :  { %17934 = vmatpush3.bf16.msra.mxu0 %v23554_v11 }
 0x611   :  { %18222 = vmatpush3.bf16.msra.mxu1 %v24993_v17 }
 0x613   :  { %15497 = vmatmul.mubr.f32.vlgmr.msra.gmra.mrb[6].mxu0 %v23396_v54 }
 0x614   :  { %15917 = vmatmul.mubr.f32.vlgmr.msra.gmra.mrb[6].mxu1 %v23401_v62 }
 0x6e6   :  { %v9283_v63 = vpop.f32.mrb[6].mxu0 }
 0x6e7   :  { %v10607_v13 = vpop.f32.mrb[6].mxu1  ;;  %v15498_v44 = vpop.f32.mrb[7].mxu0 }
 0x6e8   :  { %10624 = vrot.lane.b32.xlu1 %v10607_v13, %s18422_s21  ;;  %v15918_v3 = vpop.f32.mrb[7].mxu1 }
 0x75a   :  { %v10625_v52 = vpop.permute.xlu1 %10624 }
 0x75b   :  { %v10631_v30 = vsel %vm10627_vm1, %v9283_v63, %v10625_v52 }
 0x75c   :  { %10635 = vst [vmem:[%s23952_s4 + $0x18] sm:$0xff] %v10631_v30 }

</bundles_post_ra>
